<compile_context>
chip_gen: v6e
topology: v6e:2x2x1
jax: 0.10.0
libtpu: 0.0.40
codegen_flags: <defaults>
</compile_context>

<pallas_src>
import functools

import numpy as np
import jax
import jax.numpy as jnp
from jax import lax
from jax.experimental import pallas as pl
from jax.experimental.pallas import tpu as pltpu

BN_EPS = 1e-5
F32 = jnp.float32
BF16 = jnp.bfloat16
_VMEM_LIMIT = 32 * 1024 * 1024


# ---------------------------------------------------------------------------
# Row-shift helper for MaxPool2d(k=2, s=1) on the flattened pixel axis
# ---------------------------------------------------------------------------
def _probe_roll_kernel(o_ref):
    o_ref[...] = pltpu.roll(lax.broadcasted_iota(jnp.float32, (16, 32), 0), 1, 0)


@functools.lru_cache(maxsize=None)
def _row_shift_impl():
    """Returns shift(a, k) with shift(a, k)[r] == a[(r + k) % rows].

    Prefers a sublane pltpu.roll (XLU slot -> no VALU/ld-st relayout copies).
    The shift-sign convention of pltpu.roll is probed once on a tiny kernel so
    the pooling stays correct under either convention; if roll fails to lower
    we fall back to concat-of-slices (the previous, known-good implementation).
    """
    def concat_shift(a, k):
        return jnp.concatenate([a[k:], a[:k]], axis=0)

    try:
        probe = pl.pallas_call(
            _probe_roll_kernel,
            out_shape=jax.ShapeDtypeStruct((16, 32), jnp.float32))()
        first = float(probe[0, 0])
    except Exception:                                   # roll not available
        return concat_shift
    if first == 15.0:     # jnp.roll convention: out[i] = x[i - shift]
        return lambda a, k: pltpu.roll(a, (a.shape[0] - k) % a.shape[0], axis=0)
    if first == 1.0:      # opposite convention: out[i] = x[i + shift]
        return lambda a, k: pltpu.roll(a, k % a.shape[0], axis=0)
    return concat_shift


# ---------------------------------------------------------------------------
# Pallas kernels
# ---------------------------------------------------------------------------
def _block_kernel(p_ref, w_ref, s_ref, t_ref, wp_ref, y_ref, z_ref, *, wo, row_shift):
    """Fused conv block: im2col matmul -> MaxPool(2,1) -> BN(eval) -> ReLU -> proj.

    p_ref : (rows, K*K*Cin) bf16   im2col patches, rows ordered (i, j) per sample
    w_ref : (K*K*Cin, Cout) bf16   conv weight
    s_ref : (1, Cout)       f32    BN scale     (gamma / sqrt(var+eps))
    t_ref : (1, Cout)       f32    BN shift with conv bias folded in
    wp_ref: (Cout, 256)     bf16   this block's slice of the 1x1 classifier weight
    y_ref : (rows, Cout)    bf16   block activation (valid pooled rows meaningful)
    z_ref : (rows, 256)     bf16   y @ wp  (hypercolumn partial, native resolution)
    """
    conv = jnp.dot(p_ref[...], w_ref[...], preferred_element_type=jnp.float32)

    # MaxPool2d(kernel=2, stride=1): the 2x2 neighbours of flattened row r are
    # r+1 (j+1), r+wo (i+1) and r+wo+1.  For every valid pooled row,
    # r + wo + 1 <= ho*wo - 1, so all reads stay within this sample's real rows;
    # only border / pad rows see wrapped values and those are cropped (or never
    # gathered) in the wrapper.  Hierarchical: max over {r, r+1}, then +wo.
    m1 = jnp.maximum(conv, row_shift(conv, 1))
    pooled = jnp.maximum(m1, row_shift(m1, wo))
    y = jnp.maximum(pooled * s_ref[...] + t_ref[...], 0.0)       # BN + ReLU in f32
    y_ref[...] = y.astype(y_ref.dtype)                           # bf16 writeback
    z_ref[...] = jnp.dot(y.astype(BF16), wp_ref[...],
                         preferred_element_type=jnp.float32).astype(z_ref.dtype)


def conv_pool_bn_relu_project(patches, w_mat, bn_scale, bn_shift, w_proj,
                              *, batch, rows, wo):
    """One fused pallas_call per conv block (see _block_kernel).

    `rows` (per-sample, sublane aligned) rows per grid step; samples are
    independent -> 'parallel' grid (shards across the two TensorCores on v7x).
    """
    M, KK = patches.shape
    assert M == batch * rows and rows % 8 == 0, (M, batch, rows)
    cout = w_mat.shape[1]
    nproj = w_proj.shape[1]
    kernel = functools.partial(_block_kernel, wo=wo, row_shift=_row_shift_impl())
    return pl.pallas_call(
        kernel,
        out_shape=(jax.ShapeDtypeStruct((M, cout), BF16),
                   jax.ShapeDtypeStruct((M, nproj), BF16)),
        grid=(batch,),
        in_specs=[
            pl.BlockSpec((rows, KK), lambda b: (b, 0)),
            pl.BlockSpec((KK, cout), lambda b: (0, 0)),
            pl.BlockSpec((1, cout), lambda b: (0, 0)),
            pl.BlockSpec((1, cout), lambda b: (0, 0)),
            pl.BlockSpec((cout, nproj), lambda b: (0, 0)),
        ],
        out_specs=(pl.BlockSpec((rows, cout), lambda b: (b, 0)),
                   pl.BlockSpec((rows, nproj), lambda b: (b, 0))),
        compiler_params=pltpu.CompilerParams(
            dimension_semantics=("parallel",),
            vmem_limit_bytes=_VMEM_LIMIT),
    )(patches, w_mat, bn_scale, bn_shift, w_proj)


def _final_kernel(x_ref, z_ref, w1_ref, s_ref, t_ref, w2_ref, b2_ref, o_ref):
    """Per-pixel head: relu(s1*(x @ W1_x + z_sum) + t1) @ W2_pad + b2_pad."""
    pre = jnp.dot(x_ref[...], w1_ref[...], preferred_element_type=jnp.float32)
    pre = pre + z_ref[...]                      # bf16 z_sum promotes to f32
    h = jnp.maximum(pre * s_ref[...] + t_ref[...], 0.0)
    o_ref[...] = (jnp.dot(h.astype(BF16), w2_ref[...],
                          preferred_element_type=jnp.float32) + b2_ref[...])


def final_classifier(x_flat, z_sum, p, *, tm=1024):
    """Fused 1x1-conv -> BN -> ReLU -> 1x1-conv head, tiled over pixel rows.

    tm=1024 (was 256): fewer/larger steps for this DMA/overhead-bound kernel;
    at M=2048 that is grid=(2,) == one step per TensorCore on v7x.
    """
    M, cin = x_flat.shape
    nh = p["w1x"].shape[1]            # 256
    ncp = p["w2p"].shape[1]           # 128 (lane-dense padded class dim)
    m_pad = pl.cdiv(M, tm) * tm
    if m_pad != M:
        pad = ((0, m_pad - M), (0, 0))
        x_flat = jnp.pad(x_flat, pad)
        z_sum = jnp.pad(z_sum, pad)

    out = pl.pallas_call(
        _final_kernel,
        out_shape=jax.ShapeDtypeStruct((m_pad, ncp), F32),
        grid=(m_pad // tm,),
        in_specs=[
            pl.BlockSpec((tm, cin), lambda i: (i, 0)),
            pl.BlockSpec((tm, nh), lambda i: (i, 0)),
            pl.BlockSpec((cin, nh), lambda i: (0, 0)),
            pl.BlockSpec((1, nh), lambda i: (0, 0)),
            pl.BlockSpec((1, nh), lambda i: (0, 0)),
            pl.BlockSpec((nh, ncp), lambda i: (0, 0)),
            pl.BlockSpec((1, ncp), lambda i: (0, 0)),
        ],
        out_specs=pl.BlockSpec((tm, ncp), lambda i: (i, 0)),
        compiler_params=pltpu.CompilerParams(
            dimension_semantics=("parallel",),
            vmem_limit_bytes=_VMEM_LIMIT),
    )(x_flat, z_sum, p["w1x"], p["s1"], p["t1"], p["w2p"], p["b2p"])
    return out[:M]


# ---------------------------------------------------------------------------
# JAX glue (reshapes / strided slices / gathers only)
# ---------------------------------------------------------------------------
def im2col(x, K, stride, pad):
    """x: (B,H,W,C) bf16 -> bf16 patches (B*Ho*Wo, K*K*C), layout (kh, kw, cin)."""
    B, H, W, C = x.shape
    xp = jnp.pad(x, ((0, 0), (pad, pad), (pad, pad), (0, 0)))
    Ho = (H + 2 * pad - K) // stride + 1
    Wo = (W + 2 * pad - K) // stride + 1
    cols = []
    for kh in range(K):
        for kw in range(K):
            cols.append(
                xp[:, kh:kh + stride * Ho:stride, kw:kw + stride * Wo:stride, :])
    patches = jnp.stack(cols, axis=3)                  # (B, Ho, Wo, K*K, C)
    return patches.reshape(B * Ho * Wo, K * K * C).astype(BF16), Ho, Wo


def _nearest_rows(batch, hs, ws, H, W, row_stride):
    """Flat row indices implementing nn.Upsample(size=(H,W), mode='nearest') of a
    block's valid (hs-1, ws-1) pooled region, stored with `row_stride` rows per
    sample (>= hs*ws; pad rows are never touched).  src = floor(dst * in / out)."""
    hv, wv = hs - 1, ws - 1
    iy = (jnp.arange(H) * hv) // H
    ix = (jnp.arange(W) * wv) // W
    base = jnp.arange(batch)[:, None, None] * row_stride
    return (base + iy[None, :, None] * ws + ix[None, None, :]).reshape(-1)


# ---------------------------------------------------------------------------
# Forward pass
# ---------------------------------------------------------------------------
def hypercolumn_forward(x_nchw, params, *, num_classes=7):
    # NCHW -> NHWC, bf16 once: the whole im2col / matmul chain is bf16 operands
    # with f32 MXU accumulation (elementwise pool/BN/ReLU math stays f32).
    x = jnp.transpose(x_nchw, (0, 2, 3, 1)).astype(BF16)
    B, H, W, cin = x.shape

    def block(inp, p, k, stride, pad):
        patches, ho, wo = im2col(inp, k, stride, pad)
        rows = ho * wo
        rows_pad = ((rows + 15) // 16) * 16        # bf16 sublane-tile aligned
        if rows_pad != rows:                       # e.g. block4: 9 -> 16 rows
            patches = jnp.pad(patches.reshape(B, rows, -1),
                              ((0, 0), (0, rows_pad - rows), (0, 0))
                              ).reshape(B * rows_pad, -1)
        y_flat, z_flat = conv_pool_bn_relu_project(
            patches, p["w_mat"], p["bn_scale"], p["bn_shift"], p["w_proj"],
            batch=B, rows=rows_pad, wo=wo)
        # crop pad rows + the valid MaxPool(2,1) region for the next block input
        y = (y_flat.reshape(B, rows_pad, -1)[:, :rows]
             .reshape(B, ho, wo, -1)[:, :ho - 1, :wo - 1, :])
        return y, z_flat, ho, wo, rows_pad

    y1, z1, h1, w1, r1 = block(x,  params["block1"], 5, 2, 2)
    y2, z2, h2, w2, r2 = block(y1, params["block2"], 5, 2, 2)
    y3, z3, h3, w3, r3 = block(y2, params["block3"], 5, 2, 2)
    _,  z4, h4, w4, r4 = block(y3, params["block4"], 3, 1, 1)

    # Nearest-upsample each block's 256-channel classifier partial to (H, W)
    # with one flat-row bf16 gather per scale and sum them (linearity of the
    # first 1x1 conv) -- replaces the 492-channel concat + big matmul.
    z_sum = (z1[_nearest_rows(B, h1, w1, H, W, r1)]
             + z2[_nearest_rows(B, h2, w2, H, W, r2)]
             + z3[_nearest_rows(B, h3, w3, H, W, r3)]
             + z4[_nearest_rows(B, h4, w4, H, W, r4)])

    x_flat = x.reshape(B * H * W, cin)
    out = final_classifier(x_flat, z_sum, params["final"])       # (B*H*W, 128) f32
    out = out.reshape(B, H, W, -1)
    out = jnp.transpose(out, (0, 3, 1, 2))                       # lane-dense transpose
    return out[:, :num_classes]                                  # drop class padding


# ---------------------------------------------------------------------------
# Deterministic parameter initialization (synthetic, shapes from __init__)
# ---------------------------------------------------------------------------
def init_params(key, input_channels=12, num_classes=7):
    ks = jax.random.split(key, 12)

    def bn_stats(kb, c):
        gamma = 1.0 + 0.1 * jax.random.normal(jax.random.fold_in(kb, 0), (c,), F32)
        beta = 0.1 * jax.random.normal(jax.random.fold_in(kb, 1), (c,), F32)
        mean = 0.1 * jax.random.normal(jax.random.fold_in(kb, 2), (c,), F32)
        var = 1.0 + 0.1 * jax.random.uniform(jax.random.fold_in(kb, 3), (c,), F32)
        return gamma, beta, mean, var

    def make_block(kc, kb, cin, cout, ksz):
        w = jax.random.normal(kc, (cout, cin, ksz, ksz), F32) / np.sqrt(cin * ksz * ksz)
        b = 0.01 * jax.random.normal(jax.random.fold_in(kc, 1), (cout,), F32)
        gamma, beta, mean, var = bn_stats(kb, cout)
        scale = gamma / jnp.sqrt(var + BN_EPS)
        # conv bias commutes with MaxPool -> fold it into the BN shift
        shift = (b - mean) * scale + beta
        w_hwio = jnp.transpose(w, (2, 3, 1, 0))                   # (Kh, Kw, Cin, Cout)
        kparams = dict(
            w_mat=w_hwio.reshape(ksz * ksz * cin, cout).astype(BF16),
            bn_scale=scale.reshape(1, cout),
            bn_shift=shift.reshape(1, cout))
        ref = dict(w=w_hwio, b=b, gamma=gamma, beta=beta, mean=mean, var=var)
        return kparams, ref

    cfg = [(input_channels, 32, 5), (32, 64, 5), (64, 128, 5), (128, 256, 3)]
    kparams, refparams = {}, {}
    for n, (cin, cout, ksz) in enumerate(cfg, start=1):
        kp, rp = make_block(ks[2 * n - 2], ks[2 * n - 1], cin, cout, ksz)
        kparams[f"block{n}"] = kp
        refparams[f"block{n}"] = rp

    c_hyp = input_channels + 32 + 64 + 128 + 256                  # 492
    w1 = jax.random.normal(ks[8], (256, c_hyp), F32) / np.sqrt(c_hyp)
    b1 = 0.01 * jax.random.normal(jax.random.fold_in(ks[8], 1), (256,), F32)
    gamma1, beta1, mean1, var1 = bn_stats(ks[9], 256)
    s1 = gamma1 / jnp.sqrt(var1 + BN_EPS)
    t1 = (b1 - mean1) * s1 + beta1                                # conv bias folded in
    w2 = jax.random.normal(ks[10], (num_classes, 256), F32) / np.sqrt(256)
    b2 = 0.01 * jax.random.normal(ks[11], (num_classes,), F32)

    # split W1 by hypercolumn source (concat order: x, x1, x2, x3, x4)
    w1_in = jnp.transpose(w1, (1, 0))                             # (492, 256)
    splits = list(np.cumsum([input_channels, 32, 64, 128]))
    w1x, w1b1, w1b2, w1b3, w1b4 = jnp.split(w1_in, splits, axis=0)
    kparams["block1"]["w_proj"] = w1b1.astype(BF16)
    kparams["block2"]["w_proj"] = w1b2.astype(BF16)
    kparams["block3"]["w_proj"] = w1b3.astype(BF16)
    kparams["block4"]["w_proj"] = w1b4.astype(BF16)

    ncp = 128                                                     # lane-dense class dim
    w2p = jnp.zeros((256, ncp), F32).at[:, :num_classes].set(jnp.transpose(w2, (1, 0)))
    b2p = jnp.zeros((ncp,), F32).at[:num_classes].set(b2)
    kparams["final"] = dict(w1x=w1x.astype(BF16),
                            s1=s1.reshape(1, 256), t1=t1.reshape(1, 256),
                            w2p=w2p.astype(BF16), b2p=b2p.reshape(1, ncp))
    refparams["final"] = dict(w1=w1_in, b1=b1, gamma=gamma1, beta=beta1,
                              mean=mean1, var=var1,
                              w2=jnp.transpose(w2, (1, 0)), b2=b2)
    return kparams, refparams


# ---------------------------------------------------------------------------
# Pure-JAX f32 reference (mirrors the PyTorch module directly; used as a check)
# ---------------------------------------------------------------------------
def reference_forward(x_nchw, ref):
    x = jnp.transpose(x_nchw, (0, 2, 3, 1)).astype(F32)
    _, H, W, _ = x.shape

    def bn(y, p):
        return (y - p["mean"]) * p["gamma"] / jnp.sqrt(p["var"] + BN_EPS) + p["beta"]

    def block(inp, p, stride, pad):
        y = lax.conv_general_dilated(
            inp, p["w"], window_strides=(stride, stride),
            padding=((pad, pad), (pad, pad)),
            dimension_numbers=("NHWC", "HWIO", "NHWC")) + p["b"]
        y = jnp.maximum(jnp.maximum(y[:, :-1, :-1], y[:, 1:, :-1]),
                        jnp.maximum(y[:, :-1, 1:], y[:, 1:, 1:]))  # MaxPool(2, 1)
        return jnp.maximum(bn(y, p), 0.0)

    x1 = block(x, ref["block1"], 2, 2)
    x2 = block(x1, ref["block2"], 2, 2)
    x3 = block(x2, ref["block3"], 2, 2)
    x4 = block(x3, ref["block4"], 1, 1)

    def up(f):
        _, h, w, _ = f.shape
        rows = (jnp.arange(H) * h) // H
        cols = (jnp.arange(W) * w) // W
        return f[:, rows[:, None], cols[None, :], :]

    hyper = jnp.concatenate([x, up(x1), up(x2), up(x3), up(x4)], axis=-1)
    fin = ref["final"]
    z = jnp.einsum("bhwc,cf->bhwf", hyper, fin["w1"]) + fin["b1"]
    z = (z - fin["mean"]) * fin["gamma"] / jnp.sqrt(fin["var"] + BN_EPS) + fin["beta"]
    z = jnp.maximum(z, 0.0)
    out = jnp.einsum("bhwc,cf->bhwf", z, fin["w2"]) + fin["b2"]
    return jnp.transpose(out, (0, 3, 1, 2))


# ---------------------------------------------------------------------------
if __name__ == "__main__":
    key = jax.random.PRNGKey(0)
    kp, kx = jax.random.split(key)

    input_channels, num_classes = 12, 7
    B, H, W = 2, 32, 32            # 32x32 is the smallest spatial size for which
                                   # block4's MaxPool(2,1) is non-empty (as in PyTorch)
    params, ref = init_params(kp, input_channels, num_classes)
    x = jax.random.normal(kx, (B, input_channels, H, W), F32)

    _row_shift_impl()              # probe pltpu.roll's shift convention once, outside jit

    fwd = jax.jit(functools.partial(hypercolumn_forward, num_classes=num_classes))
    out = jax.block_until_ready(fwd(x, params))

    assert out.shape == (B, num_classes, H, W), out.shape
    assert out.dtype == jnp.float32
    assert bool(jnp.all(jnp.isfinite(out)))

    # numerical check against the straightforward f32 re-implementation
    # (bf16 MXU operands / bf16 z partials -> small deviations, f32 accumulation
    # keeps them well below this bound; a wrong pooling/gather would blow it)
    expected = jax.jit(reference_forward)(x, ref)
    max_err = float(jnp.max(jnp.abs(out - expected)))
    assert max_err < 0.4, f"max abs error {max_err}"

    print("KERNEL_OK")
</pallas_src>

<mosaic_0001>
module attributes {stable_mosaic.version = 11 : i64} {
  func.func @_block_kernel(%arg0: i32, %arg1: memref<256x300xbf16, #tpu.memory_space<vmem>>, %arg2: memref<300x32xbf16, #tpu.memory_space<vmem>>, %arg3: memref<1x32xf32, #tpu.memory_space<vmem>>, %arg4: memref<1x32xf32, #tpu.memory_space<vmem>>, %arg5: memref<32x256xbf16, #tpu.memory_space<vmem>>, %arg6: memref<256x32xbf16, #tpu.memory_space<vmem>>, %arg7: memref<256x256xbf16, #tpu.memory_space<vmem>>) attributes {dimension_semantics = [#tpu.dimension_semantics<parallel>], iteration_bounds = array<i64: 2>, scalar_prefetch = 0 : i64, scratch_operands = 0 : i64, tpu.core_type = #tpu.core_type<tc>, window_params = [{transform_indices = @transform_0, window_bounds = array<i64: 256, 300>}, {pipeline_mode = #tpu.pipeline_mode<synchronous>, transform_indices = @transform_1, window_bounds = array<i64: 300, 32>}, {pipeline_mode = #tpu.pipeline_mode<synchronous>, transform_indices = @transform_2, window_bounds = array<i64: 1, 32>}, {pipeline_mode = #tpu.pipeline_mode<synchronous>, transform_indices = @transform_3, window_bounds = array<i64: 1, 32>}, {pipeline_mode = #tpu.pipeline_mode<synchronous>, transform_indices = @transform_4, window_bounds = array<i64: 32, 256>}, {transform_indices = @transform_5, window_bounds = array<i64: 256, 32>}, {transform_indices = @transform_6, window_bounds = array<i64: 256, 256>}]} {
    %c0 = arith.constant 0 : index
    %c0_0 = arith.constant 0 : index
    %0 = vector.load %arg1[%c0, %c0_0] : memref<256x300xbf16, #tpu.memory_space<vmem>>, vector<256x300xbf16>
    %c0_1 = arith.constant 0 : index
    %c0_2 = arith.constant 0 : index
    %1 = vector.load %arg2[%c0_1, %c0_2] : memref<300x32xbf16, #tpu.memory_space<vmem>>, vector<300x32xbf16>
    %cst = arith.constant dense<0.000000e+00> : vector<256x32xf32>
    %2 = tpu.matmul %0, %1, %cst {dimension_numbers = #tpu.dot_dimension_numbers<[1], [0], [0], [1], [0, 0, 1, 1], [], []>} : vector<256x300xbf16>, vector<300x32xbf16>, vector<256x32xf32> -> vector<256x32xf32>
    %3 = vector.extract_strided_slice %2 {offsets = [1, 0], sizes = [255, 32], strides = [1, 1]} : vector<256x32xf32> to vector<255x32xf32>
    %4 = vector.extract_strided_slice %2 {offsets = [0, 0], sizes = [1, 32], strides = [1, 1]} : vector<256x32xf32> to vector<1x32xf32>
    %5 = tpu.concatenate %3, %4 in 0 : vector<255x32xf32>, vector<1x32xf32> -> vector<256x32xf32>
    %6 = arith.maximumf %2, %5 : vector<256x32xf32>
    %7 = vector.extract_strided_slice %6 {offsets = [16, 0], sizes = [240, 32], strides = [1, 1]} : vector<256x32xf32> to vector<240x32xf32>
    %8 = vector.extract_strided_slice %6 {offsets = [0, 0], sizes = [16, 32], strides = [1, 1]} : vector<256x32xf32> to vector<16x32xf32>
    %9 = tpu.concatenate %7, %8 in 0 : vector<240x32xf32>, vector<16x32xf32> -> vector<256x32xf32>
    %10 = arith.maximumf %6, %9 : vector<256x32xf32>
    %c0_3 = arith.constant 0 : index
    %c0_4 = arith.constant 0 : index
    %11 = vector.load %arg3[%c0_3, %c0_4] : memref<1x32xf32, #tpu.memory_space<vmem>>, vector<1x32xf32>
    %12 = vector.broadcast %11 : vector<1x32xf32> to vector<256x32xf32>
    %13 = arith.mulf %10, %12 : vector<256x32xf32>
    %c0_5 = arith.constant 0 : index
    %c0_6 = arith.constant 0 : index
    %14 = vector.load %arg4[%c0_5, %c0_6] : memref<1x32xf32, #tpu.memory_space<vmem>>, vector<1x32xf32>
    %15 = vector.broadcast %14 : vector<1x32xf32> to vector<256x32xf32>
    %16 = arith.addf %13, %15 : vector<256x32xf32>
    %cst_7 = arith.constant 0.000000e+00 : f32
    %17 = vector.broadcast %cst_7 : f32 to vector<256x32xf32>
    %18 = arith.maximumf %16, %17 : vector<256x32xf32>
    %19 = arith.truncf %18 : vector<256x32xf32> to vector<256x32xbf16>
    %c0_8 = arith.constant 0 : index
    %c0_9 = arith.constant 0 : index
    %20 = vector.load %arg6[%c0_8, %c0_9] : memref<256x32xbf16, #tpu.memory_space<vmem>>, vector<256x32xbf16>
    tpu.vector_store %arg6[%c0_8, %c0_9], %19 {strides = array<i32>} : memref<256x32xbf16, #tpu.memory_space<vmem>>, vector<256x32xbf16>,
    %21 = arith.truncf %18 : vector<256x32xf32> to vector<256x32xbf16>
    %c0_10 = arith.constant 0 : index
    %c0_11 = arith.constant 0 : index
    %22 = vector.load %arg5[%c0_10, %c0_11] : memref<32x256xbf16, #tpu.memory_space<vmem>>, vector<32x256xbf16>
    %cst_12 = arith.constant dense<0.000000e+00> : vector<256x256xf32>
    %23 = tpu.matmul %21, %22, %cst_12 {dimension_numbers = #tpu.dot_dimension_numbers<[1], [0], [0], [1], [0, 0, 1, 1], [], []>} : vector<256x32xbf16>, vector<32x256xbf16>, vector<256x256xf32> -> vector<256x256xf32>
    %24 = arith.truncf %23 : vector<256x256xf32> to vector<256x256xbf16>
    %c0_13 = arith.constant 0 : index
    %c0_14 = arith.constant 0 : index
    %25 = vector.load %arg7[%c0_13, %c0_14] : memref<256x256xbf16, #tpu.memory_space<vmem>>, vector<256x256xbf16>
    tpu.vector_store %arg7[%c0_13, %c0_14], %24 {strides = array<i32>} : memref<256x256xbf16, #tpu.memory_space<vmem>>, vector<256x256xbf16>,
    return
  }
  func.func @transform_0(%arg0: i32) -> (i32, i32) {
    %c0_i32 = arith.constant 0 : i32
    %c0_i32_0 = arith.constant 0 : i32
    return %arg0, %c0_i32 : i32, i32
  }
  func.func @transform_1(%arg0: i32) -> (i32, i32) {
    %c0_i32 = arith.constant 0 : i32
    %c0_i32_0 = arith.constant 0 : i32
    %c0_i32_1 = arith.constant 0 : i32
    return %c0_i32, %c0_i32_0 : i32, i32
  }
  func.func @transform_2(%arg0: i32) -> (i32, i32) {
    %c0_i32 = arith.constant 0 : i32
    %c0_i32_0 = arith.constant 0 : i32
    %c0_i32_1 = arith.constant 0 : i32
    return %c0_i32, %c0_i32_0 : i32, i32
  }
  func.func @transform_3(%arg0: i32) -> (i32, i32) {
    %c0_i32 = arith.constant 0 : i32
    %c0_i32_0 = arith.constant 0 : i32
    %c0_i32_1 = arith.constant 0 : i32
    return %c0_i32, %c0_i32_0 : i32, i32
  }
  func.func @transform_4(%arg0: i32) -> (i32, i32) {
    %c0_i32 = arith.constant 0 : i32
    %c0_i32_0 = arith.constant 0 : i32
    %c0_i32_1 = arith.constant 0 : i32
    return %c0_i32, %c0_i32_0 : i32, i32
  }
  func.func @transform_5(%arg0: i32) -> (i32, i32) {
    %c0_i32 = arith.constant 0 : i32
    %c0_i32_0 = arith.constant 0 : i32
    return %arg0, %c0_i32 : i32, i32
  }
  func.func @transform_6(%arg0: i32) -> (i32, i32) {
    %c0_i32 = arith.constant 0 : i32
    %c0_i32_0 = arith.constant 0 : i32
    return %arg0, %c0_i32 : i32, i32
  }
}

module attributes {stable_mosaic.version = 11 : i64} {
  func.func @_block_kernel(%arg0: i32, %arg1: memref<64x800xbf16, #tpu.memory_space<vmem>>, %arg2: memref<800x64xbf16, #tpu.memory_space<vmem>>, %arg3: memref<1x64xf32, #tpu.memory_space<vmem>>, %arg4: memref<1x64xf32, #tpu.memory_space<vmem>>, %arg5: memref<64x256xbf16, #tpu.memory_space<vmem>>, %arg6: memref<64x64xbf16, #tpu.memory_space<vmem>>, %arg7: memref<64x256xbf16, #tpu.memory_space<vmem>>) attributes {dimension_semantics = [#tpu.dimension_semantics<parallel>], iteration_bounds = array<i64: 2>, scalar_prefetch = 0 : i64, scratch_operands = 0 : i64, tpu.core_type = #tpu.core_type<tc>, window_params = [{transform_indices = @transform_0, window_bounds = array<i64: 64, 800>}, {pipeline_mode = #tpu.pipeline_mode<synchronous>, transform_indices = @transform_1, window_bounds = array<i64: 800, 64>}, {pipeline_mode = #tpu.pipeline_mode<synchronous>, transform_indices = @transform_2, window_bounds = array<i64: 1, 64>}, {pipeline_mode = #tpu.pipeline_mode<synchronous>, transform_indices = @transform_3, window_bounds = array<i64: 1, 64>}, {pipeline_mode = #tpu.pipeline_mode<synchronous>, transform_indices = @transform_4, window_bounds = array<i64: 64, 256>}, {transform_indices = @transform_5, window_bounds = array<i64: 64, 64>}, {transform_indices = @transform_6, window_bounds = array<i64: 64, 256>}]} {
    %c0 = arith.constant 0 : index
    %c0_0 = arith.constant 0 : index
    %0 = vector.load %arg1[%c0, %c0_0] : memref<64x800xbf16, #tpu.memory_space<vmem>>, vector<64x800xbf16>
    %c0_1 = arith.constant 0 : index
    %c0_2 = arith.constant 0 : index
    %1 = vector.load %arg2[%c0_1, %c0_2] : memref<800x64xbf16, #tpu.memory_space<vmem>>, vector<800x64xbf16>
    %cst = arith.constant dense<0.000000e+00> : vector<64x64xf32>
    %2 = tpu.matmul %0, %1, %cst {dimension_numbers = #tpu.dot_dimension_numbers<[1], [0], [0], [1], [0, 0, 1, 1], [], []>} : vector<64x800xbf16>, vector<800x64xbf16>, vector<64x64xf32> -> vector<64x64xf32>
    %3 = vector.extract_strided_slice %2 {offsets = [1, 0], sizes = [63, 64], strides = [1, 1]} : vector<64x64xf32> to vector<63x64xf32>
    %4 = vector.extract_strided_slice %2 {offsets = [0, 0], sizes = [1, 64], strides = [1, 1]} : vector<64x64xf32> to vector<1x64xf32>
    %5 = tpu.concatenate %3, %4 in 0 : vector<63x64xf32>, vector<1x64xf32> -> vector<64x64xf32>
    %6 = arith.maximumf %2, %5 : vector<64x64xf32>
    %7 = vector.extract_strided_slice %6 {offsets = [8, 0], sizes = [56, 64], strides = [1, 1]} : vector<64x64xf32> to vector<56x64xf32>
    %8 = vector.extract_strided_slice %6 {offsets = [0, 0], sizes = [8, 64], strides = [1, 1]} : vector<64x64xf32> to vector<8x64xf32>
    %9 = tpu.concatenate %7, %8 in 0 : vector<56x64xf32>, vector<8x64xf32> -> vector<64x64xf32>
    %10 = arith.maximumf %6, %9 : vector<64x64xf32>
    %c0_3 = arith.constant 0 : index
    %c0_4 = arith.constant 0 : index
    %11 = vector.load %arg3[%c0_3, %c0_4] : memref<1x64xf32, #tpu.memory_space<vmem>>, vector<1x64xf32>
    %12 = vector.broadcast %11 : vector<1x64xf32> to vector<64x64xf32>
    %13 = arith.mulf %10, %12 : vector<64x64xf32>
    %c0_5 = arith.constant 0 : index
    %c0_6 = arith.constant 0 : index
    %14 = vector.load %arg4[%c0_5, %c0_6] : memref<1x64xf32, #tpu.memory_space<vmem>>, vector<1x64xf32>
    %15 = vector.broadcast %14 : vector<1x64xf32> to vector<64x64xf32>
    %16 = arith.addf %13, %15 : vector<64x64xf32>
    %cst_7 = arith.constant 0.000000e+00 : f32
    %17 = vector.broadcast %cst_7 : f32 to vector<64x64xf32>
    %18 = arith.maximumf %16, %17 : vector<64x64xf32>
    %19 = arith.truncf %18 : vector<64x64xf32> to vector<64x64xbf16>
    %c0_8 = arith.constant 0 : index
    %c0_9 = arith.constant 0 : index
    %20 = vector.load %arg6[%c0_8, %c0_9] : memref<64x64xbf16, #tpu.memory_space<vmem>>, vector<64x64xbf16>
    tpu.vector_store %arg6[%c0_8, %c0_9], %19 {strides = array<i32>} : memref<64x64xbf16, #tpu.memory_space<vmem>>, vector<64x64xbf16>,
    %21 = arith.truncf %18 : vector<64x64xf32> to vector<64x64xbf16>
    %c0_10 = arith.constant 0 : index
    %c0_11 = arith.constant 0 : index
    %22 = vector.load %arg5[%c0_10, %c0_11] : memref<64x256xbf16, #tpu.memory_space<vmem>>, vector<64x256xbf16>
    %cst_12 = arith.constant dense<0.000000e+00> : vector<64x256xf32>
    %23 = tpu.matmul %21, %22, %cst_12 {dimension_numbers = #tpu.dot_dimension_numbers<[1], [0], [0], [1], [0, 0, 1, 1], [], []>} : vector<64x64xbf16>, vector<64x256xbf16>, vector<64x256xf32> -> vector<64x256xf32>
    %24 = arith.truncf %23 : vector<64x256xf32> to vector<64x256xbf16>
    %c0_13 = arith.constant 0 : index
    %c0_14 = arith.constant 0 : index
    %25 = vector.load %arg7[%c0_13, %c0_14] : memref<64x256xbf16, #tpu.memory_space<vmem>>, vector<64x256xbf16>
    tpu.vector_store %arg7[%c0_13, %c0_14], %24 {strides = array<i32>} : memref<64x256xbf16, #tpu.memory_space<vmem>>, vector<64x256xbf16>,
    return
  }
  func.func @transform_0(%arg0: i32) -> (i32, i32) {
    %c0_i32 = arith.constant 0 : i32
    %c0_i32_0 = arith.constant 0 : i32
    return %arg0, %c0_i32 : i32, i32
  }
  func.func @transform_1(%arg0: i32) -> (i32, i32) {
    %c0_i32 = arith.constant 0 : i32
    %c0_i32_0 = arith.constant 0 : i32
    %c0_i32_1 = arith.constant 0 : i32
    return %c0_i32, %c0_i32_0 : i32, i32
  }
  func.func @transform_2(%arg0: i32) -> (i32, i32) {
    %c0_i32 = arith.constant 0 : i32
    %c0_i32_0 = arith.constant 0 : i32
    %c0_i32_1 = arith.constant 0 : i32
    return %c0_i32, %c0_i32_0 : i32, i32
  }
  func.func @transform_3(%arg0: i32) -> (i32, i32) {
    %c0_i32 = arith.constant 0 : i32
    %c0_i32_0 = arith.constant 0 : i32
    %c0_i32_1 = arith.constant 0 : i32
    return %c0_i32, %c0_i32_0 : i32, i32
  }
  func.func @transform_4(%arg0: i32) -> (i32, i32) {
    %c0_i32 = arith.constant 0 : i32
    %c0_i32_0 = arith.constant 0 : i32
    %c0_i32_1 = arith.constant 0 : i32
    return %c0_i32, %c0_i32_0 : i32, i32
  }
  func.func @transform_5(%arg0: i32) -> (i32, i32) {
    %c0_i32 = arith.constant 0 : i32
    %c0_i32_0 = arith.constant 0 : i32
    return %arg0, %c0_i32 : i32, i32
  }
  func.func @transform_6(%arg0: i32) -> (i32, i32) {
    %c0_i32 = arith.constant 0 : i32
    %c0_i32_0 = arith.constant 0 : i32
    return %arg0, %c0_i32 : i32, i32
  }
}

module attributes {stable_mosaic.version = 11 : i64} {
  func.func @_block_kernel(%arg0: i32, %arg1: memref<16x1600xbf16, #tpu.memory_space<vmem>>, %arg2: memref<1600x128xbf16, #tpu.memory_space<vmem>>, %arg3: memref<1x128xf32, #tpu.memory_space<vmem>>, %arg4: memref<1x128xf32, #tpu.memory_space<vmem>>, %arg5: memref<128x256xbf16, #tpu.memory_space<vmem>>, %arg6: memref<16x128xbf16, #tpu.memory_space<vmem>>, %arg7: memref<16x256xbf16, #tpu.memory_space<vmem>>) attributes {dimension_semantics = [#tpu.dimension_semantics<parallel>], iteration_bounds = array<i64: 2>, scalar_prefetch = 0 : i64, scratch_operands = 0 : i64, tpu.core_type = #tpu.core_type<tc>, window_params = [{transform_indices = @transform_0, window_bounds = array<i64: 16, 1600>}, {pipeline_mode = #tpu.pipeline_mode<synchronous>, transform_indices = @transform_1, window_bounds = array<i64: 1600, 128>}, {pipeline_mode = #tpu.pipeline_mode<synchronous>, transform_indices = @transform_2, window_bounds = array<i64: 1, 128>}, {pipeline_mode = #tpu.pipeline_mode<synchronous>, transform_indices = @transform_3, window_bounds = array<i64: 1, 128>}, {pipeline_mode = #tpu.pipeline_mode<synchronous>, transform_indices = @transform_4, window_bounds = array<i64: 128, 256>}, {transform_indices = @transform_5, window_bounds = array<i64: 16, 128>}, {transform_indices = @transform_6, window_bounds = array<i64: 16, 256>}]} {
    %c0 = arith.constant 0 : index
    %c0_0 = arith.constant 0 : index
    %0 = vector.load %arg1[%c0, %c0_0] : memref<16x1600xbf16, #tpu.memory_space<vmem>>, vector<16x1600xbf16>
    %c0_1 = arith.constant 0 : index
    %c0_2 = arith.constant 0 : index
    %1 = vector.load %arg2[%c0_1, %c0_2] : memref<1600x128xbf16, #tpu.memory_space<vmem>>, vector<1600x128xbf16>
    %cst = arith.constant dense<0.000000e+00> : vector<16x128xf32>
    %2 = tpu.matmul %0, %1, %cst {dimension_numbers = #tpu.dot_dimension_numbers<[1], [0], [0], [1], [0, 0, 1, 1], [], []>} : vector<16x1600xbf16>, vector<1600x128xbf16>, vector<16x128xf32> -> vector<16x128xf32>
    %3 = vector.extract_strided_slice %2 {offsets = [1, 0], sizes = [15, 128], strides = [1, 1]} : vector<16x128xf32> to vector<15x128xf32>
    %4 = vector.extract_strided_slice %2 {offsets = [0, 0], sizes = [1, 128], strides = [1, 1]} : vector<16x128xf32> to vector<1x128xf32>
    %5 = tpu.concatenate %3, %4 in 0 : vector<15x128xf32>, vector<1x128xf32> -> vector<16x128xf32>
    %6 = arith.maximumf %2, %5 : vector<16x128xf32>
    %7 = vector.extract_strided_slice %6 {offsets = [4, 0], sizes = [12, 128], strides = [1, 1]} : vector<16x128xf32> to vector<12x128xf32>
    %8 = vector.extract_strided_slice %6 {offsets = [0, 0], sizes = [4, 128], strides = [1, 1]} : vector<16x128xf32> to vector<4x128xf32>
    %9 = tpu.concatenate %7, %8 in 0 : vector<12x128xf32>, vector<4x128xf32> -> vector<16x128xf32>
    %10 = arith.maximumf %6, %9 : vector<16x128xf32>
    %c0_3 = arith.constant 0 : index
    %c0_4 = arith.constant 0 : index
    %11 = vector.load %arg3[%c0_3, %c0_4] : memref<1x128xf32, #tpu.memory_space<vmem>>, vector<1x128xf32>
    %12 = vector.broadcast %11 : vector<1x128xf32> to vector<16x128xf32>
    %13 = arith.mulf %10, %12 : vector<16x128xf32>
    %c0_5 = arith.constant 0 : index
    %c0_6 = arith.constant 0 : index
    %14 = vector.load %arg4[%c0_5, %c0_6] : memref<1x128xf32, #tpu.memory_space<vmem>>, vector<1x128xf32>
    %15 = vector.broadcast %14 : vector<1x128xf32> to vector<16x128xf32>
    %16 = arith.addf %13, %15 : vector<16x128xf32>
    %cst_7 = arith.constant 0.000000e+00 : f32
    %17 = vector.broadcast %cst_7 : f32 to vector<16x128xf32>
    %18 = arith.maximumf %16, %17 : vector<16x128xf32>
    %19 = arith.truncf %18 : vector<16x128xf32> to vector<16x128xbf16>
    %c0_8 = arith.constant 0 : index
    %c0_9 = arith.constant 0 : index
    %20 = vector.load %arg6[%c0_8, %c0_9] : memref<16x128xbf16, #tpu.memory_space<vmem>>, vector<16x128xbf16>
    tpu.vector_store %arg6[%c0_8, %c0_9], %19 {strides = array<i32>} : memref<16x128xbf16, #tpu.memory_space<vmem>>, vector<16x128xbf16>,
    %21 = arith.truncf %18 : vector<16x128xf32> to vector<16x128xbf16>
    %c0_10 = arith.constant 0 : index
    %c0_11 = arith.constant 0 : index
    %22 = vector.load %arg5[%c0_10, %c0_11] : memref<128x256xbf16, #tpu.memory_space<vmem>>, vector<128x256xbf16>
    %cst_12 = arith.constant dense<0.000000e+00> : vector<16x256xf32>
    %23 = tpu.matmul %21, %22, %cst_12 {dimension_numbers = #tpu.dot_dimension_numbers<[1], [0], [0], [1], [0, 0, 1, 1], [], []>} : vector<16x128xbf16>, vector<128x256xbf16>, vector<16x256xf32> -> vector<16x256xf32>
    %24 = arith.truncf %23 : vector<16x256xf32> to vector<16x256xbf16>
    %c0_13 = arith.constant 0 : index
    %c0_14 = arith.constant 0 : index
    %25 = vector.load %arg7[%c0_13, %c0_14] : memref<16x256xbf16, #tpu.memory_space<vmem>>, vector<16x256xbf16>
    tpu.vector_store %arg7[%c0_13, %c0_14], %24 {strides = array<i32>} : memref<16x256xbf16, #tpu.memory_space<vmem>>, vector<16x256xbf16>,
    return
  }
  func.func @transform_0(%arg0: i32) -> (i32, i32) {
    %c0_i32 = arith.constant 0 : i32
    %c0_i32_0 = arith.constant 0 : i32
    return %arg0, %c0_i32 : i32, i32
  }
  func.func @transform_1(%arg0: i32) -> (i32, i32) {
    %c0_i32 = arith.constant 0 : i32
    %c0_i32_0 = arith.constant 0 : i32
    %c0_i32_1 = arith.constant 0 : i32
    return %c0_i32, %c0_i32_0 : i32, i32
  }
  func.func @transform_2(%arg0: i32) -> (i32, i32) {
    %c0_i32 = arith.constant 0 : i32
    %c0_i32_0 = arith.constant 0 : i32
    %c0_i32_1 = arith.constant 0 : i32
    return %c0_i32, %c0_i32_0 : i32, i32
  }
  func.func @transform_3(%arg0: i32) -> (i32, i32) {
    %c0_i32 = arith.constant 0 : i32
    %c0_i32_0 = arith.constant 0 : i32
    %c0_i32_1 = arith.constant 0 : i32
    return %c0_i32, %c0_i32_0 : i32, i32
  }
  func.func @transform_4(%arg0: i32) -> (i32, i32) {
    %c0_i32 = arith.constant 0 : i32
    %c0_i32_0 = arith.constant 0 : i32
    %c0_i32_1 = arith.constant 0 : i32
    return %c0_i32, %c0_i32_0 : i32, i32
  }
  func.func @transform_5(%arg0: i32) -> (i32, i32) {
    %c0_i32 = arith.constant 0 : i32
    %c0_i32_0 = arith.constant 0 : i32
    return %arg0, %c0_i32 : i32, i32
  }
  func.func @transform_6(%arg0: i32) -> (i32, i32) {
    %c0_i32 = arith.constant 0 : i32
    %c0_i32_0 = arith.constant 0 : i32
    return %arg0, %c0_i32 : i32, i32
  }
}

module attributes {stable_mosaic.version = 11 : i64} {
  func.func @_block_kernel(%arg0: i32, %arg1: memref<16x1152xbf16, #tpu.memory_space<vmem>>, %arg2: memref<1152x256xbf16, #tpu.memory_space<vmem>>, %arg3: memref<1x256xf32, #tpu.memory_space<vmem>>, %arg4: memref<1x256xf32, #tpu.memory_space<vmem>>, %arg5: memref<256x256xbf16, #tpu.memory_space<vmem>>, %arg6: memref<16x256xbf16, #tpu.memory_space<vmem>>, %arg7: memref<16x256xbf16, #tpu.memory_space<vmem>>) attributes {dimension_semantics = [#tpu.dimension_semantics<parallel>], iteration_bounds = array<i64: 2>, scalar_prefetch = 0 : i64, scratch_operands = 0 : i64, tpu.core_type = #tpu.core_type<tc>, window_params = [{transform_indices = @transform_0, window_bounds = array<i64: 16, 1152>}, {pipeline_mode = #tpu.pipeline_mode<synchronous>, transform_indices = @transform_1, window_bounds = array<i64: 1152, 256>}, {pipeline_mode = #tpu.pipeline_mode<synchronous>, transform_indices = @transform_2, window_bounds = array<i64: 1, 256>}, {pipeline_mode = #tpu.pipeline_mode<synchronous>, transform_indices = @transform_3, window_bounds = array<i64: 1, 256>}, {pipeline_mode = #tpu.pipeline_mode<synchronous>, transform_indices = @transform_4, window_bounds = array<i64: 256, 256>}, {transform_indices = @transform_5, window_bounds = array<i64: 16, 256>}, {transform_indices = @transform_6, window_bounds = array<i64: 16, 256>}]} {
    %c0 = arith.constant 0 : index
    %c0_0 = arith.constant 0 : index
    %0 = vector.load %arg1[%c0, %c0_0] : memref<16x1152xbf16, #tpu.memory_space<vmem>>, vector<16x1152xbf16>
    %c0_1 = arith.constant 0 : index
    %c0_2 = arith.constant 0 : index
    %1 = vector.load %arg2[%c0_1, %c0_2] : memref<1152x256xbf16, #tpu.memory_space<vmem>>, vector<1152x256xbf16>
    %cst = arith.constant dense<0.000000e+00> : vector<16x256xf32>
    %2 = tpu.matmul %0, %1, %cst {dimension_numbers = #tpu.dot_dimension_numbers<[1], [0], [0], [1], [0, 0, 1, 1], [], []>} : vector<16x1152xbf16>, vector<1152x256xbf16>, vector<16x256xf32> -> vector<16x256xf32>
    %3 = vector.extract_strided_slice %2 {offsets = [1, 0], sizes = [15, 256], strides = [1, 1]} : vector<16x256xf32> to vector<15x256xf32>
    %4 = vector.extract_strided_slice %2 {offsets = [0, 0], sizes = [1, 256], strides = [1, 1]} : vector<16x256xf32> to vector<1x256xf32>
    %5 = tpu.concatenate %3, %4 in 0 : vector<15x256xf32>, vector<1x256xf32> -> vector<16x256xf32>
    %6 = arith.maximumf %2, %5 : vector<16x256xf32>
    %7 = vector.extract_strided_slice %6 {offsets = [3, 0], sizes = [13, 256], strides = [1, 1]} : vector<16x256xf32> to vector<13x256xf32>
    %8 = vector.extract_strided_slice %6 {offsets = [0, 0], sizes = [3, 256], strides = [1, 1]} : vector<16x256xf32> to vector<3x256xf32>
    %9 = tpu.concatenate %7, %8 in 0 : vector<13x256xf32>, vector<3x256xf32> -> vector<16x256xf32>
    %10 = arith.maximumf %6, %9 : vector<16x256xf32>
    %c0_3 = arith.constant 0 : index
    %c0_4 = arith.constant 0 : index
    %11 = vector.load %arg3[%c0_3, %c0_4] : memref<1x256xf32, #tpu.memory_space<vmem>>, vector<1x256xf32>
    %12 = vector.broadcast %11 : vector<1x256xf32> to vector<16x256xf32>
    %13 = arith.mulf %10, %12 : vector<16x256xf32>
    %c0_5 = arith.constant 0 : index
    %c0_6 = arith.constant 0 : index
    %14 = vector.load %arg4[%c0_5, %c0_6] : memref<1x256xf32, #tpu.memory_space<vmem>>, vector<1x256xf32>
    %15 = vector.broadcast %14 : vector<1x256xf32> to vector<16x256xf32>
    %16 = arith.addf %13, %15 : vector<16x256xf32>
    %cst_7 = arith.constant 0.000000e+00 : f32
    %17 = vector.broadcast %cst_7 : f32 to vector<16x256xf32>
    %18 = arith.maximumf %16, %17 : vector<16x256xf32>
    %19 = arith.truncf %18 : vector<16x256xf32> to vector<16x256xbf16>
    %c0_8 = arith.constant 0 : index
    %c0_9 = arith.constant 0 : index
    %20 = vector.load %arg6[%c0_8, %c0_9] : memref<16x256xbf16, #tpu.memory_space<vmem>>, vector<16x256xbf16>
    tpu.vector_store %arg6[%c0_8, %c0_9], %19 {strides = array<i32>} : memref<16x256xbf16, #tpu.memory_space<vmem>>, vector<16x256xbf16>,
    %21 = arith.truncf %18 : vector<16x256xf32> to vector<16x256xbf16>
    %c0_10 = arith.constant 0 : index
    %c0_11 = arith.constant 0 : index
    %22 = vector.load %arg5[%c0_10, %c0_11] : memref<256x256xbf16, #tpu.memory_space<vmem>>, vector<256x256xbf16>
    %cst_12 = arith.constant dense<0.000000e+00> : vector<16x256xf32>
    %23 = tpu.matmul %21, %22, %cst_12 {dimension_numbers = #tpu.dot_dimension_numbers<[1], [0], [0], [1], [0, 0, 1, 1], [], []>} : vector<16x256xbf16>, vector<256x256xbf16>, vector<16x256xf32> -> vector<16x256xf32>
    %24 = arith.truncf %23 : vector<16x256xf32> to vector<16x256xbf16>
    %c0_13 = arith.constant 0 : index
    %c0_14 = arith.constant 0 : index
    %25 = vector.load %arg7[%c0_13, %c0_14] : memref<16x256xbf16, #tpu.memory_space<vmem>>, vector<16x256xbf16>
    tpu.vector_store %arg7[%c0_13, %c0_14], %24 {strides = array<i32>} : memref<16x256xbf16, #tpu.memory_space<vmem>>, vector<16x256xbf16>,
    return
  }
  func.func @transform_0(%arg0: i32) -> (i32, i32) {
    %c0_i32 = arith.constant 0 : i32
    %c0_i32_0 = arith.constant 0 : i32
    return %arg0, %c0_i32 : i32, i32
  }
  func.func @transform_1(%arg0: i32) -> (i32, i32) {
    %c0_i32 = arith.constant 0 : i32
    %c0_i32_0 = arith.constant 0 : i32
    %c0_i32_1 = arith.constant 0 : i32
    return %c0_i32, %c0_i32_0 : i32, i32
  }
  func.func @transform_2(%arg0: i32) -> (i32, i32) {
    %c0_i32 = arith.constant 0 : i32
    %c0_i32_0 = arith.constant 0 : i32
    %c0_i32_1 = arith.constant 0 : i32
    return %c0_i32, %c0_i32_0 : i32, i32
  }
  func.func @transform_3(%arg0: i32) -> (i32, i32) {
    %c0_i32 = arith.constant 0 : i32
    %c0_i32_0 = arith.constant 0 : i32
    %c0_i32_1 = arith.constant 0 : i32
    return %c0_i32, %c0_i32_0 : i32, i32
  }
  func.func @transform_4(%arg0: i32) -> (i32, i32) {
    %c0_i32 = arith.constant 0 : i32
    %c0_i32_0 = arith.constant 0 : i32
    %c0_i32_1 = arith.constant 0 : i32
    return %c0_i32, %c0_i32_0 : i32, i32
  }
  func.func @transform_5(%arg0: i32) -> (i32, i32) {
    %c0_i32 = arith.constant 0 : i32
    %c0_i32_0 = arith.constant 0 : i32
    return %arg0, %c0_i32 : i32, i32
  }
  func.func @transform_6(%arg0: i32) -> (i32, i32) {
    %c0_i32 = arith.constant 0 : i32
    %c0_i32_0 = arith.constant 0 : i32
    return %arg0, %c0_i32 : i32, i32
  }
}

module attributes {stable_mosaic.version = 11 : i64} {
  func.func @_final_kernel(%arg0: i32, %arg1: memref<1024x12xbf16, #tpu.memory_space<vmem>>, %arg2: memref<1024x256xbf16, #tpu.memory_space<vmem>>, %arg3: memref<12x256xbf16, #tpu.memory_space<vmem>>, %arg4: memref<1x256xf32, #tpu.memory_space<vmem>>, %arg5: memref<1x256xf32, #tpu.memory_space<vmem>>, %arg6: memref<256x128xbf16, #tpu.memory_space<vmem>>, %arg7: memref<1x128xf32, #tpu.memory_space<vmem>>, %arg8: memref<1024x128xf32, #tpu.memory_space<vmem>>) attributes {dimension_semantics = [#tpu.dimension_semantics<parallel>], iteration_bounds = array<i64: 2>, scalar_prefetch = 0 : i64, scratch_operands = 0 : i64, tpu.core_type = #tpu.core_type<tc>, window_params = [{transform_indices = @transform_0, window_bounds = array<i64: 1024, 12>}, {transform_indices = @transform_1, window_bounds = array<i64: 1024, 256>}, {pipeline_mode = #tpu.pipeline_mode<synchronous>, transform_indices = @transform_2, window_bounds = array<i64: 12, 256>}, {pipeline_mode = #tpu.pipeline_mode<synchronous>, transform_indices = @transform_3, window_bounds = array<i64: 1, 256>}, {pipeline_mode = #tpu.pipeline_mode<synchronous>, transform_indices = @transform_4, window_bounds = array<i64: 1, 256>}, {pipeline_mode = #tpu.pipeline_mode<synchronous>, transform_indices = @transform_5, window_bounds = array<i64: 256, 128>}, {pipeline_mode = #tpu.pipeline_mode<synchronous>, transform_indices = @transform_6, window_bounds = array<i64: 1, 128>}, {transform_indices = @transform_7, window_bounds = array<i64: 1024, 128>}]} {
    %c0 = arith.constant 0 : index
    %c0_0 = arith.constant 0 : index
    %0 = vector.load %arg1[%c0, %c0_0] : memref<1024x12xbf16, #tpu.memory_space<vmem>>, vector<1024x12xbf16>
    %c0_1 = arith.constant 0 : index
    %c0_2 = arith.constant 0 : index
    %1 = vector.load %arg3[%c0_1, %c0_2] : memref<12x256xbf16, #tpu.memory_space<vmem>>, vector<12x256xbf16>
    %cst = arith.constant dense<0.000000e+00> : vector<1024x256xf32>
    %2 = tpu.matmul %0, %1, %cst {dimension_numbers = #tpu.dot_dimension_numbers<[1], [0], [0], [1], [0, 0, 1, 1], [], []>} : vector<1024x12xbf16>, vector<12x256xbf16>, vector<1024x256xf32> -> vector<1024x256xf32>
    %c0_3 = arith.constant 0 : index
    %c0_4 = arith.constant 0 : index
    %3 = vector.load %arg2[%c0_3, %c0_4] : memref<1024x256xbf16, #tpu.memory_space<vmem>>, vector<1024x256xbf16>
    %4 = arith.extf %3 : vector<1024x256xbf16> to vector<1024x256xf32>
    %5 = arith.addf %2, %4 : vector<1024x256xf32>
    %c0_5 = arith.constant 0 : index
    %c0_6 = arith.constant 0 : index
    %6 = vector.load %arg4[%c0_5, %c0_6] : memref<1x256xf32, #tpu.memory_space<vmem>>, vector<1x256xf32>
    %7 = vector.broadcast %6 : vector<1x256xf32> to vector<1024x256xf32>
    %8 = arith.mulf %5, %7 : vector<1024x256xf32>
    %c0_7 = arith.constant 0 : index
    %c0_8 = arith.constant 0 : index
    %9 = vector.load %arg5[%c0_7, %c0_8] : memref<1x256xf32, #tpu.memory_space<vmem>>, vector<1x256xf32>
    %10 = vector.broadcast %9 : vector<1x256xf32> to vector<1024x256xf32>
    %11 = arith.addf %8, %10 : vector<1024x256xf32>
    %cst_9 = arith.constant 0.000000e+00 : f32
    %12 = vector.broadcast %cst_9 : f32 to vector<1024x256xf32>
    %13 = arith.maximumf %11, %12 : vector<1024x256xf32>
    %14 = arith.truncf %13 : vector<1024x256xf32> to vector<1024x256xbf16>
    %c0_10 = arith.constant 0 : index
    %c0_11 = arith.constant 0 : index
    %15 = vector.load %arg6[%c0_10, %c0_11] : memref<256x128xbf16, #tpu.memory_space<vmem>>, vector<256x128xbf16>
    %cst_12 = arith.constant dense<0.000000e+00> : vector<1024x128xf32>
    %16 = tpu.matmul %14, %15, %cst_12 {dimension_numbers = #tpu.dot_dimension_numbers<[1], [0], [0], [1], [0, 0, 1, 1], [], []>} : vector<1024x256xbf16>, vector<256x128xbf16>, vector<1024x128xf32> -> vector<1024x128xf32>
    %c0_13 = arith.constant 0 : index
    %c0_14 = arith.constant 0 : index
    %17 = vector.load %arg7[%c0_13, %c0_14] : memref<1x128xf32, #tpu.memory_space<vmem>>, vector<1x128xf32>
    %18 = vector.broadcast %17 : vector<1x128xf32> to vector<1024x128xf32>
    %19 = arith.addf %16, %18 : vector<1024x128xf32>
    %c0_15 = arith.constant 0 : index
    %c0_16 = arith.constant 0 : index
    %20 = vector.load %arg8[%c0_15, %c0_16] : memref<1024x128xf32, #tpu.memory_space<vmem>>, vector<1024x128xf32>
    tpu.vector_store %arg8[%c0_15, %c0_16], %19 {strides = array<i32>} : memref<1024x128xf32, #tpu.memory_space<vmem>>, vector<1024x128xf32>,
    return
  }
  func.func @transform_0(%arg0: i32) -> (i32, i32) {
    %c0_i32 = arith.constant 0 : i32
    %c0_i32_0 = arith.constant 0 : i32
    return %arg0, %c0_i32 : i32, i32
  }
  func.func @transform_1(%arg0: i32) -> (i32, i32) {
    %c0_i32 = arith.constant 0 : i32
    %c0_i32_0 = arith.constant 0 : i32
    return %arg0, %c0_i32 : i32, i32
  }
  func.func @transform_2(%arg0: i32) -> (i32, i32) {
    %c0_i32 = arith.constant 0 : i32
    %c0_i32_0 = arith.constant 0 : i32
    %c0_i32_1 = arith.constant 0 : i32
    return %c0_i32, %c0_i32_0 : i32, i32
  }
  func.func @transform_3(%arg0: i32) -> (i32, i32) {
    %c0_i32 = arith.constant 0 : i32
    %c0_i32_0 = arith.constant 0 : i32
    %c0_i32_1 = arith.constant 0 : i32
    return %c0_i32, %c0_i32_0 : i32, i32
  }
  func.func @transform_4(%arg0: i32) -> (i32, i32) {
    %c0_i32 = arith.constant 0 : i32
    %c0_i32_0 = arith.constant 0 : i32
    %c0_i32_1 = arith.constant 0 : i32
    return %c0_i32, %c0_i32_0 : i32, i32
  }
  func.func @transform_5(%arg0: i32) -> (i32, i32) {
    %c0_i32 = arith.constant 0 : i32
    %c0_i32_0 = arith.constant 0 : i32
    %c0_i32_1 = arith.constant 0 : i32
    return %c0_i32, %c0_i32_0 : i32, i32
  }
  func.func @transform_6(%arg0: i32) -> (i32, i32) {
    %c0_i32 = arith.constant 0 : i32
    %c0_i32_0 = arith.constant 0 : i32
    %c0_i32_1 = arith.constant 0 : i32
    return %c0_i32, %c0_i32_0 : i32, i32
  }
  func.func @transform_7(%arg0: i32) -> (i32, i32) {
    %c0_i32 = arith.constant 0 : i32
    %c0_i32_0 = arith.constant 0 : i32
    return %arg0, %c0_i32 : i32, i32
  }
}

</mosaic_0001>

<bundles_post_ra>
// kernel: hypercolumn_forward.5
= control target key start
LH: loop header
LB: loop body
LE: loop exit
PB: predicated region body
PF: predicated region fallthrough
CT: control target
= control target key end

     0   :  { %s2720_s21 = smov 0   ;;  %s3329_s0 = inlined_call_operand.vmem [shape: bf16[512,300], index: 0, kind: input, shape index: {}]   ;;  %s3330_s1 = inlined_call_operand.vmem [shape: bf16[300,32], index: 1, kind: input, shape index: {}]   ;;  %s3331_s2 = inlined_call_operand.vmem [shape: f32[1,32], index: 2, kind: input, shape index: {}]   ;;  %s3332_s3 = inlined_call_operand.vmem [shape: f32[1,32], index: 3, kind: input, shape index: {}]   ;;  %s3333_s4 = inlined_call_operand.vmem [shape: bf16[32,256], index: 4, kind: input, shape index: {}]   ;;  %s3334_s5 = inlined_call_operand.vmem [shape: bf16[512,32], index: 5, kind: output, shape index: {0}]   ;;  %s3335_s6 = inlined_call_operand.vmem [shape: bf16[512,256], index: 6, kind: output, shape index: {1}]  }
   0x1 LB: > { %s2152_s22 = sadd.s32 4294967295, %s2682_s21   ;;  %p2156_p0 = scmp.ge.s32.totalorder %s2682_s21, 1  ;;  %s2682_s21 = sphi %s2720_s21, %s17_s21  }
   0x2   : > { %p217_p1 = scmp.lt.s32.totalorder %s2682_s21, 3 }
   0x4   : > { %p218_p2 = pnand %p2156_p0, %p217_p1 }
   0x5   : > { %s2157_s25 = sshll.u32 (!%p218_p2), %s2152_s22, 5 }
   0x6   : > { %221 = sbr.rel (%p218_p2) target bundleno = 716 (0x2cc), region = 40  ;;  %p255_p3 = scmp.lt.s32.totalorder (!%p218_p2), %s2157_s25, 63 }
   0xb   : > { %v2587_v0 = vld [vmem:[%s3330_s1 + $0x78] sm:$0xff]   ;;  %v2589_v2 = vld [vmem:[%s3330_s1 + $0x70] sm:$0xff]   ;;  %v2591_v4 = vld [vmem:[%s3330_s1 + $0x68] sm:$0xff]   ;;  %s3340_s25 = smov (!%p255_p3, %s2157_s25), 63  ;;  %vm779_vm0 = vcmask 1045504   ;;  %vm730_vm1 = vcmask 359424  }
   0xc   : > { %v2588_v1 = vld [vmem:[%s3330_s1 + $0x38] sm:$0xff]   ;;  %2400 = vmatprep.subr.bf16.mxu0 %v2587_v0  ;;  %v2590_v3 = vld [vmem:[%s3330_s1 + $0x30] sm:$0xff]   ;;  %v2592_v5 = vld [vmem:[%s3330_s1 + $0x28] sm:$0xff]   ;;  %s2577_s14 = smul.u32 12, %s3340_s25  ;;  %vm1137_vm2 = vcmask 1046528   ;;  %s2160_s10 = sshll.u32 %s3340_s25, 2 }
   0xd   : > { %2401 = vmatpush3.bf16.msra.mxu0 %v2588_v1  ;;  %v2593_v6 = vld [vmem:[%s3330_s1 + $0x60] sm:$0xff]   ;;  %v2595_v8 = vld [vmem:[%s3330_s1 + $0x58] sm:$0xff]   ;;  %v2597_v10 = vld [vmem:[%s3330_s1 + $0x50] sm:$0xff]   ;;  %s2927_s13 = scalar_lea.vmem %s3334_s5, %s2160_s10  ;;  %vm1537_vm3 = vcmask 257024   ;;  %vm1594_vm4 = vcmask 261120  }
   0xe   : > { %2402 = vmatprep.subr.bf16.mxu0 %v2589_v2  ;;  %v2594_v7 = vld [vmem:[%s3330_s1 + $0x20] sm:$0xff]   ;;  %s2761_s22 = scalar_lea.vmem %s3329_s0, %s2577_s14  ;;  %v2596_v9 = vld [vmem:[%s3330_s1 + $0x18] sm:$0xff]   ;;  %v2606_v12 = vld [vmem:[%s3330_s1 + $0x90] sm:$0x3f]   ;;  %s2335_s14 = sshll.u32 %s3340_s25, 3 }
   0xf   : > { %v2605_v11 = vld [vmem:[%s2761_s22 + $0x4] ss:$12 sps:$4 sm:$0xff]   ;;  %v2599_v14 = vld [vmem:[%s3330_s1 + $0x48] sm:$0xff]   ;;  %v781_v15 = vsel %vm779_vm0, %v2606_v12, 0  ;;  %2576 = vmatprep.subr.msk.bf16.mxu1 %vm779_vm0, %v2606_v12  ;;  %v2610_v29 = vld [vmem:[%s2761_s22 + $0x34] ss:$12 sps:$4 sm:$0xff]   ;;  %s3292_s17 = scalar_lea.vmem %s3335_s6, %s2335_s14 }
  0x10   : > { %v2598_v13 = vld [vmem:[%s3330_s1 + $0x10] sm:$0xff]   ;;  %815 = vmatprep.mubr.bf16.mxu0 %v2605_v11  ;;  %v2600_v16 = vld [vmem:[%s3330_s1 + $0x8] sm:$0xff]   ;;  %2572 = vmatpush3.bf16.msra.mxu1 %v781_v15  ;;  %v2601_v17 = vld [vmem:[%s3330_s1 + $0x40] sm:$0xff]  }
  0x11   : > { %2403 = vmatpush3.bf16.msra.mxu0 %v2590_v3  ;;  %v2616_v18 = vld [vmem:[%s3330_s1 + $0x88] sm:$0xff]   ;;  %v2617_v19 = vld [vmem:[%s3330_s1 + $0x80] sm:$0xff]   ;;  %v2630_v27 = vld [vmem:[%s2761_s22 + $0xb0] ss:$12 sps:$4 sm:$0xff]  }
  0x12   : > { %2404 = vmatprep.subr.bf16.mxu0 %v2591_v4  ;;  %2570 = vmatprep.subr.bf16.mxu1 %v2616_v18  ;;  %v2621_v20 = vld [vmem:[%s2761_s22 + $0x68] ss:$12 sps:$4 sm:$0xff]   ;;  %v2602_v21 = vld [vmem:[%s3330_s1] sm:$0xff]   ;;  %v2612_v30 = vld [vmem:[%s2761_s22 + $0x30] ss:$12 sps:$4 sm:$0xff]  }
  0x13   : > { %v2603_v22 = vld [vmem:[%s2761_s22] ss:$12 sps:$4 sm:$0xff]   ;;  %2545 = vmatprep.mubr.msk.bf16.mxu1 %vm730_vm1, %v2621_v20  ;;  %v2607_v24 = vld [vmem:[%s2761_s22 + $0x1c] ss:$12 sps:$4 sm:$0xff]   ;;  %v2629_v25 = vld [vmem:[%s2761_s22 + $0x98] ss:$12 sps:$4 sm:$0xff]  }
  0x14   : > { %2573 = vmatpush3.bf16.msra.mxu1 %v2616_v18  ;;  %v2622_v23 = vld [vmem:[%s2761_s22 + $0x80] ss:$12 sps:$4 sm:$0xff]   ;;  %v2609_v26 = vld [vmem:[%s2761_s22 + $0x18] ss:$12 sps:$4 sm:$0xff]   ;;  %v2637_v28 = vld [vmem:[%s2761_s22 + $0xc8] ss:$12 sps:$4 sm:$0xff]  }
  0x15   : > { %2405 = vmatpush3.bf16.msra.mxu0 %v2592_v5  ;;  %2571 = vmatprep.subr.bf16.mxu1 %v2617_v19  ;;  %v2638_v31 = vld [vmem:[%s2761_s22 + $0xe0] ss:$12 sps:$4 sm:$0xff]   ;;  %v2645_v32 = vld [vmem:[%s2761_s22 + $0xf8] ss:$12 sps:$4 sm:$0xff]   ;;  %v2615_v34 = vld [vmem:[%s2761_s22 + $0x48] ss:$12 sps:$4 sm:$0xff]  }
  0x16   : > { %2406 = vmatprep.subr.bf16.mxu0 %v2593_v6  ;;  %v2613_v33 = vld [vmem:[%s2761_s22 + $0x4c] ss:$12 sps:$4 sm:$0xff]   ;;  %v2646_v35 = vld [vmem:[%s2761_s22 + $0x110] ss:$12 sps:$4 sm:$0xff]   ;;  %v2653_v36 = vld [vmem:[%s2761_s22 + $0x128] ss:$12 sps:$4 sm:$0xff]  }
  0x17   : > { %v2618_v37 = vld [vmem:[%s2761_s22 + $0x64] ss:$12 sps:$4 sm:$0xff]   ;;  %v2654_v38 = vld [vmem:[%s2761_s22 + $0x140] ss:$12 sps:$4 sm:$0xff]   ;;  %v2623_v41 = vld [vmem:[%s2761_s22 + $0x7c] ss:$12 sps:$4 sm:$0xff]  }
  0x18   : > { %2574 = vmatpush3.bf16.msra.mxu1 %v2617_v19  ;;  %v2620_v39 = vld [vmem:[%s2761_s22 + $0x60] ss:$12 sps:$4 sm:$0xff]   ;;  %v2661_v40 = vld [vmem:[%s2761_s22 + $0x158] ss:$12 sps:$4 sm:$0xff]   ;;  %v2662_v42 = vld [vmem:[%s2761_s22 + $0x170] ss:$12 sps:$4 sm:$0xff]  }
  0x19   : > { %2407 = vmatpush3.bf16.msra.mxu0 %v2594_v7  ;;  %v2625_v43 = vld [vmem:[%s2761_s22 + $0x78] ss:$12 sps:$4 sm:$0xff]   ;;  %v2626_v44 = vld [vmem:[%s2761_s22 + $0x94] ss:$12 sps:$4 sm:$0xff]   ;;  %v2628_v45 = vld [vmem:[%s2761_s22 + $0x90] ss:$12 sps:$4 sm:$0xff]  }
  0x1a   : > { %2408 = vmatprep.subr.bf16.mxu0 %v2595_v8  ;;  %v2631_v46 = vld [vmem:[%s2761_s22 + $0xac] ss:$12 sps:$4 sm:$0xff]   ;;  %v2633_v47 = vld [vmem:[%s2761_s22 + $0xa8] ss:$12 sps:$4 sm:$0xff]   ;;  %v2634_v48 = vld [vmem:[%s2761_s22 + $0xc4] ss:$12 sps:$4 sm:$0xff]  }
  0x1b   : > { %2546 = vmatmul.mubr.msk.bf16.vlgmr.msra.gmra.mxu1 %vm730_vm1, %v2622_v23  ;;  %v2636_v49 = vld [vmem:[%s2761_s22 + $0xc0] ss:$12 sps:$4 sm:$0xff]   ;;  %v2639_v50 = vld [vmem:[%s2761_s22 + $0xdc] ss:$12 sps:$4 sm:$0xff]   ;;  %v2641_v51 = vld [vmem:[%s2761_s22 + $0xd8] ss:$12 sps:$4 sm:$0xff]  }
  0x1c   : > { %2549 = vmatprep.mubr.msk.bf16.mxu1 %vm730_vm1, %v2629_v25  ;;  %v2642_v52 = vld [vmem:[%s2761_s22 + $0xf4] ss:$12 sps:$4 sm:$0xff]   ;;  %v2644_v53 = vld [vmem:[%s2761_s22 + $0xf0] ss:$12 sps:$4 sm:$0xff]   ;;  %v2647_v54 = vld [vmem:[%s2761_s22 + $0x10c] ss:$12 sps:$4 sm:$0xff]  }
  0x1d   : > { %2409 = vmatpush3.bf16.msra.mxu0 %v2596_v9  ;;  %v2649_v55 = vld [vmem:[%s2761_s22 + $0x108] ss:$12 sps:$4 sm:$0xff]   ;;  %v2650_v56 = vld [vmem:[%s2761_s22 + $0x124] ss:$12 sps:$4 sm:$0xff]   ;;  %v2652_v57 = vld [vmem:[%s2761_s22 + $0x120] ss:$12 sps:$4 sm:$0xff]  }
  0x1e   : > { %2410 = vmatprep.subr.bf16.mxu0 %v2597_v10  ;;  %v2655_v58 = vld [vmem:[%s2761_s22 + $0x13c] ss:$12 sps:$4 sm:$0xff]   ;;  %v2657_v59 = vld [vmem:[%s2761_s22 + $0x138] ss:$12 sps:$4 sm:$0xff]   ;;  %v2658_v60 = vld [vmem:[%s2761_s22 + $0x154] ss:$12 sps:$4 sm:$0xff]  }
  0x1f   : > { %v2660_v61 = vld [vmem:[%s2761_s22 + $0x150] ss:$12 sps:$4 sm:$0xff]   ;;  %v2663_v62 = vld [vmem:[%s2761_s22 + $0x16c] ss:$12 sps:$4 sm:$0xff]   ;;  %v2665_v63 = vld [vmem:[%s2761_s22 + $0x168] ss:$12 sps:$4 sm:$0xff]  }
  0x20   : > { %v2666_v0 = vld [vmem:[%s2761_s22 + $0x8] ss:$12 sps:$4 sm:$0xff]   ;;  %v2667_v1 = vld [vmem:[%s2761_s22 + $0x20] ss:$12 sps:$4 sm:$0xff]   ;;  %v2668_v2 = vld [vmem:[%s2761_s22 + $0x38] ss:$12 sps:$4 sm:$0xff]  }
  0x21   : > { %2411 = vmatpush3.bf16.msra.mxu0 %v2598_v13  ;;  %v2669_v3 = vld [vmem:[%s2761_s22 + $0x50] ss:$12 sps:$4 sm:$0xff]  }
  0x22   : > { %2412 = vmatprep.subr.bf16.mxu0 %v2599_v14  ;;  %v2670_v4 = vld [vmem:[%s3333_s4 + $0x10] ss:$8 sps:$4 sm:$0xff]   ;;  %v2672_v5 = vld [vmem:[%s3333_s4 + $0x14] ss:$8 sps:$4 sm:$0xff]   ;;  %v2673_v14 = vld [vmem:[%s3333_s4] ss:$8 sps:$4 sm:$0xff]  }
  0x23   : > { %2550 = vmatmul.mubr.msk.bf16.gmra.mxu1 %vm730_vm1, %v2630_v27  ;;  %1655 = vmatprep.subr.bf16.mxu1 %v2672_v5 }
  0x24   : > { %2553 = vmatprep.mubr.msk.bf16.mxu1 %vm730_vm1, %v2637_v28  ;;  %1656 = vmatpush1.bf16.msra.mxu1 %v2670_v4 }
  0x25   : > { %2413 = vmatpush3.bf16.msra.mxu0 %v2600_v16 }
  0x26   : > { %2414 = vmatprep.subr.bf16.mxu0 %v2601_v17 }
  0x29   : > { %2415 = vmatpush3.bf16.msra.mxu0 %v2602_v21 }
  0x2a   : > { %2575 = vmatprep.subr.msk.bf16.mxu0 %vm779_vm0, %v2606_v12 }
  0x2b   : > { %2554 = vmatmul.mubr.msk.bf16.gmra.mxu1 %vm730_vm1, %v2638_v31  ;;  %v2684_v31 = vmov 0  }
  0x2c   : > { %816 = vmatmul.mubr.bf16.vlgmr.msra.gmra.mxu0 %v2603_v22  ;;  %2557 = vmatprep.mubr.msk.bf16.mxu1 %vm730_vm1, %v2645_v32 }
  0x2d   : > { %2532 = vmatpush3.bf16.msra.mxu0 %v781_v15  ;;  %823 = vmatprep.mubr.bf16.mxu0 %v2607_v24  ;;  %v2675_v15 = vld [vmem:[%s3333_s4 + $0x4] ss:$8 sps:$4 sm:$0xff]  }
  0x2e   : > { %2533 = vmatprep.subr.bf16.mxu0 %v2616_v18  ;;  %1657 = vmatprep.subr.bf16.mxu1 %v2675_v15 }
  0x2f   : > { %1658 = vmatpush1.bf16.msra.mxu1 %v2673_v14 }
  0x31   : > { %2534 = vmatpush3.bf16.msra.mxu0 %v2616_v18 }
  0x32   : > { %2535 = vmatprep.subr.bf16.mxu0 %v2617_v19 }
  0x33   : > { %2558 = vmatmul.mubr.msk.bf16.gmra.mxu1 %vm730_vm1, %v2646_v35 }
  0x34   : > { %824 = vmatmul.mubr.bf16.gmra.mxu0 %v2609_v26  ;;  %2561 = vmatprep.mubr.msk.bf16.mxu1 %vm730_vm1, %v2653_v36 }
  0x35   : > { %831 = vmatprep.mubr.bf16.mxu0 %v2610_v29  ;;  %2536 = vmatpush3.bf16.msra.mxu0 %v2617_v19 }
  0x3b   : > { %2562 = vmatmul.mubr.msk.bf16.gmra.mxu1 %vm730_vm1, %v2654_v38 }
  0x3c   : > { %832 = vmatmul.mubr.bf16.gmra.mxu0 %v2612_v30  ;;  %2565 = vmatprep.mubr.msk.bf16.mxu1 %vm730_vm1, %v2661_v40 }
  0x3d   : > { %839 = vmatprep.mubr.bf16.mxu0 %v2613_v33 }
  0x43   : > { %2566 = vmatmul.mubr.msk.bf16.gmra.mxu1 %vm730_vm1, %v2662_v42 }
  0x44   : > { %840 = vmatmul.mubr.bf16.gmra.mxu0 %v2615_v34  ;;  %1675 = vmatprep.mubr.bf16.mxu1 %v2684_v31 }
  0x45   : > { %847 = vmatprep.mubr.bf16.mxu0 %v2618_v37 }
  0x4c   : > { %848 = vmatmul.mubr.bf16.gmra.mxu0 %v2620_v39 }
  0x4d   : > { %855 = vmatprep.mubr.bf16.mxu0 %v2623_v41 }
  0x54   : > { %856 = vmatmul.mubr.bf16.gmra.mxu0 %v2625_v43 }
  0x55   : > { %863 = vmatprep.mubr.bf16.mxu0 %v2626_v44 }
  0x5c   : > { %864 = vmatmul.mubr.bf16.gmra.mxu0 %v2628_v45 }
  0x5d   : > { %871 = vmatprep.mubr.bf16.mxu0 %v2631_v46 }
  0x64   : > { %872 = vmatmul.mubr.bf16.gmra.mxu0 %v2633_v47 }
  0x65   : > { %879 = vmatprep.mubr.bf16.mxu0 %v2634_v48 }
  0x6c   : > { %880 = vmatmul.mubr.bf16.gmra.mxu0 %v2636_v49 }
  0x6d   : > { %887 = vmatprep.mubr.bf16.mxu0 %v2639_v50 }
  0x74   : > { %888 = vmatmul.mubr.bf16.gmra.mxu0 %v2641_v51 }
  0x75   : > { %895 = vmatprep.mubr.bf16.mxu0 %v2642_v52 }
  0x7c   : > { %896 = vmatmul.mubr.bf16.gmra.mxu0 %v2644_v53 }
  0x7d   : > { %903 = vmatprep.mubr.bf16.mxu0 %v2647_v54 }
  0x84   : > { %904 = vmatmul.mubr.bf16.gmra.mxu0 %v2649_v55 }
  0x85   : > { %911 = vmatprep.mubr.bf16.mxu0 %v2650_v56 }
  0x8c   : > { %912 = vmatmul.mubr.bf16.gmra.mxu0 %v2652_v57 }
  0x8d   : > { %919 = vmatprep.mubr.bf16.mxu0 %v2655_v58 }
  0x94   : > { %920 = vmatmul.mubr.bf16.gmra.mxu0 %v2657_v59 }
  0x95   : > { %927 = vmatprep.mubr.bf16.mxu0 %v2658_v60 }
  0x9c   : > { %928 = vmatmul.mubr.bf16.gmra.mxu0 %v2660_v61 }
  0x9d   : > { %935 = vmatprep.mubr.bf16.mxu0 %v2663_v62 }
  0xa4   : > { %936 = vmatmul.mubr.bf16.gmra.mxu0 %v2665_v63 }
  0xa5   : > { %2537 = vmatprep.mubr.msk.bf16.mxu0 %vm730_vm1, %v2666_v0 }
  0xac   : > { %2538 = vmatmul.mubr.msk.bf16.vlgmr.msra.gmra.mxu0 %vm730_vm1, %v2667_v1 }
  0xad   : > { %2541 = vmatprep.mubr.msk.bf16.mxu0 %vm730_vm1, %v2668_v2 }
  0xb4   : > { %2542 = vmatmul.mubr.msk.bf16.gmra.mxu0 %vm730_vm1, %v2669_v3 }
  0xdb   : > { %v2547_v30 = vpop.f32.mrf.mxu1 }
  0xdd   : > { %v1010_v35 = vpop.f32.mrf.mxu1 }
  0xdf   : > { %v2548_v38 = vpop.f32.mrf.mxu1 }
  0xe1   : > { %v1013_v42 = vpop.f32.mrf.mxu1 }
  0xe3   : > { %v2551_v45 = vpop.f32.mrf.mxu1 }
  0xe5   : > { %v1026_v51 = vpop.f32.mrf.mxu1 }
  0xe7   : > { %v2552_v59 = vpop.f32.mrf.mxu1 }
  0xec   : > { %v2416_v6 = vpop.f32.mrf.mxu0 }
  0xee   : > { %v2417_v7 = vpop.f32.mrf.mxu0 }
  0xef   : > { %v2866_v8 = vadd.f32 %v2417_v7, %v2416_v6  ;;  %v1029_v6 = vpop.f32.mrf.mxu1 }
  0xf0   : > { %v2419_v9 = vpop.f32.mrf.mxu0 }
  0xf2   : > { %v2420_v10 = vpop.f32.mrf.mxu0 }
  0xf3   : > { %v2868_v11 = vadd.f32 %v2420_v10, %v2419_v9  ;;  %v2902_v10 = vld [vmem:[%s3331_s2] ss:$0 sm:$0xff] }
  0xf4   : > { %v2422_v12 = vpop.f32.mrf.mxu0 }
  0xf6   : > { %v2423_v13 = vpop.f32.mrf.mxu0 }
  0xf7   : > { %v2876_v16 = vadd.f32 %v2423_v13, %v2422_v12 }
  0xf8   : > { %v2425_v17 = vpop.f32.mrf.mxu0 }
  0xfa   : > { %v2426_v18 = vpop.f32.mrf.mxu0 }
  0xfb   : > { %v2878_v19 = vadd.f32 %v2426_v18, %v2425_v17  ;;  %v2910_v18 = vld [vmem:[%s3332_s3] ss:$0 sm:$0xff] }
  0xfc   : > { %v2428_v20 = vpop.f32.mrf.mxu0 }
  0xfe   : > { %v2429_v21 = vpop.f32.mrf.mxu0 }
  0xff   : > { %v2880_v22 = vadd.f32 %v2429_v21, %v2428_v20 }
 0x100   : > { %v2431_v23 = vpop.f32.mrf.mxu0 }
 0x102   : > { %v2432_v24 = vpop.f32.mrf.mxu0 }
 0x103   : > { %v2882_v25 = vadd.f32 %v2432_v24, %v2431_v23  ;;  %v2912_v23 = vpop.f32.mrf.mxu1 }
 0x104   : > { %v2434_v26 = vpop.f32.mrf.mxu0 }
 0x106   : > { %v2435_v27 = vpop.f32.mrf.mxu0 }
 0x107   : > { %v2884_v28 = vadd.f32 %v2435_v27, %v2434_v26 }
 0x108   : > { %v2437_v29 = vpop.f32.mrf.mxu0 }
 0x10a   : > { %v2438_v32 = vpop.f32.mrf.mxu0 }
 0x10b   : > { %v2887_v33 = vadd.f32 %v2438_v32, %v2437_v29 }
 0x10c   : > { %v2440_v34 = vpop.f32.mrf.mxu0 }
 0x10e   : > { %v2441_v36 = vpop.f32.mrf.mxu0 }
 0x10f   : > { %v2442_v43 = vadd.f32 %v2441_v36, %v2440_v34 }
 0x110   : > { %v2443_v37 = vpop.f32.mrf.mxu0 }
 0x111   : > { %v2889_v49 = vadd.f32 %v2442_v43, %v1010_v35 }
 0x112   : > { %v2444_v39 = vpop.f32.mrf.mxu0 }
 0x113   : > { %v2445_v40 = vadd.f32 %v2444_v39, %v2443_v37  ;;  %v1153_v56 = vrot.slane %v2889_v49, 1  ;;  %v1042_v39 = vpop.f32.mrf.mxu1 }
 0x114   : > { %v2446_v41 = vpop.f32.mrf.mxu0 }
 0x115   : > { %v1014_v46 = vadd.f32 %v2445_v40, %v1013_v42 }
 0x116   : > { %v2447_v44 = vpop.f32.mrf.mxu0 }
 0x117   : > { %v2448_v47 = vadd.f32 %v2447_v44, %v2446_v41  ;;  %v1155_v52 = vrot.slane %v1014_v46, 1 }
 0x118   : > { %v2449_v48 = vpop.f32.mrf.mxu0 }
 0x119   : > { %v1019_v53 = vadd.f32 %v2547_v30, %v2448_v47  ;;  %v1156_v60 = vsel %vm1137_vm2, %v1153_v56, %v1155_v52 }
 0x11a   : > { %v2450_v50 = vpop.f32.mrf.mxu0  ;;  %v2897_v3 = vmax.f32 %v2889_v49, %v1156_v60 }
 0x11b   : > { %v2451_v54 = vadd.f32 %v2450_v50, %v2449_v48  ;;  %v1157_v61 = vrot.slane %v1019_v53, 1 }
 0x11c   : > { %v2452_v55 = vpop.f32.mrf.mxu0 }
 0x11d   : > { %v1022_v57 = vadd.f32 %v2548_v38, %v2451_v54  ;;  %v1158_v12 = vsel %vm1137_vm2, %v1155_v52, %v1157_v61 }
 0x11e   : > { %v2453_v58 = vpop.f32.mrf.mxu0  ;;  %v2914_v24 = vmax.f32 %v1014_v46, %v1158_v12 }
 0x11f   : > { %v1159_v62 = vrot.slane %v1022_v57, 1  ;;  %v2454_v63 = vadd.f32 %v2453_v58, %v2452_v55 }
 0x120   : > { %v2455_v0 = vpop.f32.mrf.mxu0 }
 0x121   : > { %v1160_v1 = vsel %vm1137_vm2, %v1157_v61, %v1159_v62  ;;  %v1027_v2 = vadd.f32 %v2454_v63, %v1026_v51 }
 0x122   : > { %v1245_v4 = vmax.f32 %v1019_v53, %v1160_v1  ;;  %v2456_v5 = vpop.f32.mrf.mxu0  ;;  %v2556_v53 = vpop.f32.mrf.mxu1 }
 0x123   : > { %v1161_v7 = vrot.slane %v1027_v2, 1  ;;  %v2457_v9 = vadd.f32 %v2456_v5, %v2455_v0 }
 0x124   : > { %v1275_v13 = vmax.f32 %v2897_v3, %v1245_v4  ;;  %v2458_v14 = vpop.f32.mrf.mxu0  ;;  %v1045_v5 = vpop.f32.mrf.mxu1 }
 0x125   : > { %v1162_v15 = vsel %vm1137_vm2, %v1159_v62, %v1161_v7  ;;  %v1030_v17 = vadd.f32 %v2457_v9, %v1029_v6 }
 0x126   : > { %v1246_v20 = vmax.f32 %v1022_v57, %v1162_v15  ;;  %v2459_v21 = vpop.f32.mrf.mxu0  ;;  %v1314_v26 = vmul.f32 %v2902_v10, %v1275_v13 }
 0x127   : > { %v1163_v27 = vrot.slane %v1030_v17, 1  ;;  %v2460_v29 = vadd.f32 %v2459_v21, %v2458_v14 }
 0x128   : > { %v2461_v30 = vpop.f32.mrf.mxu0  ;;  %v1276_v32 = vmax.f32 %v2914_v24, %v1246_v20  ;;  %v1353_v34 = vadd.f32 %v2910_v18, %v1314_v26 }
 0x129   : > { %v1164_v35 = vsel %vm1137_vm2, %v1161_v7, %v1163_v27  ;;  %v1035_v36 = vadd.f32 %v2551_v45, %v2460_v29  ;;  %v2953_v29 = vpop.f32.mrf.mxu1 }
 0x12a   : > { %v1247_v37 = vmax.f32 %v1027_v2, %v1164_v35  ;;  %v2462_v38 = vpop.f32.mrf.mxu0  ;;  %v1315_v40 = vmul.f32 %v2902_v10, %v1276_v32  ;;  %v2922_v41 = vmax.f32 %v1353_v34, 0.0 }
 0x12b   : > { %v1165_v42 = vrot.slane %v1035_v36, 1  ;;  %v2463_v43 = vadd.f32 %v2462_v38, %v2461_v30 }
 0x12c   : > { %v1277_v44 = vmax.f32 %v1245_v4, %v1247_v37  ;;  %v2464_v46 = vpop.f32.mrf.mxu0  ;;  %v1354_v45 = vadd.f32 %v2910_v18, %v1315_v40  ;;  %v2344_v47 = vpack.c.bf16 %v2922_v41, %v2922_v41 }
 0x12d   : > { %v1166_v48 = vsel %vm1137_vm2, %v1163_v27, %v1165_v42  ;;  %v1038_v50 = vadd.f32 %v2552_v59, %v2463_v43 }
 0x12e   : > { %v1248_v51 = vmax.f32 %v1030_v17, %v1166_v48  ;;  %v2465_v52 = vpop.f32.mrf.mxu0  ;;  %v2933_v54 = vmax.f32 %v1354_v45, 0.0  ;;  %1546 = vst.msk [vmem:[%s2927_s13 + $0x20] sm:$0xf] %vm1537_vm3, %v2344_v47  ;;  %v1316_v55 = vmul.f32 %v2902_v10, %v1277_v44  ;;  %v1058_v45 = vpop.f32.mrf.mxu1 }
 0x12f   : > { %v1167_v57 = vrot.slane %v1038_v50, 1  ;;  %v2466_v58 = vadd.f32 %v2465_v52, %v2464_v46 }
 0x130   : > { %v1278_v60 = vmax.f32 %v1246_v20, %v1248_v51  ;;  %v2467_v61 = vpop.f32.mrf.mxu0  ;;  %v1413_v62 = vpack.c.bf16 %v2933_v54, %v2922_v41  ;;  %v2345_v59 = vpack.c.bf16 %v2933_v54, %v2933_v54  ;;  %v1355_v63 = vadd.f32 %v2910_v18, %v1316_v55 }
 0x131   : > { %v1168_v0 = vsel %vm1137_vm2, %v1165_v42, %v1167_v57  ;;  %v1043_v1 = vadd.f32 %v2466_v58, %v1042_v39 }
 0x132   : > { %v1249_v2 = vmax.f32 %v1035_v36, %v1168_v0  ;;  %v2468_v4 = vpop.f32.mrf.mxu0  ;;  %1547 = vst.msk [vmem:[%s2927_s13 + $0x24] sm:$0xf] %vm1537_vm3, %v2345_v59  ;;  %v1317_v6 = vmul.f32 %v2902_v10, %v1278_v60  ;;  %v2947_v7 = vmax.f32 %v1355_v63, 0.0  ;;  %v2560_v63 = vpop.f32.mrf.mxu1 }
 0x133   : > { %v1169_v9 = vrot.slane %v1043_v1, 1  ;;  %v2469_v12 = vadd.f32 %v2468_v4, %v2467_v61 }
 0x134   : > { %v1279_v13 = vmax.f32 %v1247_v37, %v1249_v2  ;;  %v2470_v14 = vpop.f32.mrf.mxu0  ;;  %v1356_v15 = vadd.f32 %v2910_v18, %v1317_v6  ;;  %v2346_v17 = vpack.c.bf16 %v2947_v7, %v2947_v7 }
 0x135   : > { %v1170_v20 = vsel %vm1137_vm2, %v1167_v57, %v1169_v9  ;;  %v1046_v21 = vadd.f32 %v2469_v12, %v1045_v5 }
 0x136   : > { %v1250_v26 = vmax.f32 %v1038_v50, %v1170_v20  ;;  %v2471_v27 = vpop.f32.mrf.mxu0  ;;  %v2955_v30 = vmax.f32 %v1356_v15, 0.0  ;;  %1548 = vst.msk [vmem:[%s2927_s13 + $0x28] sm:$0xf] %vm1537_vm3, %v2346_v17  ;;  %v1318_v32 = vmul.f32 %v2902_v10, %v1279_v13  ;;  %v1061_v20 = vpop.f32.mrf.mxu1 }
 0x137   : > { %v1171_v34 = vrot.slane %v1046_v21, 1  ;;  %v2472_v35 = vadd.f32 %v2471_v27, %v2470_v14 }
 0x138   : > { %v1280_v36 = vmax.f32 %v1248_v51, %v1250_v26  ;;  %v2473_v37 = vpop.f32.mrf.mxu0  ;;  %v1414_v38 = vpack.c.bf16 %v2955_v30, %v2947_v7  ;;  %v2347_v39 = vpack.c.bf16 %v2955_v30, %v2955_v30  ;;  %v1357_v40 = vadd.f32 %v2910_v18, %v1318_v32 }
 0x139   : > { %v1172_v42 = vsel %vm1137_vm2, %v1169_v9, %v1171_v34  ;;  %v1051_v43 = vadd.f32 %v2912_v23, %v2472_v35 }
 0x13a   : > { %v1251_v44 = vmax.f32 %v1043_v1, %v1172_v42  ;;  %v2474_v46 = vpop.f32.mrf.mxu0  ;;  %1549 = vst.msk [vmem:[%s2927_s13 + $0x2c] sm:$0xf] %vm1537_vm3, %v2347_v39  ;;  %v1319_v47 = vmul.f32 %v2902_v10, %v1280_v36  ;;  %v2970_v48 = vmax.f32 %v1357_v40, 0.0 }
 0x13b   : > { %v1173_v50 = vrot.slane %v1051_v43, 1  ;;  %v2475_v51 = vadd.f32 %v2474_v46, %v2473_v37  ;;  %v2996_v46 = vpop.f32.mrf.mxu1 }
 0x13c   : > { %v1281_v52 = vmax.f32 %v1249_v2, %v1251_v44  ;;  %v2476_v55 = vpop.f32.mrf.mxu0  ;;  %v1358_v57 = vadd.f32 %v2910_v18, %v1319_v47  ;;  %v2348_v58 = vpack.c.bf16 %v2970_v48, %v2970_v48 }
 0x13d   : > { %v1174_v23 = vsel %vm1137_vm2, %v1171_v34, %v1173_v50  ;;  %v1054_v60 = vadd.f32 %v2556_v53, %v2475_v51 }
 0x13e   : > { %v1252_v61 = vmax.f32 %v1046_v21, %v1174_v23  ;;  %v2477_v59 = vpop.f32.mrf.mxu0  ;;  %v2976_v0 = vmax.f32 %v1358_v57, 0.0  ;;  %1550 = vst.msk [vmem:[%s2927_s13 + $0x30] sm:$0xf] %vm1537_vm3, %v2348_v58  ;;  %v1320_v1 = vmul.f32 %v2902_v10, %v1281_v52 }
 0x13f   : > { %v1175_v2 = vrot.slane %v1054_v60, 1  ;;  %v2478_v4 = vadd.f32 %v2477_v59, %v2476_v55 }
 0x140   : > { %v1282_v5 = vmax.f32 %v1250_v26, %v1252_v61  ;;  %v2479_v6 = vpop.f32.mrf.mxu0  ;;  %v1415_v9 = vpack.c.bf16 %v2976_v0, %v2970_v48  ;;  %v2349_v53 = vpack.c.bf16 %v2976_v0, %v2976_v0  ;;  %v1359_v12 = vadd.f32 %v2910_v18, %v1320_v1 }
 0x141   : > { %v1176_v13 = vsel %vm1137_vm2, %v1173_v50, %v1175_v2  ;;  %v1059_v14 = vadd.f32 %v2478_v4, %v1058_v45 }
 0x142   : > { %v1253_v15 = vmax.f32 %v1051_v43, %v1176_v13  ;;  %v2480_v17 = vpop.f32.mrf.mxu0  ;;  %1551 = vst.msk [vmem:[%s2927_s13 + $0x34] sm:$0xf] %vm1537_vm3, %v2349_v53  ;;  %v1321_v21 = vmul.f32 %v2902_v10, %v1282_v5  ;;  %v2990_v26 = vmax.f32 %v1359_v12, 0.0 }
 0x143   : > { %v1177_v27 = vrot.slane %v1059_v14, 1  ;;  %v2481_v32 = vadd.f32 %v2480_v17, %v2479_v6 }
 0x144   : > { %v1283_v34 = vmax.f32 %v1251_v44, %v1253_v15  ;;  %v2482_v35 = vpop.f32.mrf.mxu0  ;;  %v1360_v36 = vadd.f32 %v2910_v18, %v1321_v21  ;;  %v2350_v37 = vpack.c.bf16 %v2990_v26, %v2990_v26 }
 0x145   : > { %v1178_v39 = vsel %vm1137_vm2, %v1175_v2, %v1177_v27  ;;  %v1062_v40 = vadd.f32 %v2481_v32, %v1061_v20  ;;  %v1074_v2 = vpop.f32.mrf.mxu1 }
 0x146   : > { %v1254_v42 = vmax.f32 %v1054_v60, %v1178_v39  ;;  %v2483_v43 = vpop.f32.mrf.mxu0  ;;  %v2998_v45 = vmax.f32 %v1360_v36, 0.0  ;;  %1552 = vst.msk [vmem:[%s2927_s13 + $0x38] sm:$0xf] %vm1537_vm3, %v2350_v37  ;;  %v1322_v44 = vmul.f32 %v2902_v10, %v1283_v34 }
 0x147   : > { %v1179_v47 = vrot.slane %v1062_v40, 1  ;;  %v2484_v50 = vadd.f32 %v2483_v43, %v2482_v35 }
 0x148   : > { %v1284_v51 = vmax.f32 %v1252_v61, %v1254_v42  ;;  %v2485_v52 = vpop.f32.mrf.mxu0  ;;  %v1416_v55 = vpack.c.bf16 %v2998_v45, %v2990_v26  ;;  %v2351_v57 = vpack.c.bf16 %v2998_v45, %v2998_v45  ;;  %v1361_v58 = vadd.f32 %v2910_v18, %v1322_v44 }
 0x149   : > { %v1180_v23 = vsel %vm1137_vm2, %v1177_v27, %v1179_v47  ;;  %v1067_v60 = vadd.f32 %v2953_v29, %v2484_v50  ;;  %v2564_v27 = vpop.f32.mrf.mxu1 }
 0x14a   : > { %v1255_v59 = vmax.f32 %v1059_v14, %v1180_v23  ;;  %v2486_v1 = vpop.f32.mrf.mxu0  ;;  %1553 = vst.msk [vmem:[%s2927_s13 + $0x3c] sm:$0xf] %vm1537_vm3, %v2351_v57  ;;  %v1323_v61 = vmul.f32 %v2902_v10, %v1284_v51  ;;  %v3013_v4 = vmax.f32 %v1361_v58, 0.0 }
 0x14b   : > { %v1181_v5 = vrot.slane %v1067_v60, 1  ;;  %v2487_v6 = vadd.f32 %v2486_v1, %v2485_v52  ;;  %v1077_v51 = vpop.f32.mrf.mxu1 }
 0x14c   : > { %v1285_v53 = vmax.f32 %v1253_v15, %v1255_v59  ;;  %v2488_v12 = vpop.f32.mrf.mxu0  ;;  %v1362_v13 = vadd.f32 %v2910_v18, %v1323_v61  ;;  %v2352_v17 = vpack.c.bf16 %v3013_v4, %v3013_v4 }
 0x14d   : > { %v1182_v29 = vsel %vm1137_vm2, %v1179_v47, %v1181_v5  ;;  %v1070_v14 = vadd.f32 %v2560_v63, %v2487_v6 }
 0x14e   : > { %v1256_v20 = vmax.f32 %v1062_v40, %v1182_v29  ;;  %v2489_v21 = vpop.f32.mrf.mxu0  ;;  %v3019_v32 = vmax.f32 %v1362_v13, 0.0  ;;  %1554 = vst.msk [vmem:[%s2927_s13 + $0x40] sm:$0xf] %vm1537_vm3, %v2352_v17  ;;  %v1324_v34 = vmul.f32 %v2902_v10, %v1285_v53 }
 0x14f   : > { %v1183_v15 = vrot.slane %v1070_v14, 1  ;;  %v2490_v35 = vadd.f32 %v2489_v21, %v2488_v12  ;;  %v3039_v12 = vpop.f32.mrf.mxu1 }
 0x150   : > { %v1286_v36 = vmax.f32 %v1254_v42, %v1256_v20  ;;  %v2491_v37 = vpop.f32.mrf.mxu0  ;;  %v1417_v39 = vpack.c.bf16 %v3019_v32, %v3013_v4  ;;  %v2353_v63 = vpack.c.bf16 %v3019_v32, %v3019_v32  ;;  %v1363_v40 = vadd.f32 %v2910_v18, %v1324_v34 }
 0x151   : > { %v1184_v43 = vsel %vm1137_vm2, %v1181_v5, %v1183_v15  ;;  %v1075_v44 = vadd.f32 %v2490_v35, %v1074_v2 }
 0x152   : > { %v1257_v47 = vmax.f32 %v1067_v60, %v1184_v43  ;;  %v2492_v50 = vpop.f32.mrf.mxu0  ;;  %1555 = vst.msk [vmem:[%s2927_s13 + $0x44] sm:$0xf] %vm1537_vm3, %v2353_v63  ;;  %v1325_v42 = vmul.f32 %v2902_v10, %v1286_v36  ;;  %v3033_v52 = vmax.f32 %v1363_v40, 0.0  ;;  %v1090_v43 = vpop.f32.mrf.mxu1 }
 0x153   : > { %v1185_v57 = vrot.slane %v1075_v44, 1  ;;  %v2493_v58 = vadd.f32 %v2492_v50, %v2491_v37 }
 0x154   : > { %v1287_v23 = vmax.f32 %v1255_v59, %v1257_v47  ;;  %v2494_v1 = vpop.f32.mrf.mxu0  ;;  %v1364_v61 = vadd.f32 %v2910_v18, %v1325_v42  ;;  %v2354_v5 = vpack.c.bf16 %v3033_v52, %v3033_v52 }
 0x155   : > { %v1186_v60 = vsel %vm1137_vm2, %v1183_v15, %v1185_v57  ;;  %v1078_v2 = vadd.f32 %v2493_v58, %v1077_v51 }
 0x156   : > { %v1258_v6 = vmax.f32 %v1070_v14, %v1186_v60  ;;  %v2495_v53 = vpop.f32.mrf.mxu0  ;;  %v3041_v13 = vmax.f32 %v1364_v61, 0.0  ;;  %1556 = vst.msk [vmem:[%s2927_s13 + $0x48] sm:$0xf] %vm1537_vm3, %v2354_v5  ;;  %v1326_v59 = vmul.f32 %v2902_v10, %v1287_v23  ;;  %v2568_v60 = vpop.f32.mrf.mxu1 }
 0x157   : > { %v1187_v17 = vrot.slane %v1078_v2, 1  ;;  %v2496_v29 = vadd.f32 %v2495_v53, %v2494_v1 }
 0x158   : > { %v1288_v21 = vmax.f32 %v1256_v20, %v1258_v6  ;;  %v2497_v34 = vpop.f32.mrf.mxu0  ;;  %v1418_v35 = vpack.c.bf16 %v3041_v13, %v3033_v52  ;;  %v2355_v14 = vpack.c.bf16 %v3041_v13, %v3041_v13  ;;  %v1365_v15 = vadd.f32 %v2910_v18, %v1326_v59 }
 0x159   : > { %v1188_v36 = vsel %vm1137_vm2, %v1185_v57, %v1187_v17  ;;  %v1083_v37 = vadd.f32 %v2996_v46, %v2496_v29 }
 0x15a   : > { %v1259_v63 = vmax.f32 %v1075_v44, %v1188_v36  ;;  %v2498_v40 = vpop.f32.mrf.mxu0  ;;  %1557 = vst.msk [vmem:[%s2927_s13 + $0x4c] sm:$0xf] %vm1537_vm3, %v2355_v14  ;;  %v1327_v20 = vmul.f32 %v2902_v10, %v1288_v21  ;;  %v3056_v50 = vmax.f32 %v1365_v15, 0.0 }
 0x15b   : > { %v1189_v51 = vrot.slane %v1083_v37, 1  ;;  %v2499_v42 = vadd.f32 %v2498_v40, %v2497_v34 }
 0x15c   : > { %v1289_v58 = vmax.f32 %v1257_v47, %v1259_v63  ;;  %v2500_v23 = vpop.f32.mrf.mxu0  ;;  %v1366_v1 = vadd.f32 %v2910_v18, %v1327_v20  ;;  %v2356_v57 = vpack.c.bf16 %v3056_v50, %v3056_v50  ;;  %v1093_v20 = vpop.f32.mrf.mxu1 }
 0x15d   : > { %v1190_v46 = vsel %vm1137_vm2, %v1187_v17, %v1189_v51  ;;  %v1086_v44 = vadd.f32 %v2564_v27, %v2499_v42 }
 0x15e   : > { %v1260_v61 = vmax.f32 %v1078_v2, %v1190_v46  ;;  %v2501_v5 = vpop.f32.mrf.mxu0  ;;  %v3062_v53 = vmax.f32 %v1366_v1, 0.0  ;;  %1558 = vst.msk [vmem:[%s2927_s13 + $0x50] sm:$0xf] %vm1537_vm3, %v2356_v57  ;;  %v1328_v59 = vmul.f32 %v2902_v10, %v1289_v58 }
 0x15f   : > { %v1191_v47 = vrot.slane %v1086_v44, 1  ;;  %v2502_v29 = vadd.f32 %v2501_v5, %v2500_v23 }
 0x160   : > { %v1290_v21 = vmax.f32 %v1258_v6, %v1260_v61  ;;  %v2503_v34 = vpop.f32.mrf.mxu0  ;;  %v2357_v27 = vpack.c.bf16 %v3062_v53, %v3062_v53  ;;  %v1367_v2 = vadd.f32 %v2910_v18, %v1328_v59  ;;  %v3336_v41 = vpack.c.bf16 %v3062_v53, %v3056_v50 }
 0x161   : > { %v1192_v17 = vsel %vm1137_vm2, %v1189_v51, %v1191_v47  ;;  %v1091_v15 = vadd.f32 %v2502_v29, %v1090_v43 }
 0x162   : > { %v1261_v36 = vmax.f32 %v1083_v37, %v1192_v17  ;;  %v2504_v40 = vpop.f32.mrf.mxu0  ;;  %1559 = vst.msk [vmem:[%s2927_s13 + $0x54] sm:$0xf] %vm1537_vm3, %v2357_v27  ;;  %v1329_v6 = vmul.f32 %v2902_v10, %v1290_v21  ;;  %v3076_v42 = vmax.f32 %v1367_v2, 0.0 }
 0x163   : > { %v1193_v58 = vrot.slane %v1091_v15, 1  ;;  %v2505_v23 = vadd.f32 %v2504_v40, %v2503_v34 }
 0x164   : > { %v1291_v1 = vmax.f32 %v1259_v63, %v1261_v36  ;;  %v2506_v57 = vpop.f32.mrf.mxu0  ;;  %v1368_v46 = vadd.f32 %v2910_v18, %v1329_v6  ;;  %v2358_v51 = vpack.c.bf16 %v3076_v42, %v3076_v42 }
 0x165   : > { %v1194_v37 = vsel %vm1137_vm2, %v1191_v47, %v1193_v58  ;;  %v1094_v43 = vadd.f32 %v2505_v23, %v1093_v20 }
 0x166   : > { %v1262_v5 = vmax.f32 %v1086_v44, %v1194_v37  ;;  %v2507_v59 = vpop.f32.mrf.mxu0  ;;  %v3082_v29 = vmax.f32 %v1368_v46, 0.0  ;;  %1560 = vst.msk [vmem:[%s2927_s13 + $0x58] sm:$0xf] %vm1537_vm3, %v2358_v51  ;;  %v1330_v21 = vmul.f32 %v2902_v10, %v1291_v1 }
 0x167   : > { %v1195_v34 = vrot.slane %v1094_v43, 1  ;;  %v2508_v63 = vadd.f32 %v2507_v59, %v2506_v57 }
 0x168   : > { %v1292_v27 = vmax.f32 %v1260_v61, %v1262_v5  ;;  %v2509_v2 = vpop.f32.mrf.mxu0  ;;  %v2359_v47 = vpack.c.bf16 %v3082_v29, %v3082_v29  ;;  %v1369_v44 = vadd.f32 %v2910_v18, %v1330_v21  ;;  %v3337_v54 = vpack.c.bf16 %v3082_v29, %v3076_v42 }
 0x169   : > { %v1196_v40 = vsel %vm1137_vm2, %v1193_v58, %v1195_v34  ;;  %v1099_v20 = vadd.f32 %v3039_v12, %v2508_v63 }
 0x16a   : > { %v1263_v6 = vmax.f32 %v1091_v15, %v1196_v40  ;;  %v2510_v23 = vpop.f32.mrf.mxu0  ;;  %1561 = vst.msk [vmem:[%s2927_s13 + $0x5c] sm:$0xf] %vm1537_vm3, %v2359_v47  ;;  %v1331_v61 = vmul.f32 %v2902_v10, %v1292_v27  ;;  %v3097_v1 = vmax.f32 %v1369_v44, 0.0 }
 0x16b   : > { %v1197_v57 = vrot.slane %v1099_v20, 1  ;;  %v2511_v46 = vadd.f32 %v2510_v23, %v2509_v2 }
 0x16c   : > { %v1293_v51 = vmax.f32 %v1261_v36, %v1263_v6  ;;  %v2539_v37 = vpop.f32.mrf.mxu0  ;;  %v1370_v59 = vadd.f32 %v2910_v18, %v1331_v61  ;;  %v2360_v58 = vpack.c.bf16 %v3097_v1, %v3097_v1 }
 0x16d   : > { %v1198_v12 = vsel %vm1137_vm2, %v1195_v34, %v1197_v57  ;;  %v1102_v15 = vadd.f32 %v2568_v60, %v2511_v46  ;;  %v987_v36 = vadd.f32 %v2539_v37, %v2876_v16 }
 0x16e   : > { %v1264_v21 = vmax.f32 %v1094_v43, %v1198_v12  ;;  %v978_v63 = vpop.f32.mrf.mxu0  ;;  %v3103_v40 = vmax.f32 %v1370_v59, 0.0  ;;  %1562 = vst.msk [vmem:[%s2927_s13 + $0x60] sm:$0xf] %vm1537_vm3, %v2360_v58  ;;  %v1332_v27 = vmul.f32 %v2902_v10, %v1293_v51 }
 0x16f   : > { %v1199_v2 = vrot.slane %v1102_v15, 1  ;;  %v979_v47 = vadd.f32 %v2866_v8, %v978_v63  ;;  %v1141_v37 = vrot.slane %v987_v36, 1 }
 0x170   : > { %v1294_v44 = vmax.f32 %v1262_v5, %v1264_v21  ;;  %v2540_v23 = vpop.f32.mrf.mxu0  ;;  %v2361_v60 = vpack.c.bf16 %v3103_v40, %v3103_v40  ;;  %v1371_v43 = vadd.f32 %v2910_v18, %v1332_v27 }
 0x171   : > { %v1200_v61 = vsel %vm1137_vm2, %v1197_v57, %v1199_v2  ;;  %v1138_v46 = vrot.slane %v979_v47, 1  ;;  %v990_v51 = vadd.f32 %v2540_v23, %v2878_v19 }
 0x172   : > { %v3117_v59 = vmax.f32 %v1099_v20, %v1200_v61  ;;  %v981_v16 = vpop.f32.mrf.mxu0  ;;  %1563 = vst.msk [vmem:[%s2927_s13 + $0x64] sm:$0xf] %vm1537_vm3, %v2361_v60  ;;  %v1333_v8 = vmul.f32 %v2902_v10, %v1294_v44  ;;  %v3122_v5 = vmax.f32 %v1371_v43, 0.0 }
 0x173   : > { %v1234_v58 = vsel %vm1137_vm2, %v1199_v2, %v1138_v46  ;;  %v1143_v12 = vrot.slane %v990_v51, 1  ;;  %v982_v63 = vadd.f32 %v2868_v11, %v981_v16 }
 0x174   : > { %v1295_v57 = vmax.f32 %v1263_v6, %v3117_v59  ;;  %v1266_v27 = vmax.f32 %v1102_v15, %v1234_v58  ;;  %v2543_v19 = vpop.f32.mrf.mxu0  ;;  %v1372_v20 = vadd.f32 %v2910_v18, %v1333_v8  ;;  %v2362_v23 = vpack.c.bf16 %v3122_v5, %v3122_v5 }
 0x175   : > { %v1144_v44 = vsel %vm1137_vm2, %v1141_v37, %v1143_v12  ;;  %v1139_v60 = vrot.slane %v982_v63, 1  ;;  %v1003_v43 = vadd.f32 %v2543_v19, %v2884_v28 }
 0x176   : > { %v3132_v61 = vmax.f32 %v987_v36, %v1144_v44  ;;  %v1296_v2 = vmax.f32 %v1264_v21, %v1266_v27  ;;  %v994_v34 = vpop.f32.mrf.mxu0  ;;  %v3134_v17 = vmax.f32 %v1372_v20, 0.0  ;;  %1564 = vst.msk [vmem:[%s2927_s13 + $0x68] sm:$0xf] %vm1537_vm3, %v2362_v23  ;;  %v1334_v11 = vmul.f32 %v2902_v10, %v1295_v57 }
 0x177   : > { %v1140_v6 = vsel %vm1137_vm2, %v1138_v46, %v1139_v60  ;;  %v1142_v15 = vsel %vm1137_vm2, %v1139_v60, %v1141_v37  ;;  %v1149_v16 = vrot.slane %v1003_v43, 1  ;;  %v995_v8 = vadd.f32 %v2880_v22, %v994_v34 }
 0x178   : > { %v1235_v58 = vmax.f32 %v979_v47, %v1140_v6  ;;  %v1236_v14 = vmax.f32 %v982_v63, %v1142_v15  ;;  %v1335_v28 = vmul.f32 %v2902_v10, %v1296_v2  ;;  %v2544_v21 = vpop.f32.mrf.mxu0  ;;  %v1422_v36 = vpack.c.bf16 %v3134_v17, %v3122_v5 }
 0x179   : > { %v1145_v19 = vrot.slane %v995_v8, 1  ;;  %v1006_v20 = vadd.f32 %v2544_v21, %v2887_v33  ;;  %v2363_v46 = vpack.c.bf16 %v3134_v17, %v3134_v17  ;;  %v1373_v37 = vadd.f32 %v2910_v18, %v1334_v11 }
 0x17a   : > { %v1267_v57 = vmax.f32 %v1235_v58, %v3132_v61  ;;  %v1297_v22 = vmax.f32 %v3117_v59, %v1235_v58  ;;  %v1298_v47 = vmax.f32 %v1266_v27, %v1236_v14  ;;  %v997_v34 = vpop.f32.mrf.mxu0  ;;  %v1374_v63 = vadd.f32 %v2910_v18, %v1335_v28 }
 0x17b   : > { %v1146_v23 = vsel %vm1137_vm2, %v1143_v12, %v1145_v19  ;;  %v1151_v44 = vrot.slane %v1006_v20, 1  ;;  %v998_v60 = vadd.f32 %v2882_v25, %v997_v34  ;;  %1565 = vst.msk [vmem:[%s2927_s13 + $0x6c] sm:$0xf] %vm1537_vm3, %v2363_v46  ;;  %v3156_v33 = vmax.f32 %v1373_v37, 0.0 }
 0x17c   : > { %v1306_v2 = vmul.f32 %v2902_v10, %v1267_v57  ;;  %v1337_v11 = vmul.f32 %v2902_v10, %v1298_v47  ;;  %v1238_v6 = vmax.f32 %v990_v51, %v1146_v23  ;;  %v3160_v59 = vmax.f32 %v1374_v63, 0.0 }
 0x17d   : > { %v1152_v27 = vsel %vm1137_vm2, %v1149_v16, %v1151_v44  ;;  %v1154_v12 = vsel %vm1137_vm2, %v1151_v44, %v1153_v56  ;;  %v1147_v15 = vrot.slane %v998_v60, 1  ;;  %v2364_v25 = vpack.c.bf16 %v3156_v33, %v3156_v33 }
 0x17e   : > { %v1345_v58 = vadd.f32 %v2910_v18, %v1306_v2  ;;  %v1376_v28 = vadd.f32 %v2910_v18, %v1337_v11  ;;  %v1241_v21 = vmax.f32 %v1003_v43, %v1152_v27  ;;  %v1242_v46 = vmax.f32 %v1006_v20, %v1154_v12 }
 0x17f   : > { %v1148_v51 = vsel %vm1137_vm2, %v1145_v19, %v1147_v15  ;;  %v1150_v37 = vsel %vm1137_vm2, %v1147_v15, %v1149_v16  ;;  %v1268_v57 = vmax.f32 %v1236_v14, %v1238_v6  ;;  %v1423_v49 = vpack.c.bf16 %v3160_v59, %v3156_v33  ;;  %1566 = vst.msk [vmem:[%s2927_s13 + $0x70] sm:$0xf] %vm1537_vm3, %v2364_v25 }
 0x180   : > { %v1377_v56 = vmax.f32 %v1345_v58, 0.0  ;;  %v3176_v47 = vmax.f32 %v1376_v28, 0.0  ;;  %v1273_v34 = vmax.f32 %v1241_v21, %v2897_v3  ;;  %v1274_v43 = vmax.f32 %v1242_v46, %v2914_v24 }
 0x181   : > { %v1239_v19 = vmax.f32 %v995_v8, %v1148_v51  ;;  %v1240_v20 = vmax.f32 %v998_v60, %v1150_v37  ;;  %v1307_v14 = vmul.f32 %v2902_v10, %v1268_v57  ;;  %v2365_v16 = vpack.c.bf16 %v3160_v59, %v3160_v59 }
 0x182   : > { %v2336_v63 = vpack.c.bf16 %v1377_v56, %v1377_v56  ;;  %v2367_v23 = vpack.c.bf16 %v3176_v47, %v3176_v47  ;;  %v1313_v44 = vmul.f32 %v2902_v10, %v1274_v43  ;;  %v1312_v2 = vmul.f32 %v2902_v10, %v1273_v34 }
 0x183   : > { %v1269_v3 = vmax.f32 %v3132_v61, %v1239_v19  ;;  %v1270_v11 = vmax.f32 %v1238_v6, %v1240_v20  ;;  %v1271_v27 = vmax.f32 %v1239_v19, %v1241_v21  ;;  %v1272_v24 = vmax.f32 %v1240_v20, %v1242_v46  ;;  %1567 = vst.msk [vmem:[%s2927_s13 + $0x74] sm:$0xf] %vm1537_vm3, %v2365_v16 }
 0x184   : > { %1538 = vst.msk [vmem:[%s2927_s13] sm:$0xf] %vm1537_vm3, %v2336_v63  ;;  %1569 = vst.msk [vmem:[%s2927_s13 + $0x7c] sm:$0xf] %vm1537_vm3, %v2367_v23  ;;  %v1352_v8 = vadd.f32 %v2910_v18, %v1313_v44  ;;  %v1346_v60 = vadd.f32 %v2910_v18, %v1307_v14  ;;  %v1351_v12 = vadd.f32 %v2910_v18, %v1312_v2 }
 0x185   : > { %v1336_v15 = vmul.f32 %v2902_v10, %v1297_v22  ;;  %v1309_v25 = vmul.f32 %v2902_v10, %v1270_v11  ;;  %v1311_v61 = vmul.f32 %v2902_v10, %v1272_v24  ;;  %v1308_v6 = vmul.f32 %v2902_v10, %v1269_v3 }
 0x186   : > { %v1310_v58 = vmul.f32 %v2902_v10, %v1271_v27  ;;  %v1384_v28 = vmax.f32 %v1352_v8, 0.0  ;;  %v1378_v21 = vmax.f32 %v1346_v60, 0.0  ;;  %v1383_v46 = vmax.f32 %v1351_v12, 0.0 }
 0x187   : > { %v1375_v51 = vadd.f32 %v2910_v18, %v1336_v15  ;;  %v1348_v37 = vadd.f32 %v2910_v18, %v1309_v25  ;;  %v1350_v57 = vadd.f32 %v2910_v18, %v1311_v61  ;;  %v1347_v22 = vadd.f32 %v2910_v18, %v1308_v6 }
 0x188   : > { %v1349_v34 = vadd.f32 %v2910_v18, %v1310_v58  ;;  %v2343_v43 = vpack.c.bf16 %v1384_v28, %v1384_v28  ;;  %v1409_v19 = vpack.c.bf16 %v1378_v21, %v1377_v56  ;;  %v2337_v20 = vpack.c.bf16 %v1378_v21, %v1378_v21 }
 0x189   : > { %v1412_v14 = vpack.c.bf16 %v1384_v28, %v1383_v46  ;;  %v1380_v10 = vmax.f32 %v1348_v37, 0.0  ;;  %v1382_v16 = vmax.f32 %v1350_v57, 0.0  ;;  %v1379_v63 = vmax.f32 %v1347_v22, 0.0 }
 0x18a   : > { %v1381_v23 = vmax.f32 %v1349_v34, 0.0  ;;  %1545 = vst.msk [vmem:[%s2927_s13 + $0x1c] sm:$0xf] %vm1537_vm3, %v2343_v43  ;;  %1539 = vst.msk [vmem:[%s2927_s13 + $0x4] sm:$0xf] %vm1537_vm3, %v2337_v20  ;;  %2285 = vmatmul.mubr.msk.bf16.vlgmr.msra.gmra.mxu1 %vm1594_vm4, %v1409_v19  ;;  %v2342_v18 = vpack.c.bf16 %v1383_v46, %v1383_v46  ;;  %v1407_v56 = vmax.f32 %v1375_v51, 0.0 }
 0x18b   : > { %v2339_v44 = vpack.c.bf16 %v1380_v10, %v1380_v10  ;;  %v2341_v2 = vpack.c.bf16 %v1382_v16, %v1382_v16  ;;  %1685 = vmatprep.mubr.bf16.mxu1 %v2684_v31  ;;  %v1410_v3 = vpack.c.bf16 %v1380_v10, %v1379_v63  ;;  %v2338_v11 = vpack.c.bf16 %v1379_v63, %v1379_v63 }
 0x18c   : > { %v1411_v27 = vpack.c.bf16 %v1382_v16, %v1381_v23  ;;  %v2340_v24 = vpack.c.bf16 %v1381_v23, %v1381_v23  ;;  %1544 = vst.msk [vmem:[%s2927_s13 + $0x18] sm:$0xf] %vm1537_vm3, %v2342_v18  ;;  %v1424_v8 = vpack.c.bf16 %v3176_v47, %v1407_v56  ;;  %v2366_v60 = vpack.c.bf16 %v1407_v56, %v1407_v56 }
 0x18d   : > { %1541 = vst.msk [vmem:[%s2927_s13 + $0xc] sm:$0xf] %vm1537_vm3, %v2339_v44  ;;  %1543 = vst.msk [vmem:[%s2927_s13 + $0x14] sm:$0xf] %vm1537_vm3, %v2341_v2 }
 0x18e   : > { %1540 = vst.msk [vmem:[%s2927_s13 + $0x8] sm:$0xf] %vm1537_vm3, %v2338_v11  ;;  %1542 = vst.msk [vmem:[%s2927_s13 + $0x10] sm:$0xf] %vm1537_vm3, %v2340_v24 }
 0x18f   : > { %1568 = vst.msk [vmem:[%s2927_s13 + $0x78] sm:$0xf] %vm1537_vm3, %v2366_v60 }
 0x192   : > { %2286 = vmatmul.mubr.msk.bf16.gmra.mxu1 %vm1594_vm4, %v1410_v3 }
 0x193   : > { %1695 = vmatprep.mubr.bf16.mxu1 %v2684_v31 }
 0x19a   : > { %2287 = vmatmul.mubr.msk.bf16.gmra.mxu1 %vm1594_vm4, %v1411_v27 }
 0x19b   : > { %1705 = vmatprep.mubr.bf16.mxu1 %v2684_v31 }
 0x1a2   : > { %2288 = vmatmul.mubr.msk.bf16.gmra.mxu1 %vm1594_vm4, %v1412_v14 }
 0x1a3   : > { %1715 = vmatprep.mubr.bf16.mxu1 %v2684_v31 }
 0x1aa   : > { %2289 = vmatmul.mubr.msk.bf16.gmra.mxu1 %vm1594_vm4, %v1413_v62  ;;  %v3338_v62 = vpack.c.bf16 %v3103_v40, %v3097_v1 }
 0x1ab   : > { %1725 = vmatprep.mubr.bf16.mxu1 %v2684_v31 }
 0x1b2   : > { %2290 = vmatmul.mubr.msk.bf16.gmra.mxu1 %vm1594_vm4, %v1414_v38 }
 0x1b3   : > { %1735 = vmatprep.mubr.bf16.mxu1 %v2684_v31 }
 0x1ba   : > { %2291 = vmatmul.mubr.msk.bf16.gmra.mxu1 %vm1594_vm4, %v1415_v9 }
 0x1bb   : > { %1745 = vmatprep.mubr.bf16.mxu1 %v2684_v31 }
 0x1c2   : > { %2292 = vmatmul.mubr.msk.bf16.gmra.mxu1 %vm1594_vm4, %v1416_v55 }
 0x1c3   : > { %1755 = vmatprep.mubr.bf16.mxu1 %v2684_v31 }
 0x1ca   : > { %2293 = vmatmul.mubr.msk.bf16.gmra.mxu1 %vm1594_vm4, %v1417_v39 }
 0x1cb   : > { %1765 = vmatprep.mubr.bf16.mxu1 %v2684_v31 }
 0x1d2   : > { %2294 = vmatmul.mubr.msk.bf16.gmra.mxu1 %vm1594_vm4, %v1418_v35 }
 0x1d3   : > { %1775 = vmatprep.mubr.bf16.mxu1 %v2684_v31 }
 0x1da   : > { %2295 = vmatmul.mubr.msk.bf16.gmra.mxu1 %vm1594_vm4, %v3336_v41 }
 0x1db   : > { %1785 = vmatprep.mubr.bf16.mxu1 %v2684_v31 }
 0x1e2   : > { %2296 = vmatmul.mubr.msk.bf16.gmra.mxu1 %vm1594_vm4, %v3337_v54 }
 0x1e3   : > { %1795 = vmatprep.mubr.bf16.mxu1 %v2684_v31 }
 0x1ea   : > { %2297 = vmatmul.mubr.msk.bf16.gmra.mxu1 %vm1594_vm4, %v3338_v62 }
 0x1eb   : > { %1805 = vmatprep.mubr.bf16.mxu1 %v2684_v31 }
 0x1f2   : > { %2298 = vmatmul.mubr.msk.bf16.gmra.mxu1 %vm1594_vm4, %v1422_v36 }
 0x1f3   : > { %1815 = vmatprep.mubr.bf16.mxu1 %v2684_v31 }
 0x1fa   : > { %2299 = vmatmul.mubr.msk.bf16.gmra.mxu1 %vm1594_vm4, %v1423_v49 }
 0x1fb   : > { %1825 = vmatprep.mubr.bf16.mxu1 %v2684_v31 }
 0x202   : > { %2300 = vmatmul.mubr.msk.bf16.gmra.mxu1 %vm1594_vm4, %v1424_v8 }
 0x24a   : > { %v1677_v7 = vpop.f32.mrf.mxu1 }
 0x24c   : > { %v1679_v30 = vpop.f32.mrf.mxu1 }
 0x24d   : > { %v2368_v38 = vpack.c.bf16 %v1679_v30, %v1677_v7 }
 0x24e   : > { %v1681_v48 = vpop.f32.mrf.mxu1 }
 0x24f   : > { %2028 = vst [vmem:[%s3292_s17] sm:$0xff] %v2368_v38 }
 0x250   : > { %v1683_v0 = vpop.f32.mrf.mxu1 }
 0x251   : > { %v2369_v31 = vpack.c.bf16 %v1683_v0, %v1681_v48 }
 0x252   : > { %v1687_v9 = vpop.f32.mrf.mxu1 }
 0x253   : > { %2029 = vst [vmem:[%s3292_s17 + $0x8] sm:$0xff] %v2369_v31 }
 0x254   : > { %v1689_v26 = vpop.f32.mrf.mxu1 }
 0x255   : > { %v2370_v45 = vpack.c.bf16 %v1689_v26, %v1687_v9 }
 0x256   : > { %v1691_v55 = vpop.f32.mrf.mxu1 }
 0x257   : > { %2030 = vst [vmem:[%s3292_s17 + $0x10] sm:$0xff] %v2370_v45 }
 0x258   : > { %v1693_v4 = vpop.f32.mrf.mxu1 }
 0x259   : > { %v2371_v32 = vpack.c.bf16 %v1693_v4, %v1691_v55 }
 0x25a   : > { %v1697_v39 = vpop.f32.mrf.mxu1 }
 0x25b   : > { %2031 = vst [vmem:[%s3292_s17 + $0x18] sm:$0xff] %v2371_v32 }
 0x25c   : > { %v1699_v52 = vpop.f32.mrf.mxu1 }
 0x25d   : > { %v2372_v13 = vpack.c.bf16 %v1699_v52, %v1697_v39 }
 0x25e   : > { %v1701_v35 = vpop.f32.mrf.mxu1 }
 0x25f   : > { %2032 = vst [vmem:[%s3292_s17 + $0x20] sm:$0xff] %v2372_v13 }
 0x260   : > { %v1703_v50 = vpop.f32.mrf.mxu1 }
 0x261   : > { %v2373_v53 = vpack.c.bf16 %v1703_v50, %v1701_v35 }
 0x262   : > { %v1707_v42 = vpop.f32.mrf.mxu1 }
 0x263   : > { %2033 = vst [vmem:[%s3292_s17 + $0x28] sm:$0xff] %v2373_v53 }
 0x264   : > { %v1709_v29 = vpop.f32.mrf.mxu1 }
 0x265   : > { %v2374_v17 = vpack.c.bf16 %v1709_v29, %v1707_v42 }
 0x266   : > { %v1711_v1 = vpop.f32.mrf.mxu1 }
 0x267   : > { %2034 = vst [vmem:[%s3292_s17 + $0x30] sm:$0xff] %v2374_v17 }
 0x268   : > { %v1713_v40 = vpop.f32.mrf.mxu1 }
 0x269   : > { %v2375_v5 = vpack.c.bf16 %v1713_v40, %v1711_v1 }
 0x26a   : > { %v1717_v36 = vpop.f32.mrf.mxu1 }
 0x26b   : > { %2035 = vst [vmem:[%s3292_s17 + $0x38] sm:$0xff] %v2375_v5 }
 0x26c   : > { %v1719_v33 = vpop.f32.mrf.mxu1 }
 0x26d   : > { %v2376_v59 = vpack.c.bf16 %v1719_v33, %v1717_v36 }
 0x26e   : > { %v1721_v49 = vpop.f32.mrf.mxu1 }
 0x26f   : > { %2036 = vst [vmem:[%s3292_s17 + $0x40] sm:$0xff] %v2376_v59 }
 0x270   : > { %v1723_v47 = vpop.f32.mrf.mxu1 }
 0x271   : > { %v2377_v12 = vpack.c.bf16 %v1723_v47, %v1721_v49 }
 0x272   : > { %v1727_v15 = vpop.f32.mrf.mxu1 }
 0x273   : > { %2037 = vst [vmem:[%s3292_s17 + $0x48] sm:$0xff] %v2377_v12 }
 0x274   : > { %v1729_v25 = vpop.f32.mrf.mxu1 }
 0x275   : > { %v2378_v61 = vpack.c.bf16 %v1729_v25, %v1727_v15 }
 0x276   : > { %v1731_v6 = vpop.f32.mrf.mxu1 }
 0x277   : > { %2038 = vst [vmem:[%s3292_s17 + $0x50] sm:$0xff] %v2378_v61 }
 0x278   : > { %v1733_v58 = vpop.f32.mrf.mxu1 }
 0x279   : > { %v2379_v28 = vpack.c.bf16 %v1733_v58, %v1731_v6 }
 0x27a   : > { %v1737_v21 = vpop.f32.mrf.mxu1 }
 0x27b   : > { %2039 = vst [vmem:[%s3292_s17 + $0x58] sm:$0xff] %v2379_v28 }
 0x27c   : > { %v1739_v46 = vpop.f32.mrf.mxu1 }
 0x27d   : > { %v2380_v51 = vpack.c.bf16 %v1739_v46, %v1737_v21 }
 0x27e   : > { %v1741_v37 = vpop.f32.mrf.mxu1 }
 0x27f   : > { %2040 = vst [vmem:[%s3292_s17 + $0x60] sm:$0xff] %v2380_v51 }
 0x280   : > { %v1743_v57 = vpop.f32.mrf.mxu1 }
 0x281   : > { %v2381_v22 = vpack.c.bf16 %v1743_v57, %v1741_v37 }
 0x282   : > { %v1747_v34 = vpop.f32.mrf.mxu1 }
 0x283   : > { %2041 = vst [vmem:[%s3292_s17 + $0x68] sm:$0xff] %v2381_v22 }
 0x284   : > { %v1749_v43 = vpop.f32.mrf.mxu1 }
 0x285   : > { %v2382_v19 = vpack.c.bf16 %v1749_v43, %v1747_v34 }
 0x286   : > { %v1751_v20 = vpop.f32.mrf.mxu1 }
 0x287   : > { %2042 = vst [vmem:[%s3292_s17 + $0x70] sm:$0xff] %v2382_v19 }
 0x288   : > { %v1753_v14 = vpop.f32.mrf.mxu1 }
 0x289   : > { %v2383_v10 = vpack.c.bf16 %v1753_v14, %v1751_v20 }
 0x28a   : > { %v1757_v16 = vpop.f32.mrf.mxu1 }
 0x28b   : > { %2043 = vst [vmem:[%s3292_s17 + $0x78] sm:$0xff] %v2383_v10 }
 0x28c   : > { %v1759_v63 = vpop.f32.mrf.mxu1 }
 0x28d   : > { %v2384_v23 = vpack.c.bf16 %v1759_v63, %v1757_v16 }
 0x28e   : > { %v1761_v18 = vpop.f32.mrf.mxu1 }
 0x28f   : > { %2044 = vst [vmem:[%s3292_s17 + $0x80] sm:$0xff] %v2384_v23 }
 0x290   : > { %v1763_v56 = vpop.f32.mrf.mxu1 }
 0x291   : > { %v2385_v44 = vpack.c.bf16 %v1763_v56, %v1761_v18 }
 0x292   : > { %v1767_v2 = vpop.f32.mrf.mxu1 }
 0x293   : > { %2045 = vst [vmem:[%s3292_s17 + $0x88] sm:$0xff] %v2385_v44 }
 0x294   : > { %v1769_v3 = vpop.f32.mrf.mxu1 }
 0x295   : > { %v2386_v11 = vpack.c.bf16 %v1769_v3, %v1767_v2 }
 0x296   : > { %v1771_v27 = vpop.f32.mrf.mxu1 }
 0x297   : > { %2046 = vst [vmem:[%s3292_s17 + $0x90] sm:$0xff] %v2386_v11 }
 0x298   : > { %v1773_v24 = vpop.f32.mrf.mxu1 }
 0x299   : > { %v2387_v8 = vpack.c.bf16 %v1773_v24, %v1771_v27 }
 0x29a   : > { %v1777_v60 = vpop.f32.mrf.mxu1 }
 0x29b   : > { %2047 = vst [vmem:[%s3292_s17 + $0x98] sm:$0xff] %v2387_v8 }
 0x29c   : > { %v1779_v41 = vpop.f32.mrf.mxu1 }
 0x29d   : > { %v2388_v54 = vpack.c.bf16 %v1779_v41, %v1777_v60 }
 0x29e   : > { %v1781_v62 = vpop.f32.mrf.mxu1 }
 0x29f   : > { %2048 = vst [vmem:[%s3292_s17 + $0xa0] sm:$0xff] %v2388_v54 }
 0x2a0   : > { %v1783_v7 = vpop.f32.mrf.mxu1 }
 0x2a1   : > { %v2389_v30 = vpack.c.bf16 %v1783_v7, %v1781_v62 }
 0x2a2   : > { %v1787_v38 = vpop.f32.mrf.mxu1 }
 0x2a3   : > { %2049 = vst [vmem:[%s3292_s17 + $0xa8] sm:$0xff] %v2389_v30 }
 0x2a4   : > { %v1789_v48 = vpop.f32.mrf.mxu1 }
 0x2a5   : > { %v2390_v0 = vpack.c.bf16 %v1789_v48, %v1787_v38 }
 0x2a6   : > { %v1791_v31 = vpop.f32.mrf.mxu1 }
 0x2a7   : > { %2050 = vst [vmem:[%s3292_s17 + $0xb0] sm:$0xff] %v2390_v0 }
 0x2a8   : > { %v1793_v9 = vpop.f32.mrf.mxu1 }
 0x2a9   : > { %v2391_v26 = vpack.c.bf16 %v1793_v9, %v1791_v31 }
 0x2aa   : > { %v1797_v45 = vpop.f32.mrf.mxu1 }
 0x2ab   : > { %2051 = vst [vmem:[%s3292_s17 + $0xb8] sm:$0xff] %v2391_v26 }
 0x2ac   : > { %v1799_v55 = vpop.f32.mrf.mxu1 }
 0x2ad   : > { %v2392_v4 = vpack.c.bf16 %v1799_v55, %v1797_v45 }
 0x2ae   : > { %v1801_v32 = vpop.f32.mrf.mxu1 }
 0x2af   : > { %2052 = vst [vmem:[%s3292_s17 + $0xc0] sm:$0xff] %v2392_v4 }
 0x2b0   : > { %v1803_v39 = vpop.f32.mrf.mxu1 }
 0x2b1   : > { %v2393_v52 = vpack.c.bf16 %v1803_v39, %v1801_v32 }
 0x2b2   : > { %v1807_v13 = vpop.f32.mrf.mxu1 }
 0x2b3   : > { %2053 = vst [vmem:[%s3292_s17 + $0xc8] sm:$0xff] %v2393_v52 }
 0x2b4   : > { %v1809_v35 = vpop.f32.mrf.mxu1 }
 0x2b5   : > { %v2394_v50 = vpack.c.bf16 %v1809_v35, %v1807_v13 }
 0x2b6   : > { %v1811_v53 = vpop.f32.mrf.mxu1 }
 0x2b7   : > { %2054 = vst [vmem:[%s3292_s17 + $0xd0] sm:$0xff] %v2394_v50 }
 0x2b8   : > { %v1813_v42 = vpop.f32.mrf.mxu1 }
 0x2b9   : > { %v2395_v29 = vpack.c.bf16 %v1813_v42, %v1811_v53 }
 0x2ba   : > { %v1817_v17 = vpop.f32.mrf.mxu1 }
 0x2bb   : > { %2055 = vst [vmem:[%s3292_s17 + $0xd8] sm:$0xff] %v2395_v29 }
 0x2bc   : > { %v1819_v1 = vpop.f32.mrf.mxu1 }
 0x2bd   : > { %v2396_v40 = vpack.c.bf16 %v1819_v1, %v1817_v17 }
 0x2be   : > { %v1821_v5 = vpop.f32.mrf.mxu1 }
 0x2bf   : > { %2056 = vst [vmem:[%s3292_s17 + $0xe0] sm:$0xff] %v2396_v40 }
 0x2c0   : > { %v1823_v36 = vpop.f32.mrf.mxu1 }
 0x2c1   : > { %v2397_v33 = vpack.c.bf16 %v1823_v36, %v1821_v5 }
 0x2c2   : > { %v1827_v59 = vpop.f32.mrf.mxu1 }
 0x2c3   : > { %2057 = vst [vmem:[%s3292_s17 + $0xe8] sm:$0xff] %v2397_v33 }
 0x2c4   : > { %v1829_v49 = vpop.f32.mrf.mxu1 }
 0x2c5   : > { %v2398_v47 = vpack.c.bf16 %v1829_v49, %v1827_v59 }
 0x2c6   : > { %v1831_v12 = vpop.f32.mrf.mxu1 }
 0x2c7   : > { %2058 = vst [vmem:[%s3292_s17 + $0xf0] sm:$0xff] %v2398_v47 }
 0x2c8   : > { %v1833_v15 = vpop.f32.mrf.mxu1 }
 0x2c9   : > { %v2399_v25 = vpack.c.bf16 %v1833_v15, %v1831_v12 }
 0x2cb   : > { %2059 = vst [vmem:[%s3292_s17 + $0xf8] sm:$0xff] %v2399_v25 }
 0x2cc PF: > { %s17_s21 = sadd.s32 1, %s2682_s21  }
 0x2cd   : > { %p14_p4 = scmp.ge.s32.totalorder %s17_s21, 4  }
 0x2cf   :  { %16 = sbr.rel (!%p14_p4) target bundleno = 1 (0x1), region = 82 }

// kernel: hypercolumn_forward.6
= control target key start
LH: loop header
LB: loop body
LE: loop exit
PB: predicated region body
PF: predicated region fallthrough
CT: control target
= control target key end

     0   :  { %s1976_s21 = smov 0   ;;  %s2320_s0 = inlined_call_operand.vmem [shape: bf16[128,800], index: 0, kind: input, shape index: {}]   ;;  %s2321_s1 = inlined_call_operand.vmem [shape: bf16[800,64], index: 1, kind: input, shape index: {}]   ;;  %s2322_s2 = inlined_call_operand.vmem [shape: f32[1,64], index: 2, kind: input, shape index: {}]   ;;  %s2323_s3 = inlined_call_operand.vmem [shape: f32[1,64], index: 3, kind: input, shape index: {}]   ;;  %s2324_s4 = inlined_call_operand.vmem [shape: bf16[64,256], index: 4, kind: input, shape index: {}]   ;;  %s2325_s5 = inlined_call_operand.vmem [shape: bf16[128,64], index: 5, kind: output, shape index: {0}]   ;;  %s2326_s6 = inlined_call_operand.vmem [shape: bf16[128,256], index: 6, kind: output, shape index: {1}]  }
   0x1 LB: > { %s1531_s22 = sadd.s32 4294967295, %s1938_s21   ;;  %p1535_p0 = scmp.ge.s32.totalorder %s1938_s21, 1  ;;  %s1938_s21 = sphi %s1976_s21, %s17_s21  }
   0x2   : > { %p217_p1 = scmp.lt.s32.totalorder %s1938_s21, 3 }
   0x4   : > { %p218_p2 = pnand %p1535_p0, %p217_p1 }
   0x5   : > { %s1536_s7 = sshll.u32 (!%p218_p2), %s1531_s22, 3 }
   0x6   : > { %221 = sbr.rel (%p218_p2) target bundleno = 532 (0x214), region = 40  ;;  %p255_p3 = scmp.lt.s32.totalorder (!%p218_p2), %s1536_s7, 15 }
   0xb   : > { %v1830_v0 = vld [vmem:[%s2321_s1 + $0x78] sm:$0xff]   ;;  %v1834_v4 = vld [vmem:[%s2321_s1 + $0x70] sm:$0xff]   ;;  %v1838_v8 = vld [vmem:[%s2321_s1 + $0x68] sm:$0xff]   ;;  %s2328_s7 = smov (!%p255_p3, %s1536_s7), 15  ;;  %vm847_vm0 = vcmask 261120   ;;  %vm1128_vm1 = vcmask 1046528  }
   0xc   : > { %v1831_v1 = vld [vmem:[%s2321_s1 + $0xf8] sm:$0xff]   ;;  %1674 = vmatprep.subr.bf16.mxu0 %v1830_v0  ;;  %v1835_v5 = vld [vmem:[%s2321_s1 + $0xf0] sm:$0xff]   ;;  %v1839_v9 = vld [vmem:[%s2321_s1 + $0xe8] sm:$0xff]   ;;  %s1820_s8 = smul.u32 28, %s2328_s7  ;;  %s1539_s15 = sshll.u32 %s2328_s7, 2  ;;  %vm1240_vm2 = vcmask 519168  }
   0xd   : > { %v1832_v2 = vld [vmem:[%s2321_s1 + $0x38] sm:$0xff]   ;;  %1714 = vmatprep.subr.bf16.mxu1 %v1831_v1  ;;  %v1836_v6 = vld [vmem:[%s2321_s1 + $0x30] sm:$0xff]   ;;  %v1840_v10 = vld [vmem:[%s2321_s1 + $0x28] sm:$0xff]   ;;  %s2258_s17 = scalar_lea.vmem %s2325_s5, %s1539_s15  ;;  %vm1297_vm3 = vcmask 523264   ;;  %s1657_s19 = sshll.u32 %s2328_s7, 3 }
   0xe   : > { %v1833_v3 = vld [vmem:[%s2321_s1 + $0xb8] sm:$0xff]   ;;  %1675 = vmatpush3.bf16.msra.mxu0 %v1832_v2  ;;  %v1837_v7 = vld [vmem:[%s2321_s1 + $0xb0] sm:$0xff]   ;;  %v1841_v11 = vld [vmem:[%s2321_s1 + $0xa8] sm:$0xff]   ;;  %s2082_s18 = scalar_lea.vmem %s2320_s0, %s1820_s8  ;;  %s2307_s24 = scalar_lea.vmem %s2326_s6, %s1657_s19 }
   0xf   : > { %1715 = vmatpush3.bf16.msra.mxu1 %v1833_v3  ;;  %1676 = vmatprep.subr.bf16.mxu0 %v1834_v4  ;;  %v1842_v12 = vld [vmem:[%s2321_s1 + $0x60] sm:$0xff]   ;;  %v1846_v16 = vld [vmem:[%s2321_s1 + $0x58] sm:$0xff]   ;;  %v1850_v20 = vld [vmem:[%s2321_s1 + $0x50] sm:$0xff]  }
  0x10   : > { %1716 = vmatprep.subr.bf16.mxu1 %v1835_v5  ;;  %v1843_v13 = vld [vmem:[%s2321_s1 + $0xe0] sm:$0xff]   ;;  %v1847_v17 = vld [vmem:[%s2321_s1 + $0xd8] sm:$0xff]   ;;  %v1851_v21 = vld [vmem:[%s2321_s1 + $0xd0] sm:$0xff]  }
  0x11   : > { %v1844_v14 = vld [vmem:[%s2321_s1 + $0x20] sm:$0xff]   ;;  %v1848_v18 = vld [vmem:[%s2321_s1 + $0x18] sm:$0xff]   ;;  %v1852_v22 = vld [vmem:[%s2321_s1 + $0x10] sm:$0xff]  }
  0x12   : > { %1677 = vmatpush3.bf16.msra.mxu0 %v1836_v6  ;;  %v1845_v15 = vld [vmem:[%s2321_s1 + $0xa0] sm:$0xff]   ;;  %v1849_v19 = vld [vmem:[%s2321_s1 + $0x98] sm:$0xff]   ;;  %v1853_v23 = vld [vmem:[%s2321_s1 + $0x90] sm:$0xff]  }
  0x13   : > { %1717 = vmatpush3.bf16.msra.mxu1 %v1837_v7  ;;  %1678 = vmatprep.subr.bf16.mxu0 %v1838_v8  ;;  %v1854_v24 = vld [vmem:[%s2321_s1 + $0x48] sm:$0xff]   ;;  %v1858_v28 = vld [vmem:[%s2321_s1 + $0x40] sm:$0xff]   ;;  %v1868_v36 = vld [vmem:[%s2321_s1 + $0x178] sm:$0xff]  }
  0x14   : > { %1718 = vmatprep.subr.bf16.mxu1 %v1839_v9  ;;  %v1855_v25 = vld [vmem:[%s2321_s1 + $0xc8] sm:$0xff]   ;;  %v1859_v29 = vld [vmem:[%s2321_s1 + $0xc0] sm:$0xff]   ;;  %v1869_v37 = vld [vmem:[%s2321_s1 + $0x138] sm:$0xff]  }
  0x15   : > { %v1856_v26 = vld [vmem:[%s2321_s1 + $0x8] sm:$0xff]   ;;  %v1860_v30 = vld [vmem:[%s2321_s1] sm:$0xff]   ;;  %v1870_v38 = vld [vmem:[%s2321_s1 + $0x170] sm:$0xff]  }
  0x16   : > { %1679 = vmatpush3.bf16.msra.mxu0 %v1840_v10  ;;  %v1857_v27 = vld [vmem:[%s2321_s1 + $0x88] sm:$0xff]   ;;  %v1861_v31 = vld [vmem:[%s2321_s1 + $0x80] sm:$0xff]   ;;  %v1871_v39 = vld [vmem:[%s2321_s1 + $0x130] sm:$0xff]  }
  0x17   : > { %1719 = vmatpush3.bf16.msra.mxu1 %v1841_v11  ;;  %1680 = vmatprep.subr.bf16.mxu0 %v1842_v12  ;;  %v1862_v32 = vld [vmem:[%s2082_s18] ss:$28 sps:$4 sm:$0xff]   ;;  %v1865_v34 = vld [vmem:[%s2082_s18 + $0x8] ss:$28 sps:$4 sm:$0xff]   ;;  %v1876_v42 = vld [vmem:[%s2082_s18 + $0x38] ss:$28 sps:$4 sm:$0xff]  }
  0x18   : > { %1720 = vmatprep.subr.bf16.mxu1 %v1843_v13  ;;  %v1864_v33 = vld [vmem:[%s2082_s18 + $0x4] ss:$28 sps:$4 sm:$0xff]   ;;  %v1867_v35 = vld [vmem:[%s2082_s18 + $0xc] ss:$28 sps:$4 sm:$0xff]   ;;  %v1872_v40 = vld [vmem:[%s2082_s18 + $0x3c] ss:$28 sps:$4 sm:$0xff]  }
  0x19   : > { %892 = vmatprep.mubr.bf16.mxu0 %v1864_v33  ;;  %957 = vmatprep.mubr.bf16.mxu1 %v1867_v35  ;;  %v1874_v41 = vld [vmem:[%s2082_s18 + $0x44] ss:$28 sps:$4 sm:$0xff]   ;;  %v1878_v44 = vld [vmem:[%s2321_s1 + $0x168] sm:$0xff]   ;;  %v1883_v49 = vld [vmem:[%s2082_s18 + $0x74] ss:$28 sps:$4 sm:$0xff]  }
  0x1a   : > { %1681 = vmatpush3.bf16.msra.mxu0 %v1844_v14  ;;  %v1877_v43 = vld [vmem:[%s2082_s18 + $0x40] ss:$28 sps:$4 sm:$0xff]   ;;  %v1879_v45 = vld [vmem:[%s2321_s1 + $0x128] sm:$0xff]   ;;  %v1888_v52 = vld [vmem:[%s2082_s18 + $0x78] ss:$28 sps:$4 sm:$0xff]  }
  0x1b   : > { %1721 = vmatpush3.bf16.msra.mxu1 %v1845_v15  ;;  %1682 = vmatprep.subr.bf16.mxu0 %v1846_v16  ;;  %v1880_v46 = vld [vmem:[%s2321_s1 + $0x160] sm:$0xff]   ;;  %v1881_v47 = vld [vmem:[%s2321_s1 + $0x188] sm:$0xff]   ;;  %v1885_v50 = vld [vmem:[%s2082_s18 + $0x7c] ss:$28 sps:$4 sm:$0xff]  }
  0x1c   : > { %1722 = vmatprep.subr.bf16.mxu1 %v1847_v17  ;;  %v1882_v48 = vld [vmem:[%s2321_s1 + $0x120] sm:$0xff]   ;;  %v1887_v51 = vld [vmem:[%s2082_s18 + $0x70] ss:$28 sps:$4 sm:$0xff]   ;;  %v1889_v53 = vld [vmem:[%s2321_s1 + $0x158] sm:$0xff]  }
  0x1d   : > { %v1890_v54 = vld [vmem:[%s2321_s1 + $0x118] sm:$0xff]   ;;  %v1891_v55 = vld [vmem:[%s2321_s1 + $0x150] sm:$0xff]   ;;  %v1893_v57 = vld [vmem:[%s2082_s18 + $0xac] ss:$28 sps:$4 sm:$0xff]  }
  0x1e   : > { %1683 = vmatpush3.bf16.msra.mxu0 %v1848_v18  ;;  %v1892_v56 = vld [vmem:[%s2321_s1 + $0x110] sm:$0xff]   ;;  %v1897_v59 = vld [vmem:[%s2082_s18 + $0xa8] ss:$28 sps:$4 sm:$0xff]   ;;  %v1915_v9 = vld [vmem:[%s2082_s18 + $0xc0] ss:$28 sps:$4 sm:$0xff]  }
  0x1f   : > { %1723 = vmatpush3.bf16.msra.mxu1 %v1849_v19  ;;  %1684 = vmatprep.subr.bf16.mxu0 %v1850_v20  ;;  %v1895_v58 = vld [vmem:[%s2082_s18 + $0xb4] ss:$28 sps:$4 sm:$0xff]   ;;  %v1899_v61 = vld [vmem:[%s2321_s1 + $0x148] sm:$0xff]   ;;  %v1901_v63 = vld [vmem:[%s2321_s1 + $0x140] sm:$0xff]  }
  0x20   : > { %1724 = vmatprep.subr.bf16.mxu1 %v1851_v21  ;;  %v1898_v60 = vld [vmem:[%s2082_s18 + $0xb0] ss:$28 sps:$4 sm:$0xff]   ;;  %v1902_v0 = vld [vmem:[%s2321_s1 + $0x180] sm:$0xff]   ;;  %v1907_v3 = vld [vmem:[%s2082_s18 + $0x18] ss:$28 sps:$4 sm:$0xff]  }
  0x21   : > { %v1900_v62 = vld [vmem:[%s2321_s1 + $0x108] sm:$0xff]   ;;  %v1903_v1 = vld [vmem:[%s2321_s1 + $0x100] sm:$0xff]   ;;  %v1906_v2 = vld [vmem:[%s2082_s18 + $0x14] ss:$28 sps:$4 sm:$0xff]  }
  0x22   : > { %1685 = vmatpush3.bf16.msra.mxu0 %v1852_v22  ;;  %v1904_v4 = vld [vmem:[%s2082_s18 + $0x10] ss:$28 sps:$4 sm:$0xff]   ;;  %v1912_v7 = vld [vmem:[%s2082_s18 + $0x88] ss:$28 sps:$4 sm:$0xff]   ;;  %v1916_v11 = vld [vmem:[%s2082_s18 + $0x80] ss:$28 sps:$4 sm:$0xff]  }
  0x23   : > { %1725 = vmatpush3.bf16.msra.mxu1 %v1853_v23  ;;  %1686 = vmatprep.subr.bf16.mxu0 %v1854_v24  ;;  %v1908_v5 = vld [vmem:[%s2082_s18 + $0x50] ss:$28 sps:$4 sm:$0xff]   ;;  %v1911_v8 = vld [vmem:[%s2082_s18 + $0x48] ss:$28 sps:$4 sm:$0xff]   ;;  %v1917_v12 = vld [vmem:[%s2082_s18 + $0xbc] ss:$28 sps:$4 sm:$0xff]  }
  0x24   : > { %1726 = vmatprep.subr.bf16.mxu1 %v1855_v25  ;;  %v1909_v6 = vld [vmem:[%s2082_s18 + $0x4c] ss:$28 sps:$4 sm:$0xff]   ;;  %v1913_v10 = vld [vmem:[%s2082_s18 + $0x84] ss:$28 sps:$4 sm:$0xff]   ;;  %v1919_v13 = vld [vmem:[%s2082_s18 + $0xb8] ss:$28 sps:$4 sm:$0xff]  }
  0x25   : > { %v1922_v14 = vld [vmem:[%s2324_s4 + $0x34] ss:$8 sps:$4 sm:$0xff]   ;;  %v1920_v15 = vld [vmem:[%s2324_s4 + $0x30] ss:$8 sps:$4 sm:$0xff]   ;;  %v1925_v16 = vld [vmem:[%s2324_s4 + $0x24] ss:$8 sps:$4 sm:$0xff]  }
  0x26   : > { %1687 = vmatpush3.bf16.msra.mxu0 %v1856_v26  ;;  %v1923_v17 = vld [vmem:[%s2324_s4 + $0x20] ss:$8 sps:$4 sm:$0xff]   ;;  %v1928_v18 = vld [vmem:[%s2324_s4 + $0x14] ss:$8 sps:$4 sm:$0xff]   ;;  %v1926_v19 = vld [vmem:[%s2324_s4 + $0x10] ss:$8 sps:$4 sm:$0xff]  }
  0x27   : > { %1727 = vmatpush3.bf16.msra.mxu1 %v1857_v27  ;;  %1688 = vmatprep.subr.bf16.mxu0 %v1858_v28  ;;  %v1931_v20 = vld [vmem:[%s2324_s4 + $0x4] ss:$8 sps:$4 sm:$0xff]   ;;  %v1929_v21 = vld [vmem:[%s2324_s4] ss:$8 sps:$4 sm:$0xff]   ;;  %v1940_v22 = vmov 0  }
  0x28   : > { %1728 = vmatprep.subr.bf16.mxu1 %v1859_v29 }
  0x2a   : > { %1689 = vmatpush3.bf16.msra.mxu0 %v1860_v30 }
  0x2b   : > { %1729 = vmatpush3.bf16.msra.mxu1 %v1861_v31  ;;  %1754 = vmatprep.subr.bf16.mxu0 %v1868_v36 }
  0x2c   : > { %1800 = vmatprep.subr.bf16.mxu1 %v1881_v47 }
  0x2d   : > { %893 = vmatmul.mubr.bf16.vlgmr.msra.gmra.mxu0 %v1862_v32 }
  0x2e   : > { %958 = vmatmul.mubr.bf16.vlgmr.msra.gmra.mxu1 %v1865_v34  ;;  %1755 = vmatpush3.bf16.msra.mxu0 %v1869_v37 }
  0x2f   : > { %1756 = vmatprep.subr.bf16.mxu0 %v1870_v38  ;;  %900 = vmatprep.mubr.bf16.mxu0 %v1872_v40 }
  0x30   : > { %965 = vmatprep.mubr.bf16.mxu1 %v1874_v41  ;;  %1801 = vmatpush3.bf16.msra.mxu1 %v1881_v47 }
  0x31   : > { %1802 = vmatprep.subr.bf16.mxu1 %v1902_v0 }
  0x32   : > { %1757 = vmatpush3.bf16.msra.mxu0 %v1871_v39 }
  0x33   : > { %1758 = vmatprep.subr.bf16.mxu0 %v1878_v44 }
  0x34   : > { %1803 = vmatpush3.bf16.msra.mxu1 %v1902_v0 }
  0x35   : > { %901 = vmatmul.mubr.bf16.gmra.mxu0 %v1876_v42  ;;  %1812 = vmatprep.subr.bf16.mxu1 %v1922_v14 }
  0x36   : > { %966 = vmatmul.mubr.bf16.gmra.mxu1 %v1877_v43  ;;  %1759 = vmatpush3.bf16.msra.mxu0 %v1879_v45 }
  0x37   : > { %1760 = vmatprep.subr.bf16.mxu0 %v1880_v46  ;;  %908 = vmatprep.mubr.bf16.mxu0 %v1883_v49 }
  0x38   : > { %973 = vmatprep.mubr.bf16.mxu1 %v1885_v50 }
  0x3a   : > { %1761 = vmatpush3.bf16.msra.mxu0 %v1882_v48 }
  0x3b   : > { %1762 = vmatprep.subr.bf16.mxu0 %v1889_v53 }
  0x3d   : > { %909 = vmatmul.mubr.bf16.gmra.mxu0 %v1887_v51 }
  0x3e   : > { %974 = vmatmul.mubr.bf16.gmra.mxu1 %v1888_v52  ;;  %1763 = vmatpush3.bf16.msra.mxu0 %v1890_v54 }
  0x3f   : > { %1764 = vmatprep.subr.bf16.mxu0 %v1891_v55  ;;  %916 = vmatprep.mubr.bf16.mxu0 %v1893_v57 }
  0x40   : > { %981 = vmatprep.mubr.bf16.mxu1 %v1895_v58 }
  0x42   : > { %1765 = vmatpush3.bf16.msra.mxu0 %v1892_v56 }
  0x43   : > { %1766 = vmatprep.subr.bf16.mxu0 %v1899_v61 }
  0x45   : > { %917 = vmatmul.mubr.bf16.gmra.mxu0 %v1897_v59 }
  0x46   : > { %982 = vmatmul.mubr.bf16.gmra.mxu1 %v1898_v60  ;;  %1767 = vmatpush3.bf16.msra.mxu0 %v1900_v62 }
  0x47   : > { %1768 = vmatprep.subr.bf16.mxu0 %v1901_v63  ;;  %1022 = vmatprep.mubr.bf16.mxu0 %v1906_v2 }
  0x48   : > { %1804 = vmatprep.mubr.msk.bf16.mxu1 %vm847_vm0, %v1907_v3 }
  0x4a   : > { %1769 = vmatpush3.bf16.msra.mxu0 %v1903_v1 }
  0x4b   : > { %1318 = vmatprep.subr.bf16.mxu0 %v1922_v14 }
  0x4d   : > { %1023 = vmatmul.mubr.bf16.vlgmr.msra.gmra.mxu0 %v1904_v4 }
  0x4e   : > { %1805 = vmatmul.mubr.msk.bf16.vlgmr.msra.gmra.mxu1 %vm847_vm0, %v1908_v5  ;;  %1030 = vmatprep.mubr.bf16.mxu0 %v1909_v6 }
  0x4f   : > { %1808 = vmatprep.mubr.msk.bf16.mxu1 %vm847_vm0, %v1912_v7  ;;  %1319 = vmatpush1.bf16.msra.mxu0 %v1920_v15 }
  0x50   : > { %1816 = vmatpush1.bf16.msra.mxu1 %v1920_v15  ;;  %1320 = vmatprep.subr.bf16.mxu0 %v1925_v16 }
  0x51   : > { %1813 = vmatprep.subr.bf16.mxu1 %v1925_v16 }
  0x53   : > { %1321 = vmatpush1.bf16.msra.mxu0 %v1923_v17 }
  0x54   : > { %1817 = vmatpush1.bf16.msra.mxu1 %v1923_v17  ;;  %1322 = vmatprep.subr.bf16.mxu0 %v1928_v18 }
  0x55   : > { %1031 = vmatmul.mubr.bf16.gmra.mxu0 %v1911_v8  ;;  %1814 = vmatprep.subr.bf16.mxu1 %v1928_v18 }
  0x56   : > { %1809 = vmatmul.mubr.msk.bf16.gmra.mxu1 %vm847_vm0, %v1915_v9  ;;  %1038 = vmatprep.mubr.bf16.mxu0 %v1913_v10 }
  0x57   : > { %1323 = vmatpush1.bf16.msra.mxu0 %v1926_v19  ;;  %1352 = vmatprep.mubr.bf16.mxu1 %v1940_v22 }
  0x58   : > { %1818 = vmatpush1.bf16.msra.mxu1 %v1926_v19  ;;  %1324 = vmatprep.subr.bf16.mxu0 %v1931_v20 }
  0x59   : > { %1815 = vmatprep.subr.bf16.mxu1 %v1931_v20 }
  0x5b   : > { %1325 = vmatpush1.bf16.msra.mxu0 %v1929_v21 }
  0x5c   : > { %1819 = vmatpush1.bf16.msra.mxu1 %v1929_v21 }
  0x5d   : > { %1039 = vmatmul.mubr.bf16.gmra.mxu0 %v1916_v11 }
  0x5e   : > { %1046 = vmatprep.mubr.bf16.mxu0 %v1917_v12 }
  0x65   : > { %1047 = vmatmul.mubr.bf16.gmra.mxu0 %v1919_v13 }
  0x66   : > { %1342 = vmatprep.mubr.bf16.mxu0 %v1940_v22 }
  0xed   : > { %v1690_v23 = vpop.f32.mrf.mxu0 }
  0xee   : > { %v1730_v24 = vpop.f32.mrf.mxu1 }
  0xef   : > { %v1691_v25 = vpop.f32.mrf.mxu0 }
  0xf0   : > { %v1731_v26 = vpop.f32.mrf.mxu1  ;;  %v1692_v57 = vadd.f32 %v1691_v25, %v1690_v23 }
  0xf1   : > { %v1693_v27 = vpop.f32.mrf.mxu0  ;;  %v1732_v58 = vadd.f32 %v1731_v26, %v1730_v24 }
  0xf2   : > { %v1733_v28 = vpop.f32.mrf.mxu1 }
  0xf3   : > { %v1694_v29 = vpop.f32.mrf.mxu0  ;;  %v960_v2 = vadd.f32 %v1732_v58, %v1692_v57  ;;  %v2233_v58 = vld [vmem:[%s2322_s2] ss:$0 sm:$0xff] }
  0xf4   : > { %v1734_v30 = vpop.f32.mrf.mxu1  ;;  %v1695_v61 = vadd.f32 %v1694_v29, %v1693_v27 }
  0xf5   : > { %v1696_v31 = vpop.f32.mrf.mxu0  ;;  %v1735_v62 = vadd.f32 %v1734_v30, %v1733_v28 }
  0xf6   : > { %v1736_v32 = vpop.f32.mrf.mxu1 }
  0xf7   : > { %v1697_v33 = vpop.f32.mrf.mxu0  ;;  %v963_v6 = vadd.f32 %v1735_v62, %v1695_v61 }
  0xf8   : > { %v1737_v34 = vpop.f32.mrf.mxu1  ;;  %v1698_v3 = vadd.f32 %v1697_v33, %v1696_v31 }
  0xf9   : > { %v1699_v35 = vpop.f32.mrf.mxu0  ;;  %v1738_v4 = vadd.f32 %v1737_v34, %v1736_v32 }
  0xfa   : > { %v1739_v36 = vpop.f32.mrf.mxu1 }
  0xfb   : > { %v1700_v37 = vpop.f32.mrf.mxu0  ;;  %v968_v12 = vadd.f32 %v1738_v4, %v1698_v3 }
  0xfc   : > { %v1740_v38 = vpop.f32.mrf.mxu1  ;;  %v1701_v13 = vadd.f32 %v1700_v37, %v1699_v35 }
  0xfd   : > { %v1702_v39 = vpop.f32.mrf.mxu0  ;;  %v1741_v15 = vadd.f32 %v1740_v38, %v1739_v36 }
  0xfe   : > { %v1742_v40 = vpop.f32.mrf.mxu1 }
  0xff   : > { %v1703_v41 = vpop.f32.mrf.mxu0  ;;  %v971_v27 = vadd.f32 %v1741_v15, %v1701_v13 }
 0x100   : > { %v1743_v42 = vpop.f32.mrf.mxu1  ;;  %v1704_v23 = vadd.f32 %v1703_v41, %v1702_v39 }
 0x101   : > { %v1705_v43 = vpop.f32.mrf.mxu0  ;;  %v1744_v24 = vadd.f32 %v1743_v42, %v1742_v40 }
 0x102   : > { %v1745_v44 = vpop.f32.mrf.mxu1 }
 0x103   : > { %v1706_v45 = vpop.f32.mrf.mxu0  ;;  %v976_v35 = vadd.f32 %v1744_v24, %v1704_v23 }
 0x104   : > { %v1746_v46 = vpop.f32.mrf.mxu1  ;;  %v1707_v36 = vadd.f32 %v1706_v45, %v1705_v43 }
 0x105   : > { %v2202_v47 = vpop.f32.mrf.mxu0  ;;  %v1747_v39 = vadd.f32 %v1746_v46, %v1745_v44 }
 0x106   : > { %v2204_v48 = vpop.f32.mrf.mxu1 }
 0x107   : > { %v2206_v49 = vpop.f32.mrf.mxu0  ;;  %v979_v62 = vadd.f32 %v1747_v39, %v1707_v36 }
 0x108   : > { %v2208_v50 = vpop.f32.mrf.mxu1  ;;  %v1710_v43 = vadd.f32 %v2206_v49, %v2202_v47 }
 0x109   : > { %v2210_v51 = vpop.f32.mrf.mxu0  ;;  %v1750_v44 = vadd.f32 %v2208_v50, %v2204_v48 }
 0x10a   : > { %v2212_v52 = vpop.f32.mrf.mxu1 }
 0x10b   : > { %v2214_v53 = vpop.f32.mrf.mxu0  ;;  %v984_v4 = vadd.f32 %v1750_v44, %v1710_v43 }
 0x10c   : > { %v2216_v54 = vpop.f32.mrf.mxu1 }
 0x10d   : > { %v1770_v55 = vpop.f32.mrf.mxu0 }
 0x10e   : > { %v1806_v56 = vpop.f32.mrf.mxu1 }
 0x10f   : > { %v1771_v59 = vpop.f32.mrf.mxu0 }
 0x110   : > { %v1089_v60 = vpop.f32.mrf.mxu1  ;;  %v1772_v63 = vadd.f32 %v1771_v59, %v1770_v55 }
 0x111   : > { %v1773_v0 = vpop.f32.mrf.mxu0 }
 0x112   : > { %v1807_v1 = vpop.f32.mrf.mxu1  ;;  %v1025_v8 = vadd.f32 %v1772_v63, %v960_v2  ;;  %v2243_v63 = vld [vmem:[%s2323_s3] ss:$0 sm:$0xff] }
 0x113   : > { %v1774_v5 = vpop.f32.mrf.mxu0 }
 0x114   : > { %v1775_v7 = vadd.f32 %v1774_v5, %v1773_v0  ;;  %v1092_v10 = vpop.f32.mrf.mxu1  ;;  %v2218_v16 = vadd.f32 %v1089_v60, %v1025_v8  ;;  %v1713_v5 = vadd.f32 %v2214_v53, %v2210_v51 }
 0x115   : > { %v1776_v9 = vpop.f32.mrf.mxu0 }
 0x116   : > { %v1028_v11 = vadd.f32 %v1775_v7, %v963_v6  ;;  %v2220_v26 = vpop.f32.mrf.mxu1  ;;  %v1129_v28 = vrot.slane %v2218_v16, 1 }
 0x117   : > { %v1777_v14 = vpop.f32.mrf.mxu0 }
 0x118   : > { %v1778_v17 = vadd.f32 %v1777_v14, %v1776_v9  ;;  %v1093_v18 = vadd.f32 %v1092_v10, %v1028_v11  ;;  %v1105_v37 = vpop.f32.mrf.mxu1  ;;  %v1753_v10 = vadd.f32 %v2216_v54, %v2212_v52 }
 0x119   : > { %v1779_v19 = vpop.f32.mrf.mxu0 }
 0x11a   : > { %v1033_v20 = vadd.f32 %v1778_v17, %v968_v12  ;;  %v1130_v21 = vrot.slane %v1093_v18, 1  ;;  %v1811_v46 = vpop.f32.mrf.mxu1 }
 0x11b   : > { %v1780_v25 = vpop.f32.mrf.mxu0 }
 0x11c   : > { %v1098_v29 = vadd.f32 %v1806_v56, %v1033_v20  ;;  %v1781_v30 = vadd.f32 %v1780_v25, %v1779_v19  ;;  %v1131_v33 = vsel %vm1128_vm1, %v1129_v28, %v1130_v21  ;;  %v1108_v8 = vpop.f32.mrf.mxu1 }
 0x11d   : > { %v1782_v31 = vpop.f32.mrf.mxu0  ;;  %v2228_v55 = vmax.f32 %v2218_v16, %v1131_v33 }
 0x11e   : > { %v1132_v32 = vrot.slane %v1098_v29, 1  ;;  %v1036_v34 = vadd.f32 %v1781_v30, %v971_v27 }
 0x11f   : > { %v1783_v38 = vpop.f32.mrf.mxu0 }
 0x120   : > { %v1133_v40 = vsel %vm1128_vm1, %v1130_v21, %v1132_v32  ;;  %v1101_v41 = vadd.f32 %v1807_v1, %v1036_v34  ;;  %v1784_v42 = vadd.f32 %v1783_v38, %v1782_v31  ;;  %v987_v21 = vadd.f32 %v1753_v10, %v1713_v5 }
 0x121   : > { %v1155_v56 = vmax.f32 %v1093_v18, %v1133_v40  ;;  %v1785_v57 = vpop.f32.mrf.mxu0 }
 0x122   : > { %v1134_v59 = vrot.slane %v1101_v41, 1  ;;  %v1041_v60 = vadd.f32 %v1784_v42, %v976_v35 }
 0x123   : > { %v1162_v45 = vmax.f32 %v2228_v55, %v1155_v56  ;;  %v1786_v61 = vpop.f32.mrf.mxu0 }
 0x124   : > { %v1135_v0 = vsel %vm1128_vm1, %v1132_v32, %v1134_v59  ;;  %v1106_v1 = vadd.f32 %v1105_v37, %v1041_v60  ;;  %v1787_v2 = vadd.f32 %v1786_v61, %v1785_v57 }
 0x125   : > { %v1177_v47 = vmul.f32 %v2233_v58, %v1162_v45  ;;  %v1156_v49 = vmax.f32 %v1098_v29, %v1135_v0  ;;  %v1788_v3 = vpop.f32.mrf.mxu0 }
 0x126   : > { %v1136_v48 = vrot.slane %v1106_v1, 1  ;;  %v1044_v50 = vadd.f32 %v1787_v2, %v979_v62 }
 0x127   : > { %v1192_v6 = vadd.f32 %v2243_v63, %v1177_v47  ;;  %v1163_v7 = vmax.f32 %v1155_v56, %v1156_v49  ;;  %v1789_v9 = vpop.f32.mrf.mxu0 }
 0x128   : > { %v1137_v11 = vsel %vm1128_vm1, %v1134_v59, %v1136_v48  ;;  %v1109_v12 = vadd.f32 %v1108_v8, %v1044_v50  ;;  %v1790_v13 = vadd.f32 %v1789_v9, %v1788_v3 }
 0x129   : > { %v1200_v14 = vmax.f32 %v1192_v6, 0.0  ;;  %v1178_v15 = vmul.f32 %v2233_v58, %v1163_v7  ;;  %v1157_v17 = vmax.f32 %v1101_v41, %v1137_v11  ;;  %v1791_v18 = vpop.f32.mrf.mxu0 }
 0x12a   : > { %v1138_v51 = vrot.slane %v1109_v12, 1  ;;  %v1049_v53 = vadd.f32 %v1790_v13, %v984_v4 }
 0x12b   : > { %v1658_v19 = vpack.c.bf16 %v1200_v14, %v1200_v14  ;;  %v1193_v52 = vadd.f32 %v2243_v63, %v1178_v15  ;;  %v1164_v54 = vmax.f32 %v1156_v49, %v1157_v17  ;;  %v1792_v20 = vpop.f32.mrf.mxu0 }
 0x12c   : > { %v1139_v23 = vsel %vm1128_vm1, %v1136_v48, %v1138_v51  ;;  %v1114_v24 = vadd.f32 %v2220_v26, %v1049_v53  ;;  %v1793_v25 = vadd.f32 %v1792_v20, %v1791_v18 }
 0x12d   : > { %1241 = vst.msk [vmem:[%s2258_s17] sm:$0xf] %vm1240_vm2, %v1658_v19  ;;  %v1201_v27 = vmax.f32 %v1193_v52, 0.0  ;;  %v1179_v29 = vmul.f32 %v2233_v58, %v1164_v54  ;;  %v1158_v30 = vmax.f32 %v1106_v1, %v1139_v23 }
 0x12e   : > { %v1140_v31 = vrot.slane %v1114_v24, 1  ;;  %v1052_v32 = vadd.f32 %v1793_v25, %v987_v21 }
 0x12f   : > { %v1659_v33 = vpack.c.bf16 %v1201_v27, %v1201_v27  ;;  %v1194_v34 = vadd.f32 %v2243_v63, %v1179_v29  ;;  %v1165_v35 = vmax.f32 %v1157_v17, %v1158_v30  ;;  %v1208_v36 = vpack.c.bf16 %v1201_v27, %v1200_v14 }
 0x130   : > { %v1141_v37 = vsel %vm1128_vm1, %v1138_v51, %v1140_v31  ;;  %v1117_v38 = vadd.f32 %v1811_v46, %v1052_v32 }
 0x131   : > { %1242 = vst.msk [vmem:[%s2258_s17 + $0x4] sm:$0xf] %vm1240_vm2, %v1659_v33  ;;  %v1202_v26 = vmax.f32 %v1194_v34, 0.0  ;;  %v1180_v39 = vmul.f32 %v2233_v58, %v1165_v35  ;;  %v1159_v40 = vmax.f32 %v1109_v12, %v1141_v37  ;;  %1643 = vmatmul.mubr.msk.bf16.vlgmr.msra.gmra.mxu0 %vm1297_vm3, %v1208_v36 }
 0x132   : > { %v1142_v41 = vrot.slane %v1117_v38, 1 }
 0x133   : > { %v1660_v42 = vpack.c.bf16 %v1202_v26, %v1202_v26  ;;  %v1195_v56 = vadd.f32 %v2243_v63, %v1180_v39  ;;  %v1166_v57 = vmax.f32 %v1158_v30, %v1159_v40 }
 0x134   : > { %v1143_v59 = vsel %vm1128_vm1, %v1140_v31, %v1142_v41  ;;  %v1153_v60 = vsel %vm1128_vm1, %v1142_v41, %v1129_v28 }
 0x135   : > { %1243 = vst.msk [vmem:[%s2258_s17 + $0x8] sm:$0xf] %vm1240_vm2, %v1660_v42  ;;  %v1203_v43 = vmax.f32 %v1195_v56, 0.0  ;;  %v1160_v44 = vmax.f32 %v1114_v24, %v1143_v59  ;;  %v1161_v45 = vmax.f32 %v1117_v38, %v1153_v60  ;;  %v1181_v46 = vmul.f32 %v2233_v58, %v1166_v57 }
 0x137   : > { %v1661_v61 = vpack.c.bf16 %v1203_v43, %v1203_v43  ;;  %v1167_v62 = vmax.f32 %v1159_v40, %v1160_v44  ;;  %v1168_v0 = vmax.f32 %v1160_v44, %v1161_v45  ;;  %v1169_v1 = vmax.f32 %v1161_v45, %v2228_v55 }
 0x138   : > { %v1209_v2 = vpack.c.bf16 %v1203_v43, %v1202_v26  ;;  %v1196_v47 = vadd.f32 %v2243_v63, %v1181_v46 }
 0x139   : > { %1244 = vst.msk [vmem:[%s2258_s17 + $0xc] sm:$0xf] %vm1240_vm2, %v1661_v61  ;;  %v1183_v16 = vmul.f32 %v2233_v58, %v1168_v0  ;;  %v1184_v28 = vmul.f32 %v2233_v58, %v1169_v1  ;;  %v1182_v49 = vmul.f32 %v2233_v58, %v1167_v62 }
 0x13a   : > { %1644 = vmatmul.mubr.msk.bf16.vlgmr.msra.gmra.mxu1 %vm1297_vm3, %v1209_v2  ;;  %v1204_v3 = vmax.f32 %v1196_v47, 0.0 }
 0x13b   : > { %1362 = vmatprep.mubr.bf16.mxu1 %v1940_v22  ;;  %v1197_v55 = vadd.f32 %v2243_v63, %v1182_v49  ;;  %v1198_v48 = vadd.f32 %v2243_v63, %v1183_v16  ;;  %v1199_v50 = vadd.f32 %v2243_v63, %v1184_v28 }
 0x13c   : > { %v1662_v4 = vpack.c.bf16 %v1204_v3, %v1204_v3 }
 0x13d   : > { %v1205_v5 = vmax.f32 %v1197_v55, 0.0  ;;  %v1206_v6 = vmax.f32 %v1198_v48, 0.0  ;;  %v1207_v7 = vmax.f32 %v1199_v50, 0.0 }
 0x13e   : > { %1245 = vst.msk [vmem:[%s2258_s17 + $0x10] sm:$0xf] %vm1240_vm2, %v1662_v4 }
 0x13f   : > { %v1210_v58 = vpack.c.bf16 %v1205_v5, %v1204_v3  ;;  %v1663_v8 = vpack.c.bf16 %v1205_v5, %v1205_v5  ;;  %v1664_v9 = vpack.c.bf16 %v1206_v6, %v1206_v6  ;;  %v1665_v10 = vpack.c.bf16 %v1207_v7, %v1207_v7 }
 0x140   : > { %v1211_v63 = vpack.c.bf16 %v1207_v7, %v1206_v6 }
 0x141   : > { %1246 = vst.msk [vmem:[%s2258_s17 + $0x14] sm:$0xf] %vm1240_vm2, %v1663_v8  ;;  %1247 = vst.msk [vmem:[%s2258_s17 + $0x18] sm:$0xf] %vm1240_vm2, %v1664_v9 }
 0x142   : > { %1645 = vmatmul.mubr.msk.bf16.gmra.mxu1 %vm1297_vm3, %v1210_v58  ;;  %1248 = vst.msk [vmem:[%s2258_s17 + $0x1c] sm:$0xf] %vm1240_vm2, %v1665_v10 }
 0x143   : > { %1372 = vmatprep.mubr.bf16.mxu1 %v1940_v22 }
 0x14a   : > { %1646 = vmatmul.mubr.msk.bf16.gmra.mxu1 %vm1297_vm3, %v1211_v63 }
 0x1f1   : > { %v1344_v11 = vpop.f32.mrf.mxu0 }
 0x1f3   : > { %v1346_v12 = vpop.f32.mrf.mxu0 }
 0x1f4   : > { %v1666_v13 = vpack.c.bf16 %v1346_v12, %v1344_v11 }
 0x1f5   : > { %v1348_v14 = vpop.f32.mrf.mxu0 }
 0x1f6   : > { %1431 = vst [vmem:[%s2307_s24] sm:$0xff] %v1666_v13 }
 0x1f7   : > { %v1350_v22 = vpop.f32.mrf.mxu0 }
 0x1f8   : > { %v1667_v15 = vpack.c.bf16 %v1350_v22, %v1348_v14 }
 0x1fa   : > { %1432 = vst [vmem:[%s2307_s24 + $0x8] sm:$0xff] %v1667_v15  ;;  %v1354_v17 = vpop.f32.mrf.mxu1 }
 0x1fc   : > { %v1356_v18 = vpop.f32.mrf.mxu1 }
 0x1fd   : > { %v1668_v51 = vpack.c.bf16 %v1356_v18, %v1354_v17 }
 0x1fe   : > { %v1358_v53 = vpop.f32.mrf.mxu1 }
 0x1ff   : > { %1433 = vst [vmem:[%s2307_s24 + $0x10] sm:$0xff] %v1668_v51 }
 0x200   : > { %v1360_v19 = vpop.f32.mrf.mxu1 }
 0x201   : > { %v1669_v52 = vpack.c.bf16 %v1360_v19, %v1358_v53 }
 0x202   : > { %v1364_v54 = vpop.f32.mrf.mxu1 }
 0x203   : > { %1434 = vst [vmem:[%s2307_s24 + $0x18] sm:$0xff] %v1669_v52 }
 0x204   : > { %v1366_v20 = vpop.f32.mrf.mxu1 }
 0x205   : > { %v1670_v21 = vpack.c.bf16 %v1366_v20, %v1364_v54 }
 0x206   : > { %v1368_v23 = vpop.f32.mrf.mxu1 }
 0x207   : > { %1435 = vst [vmem:[%s2307_s24 + $0x20] sm:$0xff] %v1670_v21 }
 0x208   : > { %v1370_v24 = vpop.f32.mrf.mxu1 }
 0x209   : > { %v1671_v25 = vpack.c.bf16 %v1370_v24, %v1368_v23 }
 0x20a   : > { %v1374_v27 = vpop.f32.mrf.mxu1 }
 0x20b   : > { %1436 = vst [vmem:[%s2307_s24 + $0x28] sm:$0xff] %v1671_v25 }
 0x20c   : > { %v1376_v29 = vpop.f32.mrf.mxu1 }
 0x20d   : > { %v1672_v30 = vpack.c.bf16 %v1376_v29, %v1374_v27 }
 0x20e   : > { %v1378_v31 = vpop.f32.mrf.mxu1 }
 0x20f   : > { %1437 = vst [vmem:[%s2307_s24 + $0x30] sm:$0xff] %v1672_v30 }
 0x210   : > { %v1380_v32 = vpop.f32.mrf.mxu1 }
 0x211   : > { %v1673_v33 = vpack.c.bf16 %v1380_v32, %v1378_v31 }
 0x213   : > { %1438 = vst [vmem:[%s2307_s24 + $0x38] sm:$0xff] %v1673_v33 }
 0x214 PF: > { %s17_s21 = sadd.s32 1, %s1938_s21  }
 0x215   : > { %p14_p4 = scmp.ge.s32.totalorder %s17_s21, 4  }
 0x217   :  { %16 = sbr.rel (!%p14_p4) target bundleno = 1 (0x1), region = 82 }

// kernel: hypercolumn_forward.7
= control target key start
LH: loop header
LB: loop body
LE: loop exit
PB: predicated region body
PF: predicated region fallthrough
CT: control target
= control target key end

     0   :  { %s2254_s21 = smov 0   ;;  %s2650_s0 = inlined_call_operand.vmem [shape: bf16[32,1600], index: 0, kind: input, shape index: {}]   ;;  %s2651_s1 = inlined_call_operand.vmem [shape: bf16[1600,128], index: 1, kind: input, shape index: {}]   ;;  %s2652_s2 = inlined_call_operand.vmem [shape: f32[1,128], index: 2, kind: input, shape index: {}]   ;;  %s2653_s3 = inlined_call_operand.vmem [shape: f32[1,128], index: 3, kind: input, shape index: {}]   ;;  %s2654_s4 = inlined_call_operand.vmem [shape: bf16[128,256], index: 4, kind: input, shape index: {}]   ;;  %s2655_s5 = inlined_call_operand.vmem [shape: bf16[32,128], index: 5, kind: output, shape index: {0}]   ;;  %s2656_s6 = inlined_call_operand.vmem [shape: bf16[32,256], index: 6, kind: output, shape index: {1}]  }
   0x1 LB: > { %s1744_s22 = sadd.s32 4294967295, %s2214_s21   ;;  %p1748_p0 = scmp.ge.s32.totalorder %s2214_s21, 1  ;;  %s2214_s21 = sphi %s2254_s21, %s17_s21  }
   0x2   : > { %p217_p1 = scmp.lt.s32.totalorder %s2214_s21, 3 }
   0x4   : > { %p218_p2 = pnand %p1748_p0, %p217_p1 }
   0x5   : > { %s1749_s7 = sshll.u32 (!%p218_p2), %s1744_s22, 1 }
   0x6   : > { %221 = sbr.rel (%p218_p2) target bundleno = 544 (0x220), region = 40  ;;  %p255_p3 = scmp.lt.s32.totalorder (!%p218_p2), %s1749_s7, 3 }
   0xb   : > { %v2065_v0 = vld [vmem:[%s2651_s1 + $0x78] sm:$0xff]   ;;  %v2069_v4 = vld [vmem:[%s2651_s1 + $0x70] sm:$0xff]   ;;  %v2073_v8 = vld [vmem:[%s2651_s1 + $0x68] sm:$0xff]   ;;  %s2658_s7 = smov (!%p255_p3, %s1749_s7), 3  ;;  %vm2217_vm0 = vmmov 0   ;;  %vm1154_vm1 = vcmask 523264  }
   0xc   : > { %v2066_v1 = vld [vmem:[%s2651_s1 + $0xf8] sm:$0xff]   ;;  %1904 = vmatprep.subr.bf16.mxu0 %v2065_v0  ;;  %v2070_v5 = vld [vmem:[%s2651_s1 + $0xf0] sm:$0xff]   ;;  %v2074_v9 = vld [vmem:[%s2651_s1 + $0xe8] sm:$0xff]   ;;  %s2053_s8 = smul.u32 52, %s2658_s7  ;;  %vm1447_vm2 = vcmask 1046528   ;;  %vm1459_vm3 = vcmask 1043456  }
   0xd   : > { %v2067_v2 = vld [vmem:[%s2651_s1 + $0x38] sm:$0xff]   ;;  %1926 = vmatprep.subr.bf16.mxu1 %v2066_v1  ;;  %v2071_v6 = vld [vmem:[%s2651_s1 + $0x30] sm:$0xff]   ;;  %v2075_v10 = vld [vmem:[%s2651_s1 + $0x28] sm:$0xff]   ;;  %s1752_s27 = sshll.u32 %s2658_s7, 2 }
   0xe   : > { %v2068_v3 = vld [vmem:[%s2651_s1 + $0xb8] sm:$0xff]   ;;  %1905 = vmatpush3.bf16.msra.mxu0 %v2067_v2  ;;  %v2072_v7 = vld [vmem:[%s2651_s1 + $0xb0] sm:$0xff]   ;;  %v2076_v11 = vld [vmem:[%s2651_s1 + $0xa8] sm:$0xff]   ;;  %s2360_s18 = scalar_lea.vmem %s2650_s0, %s2053_s8  ;;  %s265_s30 = scalar_lea.vmem %s2655_s5, %s1752_s27 }
   0xf   : > { %1927 = vmatpush3.bf16.msra.mxu1 %v2068_v3  ;;  %1906 = vmatprep.subr.bf16.mxu0 %v2069_v4  ;;  %v2077_v12 = vld [vmem:[%s2651_s1 + $0x60] sm:$0xff]   ;;  %v2081_v16 = vld [vmem:[%s2651_s1 + $0x58] sm:$0xff]   ;;  %v2085_v20 = vld [vmem:[%s2651_s1 + $0x50] sm:$0xff]   ;;  %s1894_s8 = sshll.u32 %s2658_s7, 3 }
  0x10   : > { %1928 = vmatprep.subr.bf16.mxu1 %v2070_v5  ;;  %v2078_v13 = vld [vmem:[%s2651_s1 + $0xe0] sm:$0xff]   ;;  %v2082_v17 = vld [vmem:[%s2651_s1 + $0xd8] sm:$0xff]   ;;  %v2086_v21 = vld [vmem:[%s2651_s1 + $0xd0] sm:$0xff]   ;;  %s272_s11 = scalar_lea.vmem %s2656_s6, %s1894_s8 }
  0x11   : > { %v2079_v14 = vld [vmem:[%s2651_s1 + $0x20] sm:$0xff]   ;;  %v2083_v18 = vld [vmem:[%s2651_s1 + $0x18] sm:$0xff]   ;;  %v2087_v22 = vld [vmem:[%s2651_s1 + $0x10] sm:$0xff]  }
  0x12   : > { %1907 = vmatpush3.bf16.msra.mxu0 %v2071_v6  ;;  %v2080_v15 = vld [vmem:[%s2651_s1 + $0xa0] sm:$0xff]   ;;  %v2084_v19 = vld [vmem:[%s2651_s1 + $0x98] sm:$0xff]   ;;  %v2088_v23 = vld [vmem:[%s2651_s1 + $0x90] sm:$0xff]  }
  0x13   : > { %1929 = vmatpush3.bf16.msra.mxu1 %v2072_v7  ;;  %1908 = vmatprep.subr.bf16.mxu0 %v2073_v8  ;;  %v2089_v24 = vld [vmem:[%s2651_s1 + $0x48] sm:$0xff]   ;;  %v2093_v28 = vld [vmem:[%s2651_s1 + $0x40] sm:$0xff]   ;;  %v2103_v36 = vld [vmem:[%s2651_s1 + $0x178] sm:$0xff]  }
  0x14   : > { %1930 = vmatprep.subr.bf16.mxu1 %v2074_v9  ;;  %v2090_v25 = vld [vmem:[%s2651_s1 + $0xc8] sm:$0xff]   ;;  %v2094_v29 = vld [vmem:[%s2651_s1 + $0xc0] sm:$0xff]   ;;  %v2104_v37 = vld [vmem:[%s2651_s1 + $0x138] sm:$0xff]  }
  0x15   : > { %v2091_v26 = vld [vmem:[%s2651_s1 + $0x8] sm:$0xff]   ;;  %v2095_v30 = vld [vmem:[%s2651_s1] sm:$0xff]   ;;  %v2105_v38 = vld [vmem:[%s2651_s1 + $0x1f8] sm:$0xff]  }
  0x16   : > { %1909 = vmatpush3.bf16.msra.mxu0 %v2075_v10  ;;  %v2092_v27 = vld [vmem:[%s2651_s1 + $0x88] sm:$0xff]   ;;  %v2096_v31 = vld [vmem:[%s2651_s1 + $0x80] sm:$0xff]   ;;  %v2106_v39 = vld [vmem:[%s2651_s1 + $0x1b8] sm:$0xff]  }
  0x17   : > { %1931 = vmatpush3.bf16.msra.mxu1 %v2076_v11  ;;  %1910 = vmatprep.subr.bf16.mxu0 %v2077_v12  ;;  %v2097_v32 = vld [vmem:[%s2360_s18] ss:$52 sps:$4 sm:$0xff]   ;;  %v2099_v33 = vld [vmem:[%s2360_s18 + $0x4] ss:$52 sps:$4 sm:$0xff]   ;;  %v2100_v34 = vld [vmem:[%s2360_s18 + $0x8] ss:$52 sps:$4 sm:$0xff]  }
  0x18   : > { %1932 = vmatprep.subr.bf16.mxu1 %v2078_v13  ;;  %v2102_v35 = vld [vmem:[%s2360_s18 + $0xc] ss:$52 sps:$4 sm:$0xff]   ;;  %1190 = vmatprep.mubr.bf16.mxu0 %v2099_v33  ;;  %v2107_v40 = vld [vmem:[%s2651_s1 + $0x170] sm:$0xff]   ;;  %v2119_v52 = vld [vmem:[%s2651_s1 + $0x158] sm:$0xff]  }
  0x19   : > { %1231 = vmatprep.mubr.bf16.mxu1 %v2102_v35  ;;  %v2108_v41 = vld [vmem:[%s2651_s1 + $0x130] sm:$0xff]   ;;  %v2111_v44 = vld [vmem:[%s2651_s1 + $0x168] sm:$0xff]   ;;  %v2115_v48 = vld [vmem:[%s2651_s1 + $0x160] sm:$0xff]  }
  0x1a   : > { %1911 = vmatpush3.bf16.msra.mxu0 %v2079_v14  ;;  %v2109_v42 = vld [vmem:[%s2651_s1 + $0x1f0] sm:$0xff]   ;;  %v2112_v45 = vld [vmem:[%s2651_s1 + $0x128] sm:$0xff]   ;;  %v2116_v49 = vld [vmem:[%s2651_s1 + $0x120] sm:$0xff]  }
  0x1b   : > { %1933 = vmatpush3.bf16.msra.mxu1 %v2080_v15  ;;  %1912 = vmatprep.subr.bf16.mxu0 %v2081_v16  ;;  %v2110_v43 = vld [vmem:[%s2651_s1 + $0x1b0] sm:$0xff]   ;;  %v2113_v46 = vld [vmem:[%s2651_s1 + $0x1e8] sm:$0xff]   ;;  %v2117_v50 = vld [vmem:[%s2651_s1 + $0x1e0] sm:$0xff]  }
  0x1c   : > { %1934 = vmatprep.subr.bf16.mxu1 %v2082_v17  ;;  %v2114_v47 = vld [vmem:[%s2651_s1 + $0x1a8] sm:$0xff]   ;;  %v2118_v51 = vld [vmem:[%s2651_s1 + $0x1a0] sm:$0xff]   ;;  %v2120_v53 = vld [vmem:[%s2651_s1 + $0x118] sm:$0xff]  }
  0x1d   : > { %v2121_v54 = vld [vmem:[%s2651_s1 + $0x1d8] sm:$0xff]   ;;  %v2123_v56 = vld [vmem:[%s2651_s1 + $0x150] sm:$0xff]   ;;  %v2127_v60 = vld [vmem:[%s2651_s1 + $0x148] sm:$0xff]  }
  0x1e   : > { %1913 = vmatpush3.bf16.msra.mxu0 %v2083_v18  ;;  %v2122_v55 = vld [vmem:[%s2651_s1 + $0x198] sm:$0xff]   ;;  %v2124_v57 = vld [vmem:[%s2651_s1 + $0x110] sm:$0xff]   ;;  %v2128_v61 = vld [vmem:[%s2651_s1 + $0x108] sm:$0xff]  }
  0x1f   : > { %1935 = vmatpush3.bf16.msra.mxu1 %v2084_v19  ;;  %1914 = vmatprep.subr.bf16.mxu0 %v2085_v20  ;;  %v2125_v58 = vld [vmem:[%s2651_s1 + $0x1d0] sm:$0xff]   ;;  %v2129_v62 = vld [vmem:[%s2651_s1 + $0x1c8] sm:$0xff]   ;;  %v2131_v0 = vld [vmem:[%s2651_s1 + $0x140] sm:$0xff]  }
  0x20   : > { %1936 = vmatprep.subr.bf16.mxu1 %v2086_v21  ;;  %v2126_v59 = vld [vmem:[%s2651_s1 + $0x190] sm:$0xff]   ;;  %v2130_v63 = vld [vmem:[%s2651_s1 + $0x188] sm:$0xff]   ;;  %v2132_v1 = vld [vmem:[%s2651_s1 + $0x100] sm:$0xff]  }
  0x21   : > { %v2133_v2 = vld [vmem:[%s2651_s1 + $0x1c0] sm:$0xff]   ;;  %v2136_v4 = vld [vmem:[%s2360_s18 + $0x14] ss:$52 sps:$4 sm:$0xff]   ;;  %v2138_v6 = vld [vmem:[%s2651_s1 + $0x278] sm:$0xff]  }
  0x22   : > { %1915 = vmatpush3.bf16.msra.mxu0 %v2087_v22  ;;  %v2134_v3 = vld [vmem:[%s2360_s18 + $0x10] ss:$52 sps:$4 sm:$0xff]   ;;  %v2139_v7 = vld [vmem:[%s2360_s18 + $0x18] ss:$52 sps:$4 sm:$0xff]  }
  0x23   : > { %1937 = vmatpush3.bf16.msra.mxu1 %v2088_v23  ;;  %1916 = vmatprep.subr.bf16.mxu0 %v2089_v24  ;;  %v2137_v5 = vld [vmem:[%s2651_s1 + $0x180] sm:$0xff]   ;;  %v2141_v8 = vld [vmem:[%s2360_s18 + $0x1c] ss:$52 sps:$4 sm:$0xff]   ;;  %v2149_v16 = vld [vmem:[%s2651_s1 + $0x268] sm:$0xff]  }
  0x24   : > { %1938 = vmatprep.subr.bf16.mxu1 %v2090_v25  ;;  %v2142_v9 = vld [vmem:[%s2651_s1 + $0x238] sm:$0xff]   ;;  %v2145_v12 = vld [vmem:[%s2651_s1 + $0x270] sm:$0xff]   ;;  %v2150_v17 = vld [vmem:[%s2651_s1 + $0x228] sm:$0xff]  }
  0x25   : > { %v2143_v10 = vld [vmem:[%s2651_s1 + $0x2f8] sm:$0xff]   ;;  %v2146_v13 = vld [vmem:[%s2651_s1 + $0x230] sm:$0xff]   ;;  %v2151_v18 = vld [vmem:[%s2651_s1 + $0x2e8] sm:$0xff]  }
  0x26   : > { %1917 = vmatpush3.bf16.msra.mxu0 %v2091_v26  ;;  %v2144_v11 = vld [vmem:[%s2651_s1 + $0x2b8] sm:$0xff]   ;;  %v2147_v14 = vld [vmem:[%s2651_s1 + $0x2f0] sm:$0xff]   ;;  %v2152_v19 = vld [vmem:[%s2651_s1 + $0x2a8] sm:$0xff]  }
  0x27   : > { %1939 = vmatpush3.bf16.msra.mxu1 %v2092_v27  ;;  %1918 = vmatprep.subr.bf16.mxu0 %v2093_v28  ;;  %v2148_v15 = vld [vmem:[%s2651_s1 + $0x2b0] sm:$0xff]   ;;  %v2153_v20 = vld [vmem:[%s2651_s1 + $0x260] sm:$0xff]   ;;  %v2157_v24 = vld [vmem:[%s2651_s1 + $0x258] sm:$0xff]  }
  0x28   : > { %1940 = vmatprep.subr.bf16.mxu1 %v2094_v29  ;;  %v2154_v21 = vld [vmem:[%s2651_s1 + $0x220] sm:$0xff]   ;;  %v2158_v25 = vld [vmem:[%s2651_s1 + $0x218] sm:$0xff]   ;;  %v2161_v28 = vld [vmem:[%s2651_s1 + $0x250] sm:$0xff]  }
  0x29   : > { %v2155_v22 = vld [vmem:[%s2651_s1 + $0x2e0] sm:$0xff]   ;;  %v2159_v26 = vld [vmem:[%s2651_s1 + $0x2d8] sm:$0xff]   ;;  %v2162_v29 = vld [vmem:[%s2651_s1 + $0x210] sm:$0xff]  }
  0x2a   : > { %1919 = vmatpush3.bf16.msra.mxu0 %v2095_v30  ;;  %v2156_v23 = vld [vmem:[%s2651_s1 + $0x2a0] sm:$0xff]   ;;  %v2160_v27 = vld [vmem:[%s2651_s1 + $0x298] sm:$0xff]   ;;  %v2163_v30 = vld [vmem:[%s2651_s1 + $0x2d0] sm:$0xff]  }
  0x2b   : > { %1941 = vmatpush3.bf16.msra.mxu1 %v2096_v31  ;;  %1948 = vmatprep.subr.bf16.mxu0 %v2103_v36  ;;  %v2164_v31 = vld [vmem:[%s2651_s1 + $0x290] sm:$0xff]   ;;  %v2166_v33 = vld [vmem:[%s2651_s1 + $0x208] sm:$0xff]   ;;  %v2169_v36 = vld [vmem:[%s2651_s1 + $0x240] sm:$0xff]  }
  0x2c   : > { %1970 = vmatprep.subr.bf16.mxu1 %v2105_v38  ;;  %v2168_v35 = vld [vmem:[%s2651_s1 + $0x288] sm:$0xff]   ;;  %v2171_v38 = vld [vmem:[%s2651_s1 + $0x2c0] sm:$0xff]  }
  0x2d   : > { %1191 = vmatmul.mubr.bf16.vlgmr.msra.gmra.mxu0 %v2097_v32  ;;  %v2165_v32 = vld [vmem:[%s2651_s1 + $0x248] sm:$0xff]  }
  0x2e   : > { %1232 = vmatmul.mubr.bf16.vlgmr.msra.gmra.mxu1 %v2100_v34  ;;  %1949 = vmatpush3.bf16.msra.mxu0 %v2104_v37  ;;  %v2167_v34 = vld [vmem:[%s2651_s1 + $0x2c8] sm:$0xff]   ;;  %v2170_v37 = vld [vmem:[%s2651_s1 + $0x200] sm:$0xff]  }
  0x2f   : > { %1971 = vmatpush3.bf16.msra.mxu1 %v2106_v39  ;;  %1950 = vmatprep.subr.bf16.mxu0 %v2107_v40  ;;  %v2172_v39 = vld [vmem:[%s2360_s18 + $0x20] ss:$52 sps:$4 sm:$0xff]   ;;  %v2174_v40 = vld [vmem:[%s2360_s18 + $0x24] ss:$52 sps:$4 sm:$0xff]  }
  0x30   : > { %1972 = vmatprep.subr.bf16.mxu1 %v2109_v42  ;;  %1272 = vmatprep.mubr.bf16.mxu0 %v2136_v4  ;;  %v2216_v42 = vmov 0.0  }
  0x31   : > { %1313 = vmatprep.mubr.bf16.mxu1 %v2141_v8 }
  0x32   : > { %1951 = vmatpush3.bf16.msra.mxu0 %v2108_v41  ;;  %v2175_v41 = vld [vmem:[%s2651_s1 + $0x280] sm:$0xff]  }
  0x33   : > { %1973 = vmatpush3.bf16.msra.mxu1 %v2110_v43  ;;  %1952 = vmatprep.subr.bf16.mxu0 %v2111_v44  ;;  %v2176_v43 = vld [vmem:[%s2360_s18 + $0x28] ss:$52 sps:$4 sm:$0xff]   ;;  %v2178_v44 = vld [vmem:[%s2360_s18 + $0x2c] ss:$52 sps:$4 sm:$0xff]  }
  0x34   : > { %1974 = vmatprep.subr.bf16.mxu1 %v2113_v46  ;;  %v2180_v46 = vld [vmem:[%s2651_s1 + $0x310] sm:$0xff]  }
  0x36   : > { %1953 = vmatpush3.bf16.msra.mxu0 %v2112_v45  ;;  %v2179_v45 = vld [vmem:[%s2651_s1 + $0x318] sm:$0xff]  }
  0x37   : > { %1975 = vmatpush3.bf16.msra.mxu1 %v2114_v47  ;;  %1954 = vmatprep.subr.bf16.mxu0 %v2115_v48  ;;  %v2181_v47 = vld [vmem:[%s2651_s1 + $0x308] sm:$0xff]   ;;  %v2182_v48 = vld [vmem:[%s2651_s1 + $0x300] sm:$0xff]  }
  0x38   : > { %1976 = vmatprep.subr.bf16.mxu1 %v2117_v50  ;;  %v2186_v50 = vld [vmem:[%s2654_s4 + $0x74] ss:$8 sps:$4 sm:$0xff]  }
  0x3a   : > { %1955 = vmatpush3.bf16.msra.mxu0 %v2116_v49  ;;  %v2183_v49 = vld [vmem:[%s2360_s18 + $0x30] ss:$52 sps:$4 sm:$0xff]  }
  0x3b   : > { %1977 = vmatpush3.bf16.msra.mxu1 %v2118_v51  ;;  %1956 = vmatprep.subr.bf16.mxu0 %v2119_v52  ;;  %v2184_v51 = vld [vmem:[%s2654_s4 + $0x70] ss:$8 sps:$4 sm:$0xff]   ;;  %v2189_v52 = vld [vmem:[%s2654_s4 + $0x64] ss:$8 sps:$4 sm:$0xff]  }
  0x3c   : > { %1978 = vmatprep.subr.bf16.mxu1 %v2121_v54  ;;  %v2192_v54 = vld [vmem:[%s2654_s4 + $0x54] ss:$8 sps:$4 sm:$0xff]  }
  0x3e   : > { %1957 = vmatpush3.bf16.msra.mxu0 %v2120_v53  ;;  %v2187_v53 = vld [vmem:[%s2654_s4 + $0x60] ss:$8 sps:$4 sm:$0xff]  }
  0x3f   : > { %1979 = vmatpush3.bf16.msra.mxu1 %v2122_v55  ;;  %1958 = vmatprep.subr.bf16.mxu0 %v2123_v56  ;;  %v2190_v55 = vld [vmem:[%s2654_s4 + $0x50] ss:$8 sps:$4 sm:$0xff]   ;;  %v2195_v56 = vld [vmem:[%s2654_s4 + $0x44] ss:$8 sps:$4 sm:$0xff]  }
  0x40   : > { %1980 = vmatprep.subr.bf16.mxu1 %v2125_v58  ;;  %v2198_v58 = vld [vmem:[%s2654_s4 + $0x34] ss:$8 sps:$4 sm:$0xff]  }
  0x42   : > { %1959 = vmatpush3.bf16.msra.mxu0 %v2124_v57  ;;  %v2193_v57 = vld [vmem:[%s2654_s4 + $0x40] ss:$8 sps:$4 sm:$0xff]  }
  0x43   : > { %1981 = vmatpush3.bf16.msra.mxu1 %v2126_v59  ;;  %1960 = vmatprep.subr.bf16.mxu0 %v2127_v60  ;;  %v2196_v59 = vld [vmem:[%s2654_s4 + $0x30] ss:$8 sps:$4 sm:$0xff]   ;;  %v2201_v60 = vld [vmem:[%s2654_s4 + $0x24] ss:$8 sps:$4 sm:$0xff]  }
  0x44   : > { %1982 = vmatprep.subr.bf16.mxu1 %v2129_v62  ;;  %v2204_v62 = vld [vmem:[%s2654_s4 + $0x14] ss:$8 sps:$4 sm:$0xff]  }
  0x46   : > { %1961 = vmatpush3.bf16.msra.mxu0 %v2128_v61  ;;  %v2199_v61 = vld [vmem:[%s2654_s4 + $0x20] ss:$8 sps:$4 sm:$0xff]  }
  0x47   : > { %1983 = vmatpush3.bf16.msra.mxu1 %v2130_v63  ;;  %1962 = vmatprep.subr.bf16.mxu0 %v2131_v0  ;;  %v2202_v63 = vld [vmem:[%s2654_s4 + $0x10] ss:$8 sps:$4 sm:$0xff]   ;;  %v2207_v0 = vld [vmem:[%s2654_s4 + $0x4] ss:$8 sps:$4 sm:$0xff]  }
  0x48   : > { %1984 = vmatprep.subr.bf16.mxu1 %v2133_v2  ;;  %v2218_v2 = vmov 0  }
  0x4a   : > { %1963 = vmatpush3.bf16.msra.mxu0 %v2132_v1  ;;  %v2205_v1 = vld [vmem:[%s2654_s4] ss:$8 sps:$4 sm:$0xff]  }
  0x4b   : > { %1985 = vmatpush3.bf16.msra.mxu1 %v2137_v5  ;;  %1992 = vmatprep.subr.bf16.mxu0 %v2138_v6 }
  0x4c   : > { %2014 = vmatprep.subr.bf16.mxu1 %v2143_v10 }
  0x4d   : > { %1273 = vmatmul.mubr.bf16.vlgmr.msra.gmra.mxu0 %v2134_v3 }
  0x4e   : > { %1993 = vmatpush3.bf16.msra.mxu0 %v2142_v9  ;;  %1314 = vmatmul.mubr.bf16.vlgmr.msra.gmra.mxu1 %v2139_v7 }
  0x4f   : > { %2015 = vmatpush3.bf16.msra.mxu1 %v2144_v11  ;;  %1994 = vmatprep.subr.bf16.mxu0 %v2145_v12 }
  0x50   : > { %2016 = vmatprep.subr.bf16.mxu1 %v2147_v14  ;;  %1354 = vmatprep.mubr.bf16.mxu0 %v2174_v40 }
  0x51   : > { %1395 = vmatprep.mubr.bf16.mxu1 %v2178_v44 }
  0x52   : > { %1995 = vmatpush3.bf16.msra.mxu0 %v2146_v13 }
  0x53   : > { %2017 = vmatpush3.bf16.msra.mxu1 %v2148_v15  ;;  %1996 = vmatprep.subr.bf16.mxu0 %v2149_v16 }
  0x54   : > { %2018 = vmatprep.subr.bf16.mxu1 %v2151_v18 }
  0x56   : > { %1997 = vmatpush3.bf16.msra.mxu0 %v2150_v17 }
  0x57   : > { %2019 = vmatpush3.bf16.msra.mxu1 %v2152_v19  ;;  %1998 = vmatprep.subr.bf16.mxu0 %v2153_v20 }
  0x58   : > { %2020 = vmatprep.subr.bf16.mxu1 %v2155_v22 }
  0x5a   : > { %1999 = vmatpush3.bf16.msra.mxu0 %v2154_v21 }
  0x5b   : > { %2021 = vmatpush3.bf16.msra.mxu1 %v2156_v23  ;;  %2000 = vmatprep.subr.bf16.mxu0 %v2157_v24 }
  0x5c   : > { %2022 = vmatprep.subr.bf16.mxu1 %v2159_v26 }
  0x5e   : > { %2001 = vmatpush3.bf16.msra.mxu0 %v2158_v25 }
  0x5f   : > { %2023 = vmatpush3.bf16.msra.mxu1 %v2160_v27  ;;  %2002 = vmatprep.subr.bf16.mxu0 %v2161_v28 }
  0x60   : > { %2024 = vmatprep.subr.bf16.mxu1 %v2163_v30 }
  0x62   : > { %2003 = vmatpush3.bf16.msra.mxu0 %v2162_v29 }
  0x63   : > { %2025 = vmatpush3.bf16.msra.mxu1 %v2164_v31  ;;  %2004 = vmatprep.subr.bf16.mxu0 %v2165_v32 }
  0x64   : > { %2026 = vmatprep.subr.bf16.mxu1 %v2167_v34 }
  0x66   : > { %2005 = vmatpush3.bf16.msra.mxu0 %v2166_v33 }
  0x67   : > { %2027 = vmatpush3.bf16.msra.mxu1 %v2168_v35  ;;  %2006 = vmatprep.subr.bf16.mxu0 %v2169_v36 }
  0x68   : > { %2028 = vmatprep.subr.bf16.mxu1 %v2171_v38 }
  0x6a   : > { %2007 = vmatpush3.bf16.msra.mxu0 %v2170_v37 }
  0x6b   : > { %2041 = vmatprep.subr.bf16.mxu0 %v2216_v42  ;;  %2029 = vmatpush3.bf16.msra.mxu1 %v2175_v41 }
  0x6c   : > { %1595 = vmatprep.subr.bf16.mxu1 %v2186_v50 }
  0x6d   : > { %1355 = vmatmul.mubr.bf16.vlgmr.msra.gmra.mxu0 %v2172_v39 }
  0x6e   : > { %2049 = vmatprep.mubr.msk.bf16.mxu0 %vm2217_vm0, %v2216_v42  ;;  %2042 = vmatpush3.bf16.msra.mxu0 %v2179_v45 }
  0x6f   : > { %1396 = vmatmul.mubr.bf16.vlgmr.msra.gmra.mxu1 %v2176_v43  ;;  %2043 = vmatprep.subr.bf16.mxu0 %v2216_v42 }
  0x70   : > { %1596 = vmatpush1.bf16.msra.mxu1 %v2184_v51  ;;  %1627 = vmatprep.mubr.bf16.mxu1 %v2218_v2 }
  0x71   : > { %1597 = vmatprep.subr.bf16.mxu1 %v2189_v52 }
  0x72   : > { %2044 = vmatpush3.bf16.msra.mxu0 %v2180_v46 }
  0x73   : > { %2045 = vmatprep.subr.bf16.mxu0 %v2216_v42 }
  0x74   : > { %1598 = vmatpush1.bf16.msra.mxu1 %v2187_v53 }
  0x75   : > { %1599 = vmatprep.subr.bf16.mxu1 %v2192_v54 }
  0x76   : > { %2046 = vmatpush3.bf16.msra.mxu0 %v2181_v47 }
  0x77   : > { %2047 = vmatprep.subr.bf16.mxu0 %v2216_v42 }
  0x78   : > { %1600 = vmatpush1.bf16.msra.mxu1 %v2190_v55 }
  0x79   : > { %1601 = vmatprep.subr.bf16.mxu1 %v2195_v56 }
  0x7a   : > { %2048 = vmatpush3.bf16.msra.mxu0 %v2182_v48 }
  0x7c   : > { %1602 = vmatpush1.bf16.msra.mxu1 %v2193_v57 }
  0x7d   : > { %2050 = vmatmul.mubr.msk.bf16.vlgmr.msra.gmra.mxu0 %vm1154_vm1, %v2183_v49  ;;  %1603 = vmatprep.subr.bf16.mxu1 %v2198_v58 }
  0x80   : > { %1604 = vmatpush1.bf16.msra.mxu1 %v2196_v59 }
  0x81   : > { %1605 = vmatprep.subr.bf16.mxu1 %v2201_v60 }
  0x84   : > { %1606 = vmatpush1.bf16.msra.mxu1 %v2199_v61 }
  0x85   : > { %1607 = vmatprep.subr.bf16.mxu1 %v2204_v62 }
  0x88   : > { %1608 = vmatpush1.bf16.msra.mxu1 %v2202_v63 }
  0x89   : > { %1609 = vmatprep.subr.bf16.mxu1 %v2207_v0 }
  0x8c   : > { %1610 = vmatpush1.bf16.msra.mxu1 %v2205_v1  ;;  %v1870_v1 = vld [vmem:[%s2652_s2] ss:$0 sm:$0xff] }
  0xed   : > { %v1920_v3 = vpop.f32.mrf.mxu0 }
  0xee   : > { %v1942_v4 = vpop.f32.mrf.mxu1 }
  0xef   : > { %v1921_v5 = vpop.f32.mrf.mxu0 }
  0xf0   : > { %v1943_v6 = vpop.f32.mrf.mxu1  ;;  %v1922_v20 = vadd.f32 %v1921_v5, %v1920_v3 }
  0xf1   : > { %v1923_v7 = vpop.f32.mrf.mxu0  ;;  %v1944_v21 = vadd.f32 %v1943_v6, %v1942_v4  ;;  %v1871_v4 = vld [vmem:[%s2653_s3] ss:$0 sm:$0xff] }
  0xf2   : > { %v1945_v8 = vpop.f32.mrf.mxu1 }
  0xf3   : > { %v1924_v9 = vpop.f32.mrf.mxu0  ;;  %v1234_v29 = vadd.f32 %v1944_v21, %v1922_v20 }
  0xf4   : > { %v1946_v11 = vpop.f32.mrf.mxu1  ;;  %v1925_v24 = vadd.f32 %v1924_v9, %v1923_v7 }
  0xf5   : > { %v1947_v25 = vadd.f32 %v1946_v11, %v1945_v8 }
  0xf7   : > { %v1237_v31 = vadd.f32 %v1947_v25, %v1925_v24 }
 0x10d   : > { %v1964_v10 = vpop.f32.mrf.mxu0 }
 0x10e   : > { %v1986_v12 = vpop.f32.mrf.mxu1 }
 0x10f   : > { %v1965_v13 = vpop.f32.mrf.mxu0 }
 0x110   : > { %v1987_v14 = vpop.f32.mrf.mxu1  ;;  %v1966_v26 = vadd.f32 %v1965_v13, %v1964_v10 }
 0x111   : > { %v1967_v15 = vpop.f32.mrf.mxu0  ;;  %v1988_v33 = vadd.f32 %v1987_v14, %v1986_v12 }
 0x112   : > { %v1989_v16 = vpop.f32.mrf.mxu1  ;;  %v1275_v32 = vadd.f32 %v1966_v26, %v1234_v29 }
 0x113   : > { %v1968_v17 = vpop.f32.mrf.mxu0 }
 0x114   : > { %v1990_v19 = vpop.f32.mrf.mxu1  ;;  %v1969_v30 = vadd.f32 %v1968_v17, %v1967_v15  ;;  %v1316_v39 = vadd.f32 %v1988_v33, %v1275_v32 }
 0x115   : > { %v1991_v37 = vadd.f32 %v1990_v19, %v1989_v16 }
 0x116   : > { %v1278_v36 = vadd.f32 %v1969_v30, %v1237_v31 }
 0x118   : > { %v1319_v42 = vadd.f32 %v1991_v37, %v1278_v36 }
 0x12d   : > { %v2008_v18 = vpop.f32.mrf.mxu0 }
 0x12f   : > { %v2009_v22 = vpop.f32.mrf.mxu0  ;;  %v2030_v23 = vpop.f32.mrf.mxu1 }
 0x130   : > { %v2010_v38 = vadd.f32 %v2009_v22, %v2008_v18 }
 0x131   : > { %v2011_v27 = vpop.f32.mrf.mxu0  ;;  %v2031_v28 = vpop.f32.mrf.mxu1 }
 0x132   : > { %v1357_v43 = vadd.f32 %v2010_v38, %v1316_v39  ;;  %v2032_v44 = vadd.f32 %v2031_v28, %v2030_v23 }
 0x133   : > { %v2012_v34 = vpop.f32.mrf.mxu0  ;;  %v2033_v35 = vpop.f32.mrf.mxu1 }
 0x134   : > { %v2013_v40 = vadd.f32 %v2012_v34, %v2011_v27  ;;  %v1398_v48 = vadd.f32 %v2032_v44, %v1357_v43 }
 0x135   : > { %v2034_v41 = vpop.f32.mrf.mxu1 }
 0x136   : > { %v1360_v45 = vadd.f32 %v2013_v40, %v1319_v42  ;;  %v2035_v46 = vadd.f32 %v2034_v41, %v2033_v35 }
 0x138   : > { %v1401_v51 = vadd.f32 %v2035_v46, %v1360_v45 }
 0x13d   : > { %v1438_v47 = vpop.f32.mrf.mxu0 }
 0x13e   : > { %v1439_v50 = vadd.f32 %v1438_v47, %v1398_v48 }
 0x13f   : > { %v2051_v49 = vpop.f32.mrf.mxu0 }
 0x140   : > { %v1448_v55 = vrot.slane %v1439_v50, 1 }
 0x141   : > { %v1441_v52 = vpop.f32.mrf.mxu0 }
 0x142   : > { %v1442_v53 = vadd.f32 %v1441_v52, %v1401_v51 }
 0x143   : > { %v2052_v54 = vpop.f32.mrf.mxu0 }
 0x144   : > { %v1449_v56 = vrot.slane %v1442_v53, 1 }
 0x146   : > { %v1450_v57 = vsel %vm1447_vm2, %v1448_v55, %v1449_v56  ;;  %v1454_v58 = vsel %vm1447_vm2, %v1449_v56, %v1448_v55 }
 0x147   : > { %v1455_v59 = vmax.f32 %v1439_v50, %v1450_v57  ;;  %v1456_v60 = vmax.f32 %v1442_v53, %v1454_v58 }
 0x149   : > { %v1460_v61 = vrot.slane %v1455_v59, 4  ;;  %v1461_v62 = vrot.slane %v1456_v60, 4 }
 0x14b   : > { %v1462_v63 = vsel %vm1459_vm3, %v1460_v61, %v1461_v62  ;;  %v1466_v0 = vsel %vm1459_vm3, %v1461_v62, %v1460_v61 }
 0x14c   : > { %v1467_v2 = vmax.f32 %v1455_v59, %v1462_v63  ;;  %v1468_v3 = vmax.f32 %v1456_v60, %v1466_v0 }
 0x14e   : > { %v1476_v5 = vmul.f32 %v1870_v1, %v1467_v2  ;;  %v1477_v6 = vmul.f32 %v1870_v1, %v1468_v3 }
 0x150   : > { %v1486_v7 = vadd.f32 %v1871_v4, %v1477_v6  ;;  %v1485_v8 = vadd.f32 %v1871_v4, %v1476_v5 }
 0x152   : > { %v1488_v9 = vmax.f32 %v1486_v7, 0.0  ;;  %v1487_v10 = vmax.f32 %v1485_v8, 0.0 }
 0x154   : > { %v1489_v11 = vpack.c.bf16 %v1488_v9, %v1487_v10 }
 0x156   : > { %1903 = vst [vmem:[%s265_s30] sm:$0xff] %v1489_v11   ;;  %1628 = vmatmul.mubr.bf16.vlgmr.msra.gmra.mxu1 %v1489_v11 }
 0x216   : > { %v1629_v12 = vpop.f32.mrf.mxu1 }
 0x218   : > { %v1631_v13 = vpop.f32.mrf.mxu1 }
 0x219   : > { %v1897_v14 = vpack.c.bf16 %v1631_v13, %v1629_v12 }
 0x21a   : > { %v1633_v15 = vpop.f32.mrf.mxu1 }
 0x21b   : > { %1650 = vst [vmem:[%s272_s11] sm:$0xff] %v1897_v14 }
 0x21c   : > { %v1635_v16 = vpop.f32.mrf.mxu1 }
 0x21d   : > { %v1898_v17 = vpack.c.bf16 %v1635_v16, %v1633_v15 }
 0x21f   : > { %1651 = vst [vmem:[%s272_s11 + $0x8] sm:$0xff] %v1898_v17 }
 0x220 PF: > { %s17_s21 = sadd.s32 1, %s2214_s21  }
 0x221   : > { %p14_p4 = scmp.ge.s32.totalorder %s17_s21, 4  }
 0x223   :  { %16 = sbr.rel (!%p14_p4) target bundleno = 1 (0x1), region = 82 }

// kernel: hypercolumn_forward.8
= control target key start
LH: loop header
LB: loop body
LE: loop exit
PB: predicated region body
PF: predicated region fallthrough
CT: control target
= control target key end

     0   :  { %12 = vsyncpa [#allocation3], 0  ;;  %s3156_s0 = inlined_call_operand.vmem [shape: bf16[32,1152], index: 0, kind: input, shape index: {}]   ;;  %s3157_s1 = inlined_call_operand.vmem [shape: bf16[1152,256], index: 1, kind: input, shape index: {}]   ;;  %s3158_s2 = inlined_call_operand.vmem [shape: f32[1,256], index: 2, kind: input, shape index: {}]   ;;  %s3159_s3 = inlined_call_operand.vmem [shape: f32[1,256], index: 3, kind: input, shape index: {}]   ;;  %s3160_s4 = inlined_call_operand.vmem [shape: bf16[256,256], index: 4, kind: input, shape index: {}]   ;;  %s3161_s5 = inlined_call_operand.hbm [shape: bf16[32,256], index: 5, kind: output, shape index: {0}]   ;;  %s3162_s6 = inlined_call_operand.vmem [shape: bf16[32,256], index: 6, kind: output, shape index: {1}]  }
   0x1   :  { %14 = vsyncpa [#allocation3 + $0x1], 0  ;;  %s2499_s21 = smov 0   ;;  %s2501_s22 = smov 0  }
   0x2   :  { %s2503_s23 = smov 0   ;;  %s2505_s24 = smov 0  }
   0x3 LB: > { %s2520_s25 = sadd.s32 4294967295, %s2458_s24   ;;  %s1866_s26 = sadd.s32 4294967294, %s2458_s24   ;;  %s2458_s24 = sphi %s2505_s24, %s3168_s24   ;;  %s2454_s23 = sphi %s2503_s23, %s3167_s23   ;;  %s2450_s22 = sphi %s2501_s22, %s3166_s22   ;;  %s2446_s21 = sphi %s2499_s21, %s3165_s21  }
   0x4   : > { %s2524_s27 = sadd.s32 1, %s2458_s24   ;;  %s137_s28 = sadd.s32 1, %s2454_s23 }
   0x5   : > { %s134_s29 = ssub.s32 %s2458_s24, %s2524_s27  ;;  %p147_p0 = scmp.ne.s32.totalorder %s2454_s23, %s2450_s22 }
   0x6   : > { %p135_p1 = scmp.eq.s32.totalorder %s134_s29, 0  ;;  %p148_p2 = scmp.eq.s32.totalorder %s2520_s25, 1 }
   0x7   : > { %p153_p3 = scmp.ne.s32.totalorder %s2450_s22, %s2446_s21  ;;  %p154_p4 = scmp.eq.s32.totalorder %s1866_s26, 1 }
   0x8   : > { %s2535_s30 = scalar_select %p135_p1, %s2454_s23, %s137_s28  }
   0x9   : > { %p2537_p5 = por %p148_p2, %p147_p0  ;;  %p2541_p6 = por %p154_p4, %p153_p3 }
   0xa   : > { %p1869_p7 = scmp.ge.s32.totalorder %s2458_s24, 1  ;;  %p220_p8 = scmp.lt.s32.totalorder %s2458_s24, 3 }
   0xc   : > { %p221_p9 = pnand %p1869_p7, %p220_p8 }
   0xd   : > { %s1871_s9 = sshll.u32 (!%p221_p9), %s2520_s25, 1  ;;  %s2077_s26 = sshll.u32 (!%p221_p9), %s2520_s25, 8 }
   0xe   : > { %224 = sbr.rel (%p221_p9) target bundleno = 602 (0x25a), region = 40  ;;  %p258_p10 = scmp.lt.s32.totalorder (!%p221_p9), %s1871_s9, 3 }
   0xf   : > { %s2461_s13 = smov (!%p221_p9), [#allocation2]  }
  0x10   : > { %s2402_s25 = sshll.u32 (!%p221_p9), %s2461_s13, 4  ;;  %s2403_s25 = int_to_ptr.vmem [resolvable:$false] %s2402_s25 }
  0x11   : > { %s2404_s14 = scalar_lea.vmem (!%p221_p9), %s2403_s25, 512 }
  0x13   : > { %v2121_v0 = vld [vmem:[%s3157_s1 + $0x74] ss:$8 sps:$4 sm:$0xff]   ;;  %v2125_v2 = vld [vmem:[%s3157_s1 + $0x70] ss:$8 sps:$4 sm:$0xff]   ;;  %v2127_v4 = vld [vmem:[%s3157_s1 + $0x64] ss:$8 sps:$4 sm:$0xff]  }
  0x14   : > { %v2123_v1 = vld [vmem:[%s3157_s1 + $0x174] ss:$8 sps:$4 sm:$0xff]   ;;  %1193 = vmatprep.subr.bf16.mxu0 %v2121_v0  ;;  %v2126_v3 = vld [vmem:[%s3157_s1 + $0x170] ss:$8 sps:$4 sm:$0xff]   ;;  %v2129_v5 = vld [vmem:[%s3157_s1 + $0x164] ss:$8 sps:$4 sm:$0xff]  }
  0x15   : > { %1236 = vmatprep.subr.bf16.mxu1 %v2123_v1  ;;  %1194 = vmatpush1.bf16.msra.mxu0 %v2125_v2  ;;  %v2131_v6 = vld [vmem:[%s3157_s1 + $0x60] ss:$8 sps:$4 sm:$0xff]   ;;  %v2133_v8 = vld [vmem:[%s3157_s1 + $0x54] ss:$8 sps:$4 sm:$0xff]   ;;  %v2137_v10 = vld [vmem:[%s3157_s1 + $0x50] ss:$8 sps:$4 sm:$0xff]  }
  0x16   : > { %1237 = vmatpush1.bf16.msra.mxu1 %v2126_v3  ;;  %1195 = vmatprep.subr.bf16.mxu0 %v2127_v4  ;;  %v2132_v7 = vld [vmem:[%s3157_s1 + $0x160] ss:$8 sps:$4 sm:$0xff]   ;;  %v2135_v9 = vld [vmem:[%s3157_s1 + $0x154] ss:$8 sps:$4 sm:$0xff]   ;;  %v2138_v11 = vld [vmem:[%s3157_s1 + $0x150] ss:$8 sps:$4 sm:$0xff]  }
  0x17   : > { %1238 = vmatprep.subr.bf16.mxu1 %v2129_v5  ;;  %v2139_v12 = vld [vmem:[%s3157_s1 + $0x44] ss:$8 sps:$4 sm:$0xff]   ;;  %v2143_v14 = vld [vmem:[%s3157_s1 + $0x40] ss:$8 sps:$4 sm:$0xff]   ;;  %v2145_v16 = vld [vmem:[%s3157_s1 + $0x34] ss:$8 sps:$4 sm:$0xff]  }
  0x18   : > { %v2141_v13 = vld [vmem:[%s3157_s1 + $0x144] ss:$8 sps:$4 sm:$0xff]   ;;  %v2144_v15 = vld [vmem:[%s3157_s1 + $0x140] ss:$8 sps:$4 sm:$0xff]   ;;  %v2147_v17 = vld [vmem:[%s3157_s1 + $0x134] ss:$8 sps:$4 sm:$0xff]  }
  0x19   : > { %1196 = vmatpush1.bf16.msra.mxu0 %v2131_v6  ;;  %v2149_v18 = vld [vmem:[%s3157_s1 + $0x30] ss:$8 sps:$4 sm:$0xff]   ;;  %v2151_v20 = vld [vmem:[%s3157_s1 + $0x24] ss:$8 sps:$4 sm:$0xff]   ;;  %v2155_v22 = vld [vmem:[%s3157_s1 + $0x20] ss:$8 sps:$4 sm:$0xff]  }
  0x1a   : > { %1239 = vmatpush1.bf16.msra.mxu1 %v2132_v7  ;;  %1197 = vmatprep.subr.bf16.mxu0 %v2133_v8  ;;  %v2150_v19 = vld [vmem:[%s3157_s1 + $0x130] ss:$8 sps:$4 sm:$0xff]   ;;  %v2153_v21 = vld [vmem:[%s3157_s1 + $0x124] ss:$8 sps:$4 sm:$0xff]   ;;  %v2156_v23 = vld [vmem:[%s3157_s1 + $0x120] ss:$8 sps:$4 sm:$0xff]  }
  0x1b   : > { %1240 = vmatprep.subr.bf16.mxu1 %v2135_v9  ;;  %v2157_v24 = vld [vmem:[%s3157_s1 + $0x14] ss:$8 sps:$4 sm:$0xff]   ;;  %v2161_v26 = vld [vmem:[%s3157_s1 + $0x10] ss:$8 sps:$4 sm:$0xff]   ;;  %v2163_v28 = vld [vmem:[%s3157_s1 + $0x4] ss:$8 sps:$4 sm:$0xff]  }
  0x1c   : > { %v2159_v25 = vld [vmem:[%s3157_s1 + $0x114] ss:$8 sps:$4 sm:$0xff]   ;;  %v2162_v27 = vld [vmem:[%s3157_s1 + $0x110] ss:$8 sps:$4 sm:$0xff]   ;;  %v2165_v29 = vld [vmem:[%s3157_s1 + $0x104] ss:$8 sps:$4 sm:$0xff]  }
  0x1d   : > { %1198 = vmatpush1.bf16.msra.mxu0 %v2137_v10  ;;  %v2167_v30 = vld [vmem:[%s3157_s1] ss:$8 sps:$4 sm:$0xff]   ;;  %v2169_v32 = vld [vmem:[%s3157_s1 + $0xf4] ss:$8 sps:$4 sm:$0xff]   ;;  %v2173_v34 = vld [vmem:[%s3157_s1 + $0xf0] ss:$8 sps:$4 sm:$0xff]  }
  0x1e   : > { %1241 = vmatpush1.bf16.msra.mxu1 %v2138_v11  ;;  %1199 = vmatprep.subr.bf16.mxu0 %v2139_v12  ;;  %v2168_v31 = vld [vmem:[%s3157_s1 + $0x100] ss:$8 sps:$4 sm:$0xff]   ;;  %v2171_v33 = vld [vmem:[%s3157_s1 + $0x1f4] ss:$8 sps:$4 sm:$0xff]   ;;  %v2174_v35 = vld [vmem:[%s3157_s1 + $0x1f0] ss:$8 sps:$4 sm:$0xff]  }
  0x1f   : > { %1242 = vmatprep.subr.bf16.mxu1 %v2141_v13  ;;  %v2175_v36 = vld [vmem:[%s3157_s1 + $0xe4] ss:$8 sps:$4 sm:$0xff]   ;;  %s3170_s9 = smov (!%p258_p10, %s1871_s9), 3  ;;  %v2179_v38 = vld [vmem:[%s3157_s1 + $0xe0] ss:$8 sps:$4 sm:$0xff]   ;;  %vm1412_vm0 = vcmask 1046528  }
  0x20   : > { %v2177_v37 = vld [vmem:[%s3157_s1 + $0x1e4] ss:$8 sps:$4 sm:$0xff]   ;;  %v2180_v39 = vld [vmem:[%s3157_s1 + $0x1e0] ss:$8 sps:$4 sm:$0xff]   ;;  %v2181_v40 = vld [vmem:[%s3157_s1 + $0xd4] ss:$8 sps:$4 sm:$0xff]  }
  0x21   : > { %1200 = vmatpush1.bf16.msra.mxu0 %v2143_v14  ;;  %s2078_s18 = smul.u32 36, %s3170_s9  ;;  %v2183_v41 = vld [vmem:[%s3157_s1 + $0x1d4] ss:$8 sps:$4 sm:$0xff]   ;;  %v2185_v42 = vld [vmem:[%s3157_s1 + $0xd0] ss:$8 sps:$4 sm:$0xff]   ;;  %vm1435_vm1 = vcmask 1044480  }
  0x22   : > { %1243 = vmatpush1.bf16.msra.mxu1 %v2144_v15  ;;  %1201 = vmatprep.subr.bf16.mxu0 %v2145_v16  ;;  %v2186_v43 = vld [vmem:[%s3157_s1 + $0x1d0] ss:$8 sps:$4 sm:$0xff]   ;;  %v2187_v44 = vld [vmem:[%s3157_s1 + $0xc4] ss:$8 sps:$4 sm:$0xff]   ;;  %v2191_v46 = vld [vmem:[%s3157_s1 + $0xc0] ss:$8 sps:$4 sm:$0xff]  }
  0x23   : > { %1244 = vmatprep.subr.bf16.mxu1 %v2147_v17  ;;  %s2689_s15 = scalar_lea.vmem %s3156_s0, %s2078_s18  ;;  %v2189_v45 = vld [vmem:[%s3157_s1 + $0x1c4] ss:$8 sps:$4 sm:$0xff]   ;;  %v2192_v47 = vld [vmem:[%s3157_s1 + $0x1c0] ss:$8 sps:$4 sm:$0xff]   ;;  %v2193_v48 = vld [vmem:[%s3157_s1 + $0xb4] ss:$8 sps:$4 sm:$0xff]   ;;  %s3108_s18 = scalar_lea.hbm %s3161_s5, %s2077_s26 }
  0x24   : > { %v2219_v49 = vld [vmem:[%s2689_s15 + $0x4] ss:$36 sps:$4 sm:$0xff]   ;;  %v2195_v50 = vld [vmem:[%s3157_s1 + $0x1b4] ss:$8 sps:$4 sm:$0xff]   ;;  %v2222_v51 = vld [vmem:[%s2689_s15 + $0xc] ss:$36 sps:$4 sm:$0xff]  }
  0x25   : > { %1202 = vmatpush1.bf16.msra.mxu0 %v2149_v18  ;;  %1225 = vmatprep.mubr.bf16.mxu0 %v2219_v49  ;;  %v2197_v52 = vld [vmem:[%s3157_s1 + $0xb0] ss:$8 sps:$4 sm:$0xff]   ;;  %v2199_v54 = vld [vmem:[%s3157_s1 + $0xa4] ss:$8 sps:$4 sm:$0xff]   ;;  %v2203_v56 = vld [vmem:[%s3157_s1 + $0xa0] ss:$8 sps:$4 sm:$0xff]  }
  0x26   : > { %1245 = vmatpush1.bf16.msra.mxu1 %v2150_v19  ;;  %1203 = vmatprep.subr.bf16.mxu0 %v2151_v20  ;;  %v2198_v53 = vld [vmem:[%s3157_s1 + $0x1b0] ss:$8 sps:$4 sm:$0xff]   ;;  %v2201_v55 = vld [vmem:[%s3157_s1 + $0x1a4] ss:$8 sps:$4 sm:$0xff]   ;;  %v2204_v57 = vld [vmem:[%s3157_s1 + $0x1a0] ss:$8 sps:$4 sm:$0xff]  }
  0x27   : > { %1246 = vmatprep.subr.bf16.mxu1 %v2153_v21  ;;  %1268 = vmatprep.mubr.bf16.mxu1 %v2222_v51  ;;  %v2205_v58 = vld [vmem:[%s3157_s1 + $0x94] ss:$8 sps:$4 sm:$0xff]   ;;  %v2209_v60 = vld [vmem:[%s3157_s1 + $0x90] ss:$8 sps:$4 sm:$0xff]   ;;  %v2211_v62 = vld [vmem:[%s3157_s1 + $0x84] ss:$8 sps:$4 sm:$0xff]  }
  0x28   : > { %v2207_v59 = vld [vmem:[%s3157_s1 + $0x194] ss:$8 sps:$4 sm:$0xff]   ;;  %v2210_v61 = vld [vmem:[%s3157_s1 + $0x190] ss:$8 sps:$4 sm:$0xff]   ;;  %v2213_v63 = vld [vmem:[%s3157_s1 + $0x184] ss:$8 sps:$4 sm:$0xff]  }
  0x29   : > { %1204 = vmatpush1.bf16.msra.mxu0 %v2155_v22  ;;  %v2215_v0 = vld [vmem:[%s3157_s1 + $0x80] ss:$8 sps:$4 sm:$0xff]   ;;  %v2225_v2 = vld [vmem:[%s3157_s1 + $0x274] ss:$8 sps:$4 sm:$0xff]   ;;  %v2223_v6 = vld [vmem:[%s3157_s1 + $0x270] ss:$8 sps:$4 sm:$0xff]  }
  0x2a   : > { %1247 = vmatpush1.bf16.msra.mxu1 %v2156_v23  ;;  %1205 = vmatprep.subr.bf16.mxu0 %v2157_v24  ;;  %v2216_v1 = vld [vmem:[%s3157_s1 + $0x180] ss:$8 sps:$4 sm:$0xff]   ;;  %v2228_v3 = vld [vmem:[%s3157_s1 + $0x374] ss:$8 sps:$4 sm:$0xff]   ;;  %v2226_v7 = vld [vmem:[%s3157_s1 + $0x370] ss:$8 sps:$4 sm:$0xff]  }
  0x2b   : > { %1248 = vmatprep.subr.bf16.mxu1 %v2159_v25  ;;  %v2217_v4 = vld [vmem:[%s2689_s15] ss:$36 sps:$4 sm:$0xff]   ;;  %v2220_v5 = vld [vmem:[%s2689_s15 + $0x8] ss:$36 sps:$4 sm:$0xff]   ;;  %v2237_v12 = vld [vmem:[%s3157_s1 + $0x254] ss:$8 sps:$4 sm:$0xff]  }
  0x2c   : > { %v2231_v8 = vld [vmem:[%s3157_s1 + $0x264] ss:$8 sps:$4 sm:$0xff]   ;;  %v2229_v10 = vld [vmem:[%s3157_s1 + $0x260] ss:$8 sps:$4 sm:$0xff]   ;;  %v2240_v13 = vld [vmem:[%s3157_s1 + $0x354] ss:$8 sps:$4 sm:$0xff]  }
  0x2d   : > { %1206 = vmatpush1.bf16.msra.mxu0 %v2161_v26  ;;  %v2234_v9 = vld [vmem:[%s3157_s1 + $0x364] ss:$8 sps:$4 sm:$0xff]   ;;  %v2232_v11 = vld [vmem:[%s3157_s1 + $0x360] ss:$8 sps:$4 sm:$0xff]   ;;  %v2235_v14 = vld [vmem:[%s3157_s1 + $0x250] ss:$8 sps:$4 sm:$0xff]  }
  0x2e   : > { %1249 = vmatpush1.bf16.msra.mxu1 %v2162_v27  ;;  %1207 = vmatprep.subr.bf16.mxu0 %v2163_v28  ;;  %v2238_v15 = vld [vmem:[%s3157_s1 + $0x350] ss:$8 sps:$4 sm:$0xff]   ;;  %v2243_v16 = vld [vmem:[%s3157_s1 + $0x244] ss:$8 sps:$4 sm:$0xff]   ;;  %v2241_v18 = vld [vmem:[%s3157_s1 + $0x240] ss:$8 sps:$4 sm:$0xff]  }
  0x2f   : > { %1250 = vmatprep.subr.bf16.mxu1 %v2165_v29  ;;  %v2246_v17 = vld [vmem:[%s3157_s1 + $0x344] ss:$8 sps:$4 sm:$0xff]   ;;  %v2244_v19 = vld [vmem:[%s3157_s1 + $0x340] ss:$8 sps:$4 sm:$0xff]   ;;  %v2249_v20 = vld [vmem:[%s3157_s1 + $0x234] ss:$8 sps:$4 sm:$0xff]  }
  0x30   : > { %v2252_v21 = vld [vmem:[%s3157_s1 + $0x334] ss:$8 sps:$4 sm:$0xff]   ;;  %v2247_v22 = vld [vmem:[%s3157_s1 + $0x230] ss:$8 sps:$4 sm:$0xff]   ;;  %v2255_v24 = vld [vmem:[%s3157_s1 + $0x224] ss:$8 sps:$4 sm:$0xff]  }
  0x31   : > { %1208 = vmatpush1.bf16.msra.mxu0 %v2167_v30  ;;  %v2250_v23 = vld [vmem:[%s3157_s1 + $0x330] ss:$8 sps:$4 sm:$0xff]   ;;  %v2258_v25 = vld [vmem:[%s3157_s1 + $0x324] ss:$8 sps:$4 sm:$0xff]   ;;  %v2253_v26 = vld [vmem:[%s3157_s1 + $0x220] ss:$8 sps:$4 sm:$0xff]  }
  0x32   : > { %1251 = vmatpush1.bf16.msra.mxu1 %v2168_v31  ;;  %1209 = vmatprep.subr.bf16.mxu0 %v2169_v32  ;;  %v2256_v27 = vld [vmem:[%s3157_s1 + $0x320] ss:$8 sps:$4 sm:$0xff]   ;;  %v2261_v28 = vld [vmem:[%s3157_s1 + $0x214] ss:$8 sps:$4 sm:$0xff]   ;;  %v2259_v30 = vld [vmem:[%s3157_s1 + $0x210] ss:$8 sps:$4 sm:$0xff]  }
  0x33   : > { %1252 = vmatprep.subr.bf16.mxu1 %v2171_v33  ;;  %v2264_v29 = vld [vmem:[%s3157_s1 + $0x314] ss:$8 sps:$4 sm:$0xff]   ;;  %v2262_v31 = vld [vmem:[%s3157_s1 + $0x310] ss:$8 sps:$4 sm:$0xff]   ;;  %v2267_v32 = vld [vmem:[%s3157_s1 + $0x204] ss:$8 sps:$4 sm:$0xff]  }
  0x34   : > { %v2270_v33 = vld [vmem:[%s3157_s1 + $0x304] ss:$8 sps:$4 sm:$0xff]   ;;  %v2286_v49 = vld [vmem:[%s3157_s1 + $0x3d0] ss:$8 sps:$4 sm:$0xff]  }
  0x35   : > { %1210 = vmatpush2.bf16.msra.mxu0 %v2173_v34  ;;  %v2321_v34 = vld [vmem:[%s2689_s15 + $0x14] ss:$36 sps:$4 sm:$0xff]   ;;  %v2294_v51 = vld [vmem:[%s3157_s1 + $0x3c4] ss:$8 sps:$4 sm:$0xff]  }
  0x36   : > { %1253 = vmatpush2.bf16.msra.mxu1 %v2174_v35  ;;  %1211 = vmatprep.subr.bf16.mxu0 %v2175_v36  ;;  %v2265_v35 = vld [vmem:[%s3157_s1 + $0x200] ss:$8 sps:$4 sm:$0xff]  }
  0x37   : > { %1254 = vmatprep.subr.bf16.mxu1 %v2177_v37  ;;  %v2268_v36 = vld [vmem:[%s3157_s1 + $0x300] ss:$8 sps:$4 sm:$0xff]  }
  0x38   : > { %v2327_v37 = vld [vmem:[%s2689_s15 + $0x1c] ss:$36 sps:$4 sm:$0xff]  }
  0x39   : > { %1212 = vmatpush2.bf16.msra.mxu0 %v2179_v38  ;;  %v2273_v38 = vld [vmem:[%s3157_s1 + $0x2f4] ss:$8 sps:$4 sm:$0xff]  }
  0x3a   : > { %1255 = vmatpush2.bf16.msra.mxu1 %v2180_v39  ;;  %1213 = vmatprep.subr.bf16.mxu0 %v2181_v40  ;;  %v2276_v39 = vld [vmem:[%s3157_s1 + $0x3f4] ss:$8 sps:$4 sm:$0xff]   ;;  %v2271_v40 = vld [vmem:[%s3157_s1 + $0x2f0] ss:$8 sps:$4 sm:$0xff]  }
  0x3b   : > { %1256 = vmatprep.subr.bf16.mxu1 %v2183_v41  ;;  %v2274_v41 = vld [vmem:[%s3157_s1 + $0x3f0] ss:$8 sps:$4 sm:$0xff]  }
  0x3d   : > { %1214 = vmatpush2.bf16.msra.mxu0 %v2185_v42  ;;  %v2279_v42 = vld [vmem:[%s3157_s1 + $0x2e4] ss:$8 sps:$4 sm:$0xff]  }
  0x3e   : > { %1257 = vmatpush2.bf16.msra.mxu1 %v2186_v43  ;;  %1215 = vmatprep.subr.bf16.mxu0 %v2187_v44  ;;  %v2282_v43 = vld [vmem:[%s3157_s1 + $0x3e4] ss:$8 sps:$4 sm:$0xff]   ;;  %v2277_v44 = vld [vmem:[%s3157_s1 + $0x2e0] ss:$8 sps:$4 sm:$0xff]  }
  0x3f   : > { %1258 = vmatprep.subr.bf16.mxu1 %v2189_v45  ;;  %v2280_v45 = vld [vmem:[%s3157_s1 + $0x3e0] ss:$8 sps:$4 sm:$0xff]  }
  0x41   : > { %1216 = vmatpush2.bf16.msra.mxu0 %v2191_v46  ;;  %v2285_v46 = vld [vmem:[%s3157_s1 + $0x2d4] ss:$8 sps:$4 sm:$0xff]  }
  0x42   : > { %1259 = vmatpush2.bf16.msra.mxu1 %v2192_v47  ;;  %1217 = vmatprep.subr.bf16.mxu0 %v2193_v48  ;;  %v2288_v47 = vld [vmem:[%s3157_s1 + $0x3d4] ss:$8 sps:$4 sm:$0xff]   ;;  %v2283_v48 = vld [vmem:[%s3157_s1 + $0x2d0] ss:$8 sps:$4 sm:$0xff]  }
  0x43   : > { %1260 = vmatprep.subr.bf16.mxu1 %v2195_v50  ;;  %v2291_v50 = vld [vmem:[%s3157_s1 + $0x2c4] ss:$8 sps:$4 sm:$0xff]  }
  0x45   : > { %1218 = vmatpush2.bf16.msra.mxu0 %v2197_v52  ;;  %v2289_v52 = vld [vmem:[%s3157_s1 + $0x2c0] ss:$8 sps:$4 sm:$0xff]  }
  0x46   : > { %1261 = vmatpush2.bf16.msra.mxu1 %v2198_v53  ;;  %1219 = vmatprep.subr.bf16.mxu0 %v2199_v54  ;;  %v2292_v53 = vld [vmem:[%s3157_s1 + $0x3c0] ss:$8 sps:$4 sm:$0xff]   ;;  %v2297_v54 = vld [vmem:[%s3157_s1 + $0x2b4] ss:$8 sps:$4 sm:$0xff]  }
  0x47   : > { %1262 = vmatprep.subr.bf16.mxu1 %v2201_v55  ;;  %v2300_v55 = vld [vmem:[%s3157_s1 + $0x3b4] ss:$8 sps:$4 sm:$0xff]  }
  0x49   : > { %1220 = vmatpush2.bf16.msra.mxu0 %v2203_v56  ;;  %v2295_v56 = vld [vmem:[%s3157_s1 + $0x2b0] ss:$8 sps:$4 sm:$0xff]  }
  0x4a   : > { %1263 = vmatpush2.bf16.msra.mxu1 %v2204_v57  ;;  %1221 = vmatprep.subr.bf16.mxu0 %v2205_v58  ;;  %v2298_v57 = vld [vmem:[%s3157_s1 + $0x3b0] ss:$8 sps:$4 sm:$0xff]   ;;  %v2303_v58 = vld [vmem:[%s3157_s1 + $0x2a4] ss:$8 sps:$4 sm:$0xff]  }
  0x4b   : > { %1264 = vmatprep.subr.bf16.mxu1 %v2207_v59  ;;  %v2306_v59 = vld [vmem:[%s3157_s1 + $0x3a4] ss:$8 sps:$4 sm:$0xff]  }
  0x4d   : > { %1222 = vmatpush2.bf16.msra.mxu0 %v2209_v60  ;;  %v2301_v60 = vld [vmem:[%s3157_s1 + $0x2a0] ss:$8 sps:$4 sm:$0xff]  }
  0x4e   : > { %1265 = vmatpush2.bf16.msra.mxu1 %v2210_v61  ;;  %1223 = vmatprep.subr.bf16.mxu0 %v2211_v62  ;;  %v2304_v61 = vld [vmem:[%s3157_s1 + $0x3a0] ss:$8 sps:$4 sm:$0xff]   ;;  %v2309_v62 = vld [vmem:[%s3157_s1 + $0x294] ss:$8 sps:$4 sm:$0xff]  }
  0x4f   : > { %1266 = vmatprep.subr.bf16.mxu1 %v2213_v63  ;;  %v2312_v63 = vld [vmem:[%s3157_s1 + $0x394] ss:$8 sps:$4 sm:$0xff]  }
  0x51   : > { %1224 = vmatpush2.bf16.msra.mxu0 %v2215_v0  ;;  %v2307_v0 = vld [vmem:[%s3157_s1 + $0x290] ss:$8 sps:$4 sm:$0xff]  }
  0x52   : > { %1267 = vmatpush2.bf16.msra.mxu1 %v2216_v1  ;;  %1279 = vmatprep.subr.bf16.mxu0 %v2225_v2  ;;  %v2310_v1 = vld [vmem:[%s3157_s1 + $0x390] ss:$8 sps:$4 sm:$0xff]   ;;  %v2315_v2 = vld [vmem:[%s3157_s1 + $0x284] ss:$8 sps:$4 sm:$0xff]  }
  0x53   : > { %1322 = vmatprep.subr.bf16.mxu1 %v2228_v3  ;;  %v2318_v3 = vld [vmem:[%s3157_s1 + $0x384] ss:$8 sps:$4 sm:$0xff]  }
  0x54   : > { %1226 = vmatmul.mubr.bf16.vlgmr.msra.gmra.mxu0 %v2217_v4  ;;  %v2313_v4 = vld [vmem:[%s3157_s1 + $0x280] ss:$8 sps:$4 sm:$0xff]  }
  0x55   : > { %1269 = vmatmul.mubr.bf16.vlgmr.msra.gmra.mxu1 %v2220_v5  ;;  %1280 = vmatpush1.bf16.msra.mxu0 %v2223_v6  ;;  %v2316_v5 = vld [vmem:[%s3157_s1 + $0x380] ss:$8 sps:$4 sm:$0xff]   ;;  %v2324_v6 = vld [vmem:[%s3157_s1 + $0x474] ss:$8 sps:$4 sm:$0xff]  }
  0x56   : > { %1323 = vmatpush1.bf16.msra.mxu1 %v2226_v7  ;;  %1281 = vmatprep.subr.bf16.mxu0 %v2231_v8  ;;  %v2319_v7 = vld [vmem:[%s2689_s15 + $0x10] ss:$36 sps:$4 sm:$0xff]   ;;  %v2325_v8 = vld [vmem:[%s2689_s15 + $0x18] ss:$36 sps:$4 sm:$0xff]  }
  0x57   : > { %1324 = vmatprep.subr.bf16.mxu1 %v2234_v9  ;;  %1311 = vmatprep.mubr.bf16.mxu0 %v2321_v34  ;;  %v2322_v9 = vld [vmem:[%s3157_s1 + $0x470] ss:$8 sps:$4 sm:$0xff]  }
  0x58   : > { %1354 = vmatprep.mubr.bf16.mxu1 %v2327_v37  ;;  %v2362_v34 = vld [vmem:[%s3160_s4 + $0x30] ss:$8 sps:$4 sm:$0xff]   ;;  %v2365_v37 = vld [vmem:[%s3160_s4 + $0x20] ss:$8 sps:$4 sm:$0xff]  }
  0x59   : > { %1282 = vmatpush1.bf16.msra.mxu0 %v2229_v10  ;;  %v2330_v10 = vld [vmem:[%s3157_s1 + $0x464] ss:$8 sps:$4 sm:$0xff]  }
  0x5a   : > { %1325 = vmatpush1.bf16.msra.mxu1 %v2232_v11  ;;  %1283 = vmatprep.subr.bf16.mxu0 %v2237_v12  ;;  %v2328_v11 = vld [vmem:[%s3157_s1 + $0x460] ss:$8 sps:$4 sm:$0xff]   ;;  %v2460_v12 = vmov 0  }
  0x5b   : > { %1326 = vmatprep.subr.bf16.mxu1 %v2240_v13  ;;  %v2333_v13 = vld [vmem:[%s3157_s1 + $0x454] ss:$8 sps:$4 sm:$0xff]  }
  0x5d   : > { %1284 = vmatpush1.bf16.msra.mxu0 %v2235_v14  ;;  %v2331_v14 = vld [vmem:[%s3157_s1 + $0x450] ss:$8 sps:$4 sm:$0xff]  }
  0x5e   : > { %1327 = vmatpush1.bf16.msra.mxu1 %v2238_v15  ;;  %1285 = vmatprep.subr.bf16.mxu0 %v2243_v16  ;;  %v2336_v15 = vld [vmem:[%s3157_s1 + $0x444] ss:$8 sps:$4 sm:$0xff]   ;;  %v2350_v16 = vld [vmem:[%s3160_s4 + $0x70] ss:$8 sps:$4 sm:$0xff]  }
  0x5f   : > { %1328 = vmatprep.subr.bf16.mxu1 %v2246_v17  ;;  %v2352_v17 = vld [vmem:[%s3160_s4 + $0x74] ss:$8 sps:$4 sm:$0xff]  }
  0x61   : > { %1286 = vmatpush1.bf16.msra.mxu0 %v2241_v18  ;;  %v2334_v18 = vld [vmem:[%s3157_s1 + $0x440] ss:$8 sps:$4 sm:$0xff]  }
  0x62   : > { %1329 = vmatpush1.bf16.msra.mxu1 %v2244_v19  ;;  %1287 = vmatprep.subr.bf16.mxu0 %v2249_v20  ;;  %v2339_v19 = vld [vmem:[%s3157_s1 + $0x434] ss:$8 sps:$4 sm:$0xff]   ;;  %v2337_v20 = vld [vmem:[%s3157_s1 + $0x430] ss:$8 sps:$4 sm:$0xff]  }
  0x63   : > { %1330 = vmatprep.subr.bf16.mxu1 %v2252_v21  ;;  %v2342_v21 = vld [vmem:[%s3157_s1 + $0x424] ss:$8 sps:$4 sm:$0xff]  }
  0x65   : > { %1288 = vmatpush1.bf16.msra.mxu0 %v2247_v22  ;;  %v2340_v22 = vld [vmem:[%s3157_s1 + $0x420] ss:$8 sps:$4 sm:$0xff]  }
  0x66   : > { %1331 = vmatpush1.bf16.msra.mxu1 %v2250_v23  ;;  %1289 = vmatprep.subr.bf16.mxu0 %v2255_v24  ;;  %v2345_v23 = vld [vmem:[%s3157_s1 + $0x414] ss:$8 sps:$4 sm:$0xff]   ;;  %v2343_v24 = vld [vmem:[%s3157_s1 + $0x410] ss:$8 sps:$4 sm:$0xff]  }
  0x67   : > { %1332 = vmatprep.subr.bf16.mxu1 %v2258_v25  ;;  %v2348_v25 = vld [vmem:[%s3157_s1 + $0x404] ss:$8 sps:$4 sm:$0xff]  }
  0x69   : > { %1290 = vmatpush1.bf16.msra.mxu0 %v2253_v26  ;;  %v2346_v26 = vld [vmem:[%s3157_s1 + $0x400] ss:$8 sps:$4 sm:$0xff]  }
  0x6a   : > { %1333 = vmatpush1.bf16.msra.mxu1 %v2256_v27  ;;  %1291 = vmatprep.subr.bf16.mxu0 %v2261_v28  ;;  %v2349_v27 = vld [vmem:[%s2689_s15 + $0x20] ss:$36 sps:$4 sm:$0xff]   ;;  %s246_s15 = sand.u32 1, %s2450_s22  }
  0x6b   : > { %1334 = vmatprep.subr.bf16.mxu1 %v2264_v29  ;;  %v2355_v28 = vld [vmem:[%s3160_s4 + $0x64] ss:$8 sps:$4 sm:$0xff]   ;;  %v2353_v29 = vld [vmem:[%s3160_s4 + $0x60] ss:$8 sps:$4 sm:$0xff]   ;;  %s1870_s19 = sshll.u32 %s246_s15, 4  ;;  %s3112_s11 = scalar_lea.sflag [#allocation3], %s246_s15 }
  0x6c   : > { %s248_s20 = scalar_lea.vmem [#allocation2], %s1870_s19 }
  0x6d   : > { %1292 = vmatpush1.bf16.msra.mxu0 %v2259_v30  ;;  %v2358_v30 = vld [vmem:[%s3160_s4 + $0x54] ss:$8 sps:$4 sm:$0xff]   ;;  %s1774_s28 = sshll.u32 %s248_s20, 4  ;;  %s3110_s28 = int_to_ptr.vmem [resolvable:$true] %s1774_s28 }
  0x6e   : > { %1335 = vmatpush1.bf16.msra.mxu1 %v2262_v31  ;;  %1293 = vmatprep.subr.bf16.mxu0 %v2267_v32  ;;  %v2356_v31 = vld [vmem:[%s3160_s4 + $0x50] ss:$8 sps:$4 sm:$0xff]   ;;  %v2361_v32 = vld [vmem:[%s3160_s4 + $0x44] ss:$8 sps:$4 sm:$0xff]   ;;  %s2398_s12 = scalar_lea.vmem %s3110_s28, 256  ;;  %p2405_p0 = scmp.lt.s32.totalorder %s3110_s28, %s2403_s25 }
  0x6f   : > { %1336 = vmatprep.subr.bf16.mxu1 %v2270_v33  ;;  %v2359_v33 = vld [vmem:[%s3160_s4 + $0x40] ss:$8 sps:$4 sm:$0xff]   ;;  %p2399_p11 = scmp.ne.s32.totalorder %s3110_s28, %s2398_s12  ;;  %p2406_p1 = scmp.lt.s32.totalorder %s2404_s14, %s2398_s12 }
  0x71   : > { %1294 = vmatpush1.bf16.msra.mxu0 %v2265_v35  ;;  %v2364_v35 = vld [vmem:[%s3160_s4 + $0x34] ss:$8 sps:$4 sm:$0xff]   ;;  %p2400_p12 = pnand %p2399_p11, %p2537_p5  ;;  %p2407_p2 = por %p2406_p1, %p2405_p0 }
  0x72   : > { %1337 = vmatpush1.bf16.msra.mxu1 %v2268_v36  ;;  %1295 = vmatprep.subr.bf16.mxu0 %v2273_v38  ;;  %v2367_v36 = vld [vmem:[%s3160_s4 + $0x24] ss:$8 sps:$4 sm:$0xff]   ;;  %v2370_v38 = vld [vmem:[%s3160_s4 + $0x14] ss:$8 sps:$4 sm:$0xff]  }
  0x73   : > { %1338 = vmatprep.subr.bf16.mxu1 %v2276_v39  ;;  %v2368_v39 = vld [vmem:[%s3160_s4 + $0x10] ss:$8 sps:$4 sm:$0xff]   ;;  %p2401_p13 = pneg %p2400_p12 }
  0x75   : > { %1296 = vmatpush2.bf16.msra.mxu0 %v2271_v40  ;;  %v2373_v40 = vld [vmem:[%s3160_s4 + $0x4] ss:$8 sps:$4 sm:$0xff]   ;;  %p2408_p3 = pnand %p2407_p2, %p2401_p13 }
  0x76   : > { %1339 = vmatpush2.bf16.msra.mxu1 %v2274_v41  ;;  %1297 = vmatprep.subr.bf16.mxu0 %v2279_v42  ;;  %v2371_v41 = vld [vmem:[%s3160_s4] ss:$8 sps:$4 sm:$0xff]   ;;  %v2376_v42 = vld [vmem:[%s3160_s4 + $0xf4] ss:$8 sps:$4 sm:$0xff]  }
  0x77   : > { %1340 = vmatprep.subr.bf16.mxu1 %v2282_v43  ;;  %v2374_v43 = vld [vmem:[%s3160_s4 + $0xf0] ss:$8 sps:$4 sm:$0xff]  }
  0x79   : > { %1298 = vmatpush2.bf16.msra.mxu0 %v2277_v44  ;;  %v2379_v44 = vld [vmem:[%s3160_s4 + $0xe4] ss:$8 sps:$4 sm:$0xff]  }
  0x7a   : > { %1341 = vmatpush2.bf16.msra.mxu1 %v2280_v45  ;;  %1299 = vmatprep.subr.bf16.mxu0 %v2285_v46  ;;  %v2377_v45 = vld [vmem:[%s3160_s4 + $0xe0] ss:$8 sps:$4 sm:$0xff]   ;;  %v2382_v46 = vld [vmem:[%s3160_s4 + $0xd4] ss:$8 sps:$4 sm:$0xff]  }
  0x7b   : > { %1342 = vmatprep.subr.bf16.mxu1 %v2288_v47  ;;  %v2380_v47 = vld [vmem:[%s3160_s4 + $0xd0] ss:$8 sps:$4 sm:$0xff]  }
  0x7d   : > { %1300 = vmatpush2.bf16.msra.mxu0 %v2283_v48  ;;  %v2385_v48 = vld [vmem:[%s3160_s4 + $0xc4] ss:$8 sps:$4 sm:$0xff]  }
  0x7e   : > { %1343 = vmatpush2.bf16.msra.mxu1 %v2286_v49  ;;  %1301 = vmatprep.subr.bf16.mxu0 %v2291_v50  ;;  %v2383_v49 = vld [vmem:[%s3160_s4 + $0xc0] ss:$8 sps:$4 sm:$0xff]   ;;  %v2388_v50 = vld [vmem:[%s3160_s4 + $0xb4] ss:$8 sps:$4 sm:$0xff]  }
  0x7f   : > { %1344 = vmatprep.subr.bf16.mxu1 %v2294_v51  ;;  %v2386_v51 = vld [vmem:[%s3160_s4 + $0xb0] ss:$8 sps:$4 sm:$0xff]  }
  0x81   : > { %1302 = vmatpush2.bf16.msra.mxu0 %v2289_v52  ;;  %v2391_v52 = vld [vmem:[%s3160_s4 + $0xa4] ss:$8 sps:$4 sm:$0xff]  }
  0x82   : > { %1345 = vmatpush2.bf16.msra.mxu1 %v2292_v53  ;;  %1303 = vmatprep.subr.bf16.mxu0 %v2297_v54  ;;  %v2389_v53 = vld [vmem:[%s3160_s4 + $0xa0] ss:$8 sps:$4 sm:$0xff]   ;;  %v2394_v54 = vld [vmem:[%s3160_s4 + $0x94] ss:$8 sps:$4 sm:$0xff]  }
  0x83   : > { %1346 = vmatprep.subr.bf16.mxu1 %v2300_v55  ;;  %v2392_v55 = vld [vmem:[%s3160_s4 + $0x90] ss:$8 sps:$4 sm:$0xff]  }
  0x85   : > { %1304 = vmatpush2.bf16.msra.mxu0 %v2295_v56  ;;  %v2395_v56 = vld [vmem:[%s3160_s4 + $0x80] ss:$8 sps:$4 sm:$0xff]  }
  0x86   : > { %1347 = vmatpush2.bf16.msra.mxu1 %v2298_v57  ;;  %1305 = vmatprep.subr.bf16.mxu0 %v2303_v58  ;;  %v2397_v57 = vld [vmem:[%s3160_s4 + $0x84] ss:$8 sps:$4 sm:$0xff]  }
  0x87   : > { %1348 = vmatprep.subr.bf16.mxu1 %v2306_v59 }
  0x89   : > { %1306 = vmatpush2.bf16.msra.mxu0 %v2301_v60 }
  0x8a   : > { %1349 = vmatpush2.bf16.msra.mxu1 %v2304_v61  ;;  %1307 = vmatprep.subr.bf16.mxu0 %v2309_v62 }
  0x8b   : > { %1350 = vmatprep.subr.bf16.mxu1 %v2312_v63 }
  0x8d   : > { %1308 = vmatpush2.bf16.msra.mxu0 %v2307_v0 }
  0x8e   : > { %1351 = vmatpush2.bf16.msra.mxu1 %v2310_v1  ;;  %1309 = vmatprep.subr.bf16.mxu0 %v2315_v2 }
  0x8f   : > { %1352 = vmatprep.subr.bf16.mxu1 %v2318_v3 }
  0x91   : > { %1310 = vmatpush2.bf16.msra.mxu0 %v2313_v4 }
  0x92   : > { %1353 = vmatpush2.bf16.msra.mxu1 %v2316_v5  ;;  %1365 = vmatprep.subr.bf16.mxu0 %v2324_v6 }
  0x93   : > { %1696 = vmatprep.subr.bf16.mxu1 %v2352_v17  ;;  %v1456_v17 = vlaneseq }
  0x94   : > { %1312 = vmatmul.mubr.bf16.vlgmr.msra.gmra.mxu0 %v2319_v7 }
  0x95   : > { %1355 = vmatmul.mubr.bf16.vlgmr.msra.gmra.mxu1 %v2325_v8  ;;  %1366 = vmatpush1.bf16.msra.mxu0 %v2322_v9 }
  0x96   : > { %1397 = vmatprep.mubr.bf16.mxu0 %v2460_v12  ;;  %1367 = vmatprep.subr.bf16.mxu0 %v2330_v10 }
  0x97   : > { %1697 = vmatpush1.bf16.msra.mxu1 %v2350_v16 }
  0x98   : > { %1698 = vmatprep.subr.bf16.mxu1 %v2355_v28 }
  0x99   : > { %1368 = vmatpush1.bf16.msra.mxu0 %v2328_v11 }
  0x9a   : > { %1369 = vmatprep.subr.bf16.mxu0 %v2333_v13 }
  0x9b   : > { %1699 = vmatpush1.bf16.msra.mxu1 %v2353_v29 }
  0x9c   : > { %1700 = vmatprep.subr.bf16.mxu1 %v2358_v30 }
  0x9d   : > { %1370 = vmatpush1.bf16.msra.mxu0 %v2331_v14 }
  0x9e   : > { %1371 = vmatprep.subr.bf16.mxu0 %v2336_v15 }
  0x9f   : > { %1701 = vmatpush1.bf16.msra.mxu1 %v2356_v31 }
  0xa0   : > { %1702 = vmatprep.subr.bf16.mxu1 %v2361_v32 }
  0xa1   : > { %1372 = vmatpush1.bf16.msra.mxu0 %v2334_v18 }
  0xa2   : > { %1373 = vmatprep.subr.bf16.mxu0 %v2339_v19 }
  0xa3   : > { %1703 = vmatpush1.bf16.msra.mxu1 %v2359_v33 }
  0xa4   : > { %1704 = vmatprep.subr.bf16.mxu1 %v2364_v35 }
  0xa5   : > { %1374 = vmatpush1.bf16.msra.mxu0 %v2337_v20 }
  0xa6   : > { %1375 = vmatprep.subr.bf16.mxu0 %v2342_v21 }
  0xa7   : > { %1705 = vmatpush1.bf16.msra.mxu1 %v2362_v34 }
  0xa8   : > { %1706 = vmatprep.subr.bf16.mxu1 %v2367_v36 }
  0xa9   : > { %1376 = vmatpush1.bf16.msra.mxu0 %v2340_v22 }
  0xaa   : > { %1377 = vmatprep.subr.bf16.mxu0 %v2345_v23 }
  0xab   : > { %1707 = vmatpush1.bf16.msra.mxu1 %v2365_v37 }
  0xac   : > { %1708 = vmatprep.subr.bf16.mxu1 %v2370_v38 }
  0xad   : > { %1378 = vmatpush1.bf16.msra.mxu0 %v2343_v24 }
  0xae   : > { %1379 = vmatprep.subr.bf16.mxu0 %v2348_v25 }
  0xaf   : > { %1709 = vmatpush1.bf16.msra.mxu1 %v2368_v39 }
  0xb0   : > { %1710 = vmatprep.subr.bf16.mxu1 %v2373_v40 }
  0xb1   : > { %1380 = vmatpush1.bf16.msra.mxu0 %v2346_v26  ;;  %v1457_v26 = vshrl.u32 %v1456_v17, 7 }
  0xb3   : > { %1711 = vmatpush1.bf16.msra.mxu1 %v2371_v41  ;;  %v1458_v34 = vsub.s32 0, %v1457_v26  ;;  %v1454_v41 = vld [vmem:[%s3158_s2] sm:$0x3] }
  0xb4   : > { %1398 = vmatmul.mubr.bf16.vlgmr.msra.gmra.mxu0 %v2349_v27  ;;  %1712 = vmatprep.subr.bf16.mxu1 %v2376_v42 }
  0xb7   : > { %1713 = vmatpush2.bf16.msra.mxu1 %v2374_v43 }
  0xb8   : > { %1714 = vmatprep.subr.bf16.mxu1 %v2379_v44  ;;  %v1462_v44 = vsub.s32 1, %v1457_v26 }
  0xbb   : > { %1715 = vmatpush2.bf16.msra.mxu1 %v2377_v45 }
  0xbc   : > { %1716 = vmatprep.subr.bf16.mxu1 %v2382_v46 }
  0xbf   : > { %1717 = vmatpush2.bf16.msra.mxu1 %v2380_v47  ;;  %v1470_v47 = vld [vmem:[%s3159_s3] sm:$0x3] }
  0xc0   : > { %1718 = vmatprep.subr.bf16.mxu1 %v2385_v48 }
  0xc3   : > { %1719 = vmatpush2.bf16.msra.mxu1 %v2383_v49 }
  0xc4   : > { %1720 = vmatprep.subr.bf16.mxu1 %v2388_v50  ;;  %v1459_v50 = vrot.slane %v1454_v41, %v1458_v34 }
  0xc7   : > { %1721 = vmatpush2.bf16.msra.mxu1 %v2386_v51 }
  0xc8   : > { %1722 = vmatprep.subr.bf16.mxu1 %v2391_v52 }
  0xcb   : > { %1723 = vmatpush2.bf16.msra.mxu1 %v2389_v53 }
  0xcc   : > { %1724 = vmatprep.subr.bf16.mxu1 %v2394_v54 }
  0xcf   : > { %1725 = vmatpush2.bf16.msra.mxu1 %v2392_v55 }
  0xd0   : > { %1726 = vmatprep.subr.bf16.mxu1 %v2397_v57  ;;  %v1475_v57 = vrot.slane %v1470_v47, %v1458_v34 }
  0xd3   : > { %1727 = vmatpush2.bf16.msra.mxu1 %v2395_v56 }
 0x114   : > { %v1227_v58 = vpop.f32.mrf.mxu0 }
 0x115   : > { %v1270_v59 = vpop.f32.mrf.mxu1 }
 0x116   : > { %v1229_v60 = vpop.f32.mrf.mxu0  ;;  %v1271_v7 = vadd.f32 %v1270_v59, %v1227_v58  ;;  %v1463_v58 = vrot.slane %v1454_v41, %v1462_v44 }
 0x117   : > { %v1272_v61 = vpop.f32.mrf.mxu1 }
 0x118   : > { %v1231_v62 = vpop.f32.mrf.mxu0  ;;  %v1273_v8 = vadd.f32 %v1272_v61, %v1229_v60  ;;  %v1479_v61 = vrot.slane %v1470_v47, %v1462_v44 }
 0x119   : > { %v1274_v63 = vpop.f32.mrf.mxu1 }
 0x11a   : > { %v1233_v0 = vpop.f32.mrf.mxu0  ;;  %v1275_v9 = vadd.f32 %v1274_v63, %v1231_v62 }
 0x11b   : > { %v1276_v2 = vpop.f32.mrf.mxu1 }
 0x11c   : > { %v1277_v13 = vadd.f32 %v1276_v2, %v1233_v0 }
 0x154   : > { %v1313_v1 = vpop.f32.mrf.mxu0 }
 0x155   : > { %v1356_v4 = vpop.f32.mrf.mxu1  ;;  %v1314_v10 = vadd.f32 %v1313_v1, %v1271_v7 }
 0x156   : > { %v1315_v3 = vpop.f32.mrf.mxu0 }
 0x157   : > { %v1358_v6 = vpop.f32.mrf.mxu1  ;;  %v1316_v14 = vadd.f32 %v1315_v3, %v1273_v8  ;;  %v1357_v18 = vadd.f32 %v1356_v4, %v1314_v10 }
 0x158   : > { %v1317_v5 = vpop.f32.mrf.mxu0 }
 0x159   : > { %v1360_v12 = vpop.f32.mrf.mxu1  ;;  %v1318_v15 = vadd.f32 %v1317_v5, %v1275_v9  ;;  %v1359_v22 = vadd.f32 %v1358_v6, %v1316_v14 }
 0x15a   : > { %v1319_v11 = vpop.f32.mrf.mxu0 }
 0x15b   : > { %v1320_v19 = vadd.f32 %v1319_v11, %v1277_v13  ;;  %v1362_v20 = vpop.f32.mrf.mxu1  ;;  %v1361_v23 = vadd.f32 %v1360_v12, %v1318_v15 }
 0x15d   : > { %v1363_v27 = vadd.f32 %v1362_v20, %v1320_v19 }
 0x174   : > { %v1399_v16 = vpop.f32.mrf.mxu0 }
 0x175   : > { %v1400_v24 = vadd.f32 %v1399_v16, %v1357_v18 }
 0x176   : > { %v1401_v21 = vpop.f32.mrf.mxu0 }
 0x177   : > { %v1402_v28 = vadd.f32 %v1401_v21, %v1359_v22  ;;  %v1413_v31 = vrot.slane %v1400_v24, 1 }
 0x178   : > { %v1403_v25 = vpop.f32.mrf.mxu0 }
 0x179   : > { %v1404_v29 = vadd.f32 %v1403_v25, %v1361_v23  ;;  %v1416_v35 = vrot.slane %v1402_v28, 1 }
 0x17a   : > { %v1405_v30 = vpop.f32.mrf.mxu0 }
 0x17b   : > { %v1414_v32 = vrot.slane %v1404_v29, 1  ;;  %v1406_v33 = vadd.f32 %v1405_v30, %v1363_v27 }
 0x17d   : > { %v1415_v36 = vsel %vm1412_vm0, %v1413_v31, %v1414_v32  ;;  %v1425_v37 = vsel %vm1412_vm0, %v1414_v32, %v1413_v31  ;;  %v1417_v38 = vrot.slane %v1406_v33, 1 }
 0x17e   : > { %v1427_v39 = vmax.f32 %v1400_v24, %v1415_v36  ;;  %v1429_v40 = vmax.f32 %v1404_v29, %v1425_v37 }
 0x17f   : > { %v1418_v42 = vsel %vm1412_vm0, %v1416_v35, %v1417_v38  ;;  %v1426_v43 = vsel %vm1412_vm0, %v1417_v38, %v1416_v35 }
 0x180   : > { %v1436_v45 = vrot.slane %v1427_v39, 3  ;;  %v1437_v46 = vrot.slane %v1429_v40, 3  ;;  %v1428_v48 = vmax.f32 %v1402_v28, %v1418_v42  ;;  %v1430_v49 = vmax.f32 %v1406_v33, %v1426_v43 }
 0x182   : > { %v1438_v51 = vsel %vm1435_vm1, %v1436_v45, %v1437_v46  ;;  %v1448_v52 = vsel %vm1435_vm1, %v1437_v46, %v1436_v45  ;;  %v1439_v53 = vrot.slane %v1428_v48, 3  ;;  %v1440_v54 = vrot.slane %v1430_v49, 3 }
 0x183   : > { %v1450_v55 = vmax.f32 %v1427_v39, %v1438_v51  ;;  %v1452_v56 = vmax.f32 %v1429_v40, %v1448_v52 }
 0x184   : > { %v1441_v59 = vsel %vm1435_vm1, %v1439_v53, %v1440_v54  ;;  %v1449_v60 = vsel %vm1435_vm1, %v1440_v54, %v1439_v53 }
 0x185   : > { %v1466_v62 = vmul.f32 %v1459_v50, %v1450_v55  ;;  %v1468_v63 = vmul.f32 %v1459_v50, %v1452_v56  ;;  %v1451_v0 = vmax.f32 %v1428_v48, %v1441_v59  ;;  %v1453_v1 = vmax.f32 %v1430_v49, %v1449_v60 }
 0x187   : > { %v1484_v2 = vadd.f32 %v1475_v57, %v1468_v63  ;;  %v1469_v3 = vmul.f32 %v1463_v58, %v1453_v1  ;;  %v1467_v4 = vmul.f32 %v1463_v58, %v1451_v0  ;;  %v1482_v5 = vadd.f32 %v1475_v57, %v1466_v62 }
 0x189   : > { %v1483_v6 = vadd.f32 %v1479_v61, %v1467_v4  ;;  %v1485_v7 = vadd.f32 %v1479_v61, %v1469_v3  ;;  %v1488_v8 = vmax.f32 %v1484_v2, 0.0  ;;  %v1486_v9 = vmax.f32 %v1482_v5, 0.0 }
 0x18b   : > { %v1487_v10 = vmax.f32 %v1483_v6, 0.0  ;;  %v1489_v11 = vmax.f32 %v1485_v7, 0.0  ;;  %v1490_v15 = vpack.c.bf16 %v1488_v8, %v1486_v9 }
 0x18d   : > { %v1491_v12 = vpack.c.bf16 %v1489_v11, %v1487_v10  ;;  %v2072_v13 = vpack.c.bf16 %v1487_v10, %v1486_v9  ;;  %v2073_v14 = vpack.c.bf16 %v1489_v11, %v1488_v8 }
 0x18f   : > { %1502 = vst [vmem:[%s248_s20] sm:$0xff] %v2072_v13  ;;  %1503 = vst [vmem:[%s248_s20 + $0x8] sm:$0xff] %v2073_v14  ;;  %1728 = vmatprep.mubr.bf16.mxu1 %v1491_v12 }
 0x190   : > { %1729 = vmatmul.mubr.bf16.vlgmr.msra.gmra.mxu1 %v1490_v15 }
 0x191   : > { %2411 = shalt.err (!%p2408_p3)
}
 0x192   : > { %s2412_s16 = scalar_lea.hbm %s3108_s18, 256  ;;  %s2416_s19 = scalar_lea.hbm %s3161_s5, 512 }
 0x193   : > { %p2413_p4 = scmp.ne.s32.totalorder %s3108_s18, %s2412_s16  ;;  %p2417_p9 = scmp.lt.s32.totalorder %s3108_s18, %s3161_s5 }
 0x194   : > { %p2418_p10 = scmp.lt.s32.totalorder %s2416_s19, %s2412_s16 }
 0x195   : > { %p2414_p7 = pnand %p2413_p4, %p2537_p5 }
 0x196   : > { %p2419_p11 = por %p2418_p10, %p2417_p9 }
 0x197   : > { %p2415_p8 = pneg %p2414_p7 }
 0x199   : > { %p2420_p12 = pnand %p2419_p11, %p2415_p8 }
 0x19b   : > { %2423 = shalt.err (!%p2420_p12)
}
 0x19c   : > { %s2462_s29 = smov 128   ;;  %s2463_s10 = smov 8  }
 0x19d   : > { %2079 = dma.vmem_to_hbm [thread:$0]  (%p2537_p5), %s3110_s28, 256, %s3108_s18, %s3112_s11, %s2462_s29, %s2462_s29, %s2463_s10  }
 0x19e   : > { %s2071_s12 = sshll.u32 %s3170_s9, 3 }
 0x19f   : > { %s270_s14 = scalar_lea.vmem %s3162_s6, %s2071_s12 }
 0x250   : > { %v1730_v16 = vpop.f32.mrf.mxu1 }
 0x252   : > { %v1732_v17 = vpop.f32.mrf.mxu1 }
 0x253   : > { %v2074_v18 = vpack.c.bf16 %v1732_v17, %v1730_v16 }
 0x254   : > { %v1734_v19 = vpop.f32.mrf.mxu1 }
 0x255   : > { %1751 = vst [vmem:[%s270_s14] sm:$0xff] %v2074_v18 }
 0x256   : > { %v1736_v20 = vpop.f32.mrf.mxu1 }
 0x257   : > { %v2075_v21 = vpack.c.bf16 %v1736_v20, %v1734_v19 }
 0x259   : > { %1752 = vst [vmem:[%s270_s14 + $0x8] sm:$0xff] %v2075_v21 }
 0x25a PF: > { %p2085_p13 = scmp.ge.s32.totalorder %s2458_s24, 2  ;;  %s1793_s7 = sand.u32 1, %s2446_s21  }
 0x25b   : > { %s1794_s9 = scalar_lea.sflag [#allocation3], %s1793_s7 }
 0x25c   : > { %p2082_p5 = pnand %p2085_p13, %p2541_p6 }
 0x25e   : > { %p2083_p0 = pneg %p2082_p5 }
 0x260   : > { %2441 = dma.done.wait (%p2083_p0), %s1794_s9, 256  }
 0x261   : > { %2443 = vsyncadd (%p2083_p0), %s1794_s9, 4294967040  ;;  %p17_p1 = scmp.ge.s32.totalorder %s2524_s27, 4   ;;  %s3165_s21 = smov %s2450_s22 }
 0x262   : > { %s3166_s22 = smov %s2454_s23  ;;  %s3167_s23 = smov %s2535_s30 }
 0x263   : > { %s3168_s24 = smov %s2524_s27  ;;  %19 = sbr.rel (!%p17_p1) target bundleno = 3 (0x3), region = 87 }
 0x268   :  { %1808 = vsyncpa [#allocation3], 1 }
 0x269   :  { %1810 = vsyncpa [#allocation3 + $0x1], 1 }

// kernel: hypercolumn_forward.9
= control target key start
LH: loop header
LB: loop body
LE: loop exit
PB: predicated region body
PF: predicated region fallthrough
CT: control target
= control target key end

     0   :  { %s4158_s24 = smov 0   ;;  %s5402_s0 = inlined_call_operand.vmem [shape: bf16[2048,12], index: 0, kind: input, shape index: {}]   ;;  %s5403_s1 = inlined_call_operand.vmem [shape: bf16[2048,256], index: 1, kind: input, shape index: {}]   ;;  %s5404_s2 = inlined_call_operand.vmem [shape: bf16[12,256], index: 2, kind: input, shape index: {}]   ;;  %s5405_s3 = inlined_call_operand.vmem [shape: f32[1,256], index: 3, kind: input, shape index: {}]   ;;  %s5406_s4 = inlined_call_operand.vmem [shape: f32[1,256], index: 4, kind: input, shape index: {}]   ;;  %s5407_s5 = inlined_call_operand.vmem [shape: bf16[256,128], index: 5, kind: input, shape index: {}]   ;;  %s5408_s6 = inlined_call_operand.vmem [shape: f32[1,128], index: 6, kind: input, shape index: {}]   ;;  %s5409_s7 = inlined_call_operand.vmem [shape: f32[2048,128], index: 7, kind: output, shape index: {}]  }
   0x1 LB: > { %s3819_s25 = sadd.s32 4294967295, %s4115_s24   ;;  %p3823_p0 = scmp.ge.s32.totalorder %s4115_s24, 1  ;;  %s4115_s24 = sphi %s4158_s24, %s17_s24  }
   0x2   : > { %p250_p1 = scmp.lt.s32.totalorder %s4115_s24, 3 }
   0x4   : > { %p251_p2 = pnand %p3823_p0, %p250_p1 }
   0x5   : > { %s3824_s30 = sshll.u32 (!%p251_p2), %s3819_s25, 7 }
   0x6   : > { %254 = sbr.rel (%p251_p2) target bundleno = 931 (0x3a3), region = 48  ;;  %p289_p3 = scmp.lt.s32.totalorder (!%p251_p2), %s3824_s30, 255 }
   0xb   : > { %v4023_v0 = vld [vmem:[%s5404_s2 + $0x4] ss:$8 sps:$4 sm:$0x3f]   ;;  %vm1343_vm0 = vcmask 1045504   ;;  %v4117_v2 = vmov 0   ;;  %s5411_s30 = smov (!%p289_p3, %s3824_s30), 255  ;;  %v2025_v43 = vlaneseq }
   0xc   : > { %v4025_v1 = vld [vmem:[%s5404_s2] ss:$8 sps:$4 sm:$0x3f]   ;;  %3897 = vmatprep.subr.msk.bf16.mxu0 %vm1343_vm0, %v4023_v0  ;;  %1382 = vmatprep.mubr.bf16.mxu0 %v4117_v2  ;;  %s3825_s8 = sshll.u32 %s5411_s30, 2  ;;  %vm1150_vm1 = vcmask 97280   ;;  %v4048_v10 = vld [vmem:[%s5407_s5 + $0x38] sm:$0xff]  }
   0xd   : > { %v1345_v3 = vsel %vm1343_vm0, %v4025_v1, 0  ;;  %3982 = vmatprep.subr.bf16.mxu1 %v4117_v2  ;;  %s4181_s11 = scalar_lea.vmem %s5402_s0, %s3825_s8  ;;  %v4049_v11 = vld [vmem:[%s5407_s5 + $0x30] sm:$0xff]   ;;  %v4051_v13 = vld [vmem:[%s5407_s5 + $0x28] sm:$0xff]   ;;  %v4052_v14 = vld [vmem:[%s5407_s5 + $0x20] sm:$0xff]   ;;  %s3981_s25 = sshll.u32 %s5411_s30, 3  ;;  %v2026_v45 = vshrl.u32 %v2025_v43, 7 }
   0xe   : > { %1365 = vmatpush1.bf16.msra.mxu0 %v1345_v3  ;;  %v4026_v4 = vld [vmem:[%s4181_s11] sm:$0xff]   ;;  %v4027_v5 = vld [vmem:[%s4181_s11 + $0x8] sm:$0xff]   ;;  %v4028_v6 = vld [vmem:[%s4181_s11 + $0x10] sm:$0xff]   ;;  %3998 = vmatpush1.bf16.msra.mxu1 %v4048_v10  ;;  %s4337_s28 = scalar_lea.vmem %s5403_s1, %s3981_s25  ;;  %s4759_s16 = scalar_lea.vmem %s5409_s7, %s3981_s25 }
   0xf   : > { %3078 = vmatprep.subr.bf16.mxu0 %v4117_v2  ;;  %v4029_v7 = vld [vmem:[%s4181_s11 + $0x18] sm:$0xff]   ;;  %v4030_v8 = vld [vmem:[%s4181_s11 + $0x20] sm:$0xff]   ;;  %v4031_v9 = vld [vmem:[%s4181_s11 + $0x28] sm:$0xff]   ;;  %3983 = vmatprep.subr.bf16.mxu1 %v4117_v2  ;;  %v2027_v47 = vsub.s32 0, %v2026_v45  ;;  %v2031_v51 = vsub.s32 1, %v2026_v45 }
  0x10   : > { %v4032_v12 = vld [vmem:[%s4181_s11 + $0x30] sm:$0xff]   ;;  %v4033_v15 = vld [vmem:[%s4181_s11 + $0x38] sm:$0xff]   ;;  %v4034_v18 = vld [vmem:[%s4181_s11 + $0x40] sm:$0xff]  }
  0x11   : > { %3898 = vmatmul.mubr.msk.bf16.vlgmr.msra.gmra.mxu0 %vm1150_vm1, %v4026_v4  ;;  %v4054_v16 = vld [vmem:[%s5407_s5 + $0x18] sm:$0xff]   ;;  %v4055_v17 = vld [vmem:[%s5407_s5 + $0x10] sm:$0xff]   ;;  %v4057_v19 = vld [vmem:[%s5407_s5 + $0x8] sm:$0xff]  }
  0x12   : > { %1392 = vmatprep.mubr.bf16.mxu0 %v4117_v2  ;;  %3079 = vmatpush1.bf16.msra.mxu0 %v4048_v10  ;;  %v4035_v20 = vld [vmem:[%s4181_s11 + $0x48] sm:$0xff]   ;;  %v4058_v21 = vld [vmem:[%s5407_s5] sm:$0xff]   ;;  %v4060_v22 = vld [vmem:[%s5407_s5 + $0x78] sm:$0xff]  }
  0x13   : > { %3080 = vmatprep.subr.bf16.mxu0 %v4117_v2  ;;  %3999 = vmatpush1.bf16.msra.mxu1 %v4049_v11  ;;  %v4036_v23 = vld [vmem:[%s4181_s11 + $0x50] sm:$0xff]   ;;  %v4063_v25 = vld [vmem:[%s5407_s5 + $0x68] sm:$0xff]   ;;  %v4037_v26 = vld [vmem:[%s4181_s11 + $0x58] sm:$0xff]  }
  0x14   : > { %3984 = vmatprep.subr.bf16.mxu1 %v4117_v2  ;;  %v4061_v24 = vld [vmem:[%s5407_s5 + $0x70] sm:$0xff]   ;;  %v4064_v27 = vld [vmem:[%s5407_s5 + $0x60] sm:$0xff]   ;;  %v4066_v28 = vld [vmem:[%s5407_s5 + $0x58] sm:$0xff]  }
  0x15   : > { %v4038_v29 = vld [vmem:[%s4181_s11 + $0x60] sm:$0xff]   ;;  %v4067_v30 = vld [vmem:[%s5407_s5 + $0x50] sm:$0xff]   ;;  %v4069_v31 = vld [vmem:[%s5407_s5 + $0x48] sm:$0xff]  }
  0x16   : > { %3081 = vmatpush1.bf16.msra.mxu0 %v4049_v11  ;;  %v4039_v32 = vld [vmem:[%s4181_s11 + $0x68] sm:$0xff]   ;;  %v4070_v33 = vld [vmem:[%s5407_s5 + $0x40] sm:$0xff]   ;;  %v4040_v34 = vld [vmem:[%s4181_s11 + $0x70] sm:$0xff]  }
  0x17   : > { %3082 = vmatprep.subr.bf16.mxu0 %v4117_v2  ;;  %4000 = vmatpush1.bf16.msra.mxu1 %v4051_v13  ;;  %v4041_v35 = vld [vmem:[%s4181_s11 + $0x78] sm:$0xff]   ;;  %v4042_v36 = vld [vmem:[%s4181_s11 + $0x80] sm:$0xff]   ;;  %v4043_v37 = vld [vmem:[%s4181_s11 + $0x88] sm:$0xff]  }
  0x18   : > { %3985 = vmatprep.subr.bf16.mxu1 %v4117_v2  ;;  %v4044_v38 = vld [vmem:[%s4181_s11 + $0x90] sm:$0xff]   ;;  %v4045_v39 = vld [vmem:[%s4181_s11 + $0x98] sm:$0xff]   ;;  %v4046_v40 = vld [vmem:[%s4181_s11 + $0xa0] sm:$0xff]  }
  0x19   : > { %3899 = vmatmul.mubr.msk.bf16.gmra.mxu0 %vm1150_vm1, %v4027_v5  ;;  %v4047_v41 = vld [vmem:[%s4181_s11 + $0xa8] sm:$0xff]   ;;  %v4050_v42 = vld [vmem:[%s4181_s11 + $0xb0] sm:$0xff]   ;;  %v4053_v44 = vld [vmem:[%s4181_s11 + $0xb8] sm:$0xff]  }
  0x1a   : > { %1402 = vmatprep.mubr.bf16.mxu0 %v4117_v2  ;;  %3083 = vmatpush1.bf16.msra.mxu0 %v4051_v13  ;;  %v438_v46 = vld [vmem:[%s4337_s28] sm:$0xff]  ;;  %v439_v52 = vld [vmem:[%s4337_s28 + $0x8] sm:$0xff]  ;;  %v440_v62 = vld [vmem:[%s4337_s28 + $0x10] sm:$0xff] }
  0x1b   : > { %3084 = vmatprep.subr.bf16.mxu0 %v4117_v2  ;;  %4001 = vmatpush1.bf16.msra.mxu1 %v4052_v14  ;;  %v2023_v48 = vld [vmem:[%s5405_s3] sm:$0x3]  ;;  %v566_v50 = vunpack.c.l.bf16 %v438_v46  ;;  %v567_v55 = vunpack.c.h.bf16 %v438_v46  ;;  %v568_v58 = vunpack.c.l.bf16 %v439_v52  ;;  %v569_v1 = vunpack.c.h.bf16 %v439_v52  ;;  %v4059_v4 = vld [vmem:[%s4181_s11 + $0xc8] sm:$0xff]   ;;  %v441_v11 = vld [vmem:[%s4337_s28 + $0x18] sm:$0xff] }
  0x1c   : > { %3986 = vmatprep.subr.bf16.mxu1 %v4117_v2  ;;  %v4056_v49 = vld [vmem:[%s4181_s11 + $0xc0] sm:$0xff]   ;;  %v4347_v53 = vrot.slane %v2023_v48, %v2027_v47  ;;  %v4356_v61 = vrot.slane %v2023_v48, %v2031_v51 }
  0x1d   : > { %v2291_v54 = vld [vmem:[%s5406_s4] sm:$0x3] }
  0x1e   : > { %3085 = vmatpush1.bf16.msra.mxu0 %v4052_v14  ;;  %v4354_v59 = vrot.slane %v2291_v54, %v2027_v47  ;;  %v571_v14 = vunpack.c.h.bf16 %v440_v62 }
  0x1f   : > { %3086 = vmatprep.subr.bf16.mxu0 %v4117_v2  ;;  %4002 = vmatpush1.bf16.msra.mxu1 %v4054_v16 }
  0x20   : > { %3987 = vmatprep.subr.bf16.mxu1 %v4117_v2 }
  0x21   : > { %3900 = vmatmul.mubr.msk.bf16.gmra.mxu0 %vm1150_vm1, %v4028_v6  ;;  %v570_v6 = vunpack.c.l.bf16 %v440_v62  ;;  %v4065_v62 = vld [vmem:[%s4181_s11 + $0xd8] sm:$0xff]  }
  0x22   : > { %1412 = vmatprep.mubr.bf16.mxu0 %v4117_v2  ;;  %3087 = vmatpush1.bf16.msra.mxu0 %v4054_v16 }
  0x23   : > { %3088 = vmatprep.subr.bf16.mxu0 %v4117_v2  ;;  %4003 = vmatpush1.bf16.msra.mxu1 %v4055_v17 }
  0x24   : > { %3988 = vmatprep.subr.bf16.mxu1 %v4117_v2 }
  0x26   : > { %3089 = vmatpush1.bf16.msra.mxu0 %v4055_v17 }
  0x27   : > { %3090 = vmatprep.subr.bf16.mxu0 %v4117_v2  ;;  %4004 = vmatpush1.bf16.msra.mxu1 %v4057_v19 }
  0x28   : > { %3989 = vmatprep.subr.bf16.mxu1 %v4117_v2 }
  0x29   : > { %3901 = vmatmul.mubr.msk.bf16.gmra.mxu0 %vm1150_vm1, %v4029_v7 }
  0x2a   : > { %1422 = vmatprep.mubr.bf16.mxu0 %v4117_v2  ;;  %3091 = vmatpush1.bf16.msra.mxu0 %v4057_v19  ;;  %v572_v19 = vunpack.c.l.bf16 %v441_v11 }
  0x2b   : > { %3092 = vmatprep.subr.bf16.mxu0 %v4117_v2  ;;  %4005 = vmatpush1.bf16.msra.mxu1 %v4058_v21 }
  0x2c   : > { %3990 = vmatprep.subr.bf16.mxu1 %v4117_v2 }
  0x2e   : > { %3093 = vmatpush1.bf16.msra.mxu0 %v4058_v21 }
  0x2f   : > { %3094 = vmatprep.subr.bf16.mxu0 %v4117_v2  ;;  %4006 = vmatpush2.bf16.msra.mxu1 %v4060_v22 }
  0x30   : > { %3991 = vmatprep.subr.bf16.mxu1 %v4117_v2 }
  0x31   : > { %3902 = vmatmul.mubr.msk.bf16.gmra.mxu0 %vm1150_vm1, %v4030_v8 }
  0x32   : > { %1432 = vmatprep.mubr.bf16.mxu0 %v4117_v2  ;;  %3095 = vmatpush2.bf16.msra.mxu0 %v4060_v22 }
  0x33   : > { %3096 = vmatprep.subr.bf16.mxu0 %v4117_v2  ;;  %4007 = vmatpush2.bf16.msra.mxu1 %v4061_v24 }
  0x34   : > { %3992 = vmatprep.subr.bf16.mxu1 %v4117_v2 }
  0x36   : > { %3097 = vmatpush2.bf16.msra.mxu0 %v4061_v24  ;;  %v442_v24 = vld [vmem:[%s4337_s28 + $0x20] sm:$0xff] }
  0x37   : > { %3098 = vmatprep.subr.bf16.mxu0 %v4117_v2  ;;  %4008 = vmatpush2.bf16.msra.mxu1 %v4063_v25 }
  0x38   : > { %3993 = vmatprep.subr.bf16.mxu1 %v4117_v2 }
  0x39   : > { %3903 = vmatmul.mubr.msk.bf16.gmra.mxu0 %vm1150_vm1, %v4031_v9  ;;  %v4363_v9 = vrot.slane %v2291_v54, %v2031_v51 }
  0x3a   : > { %1442 = vmatprep.mubr.bf16.mxu0 %v4117_v2  ;;  %3099 = vmatpush2.bf16.msra.mxu0 %v4063_v25 }
  0x3b   : > { %3100 = vmatprep.subr.bf16.mxu0 %v4117_v2  ;;  %4009 = vmatpush2.bf16.msra.mxu1 %v4064_v27 }
  0x3c   : > { %3994 = vmatprep.subr.bf16.mxu1 %v4117_v2 }
  0x3e   : > { %3101 = vmatpush2.bf16.msra.mxu0 %v4064_v27 }
  0x3f   : > { %3102 = vmatprep.subr.bf16.mxu0 %v4117_v2  ;;  %4010 = vmatpush2.bf16.msra.mxu1 %v4066_v28 }
  0x40   : > { %3995 = vmatprep.subr.bf16.mxu1 %v4117_v2 }
  0x41   : > { %3904 = vmatmul.mubr.msk.bf16.gmra.mxu0 %vm1150_vm1, %v4032_v12 }
  0x42   : > { %1452 = vmatprep.mubr.bf16.mxu0 %v4117_v2  ;;  %3103 = vmatpush2.bf16.msra.mxu0 %v4066_v28 }
  0x43   : > { %3104 = vmatprep.subr.bf16.mxu0 %v4117_v2  ;;  %4011 = vmatpush2.bf16.msra.mxu1 %v4067_v30 }
  0x44   : > { %3996 = vmatprep.subr.bf16.mxu1 %v4117_v2 }
  0x46   : > { %3105 = vmatpush2.bf16.msra.mxu0 %v4067_v30  ;;  %v4062_v30 = vld [vmem:[%s4181_s11 + $0xd0] sm:$0xff]  }
  0x47   : > { %3106 = vmatprep.subr.bf16.mxu0 %v4117_v2  ;;  %4012 = vmatpush2.bf16.msra.mxu1 %v4069_v31 }
  0x48   : > { %3997 = vmatprep.subr.bf16.mxu1 %v4117_v2 }
  0x49   : > { %3905 = vmatmul.mubr.msk.bf16.gmra.mxu0 %vm1150_vm1, %v4033_v15 }
  0x4a   : > { %1462 = vmatprep.mubr.bf16.mxu0 %v4117_v2  ;;  %3107 = vmatpush2.bf16.msra.mxu0 %v4069_v31 }
  0x4b   : > { %3108 = vmatprep.subr.bf16.mxu0 %v4117_v2  ;;  %4013 = vmatpush2.bf16.msra.mxu1 %v4070_v33 }
  0x4e   : > { %3109 = vmatpush2.bf16.msra.mxu0 %v4070_v33  ;;  %v574_v33 = vunpack.c.l.bf16 %v442_v24 }
  0x51   : > { %3906 = vmatmul.mubr.msk.bf16.gmra.mxu0 %vm1150_vm1, %v4034_v18 }
  0x52   : > { %1472 = vmatprep.mubr.bf16.mxu0 %v4117_v2 }
  0x59   : > { %3907 = vmatmul.mubr.msk.bf16.gmra.mxu0 %vm1150_vm1, %v4035_v20 }
  0x5a   : > { %1482 = vmatprep.mubr.bf16.mxu0 %v4117_v2 }
  0x61   : > { %3908 = vmatmul.mubr.msk.bf16.gmra.mxu0 %vm1150_vm1, %v4036_v23  ;;  %v573_v23 = vunpack.c.h.bf16 %v441_v11 }
  0x62   : > { %1492 = vmatprep.mubr.bf16.mxu0 %v4117_v2 }
  0x69   : > { %3909 = vmatmul.mubr.msk.bf16.gmra.mxu0 %vm1150_vm1, %v4037_v26 }
  0x6a   : > { %1502 = vmatprep.mubr.bf16.mxu0 %v4117_v2 }
  0x71   : > { %3910 = vmatmul.mubr.msk.bf16.gmra.mxu0 %vm1150_vm1, %v4038_v29 }
  0x72   : > { %1512 = vmatprep.mubr.bf16.mxu0 %v4117_v2 }
  0x79   : > { %3911 = vmatmul.mubr.msk.bf16.gmra.mxu0 %vm1150_vm1, %v4039_v32 }
  0x7a   : > { %1522 = vmatprep.mubr.bf16.mxu0 %v4117_v2 }
  0x81   : > { %3912 = vmatmul.mubr.msk.bf16.gmra.mxu0 %vm1150_vm1, %v4040_v34 }
  0x82   : > { %1532 = vmatprep.mubr.bf16.mxu0 %v4117_v2 }
  0x89   : > { %3913 = vmatmul.mubr.msk.bf16.gmra.mxu0 %vm1150_vm1, %v4041_v35 }
  0x8a   : > { %1542 = vmatprep.mubr.bf16.mxu0 %v4117_v2 }
  0x91   : > { %3914 = vmatmul.mubr.msk.bf16.gmra.mxu0 %vm1150_vm1, %v4042_v36 }
  0x92   : > { %1552 = vmatprep.mubr.bf16.mxu0 %v4117_v2 }
  0x99   : > { %3915 = vmatmul.mubr.msk.bf16.gmra.mxu0 %vm1150_vm1, %v4043_v37 }
  0x9a   : > { %1562 = vmatprep.mubr.bf16.mxu0 %v4117_v2 }
  0xa1   : > { %3916 = vmatmul.mubr.msk.bf16.gmra.mxu0 %vm1150_vm1, %v4044_v38  ;;  %v443_v38 = vld [vmem:[%s4337_s28 + $0x28] sm:$0xff] }
  0xa2   : > { %1572 = vmatprep.mubr.bf16.mxu0 %v4117_v2  ;;  %v576_v48 = vunpack.c.l.bf16 %v443_v38  ;;  %v577_v52 = vunpack.c.h.bf16 %v443_v38 }
  0xa9   : > { %3917 = vmatmul.mubr.msk.bf16.gmra.mxu0 %vm1150_vm1, %v4045_v39 }
  0xaa   : > { %1582 = vmatprep.mubr.bf16.mxu0 %v4117_v2 }
  0xb1   : > { %3918 = vmatmul.mubr.msk.bf16.gmra.mxu0 %vm1150_vm1, %v4046_v40 }
  0xb2   : > { %1592 = vmatprep.mubr.bf16.mxu0 %v4117_v2 }
  0xb9   : > { %3919 = vmatmul.mubr.msk.bf16.gmra.mxu0 %vm1150_vm1, %v4047_v41 }
  0xba   : > { %1602 = vmatprep.mubr.bf16.mxu0 %v4117_v2 }
  0xc1   : > { %3920 = vmatmul.mubr.msk.bf16.gmra.mxu0 %vm1150_vm1, %v4050_v42  ;;  %v575_v42 = vunpack.c.h.bf16 %v442_v24 }
  0xc2   : > { %1612 = vmatprep.mubr.bf16.mxu0 %v4117_v2 }
  0xc9   : > { %3921 = vmatmul.mubr.msk.bf16.gmra.mxu0 %vm1150_vm1, %v4053_v44 }
  0xca   : > { %1622 = vmatprep.mubr.bf16.mxu0 %v4117_v2 }
  0xd1   : > { %v1384_v56 = vpop.f32.mrf.mxu0  ;;  %3922 = vmatmul.mubr.msk.bf16.gmra.mxu0 %vm1150_vm1, %v4056_v49 }
  0xd2   : > { %v1385_v57 = vadd.f32 %v1384_v56, %v566_v50  ;;  %1632 = vmatprep.mubr.bf16.mxu0 %v4117_v2 }
  0xd3   : > { %v1386_v60 = vpop.f32.mrf.mxu0 }
  0xd4   : > { %v2035_v63 = vmul.f32 %v4347_v53, %v1385_v57  ;;  %v1387_v0 = vadd.f32 %v1386_v60, %v567_v55  ;;  %v444_v60 = vld [vmem:[%s4337_s28 + $0x30] sm:$0xff] }
  0xd5   : > { %v1388_v3 = vpop.f32.mrf.mxu0  ;;  %v578_v11 = vunpack.c.l.bf16 %v444_v60 }
  0xd6   : > { %v1389_v5 = vadd.f32 %v1388_v3, %v568_v58  ;;  %v2303_v7 = vadd.f32 %v4354_v59, %v2035_v63  ;;  %v2036_v8 = vmul.f32 %v4356_v61, %v1387_v0 }
  0xd7   : > { %v1390_v10 = vpop.f32.mrf.mxu0 }
  0xd8   : > { %v2037_v12 = vmul.f32 %v4347_v53, %v1389_v5  ;;  %v1391_v13 = vadd.f32 %v1390_v10, %v569_v1  ;;  %v2559_v20 = vmax.f32 %v2303_v7, 0.0  ;;  %v2304_v21 = vadd.f32 %v4363_v9, %v2036_v8 }
  0xd9   : > { %v1394_v15 = vpop.f32.mrf.mxu0  ;;  %3923 = vmatmul.mubr.msk.bf16.gmra.mxu0 %vm1150_vm1, %v4059_v4 }
  0xda   : > { %v2305_v16 = vadd.f32 %v4354_v59, %v2037_v12  ;;  %v2038_v17 = vmul.f32 %v4356_v61, %v1391_v13  ;;  %v1395_v18 = vadd.f32 %v1394_v15, %v570_v6  ;;  %1642 = vmatprep.mubr.bf16.mxu0 %v4117_v2  ;;  %v2560_v34 = vmax.f32 %v2304_v21, 0.0  ;;  %v445_v6 = vld [vmem:[%s4337_s28 + $0x38] sm:$0xff] }
  0xdb   : > { %v1396_v22 = vpop.f32.mrf.mxu0  ;;  %v579_v12 = vunpack.c.h.bf16 %v444_v60  ;;  %v581_v21 = vunpack.c.h.bf16 %v445_v6 }
  0xdc   : > { %v2561_v25 = vmax.f32 %v2305_v16, 0.0  ;;  %v2306_v26 = vadd.f32 %v4363_v9, %v2038_v17  ;;  %v2039_v27 = vmul.f32 %v4347_v53, %v1395_v18  ;;  %v1397_v28 = vadd.f32 %v1396_v22, %v571_v14 }
  0xdd   : > { %v1398_v29 = vpop.f32.mrf.mxu0  ;;  %v580_v17 = vunpack.c.l.bf16 %v445_v6 }
  0xde   : > { %v4376_v31 = vpack.c.bf16 %v2561_v25, %v2559_v20  ;;  %v1399_v32 = vadd.f32 %v1398_v29, %v572_v19  ;;  %v2307_v35 = vadd.f32 %v4354_v59, %v2039_v27  ;;  %v2040_v36 = vmul.f32 %v4356_v61, %v1397_v28  ;;  %v4068_v28 = vld [vmem:[%s4181_s11 + $0xe0] sm:$0xff]  }
  0xdf   : > { %v1400_v37 = vpop.f32.mrf.mxu0  ;;  %v2562_v39 = vmax.f32 %v2306_v26, 0.0  ;;  %v446_v26 = vld [vmem:[%s4337_s28 + $0x40] sm:$0xff] }
  0xe0   : > { %v2041_v40 = vmul.f32 %v4347_v53, %v1399_v32  ;;  %v1401_v41 = vadd.f32 %v1400_v37, %v573_v23  ;;  %v2563_v49 = vmax.f32 %v2307_v35, 0.0  ;;  %v2308_v50 = vadd.f32 %v4363_v9, %v2040_v36  ;;  %v447_v36 = vld [vmem:[%s4337_s28 + $0x48] sm:$0xff] }
  0xe1   : > { %v1404_v43 = vpop.f32.mrf.mxu0  ;;  %3924 = vmatmul.mubr.msk.bf16.gmra.mxu0 %vm1150_vm1, %v4062_v30  ;;  %v4383_v44 = vpack.c.bf16 %v2562_v39, %v2560_v34  ;;  %v582_v35 = vunpack.c.l.bf16 %v446_v26 }
  0xe2   : > { %v2309_v45 = vadd.f32 %v4354_v59, %v2041_v40  ;;  %v2042_v46 = vmul.f32 %v4356_v61, %v1401_v41  ;;  %v1405_v47 = vadd.f32 %v1404_v43, %v574_v33  ;;  %1652 = vmatprep.mubr.bf16.mxu0 %v4117_v2  ;;  %v2564_v1 = vmax.f32 %v2308_v50, 0.0 }
  0xe3   : > { %v1406_v51 = vpop.f32.mrf.mxu0  ;;  %v583_v41 = vunpack.c.h.bf16 %v446_v26 }
  0xe4   : > { %v2565_v54 = vmax.f32 %v2309_v45, 0.0  ;;  %v2310_v55 = vadd.f32 %v4363_v9, %v2042_v46  ;;  %v2043_v56 = vmul.f32 %v4347_v53, %v1405_v47  ;;  %v1407_v57 = vadd.f32 %v1406_v51, %v575_v42 }
  0xe5   : > { %v1408_v58 = vpop.f32.mrf.mxu0  ;;  %v584_v47 = vunpack.c.l.bf16 %v447_v36 }
  0xe6   : > { %v4393_v63 = vpack.c.bf16 %v2565_v54, %v2563_v49  ;;  %v1409_v0 = vadd.f32 %v1408_v58, %v576_v48  ;;  %v2311_v3 = vadd.f32 %v4354_v59, %v2043_v56  ;;  %v2044_v4 = vmul.f32 %v4356_v61, %v1407_v57  ;;  %v4071_v58 = vld [vmem:[%s4181_s11 + $0xe8] sm:$0xff]  }
  0xe7   : > { %v1410_v5 = vpop.f32.mrf.mxu0  ;;  %v2566_v7 = vmax.f32 %v2310_v55, 0.0  ;;  %v585_v49 = vunpack.c.h.bf16 %v447_v36  ;;  %v448_v55 = vld [vmem:[%s4337_s28 + $0x50] sm:$0xff] }
  0xe8   : > { %v2045_v8 = vmul.f32 %v4347_v53, %v1409_v0  ;;  %v1411_v10 = vadd.f32 %v1410_v5, %v577_v52  ;;  %v2567_v18 = vmax.f32 %v2311_v3, 0.0  ;;  %v2312_v19 = vadd.f32 %v4363_v9, %v2044_v4 }
  0xe9   : > { %v1414_v13 = vpop.f32.mrf.mxu0  ;;  %3925 = vmatmul.mubr.msk.bf16.gmra.mxu0 %vm1150_vm1, %v4065_v62  ;;  %v4400_v14 = vpack.c.bf16 %v2566_v7, %v2564_v1  ;;  %v586_v4 = vunpack.c.l.bf16 %v448_v55  ;;  %v587_v6 = vunpack.c.h.bf16 %v448_v55  ;;  %v449_v7 = vld [vmem:[%s4337_s28 + $0x58] sm:$0xff] }
  0xea   : > { %v2313_v15 = vadd.f32 %v4354_v59, %v2045_v8  ;;  %v2046_v16 = vmul.f32 %v4356_v61, %v1411_v10  ;;  %1662 = vmatprep.mubr.bf16.mxu0 %v4117_v2  ;;  %v1415_v24 = vadd.f32 %v1414_v13, %v578_v11  ;;  %v2568_v32 = vmax.f32 %v2312_v19, 0.0 }
  0xeb   : > { %v1416_v20 = vpop.f32.mrf.mxu0  ;;  %v588_v19 = vunpack.c.l.bf16 %v449_v7 }
  0xec   : > { %v2569_v22 = vmax.f32 %v2313_v15, 0.0  ;;  %v2314_v23 = vadd.f32 %v4363_v9, %v2046_v16  ;;  %v1417_v25 = vadd.f32 %v1416_v20, %v579_v12  ;;  %v2047_v38 = vmul.f32 %v4347_v53, %v1415_v24 }
  0xed   : > { %v1418_v27 = vpop.f32.mrf.mxu0 }
  0xee   : > { %v4409_v29 = vpack.c.bf16 %v2569_v22, %v2567_v18  ;;  %v1419_v30 = vadd.f32 %v1418_v27, %v580_v17  ;;  %v2048_v33 = vmul.f32 %v4356_v61, %v1417_v25  ;;  %v2570_v37 = vmax.f32 %v2314_v23, 0.0  ;;  %v450_v27 = vld [vmem:[%s4337_s28 + $0x60] sm:$0xff] }
  0xef   : > { %v1420_v34 = vpop.f32.mrf.mxu0  ;;  %v2315_v51 = vadd.f32 %v4354_v59, %v2047_v38  ;;  %v589_v22 = vunpack.c.h.bf16 %v449_v7  ;;  %v590_v38 = vunpack.c.l.bf16 %v450_v27 }
  0xf0   : > { %v2049_v39 = vmul.f32 %v4347_v53, %v1419_v30  ;;  %v1421_v40 = vadd.f32 %v1420_v34, %v581_v21  ;;  %v4416_v43 = vpack.c.bf16 %v2570_v37, %v2568_v32  ;;  %v2316_v50 = vadd.f32 %v4363_v9, %v2048_v33  ;;  %v4072_v30 = vld [vmem:[%s4181_s11 + $0xf0] sm:$0xff]  }
  0xf1   : > { %v1424_v42 = vpop.f32.mrf.mxu0  ;;  %3926 = vmatmul.mubr.msk.bf16.gmra.mxu0 %vm1150_vm1, %v4068_v28  ;;  %v2571_v8 = vmax.f32 %v2315_v51, 0.0 }
  0xf2   : > { %v2317_v45 = vadd.f32 %v4354_v59, %v2049_v39  ;;  %v2050_v46 = vmul.f32 %v4356_v61, %v1421_v40  ;;  %1672 = vmatprep.mubr.bf16.mxu0 %v4117_v2  ;;  %v1425_v52 = vadd.f32 %v1424_v42, %v582_v35  ;;  %v2572_v5 = vmax.f32 %v2316_v50, 0.0  ;;  %v451_v40 = vld [vmem:[%s4337_s28 + $0x68] sm:$0xff] }
  0xf3   : > { %v1426_v48 = vpop.f32.mrf.mxu0  ;;  %v591_v39 = vunpack.c.h.bf16 %v450_v27 }
  0xf4   : > { %v1427_v54 = vadd.f32 %v1426_v48, %v583_v41  ;;  %v2318_v56 = vadd.f32 %v4363_v9, %v2050_v46  ;;  %v2573_v60 = vmax.f32 %v2317_v45, 0.0  ;;  %v2051_v10 = vmul.f32 %v4347_v53, %v1425_v52 }
  0xf5   : > { %v1428_v57 = vpop.f32.mrf.mxu0  ;;  %v592_v52 = vunpack.c.l.bf16 %v451_v40 }
  0xf6   : > { %v1429_v62 = vadd.f32 %v1428_v57, %v584_v47  ;;  %v2574_v0 = vmax.f32 %v2318_v56, 0.0  ;;  %v2052_v1 = vmul.f32 %v4356_v61, %v1427_v54  ;;  %v2821_v18 = vpack.c.bf16 %v2573_v60, %v2571_v8 }
  0xf7   : > { %v1430_v3 = vpop.f32.mrf.mxu0  ;;  %v2319_v23 = vadd.f32 %v4354_v59, %v2051_v10  ;;  %v593_v56 = vunpack.c.h.bf16 %v451_v40 }
  0xf8   : > { %v2053_v11 = vmul.f32 %v4347_v53, %v1429_v62  ;;  %v1431_v12 = vadd.f32 %v1430_v3, %v585_v49  ;;  %v2822_v15 = vpack.c.bf16 %v2574_v0, %v2572_v5  ;;  %v2320_v20 = vadd.f32 %v4363_v9, %v2052_v1  ;;  %v452_v0 = vld [vmem:[%s4337_s28 + $0x70] sm:$0xff]  ;;  %v4073_v3 = vld [vmem:[%s4181_s11 + $0xf8] sm:$0xff]  }
  0xf9   : > { %v1434_v13 = vpop.f32.mrf.mxu0  ;;  %3927 = vmatmul.mubr.msk.bf16.gmra.mxu0 %vm1150_vm1, %v4071_v58  ;;  %v2575_v41 = vmax.f32 %v2319_v23, 0.0 }
  0xfa   : > { %v2321_v16 = vadd.f32 %v4354_v59, %v2053_v11  ;;  %v2054_v17 = vmul.f32 %v4356_v61, %v1431_v12  ;;  %1682 = vmatprep.mubr.bf16.mxu0 %v4117_v2  ;;  %3134 = vmatprep.mubr.bf16.mxu1 %v2822_v15  ;;  %v1435_v25 = vadd.f32 %v1434_v13, %v586_v4  ;;  %v2576_v35 = vmax.f32 %v2320_v20, 0.0  ;;  %v453_v13 = vld [vmem:[%s4337_s28 + $0x78] sm:$0xff] }
  0xfb   : > { %v1436_v21 = vpop.f32.mrf.mxu0  ;;  %3135 = vmatmul.mubr.bf16.vlgmr.msra.gmra.mxu1 %v2821_v18  ;;  %v594_v11 = vunpack.c.l.bf16 %v452_v0  ;;  %v595_v12 = vunpack.c.h.bf16 %v452_v0  ;;  %v597_v27 = vunpack.c.h.bf16 %v453_v13 }
  0xfc   : > { %v2322_v24 = vadd.f32 %v4363_v9, %v2054_v17  ;;  %v1437_v26 = vadd.f32 %v1436_v21, %v587_v6  ;;  %v2577_v32 = vmax.f32 %v2321_v16, 0.0  ;;  %v2055_v42 = vmul.f32 %v4347_v53, %v1435_v25 }
  0xfd   : > { %v1438_v28 = vpop.f32.mrf.mxu0 }
  0xfe   : > { %v1439_v33 = vadd.f32 %v1438_v28, %v588_v19  ;;  %v2578_v34 = vmax.f32 %v2322_v24, 0.0  ;;  %v2056_v36 = vmul.f32 %v4356_v61, %v1437_v26  ;;  %v2823_v51 = vpack.c.bf16 %v2577_v32, %v2575_v41 }
  0xff   : > { %v1440_v37 = vpop.f32.mrf.mxu0  ;;  %v2323_v57 = vadd.f32 %v4354_v59, %v2055_v42  ;;  %v596_v24 = vunpack.c.l.bf16 %v453_v13 }
 0x100   : > { %v2057_v45 = vmul.f32 %v4347_v53, %v1439_v33  ;;  %v1441_v46 = vadd.f32 %v1440_v37, %v589_v22  ;;  %v2824_v48 = vpack.c.bf16 %v2578_v34, %v2576_v35  ;;  %v2324_v54 = vadd.f32 %v4363_v9, %v2056_v36  ;;  %v454_v34 = vld [vmem:[%s4337_s28 + $0x80] sm:$0xff] }
 0x101   : > { %v1444_v47 = vpop.f32.mrf.mxu0  ;;  %3928 = vmatmul.mubr.msk.bf16.gmra.mxu0 %vm1150_vm1, %v4072_v30  ;;  %v2579_v15 = vmax.f32 %v2323_v57, 0.0  ;;  %v4074_v36 = vld [vmem:[%s4181_s11 + $0x100] sm:$0xff]  }
 0x102   : > { %v2325_v49 = vadd.f32 %v4354_v59, %v2057_v45  ;;  %v2058_v50 = vmul.f32 %v4356_v61, %v1441_v46  ;;  %1692 = vmatprep.mubr.bf16.mxu0 %v4117_v2  ;;  %3142 = vmatprep.mubr.bf16.mxu1 %v2824_v48  ;;  %v1445_v60 = vadd.f32 %v1444_v47, %v590_v38  ;;  %v2580_v7 = vmax.f32 %v2324_v54, 0.0  ;;  %v455_v47 = vld [vmem:[%s4337_s28 + $0x88] sm:$0xff] }
 0x103   : > { %v1446_v55 = vpop.f32.mrf.mxu0  ;;  %3143 = vmatmul.mubr.bf16.gmra.mxu1 %v2823_v51  ;;  %v598_v45 = vunpack.c.l.bf16 %v454_v34  ;;  %v599_v46 = vunpack.c.h.bf16 %v454_v34  ;;  %v601_v0 = vunpack.c.h.bf16 %v455_v47 }
 0x104   : > { %v2326_v58 = vadd.f32 %v4363_v9, %v2058_v50  ;;  %v1447_v62 = vadd.f32 %v1446_v55, %v591_v39  ;;  %v2581_v4 = vmax.f32 %v2325_v49, 0.0  ;;  %v2059_v16 = vmul.f32 %v4347_v53, %v1445_v60 }
 0x105   : > { %v1448_v1 = vpop.f32.mrf.mxu0 }
 0x106   : > { %v1449_v5 = vadd.f32 %v1448_v1, %v592_v52  ;;  %v2582_v6 = vmax.f32 %v2326_v58, 0.0  ;;  %v2060_v8 = vmul.f32 %v4356_v61, %v1447_v62  ;;  %v2825_v23 = vpack.c.bf16 %v2581_v4, %v2579_v15 }
 0x107   : > { %v1450_v10 = vpop.f32.mrf.mxu0  ;;  %v2327_v28 = vadd.f32 %v4354_v59, %v2059_v16  ;;  %v600_v58 = vunpack.c.l.bf16 %v455_v47 }
 0x108   : > { %v2061_v17 = vmul.f32 %v4347_v53, %v1449_v5  ;;  %v1451_v18 = vadd.f32 %v1450_v10, %v593_v56  ;;  %v2826_v20 = vpack.c.bf16 %v2582_v6, %v2580_v7  ;;  %v2328_v25 = vadd.f32 %v4363_v9, %v2060_v8  ;;  %v456_v6 = vld [vmem:[%s4337_s28 + $0x90] sm:$0xff]  ;;  %v4075_v8 = vld [vmem:[%s4181_s11 + $0x108] sm:$0xff]  }
 0x109   : > { %v1454_v19 = vpop.f32.mrf.mxu0  ;;  %3929 = vmatmul.mubr.msk.bf16.gmra.mxu0 %vm1150_vm1, %v4073_v3  ;;  %v2583_v48 = vmax.f32 %v2327_v28, 0.0 }
 0x10a   : > { %v2329_v21 = vadd.f32 %v4354_v59, %v2061_v17  ;;  %v2062_v22 = vmul.f32 %v4356_v61, %v1451_v18  ;;  %1702 = vmatprep.mubr.bf16.mxu0 %v4117_v2  ;;  %3150 = vmatprep.mubr.bf16.mxu1 %v2826_v20  ;;  %v1455_v32 = vadd.f32 %v1454_v19, %v594_v11  ;;  %v2584_v40 = vmax.f32 %v2328_v25, 0.0  ;;  %v457_v19 = vld [vmem:[%s4337_s28 + $0x98] sm:$0xff] }
 0x10b   : > { %v1456_v26 = vpop.f32.mrf.mxu0  ;;  %3151 = vmatmul.mubr.bf16.gmra.mxu1 %v2825_v23  ;;  %v602_v17 = vunpack.c.l.bf16 %v456_v6  ;;  %v603_v18 = vunpack.c.h.bf16 %v456_v6  ;;  %v605_v34 = vunpack.c.h.bf16 %v457_v19 }
 0x10c   : > { %v2330_v30 = vadd.f32 %v4363_v9, %v2062_v22  ;;  %v1457_v33 = vadd.f32 %v1456_v26, %v595_v12  ;;  %v2585_v37 = vmax.f32 %v2329_v21, 0.0  ;;  %v2063_v49 = vmul.f32 %v4347_v53, %v1455_v32 }
 0x10d   : > { %v1458_v35 = vpop.f32.mrf.mxu0 }
 0x10e   : > { %v1459_v38 = vadd.f32 %v1458_v35, %v596_v24  ;;  %v2586_v39 = vmax.f32 %v2330_v30, 0.0  ;;  %v2064_v41 = vmul.f32 %v4356_v61, %v1457_v33  ;;  %v2827_v57 = vpack.c.bf16 %v2585_v37, %v2583_v48 }
 0x10f   : > { %v1460_v42 = vpop.f32.mrf.mxu0  ;;  %v2331_v1 = vadd.f32 %v4354_v59, %v2063_v49  ;;  %v604_v30 = vunpack.c.l.bf16 %v457_v19 }
 0x110   : > { %v2065_v50 = vmul.f32 %v4347_v53, %v1459_v38  ;;  %v1461_v51 = vadd.f32 %v1460_v42, %v597_v27  ;;  %v2828_v54 = vpack.c.bf16 %v2586_v39, %v2584_v40  ;;  %v2332_v60 = vadd.f32 %v4363_v9, %v2064_v41  ;;  %v458_v39 = vld [vmem:[%s4337_s28 + $0xa0] sm:$0xff]  ;;  %v4076_v41 = vld [vmem:[%s4181_s11 + $0x110] sm:$0xff]  }
 0x111   : > { %v1464_v52 = vpop.f32.mrf.mxu0  ;;  %3930 = vmatmul.mubr.msk.bf16.gmra.mxu0 %vm1150_vm1, %v4074_v36  ;;  %v2587_v20 = vmax.f32 %v2331_v1, 0.0 }
 0x112   : > { %v2333_v55 = vadd.f32 %v4354_v59, %v2065_v50  ;;  %v2066_v56 = vmul.f32 %v4356_v61, %v1461_v51  ;;  %1712 = vmatprep.mubr.bf16.mxu0 %v4117_v2  ;;  %3158 = vmatprep.mubr.bf16.mxu1 %v2828_v54  ;;  %v1465_v4 = vadd.f32 %v1464_v52, %v598_v45  ;;  %v2588_v13 = vmax.f32 %v2332_v60, 0.0  ;;  %v459_v52 = vld [vmem:[%s4337_s28 + $0xa8] sm:$0xff] }
 0x113   : > { %v1466_v62 = vpop.f32.mrf.mxu0  ;;  %3159 = vmatmul.mubr.bf16.gmra.mxu1 %v2827_v57  ;;  %v606_v50 = vunpack.c.l.bf16 %v458_v39  ;;  %v607_v51 = vunpack.c.h.bf16 %v458_v39  ;;  %v609_v6 = vunpack.c.h.bf16 %v459_v52 }
 0x114   : > { %v2334_v3 = vadd.f32 %v4363_v9, %v2066_v56  ;;  %v1467_v5 = vadd.f32 %v1466_v62, %v599_v46  ;;  %v2589_v10 = vmax.f32 %v2333_v55, 0.0  ;;  %v2067_v21 = vmul.f32 %v4347_v53, %v1465_v4 }
 0x115   : > { %v1468_v7 = vpop.f32.mrf.mxu0 }
 0x116   : > { %v1469_v11 = vadd.f32 %v1468_v7, %v600_v58  ;;  %v2590_v12 = vmax.f32 %v2334_v3, 0.0  ;;  %v2068_v15 = vmul.f32 %v4356_v61, %v1467_v5  ;;  %v2829_v28 = vpack.c.bf16 %v2589_v10, %v2587_v20 }
 0x117   : > { %v1470_v16 = vpop.f32.mrf.mxu0  ;;  %v2335_v35 = vadd.f32 %v4354_v59, %v2067_v21  ;;  %v608_v3 = vunpack.c.l.bf16 %v459_v52 }
 0x118   : > { %v2069_v22 = vmul.f32 %v4347_v53, %v1469_v11  ;;  %v1471_v23 = vadd.f32 %v1470_v16, %v601_v0  ;;  %v2830_v25 = vpack.c.bf16 %v2590_v12, %v2588_v13  ;;  %v2336_v32 = vadd.f32 %v4363_v9, %v2068_v15  ;;  %v460_v12 = vld [vmem:[%s4337_s28 + $0xb0] sm:$0xff]  ;;  %v4077_v15 = vld [vmem:[%s4181_s11 + $0x118] sm:$0xff]  }
 0x119   : > { %v1474_v24 = vpop.f32.mrf.mxu0  ;;  %3931 = vmatmul.mubr.msk.bf16.gmra.mxu0 %vm1150_vm1, %v4075_v8  ;;  %v2591_v54 = vmax.f32 %v2335_v35, 0.0 }
 0x11a   : > { %v2337_v26 = vadd.f32 %v4354_v59, %v2069_v22  ;;  %v2070_v27 = vmul.f32 %v4356_v61, %v1471_v23  ;;  %1722 = vmatprep.mubr.bf16.mxu0 %v4117_v2  ;;  %3166 = vmatprep.mubr.bf16.mxu1 %v2830_v25  ;;  %v1475_v37 = vadd.f32 %v1474_v24, %v602_v17  ;;  %v2592_v47 = vmax.f32 %v2336_v32, 0.0  ;;  %v461_v24 = vld [vmem:[%s4337_s28 + $0xb8] sm:$0xff] }
 0x11b   : > { %v1476_v33 = vpop.f32.mrf.mxu0  ;;  %3167 = vmatmul.mubr.bf16.gmra.mxu1 %v2829_v28  ;;  %v610_v22 = vunpack.c.l.bf16 %v460_v12  ;;  %v611_v23 = vunpack.c.h.bf16 %v460_v12  ;;  %v613_v39 = vunpack.c.h.bf16 %v461_v24 }
 0x11c   : > { %v2338_v36 = vadd.f32 %v4363_v9, %v2070_v27  ;;  %v1477_v38 = vadd.f32 %v1476_v33, %v603_v18  ;;  %v2593_v42 = vmax.f32 %v2337_v26, 0.0  ;;  %v2071_v55 = vmul.f32 %v4347_v53, %v1475_v37 }
 0x11d   : > { %v1478_v40 = vpop.f32.mrf.mxu0 }
 0x11e   : > { %v1479_v45 = vadd.f32 %v1478_v40, %v604_v30  ;;  %v2594_v46 = vmax.f32 %v2338_v36, 0.0  ;;  %v2072_v48 = vmul.f32 %v4356_v61, %v1477_v38  ;;  %v2831_v1 = vpack.c.bf16 %v2593_v42, %v2591_v54 }
 0x11f   : > { %v1480_v49 = vpop.f32.mrf.mxu0  ;;  %v2339_v7 = vadd.f32 %v4354_v59, %v2071_v55  ;;  %v612_v36 = vunpack.c.l.bf16 %v461_v24 }
 0x120   : > { %v2073_v56 = vmul.f32 %v4347_v53, %v1479_v45  ;;  %v1481_v57 = vadd.f32 %v1480_v49, %v605_v34  ;;  %v2832_v60 = vpack.c.bf16 %v2594_v46, %v2592_v47  ;;  %v2340_v4 = vadd.f32 %v4363_v9, %v2072_v48  ;;  %v462_v46 = vld [vmem:[%s4337_s28 + $0xc0] sm:$0xff] }
 0x121   : > { %v1484_v58 = vpop.f32.mrf.mxu0  ;;  %3932 = vmatmul.mubr.msk.bf16.gmra.mxu0 %vm1150_vm1, %v4076_v41  ;;  %v2595_v25 = vmax.f32 %v2339_v7, 0.0  ;;  %v4078_v48 = vld [vmem:[%s4181_s11 + $0x120] sm:$0xff]  }
 0x122   : > { %v2341_v62 = vadd.f32 %v4354_v59, %v2073_v56  ;;  %v2074_v0 = vmul.f32 %v4356_v61, %v1481_v57  ;;  %1732 = vmatprep.mubr.bf16.mxu0 %v4117_v2  ;;  %3174 = vmatprep.mubr.bf16.mxu1 %v2832_v60  ;;  %v1485_v10 = vadd.f32 %v1484_v58, %v606_v50  ;;  %v2596_v19 = vmax.f32 %v2340_v4, 0.0  ;;  %v463_v58 = vld [vmem:[%s4337_s28 + $0xc8] sm:$0xff] }
 0x123   : > { %v1486_v5 = vpop.f32.mrf.mxu0  ;;  %3175 = vmatmul.mubr.bf16.gmra.mxu1 %v2831_v1  ;;  %v614_v56 = vunpack.c.l.bf16 %v462_v46  ;;  %v615_v57 = vunpack.c.h.bf16 %v462_v46  ;;  %v617_v12 = vunpack.c.h.bf16 %v463_v58 }
 0x124   : > { %v2342_v8 = vadd.f32 %v4363_v9, %v2074_v0  ;;  %v1487_v11 = vadd.f32 %v1486_v5, %v607_v51  ;;  %v2597_v16 = vmax.f32 %v2341_v62, 0.0  ;;  %v2075_v26 = vmul.f32 %v4347_v53, %v1485_v10 }
 0x125   : > { %v1488_v13 = vpop.f32.mrf.mxu0 }
 0x126   : > { %v1489_v17 = vadd.f32 %v1488_v13, %v608_v3  ;;  %v2598_v18 = vmax.f32 %v2342_v8, 0.0  ;;  %v2076_v20 = vmul.f32 %v4356_v61, %v1487_v11  ;;  %v2833_v35 = vpack.c.bf16 %v2597_v16, %v2595_v25 }
 0x127   : > { %v1490_v21 = vpop.f32.mrf.mxu0  ;;  %v2343_v40 = vadd.f32 %v4354_v59, %v2075_v26  ;;  %v616_v8 = vunpack.c.l.bf16 %v463_v58 }
 0x128   : > { %v2077_v27 = vmul.f32 %v4347_v53, %v1489_v17  ;;  %v1491_v28 = vadd.f32 %v1490_v21, %v609_v6  ;;  %v2834_v32 = vpack.c.bf16 %v2598_v18, %v2596_v19  ;;  %v2344_v37 = vadd.f32 %v4363_v9, %v2076_v20  ;;  %v464_v18 = vld [vmem:[%s4337_s28 + $0xd0] sm:$0xff]  ;;  %v4079_v20 = vld [vmem:[%s4181_s11 + $0x128] sm:$0xff]  }
 0x129   : > { %v1494_v30 = vpop.f32.mrf.mxu0  ;;  %3933 = vmatmul.mubr.msk.bf16.gmra.mxu0 %vm1150_vm1, %v4077_v15  ;;  %v2599_v60 = vmax.f32 %v2343_v40, 0.0 }
 0x12a   : > { %v2345_v33 = vadd.f32 %v4354_v59, %v2077_v27  ;;  %v2078_v34 = vmul.f32 %v4356_v61, %v1491_v28  ;;  %1742 = vmatprep.mubr.bf16.mxu0 %v4117_v2  ;;  %3182 = vmatprep.mubr.bf16.mxu1 %v2834_v32  ;;  %v1495_v42 = vadd.f32 %v1494_v30, %v610_v22  ;;  %v2600_v52 = vmax.f32 %v2344_v37, 0.0  ;;  %v465_v30 = vld [vmem:[%s4337_s28 + $0xd8] sm:$0xff] }
 0x12b   : > { %v1496_v38 = vpop.f32.mrf.mxu0  ;;  %3183 = vmatmul.mubr.bf16.gmra.mxu1 %v2833_v35  ;;  %v618_v27 = vunpack.c.l.bf16 %v464_v18  ;;  %v619_v28 = vunpack.c.h.bf16 %v464_v18  ;;  %v621_v46 = vunpack.c.h.bf16 %v465_v30 }
 0x12c   : > { %v2346_v41 = vadd.f32 %v4363_v9, %v2078_v34  ;;  %v1497_v45 = vadd.f32 %v1496_v38, %v611_v23  ;;  %v2601_v49 = vmax.f32 %v2345_v33, 0.0  ;;  %v2079_v62 = vmul.f32 %v4347_v53, %v1495_v42 }
 0x12d   : > { %v1498_v47 = vpop.f32.mrf.mxu0 }
 0x12e   : > { %v1499_v50 = vadd.f32 %v1498_v47, %v612_v36  ;;  %v2602_v51 = vmax.f32 %v2346_v41, 0.0  ;;  %v2080_v54 = vmul.f32 %v4356_v61, %v1497_v45  ;;  %v2835_v7 = vpack.c.bf16 %v2601_v49, %v2599_v60 }
 0x12f   : > { %v1500_v55 = vpop.f32.mrf.mxu0  ;;  %v2347_v13 = vadd.f32 %v4354_v59, %v2079_v62  ;;  %v620_v41 = vunpack.c.l.bf16 %v465_v30 }
 0x130   : > { %v2081_v0 = vmul.f32 %v4347_v53, %v1499_v50  ;;  %v1501_v1 = vadd.f32 %v1500_v55, %v613_v39  ;;  %v2836_v4 = vpack.c.bf16 %v2602_v51, %v2600_v52  ;;  %v2348_v10 = vadd.f32 %v4363_v9, %v2080_v54  ;;  %v466_v51 = vld [vmem:[%s4337_s28 + $0xe0] sm:$0xff]  ;;  %v4080_v54 = vld [vmem:[%s4181_s11 + $0x130] sm:$0xff]  }
 0x131   : > { %v1504_v3 = vpop.f32.mrf.mxu0  ;;  %3934 = vmatmul.mubr.msk.bf16.gmra.mxu0 %vm1150_vm1, %v4078_v48  ;;  %v2603_v32 = vmax.f32 %v2347_v13, 0.0 }
 0x132   : > { %v2349_v5 = vadd.f32 %v4354_v59, %v2081_v0  ;;  %v2082_v6 = vmul.f32 %v4356_v61, %v1501_v1  ;;  %1752 = vmatprep.mubr.bf16.mxu0 %v4117_v2  ;;  %3190 = vmatprep.mubr.bf16.mxu1 %v2836_v4  ;;  %v1505_v16 = vadd.f32 %v1504_v3, %v614_v56  ;;  %v2604_v24 = vmax.f32 %v2348_v10, 0.0  ;;  %v467_v3 = vld [vmem:[%s4337_s28 + $0xe8] sm:$0xff] }
 0x133   : > { %v1506_v11 = vpop.f32.mrf.mxu0  ;;  %3191 = vmatmul.mubr.bf16.gmra.mxu1 %v2835_v7  ;;  %v622_v0 = vunpack.c.l.bf16 %v466_v51  ;;  %v623_v1 = vunpack.c.h.bf16 %v466_v51  ;;  %v625_v18 = vunpack.c.h.bf16 %v467_v3 }
 0x134   : > { %v2350_v15 = vadd.f32 %v4363_v9, %v2082_v6  ;;  %v1507_v17 = vadd.f32 %v1506_v11, %v615_v57  ;;  %v2605_v21 = vmax.f32 %v2349_v5, 0.0  ;;  %v2083_v33 = vmul.f32 %v4347_v53, %v1505_v16 }
 0x135   : > { %v1508_v19 = vpop.f32.mrf.mxu0 }
 0x136   : > { %v1509_v22 = vadd.f32 %v1508_v19, %v616_v8  ;;  %v2606_v23 = vmax.f32 %v2350_v15, 0.0  ;;  %v2084_v25 = vmul.f32 %v4356_v61, %v1507_v17  ;;  %v2837_v40 = vpack.c.bf16 %v2605_v21, %v2603_v32 }
 0x137   : > { %v1510_v26 = vpop.f32.mrf.mxu0  ;;  %v2351_v47 = vadd.f32 %v4354_v59, %v2083_v33  ;;  %v624_v15 = vunpack.c.l.bf16 %v467_v3 }
 0x138   : > { %v2085_v34 = vmul.f32 %v4347_v53, %v1509_v22  ;;  %v1511_v35 = vadd.f32 %v1510_v26, %v617_v12  ;;  %v2838_v37 = vpack.c.bf16 %v2606_v23, %v2604_v24  ;;  %v2352_v42 = vadd.f32 %v4363_v9, %v2084_v25  ;;  %v468_v23 = vld [vmem:[%s4337_s28 + $0xf0] sm:$0xff]  ;;  %v4081_v25 = vld [vmem:[%s4181_s11 + $0x138] sm:$0xff]  }
 0x139   : > { %v1514_v36 = vpop.f32.mrf.mxu0  ;;  %3935 = vmatmul.mubr.msk.bf16.gmra.mxu0 %vm1150_vm1, %v4079_v20  ;;  %v2607_v4 = vmax.f32 %v2351_v47, 0.0 }
 0x13a   : > { %v2353_v38 = vadd.f32 %v4354_v59, %v2085_v34  ;;  %v2086_v39 = vmul.f32 %v4356_v61, %v1511_v35  ;;  %1762 = vmatprep.mubr.bf16.mxu0 %v4117_v2  ;;  %3198 = vmatprep.mubr.bf16.mxu1 %v2838_v37  ;;  %v1515_v49 = vadd.f32 %v1514_v36, %v618_v27  ;;  %v2608_v58 = vmax.f32 %v2352_v42, 0.0  ;;  %v469_v36 = vld [vmem:[%s4337_s28 + $0xf8] sm:$0xff] }
 0x13b   : > { %v1516_v45 = vpop.f32.mrf.mxu0  ;;  %3199 = vmatmul.mubr.bf16.gmra.mxu1 %v2837_v40  ;;  %v626_v34 = vunpack.c.l.bf16 %v468_v23  ;;  %v627_v35 = vunpack.c.h.bf16 %v468_v23  ;;  %v629_v51 = vunpack.c.h.bf16 %v469_v36 }
 0x13c   : > { %v2354_v48 = vadd.f32 %v4363_v9, %v2086_v39  ;;  %v1517_v50 = vadd.f32 %v1516_v45, %v619_v28  ;;  %v2609_v55 = vmax.f32 %v2353_v38, 0.0  ;;  %v2087_v5 = vmul.f32 %v4347_v53, %v1515_v49 }
 0x13d   : > { %v1518_v52 = vpop.f32.mrf.mxu0 }
 0x13e   : > { %v1519_v56 = vadd.f32 %v1518_v52, %v620_v41  ;;  %v2610_v57 = vmax.f32 %v2354_v48, 0.0  ;;  %v2088_v60 = vmul.f32 %v4356_v61, %v1517_v50  ;;  %v2839_v13 = vpack.c.bf16 %v2609_v55, %v2607_v4 }
 0x13f   : > { %v1520_v62 = vpop.f32.mrf.mxu0  ;;  %v2355_v19 = vadd.f32 %v4354_v59, %v2087_v5  ;;  %v628_v48 = vunpack.c.l.bf16 %v469_v36 }
 0x140   : > { %v2089_v6 = vmul.f32 %v4347_v53, %v1519_v56  ;;  %v1521_v7 = vadd.f32 %v1520_v62, %v621_v46  ;;  %v2840_v10 = vpack.c.bf16 %v2610_v57, %v2608_v58  ;;  %v2356_v16 = vadd.f32 %v4363_v9, %v2088_v60  ;;  %v470_v57 = vld [vmem:[%s4337_s28 + $0x100] sm:$0xff] }
 0x141   : > { %v1524_v8 = vpop.f32.mrf.mxu0  ;;  %3936 = vmatmul.mubr.msk.bf16.gmra.mxu0 %vm1150_vm1, %v4080_v54  ;;  %v2611_v37 = vmax.f32 %v2355_v19, 0.0  ;;  %v4082_v60 = vld [vmem:[%s4181_s11 + $0x140] sm:$0xff]  }
 0x142   : > { %v2357_v11 = vadd.f32 %v4354_v59, %v2089_v6  ;;  %v2090_v12 = vmul.f32 %v4356_v61, %v1521_v7  ;;  %1772 = vmatprep.mubr.bf16.mxu0 %v4117_v2  ;;  %3206 = vmatprep.mubr.bf16.mxu1 %v2840_v10  ;;  %v1525_v21 = vadd.f32 %v1524_v8, %v622_v0  ;;  %v2612_v30 = vmax.f32 %v2356_v16, 0.0  ;;  %v471_v8 = vld [vmem:[%s4337_s28 + $0x108] sm:$0xff] }
 0x143   : > { %v1526_v17 = vpop.f32.mrf.mxu0  ;;  %3207 = vmatmul.mubr.bf16.gmra.mxu1 %v2839_v13  ;;  %v630_v6 = vunpack.c.l.bf16 %v470_v57  ;;  %v631_v7 = vunpack.c.h.bf16 %v470_v57  ;;  %v633_v23 = vunpack.c.h.bf16 %v471_v8 }
 0x144   : > { %v2358_v20 = vadd.f32 %v4363_v9, %v2090_v12  ;;  %v1527_v22 = vadd.f32 %v1526_v17, %v623_v1  ;;  %v2613_v26 = vmax.f32 %v2357_v11, 0.0  ;;  %v2091_v38 = vmul.f32 %v4347_v53, %v1525_v21 }
 0x145   : > { %v1528_v24 = vpop.f32.mrf.mxu0 }
 0x146   : > { %v1529_v27 = vadd.f32 %v1528_v24, %v624_v15  ;;  %v2614_v28 = vmax.f32 %v2358_v20, 0.0  ;;  %v2092_v32 = vmul.f32 %v4356_v61, %v1527_v22  ;;  %v2841_v47 = vpack.c.bf16 %v2613_v26, %v2611_v37 }
 0x147   : > { %v1530_v33 = vpop.f32.mrf.mxu0  ;;  %v2359_v52 = vadd.f32 %v4354_v59, %v2091_v38  ;;  %v632_v20 = vunpack.c.l.bf16 %v471_v8 }
 0x148   : > { %v2093_v39 = vmul.f32 %v4347_v53, %v1529_v27  ;;  %v1531_v40 = vadd.f32 %v1530_v33, %v625_v18  ;;  %v2842_v42 = vpack.c.bf16 %v2614_v28, %v2612_v30  ;;  %v2360_v49 = vadd.f32 %v4363_v9, %v2092_v32  ;;  %v472_v28 = vld [vmem:[%s4337_s28 + $0x110] sm:$0xff]  ;;  %v4083_v32 = vld [vmem:[%s4181_s11 + $0x148] sm:$0xff]  }
 0x149   : > { %v1534_v41 = vpop.f32.mrf.mxu0  ;;  %3937 = vmatmul.mubr.msk.bf16.gmra.mxu0 %vm1150_vm1, %v4081_v25  ;;  %v2615_v10 = vmax.f32 %v2359_v52, 0.0 }
 0x14a   : > { %v2361_v45 = vadd.f32 %v4354_v59, %v2093_v39  ;;  %v2094_v46 = vmul.f32 %v4356_v61, %v1531_v40  ;;  %1782 = vmatprep.mubr.bf16.mxu0 %v4117_v2  ;;  %3214 = vmatprep.mubr.bf16.mxu1 %v2842_v42  ;;  %v1535_v55 = vadd.f32 %v1534_v41, %v626_v34  ;;  %v2616_v3 = vmax.f32 %v2360_v49, 0.0  ;;  %v473_v41 = vld [vmem:[%s4337_s28 + $0x118] sm:$0xff] }
 0x14b   : > { %v1536_v50 = vpop.f32.mrf.mxu0  ;;  %3215 = vmatmul.mubr.bf16.gmra.mxu1 %v2841_v47  ;;  %v634_v39 = vunpack.c.l.bf16 %v472_v28  ;;  %v635_v40 = vunpack.c.h.bf16 %v472_v28  ;;  %v637_v57 = vunpack.c.h.bf16 %v473_v41 }
 0x14c   : > { %v2362_v54 = vadd.f32 %v4363_v9, %v2094_v46  ;;  %v1537_v56 = vadd.f32 %v1536_v50, %v627_v35  ;;  %v2617_v62 = vmax.f32 %v2361_v45, 0.0  ;;  %v2095_v11 = vmul.f32 %v4347_v53, %v1535_v55 }
 0x14d   : > { %v1538_v58 = vpop.f32.mrf.mxu0 }
 0x14e   : > { %v1539_v0 = vadd.f32 %v1538_v58, %v628_v48  ;;  %v2618_v1 = vmax.f32 %v2362_v54, 0.0  ;;  %v2096_v4 = vmul.f32 %v4356_v61, %v1537_v56  ;;  %v2843_v19 = vpack.c.bf16 %v2617_v62, %v2615_v10 }
 0x14f   : > { %v1540_v5 = vpop.f32.mrf.mxu0  ;;  %v2363_v24 = vadd.f32 %v4354_v59, %v2095_v11  ;;  %v636_v54 = vunpack.c.l.bf16 %v473_v41 }
 0x150   : > { %v2097_v12 = vmul.f32 %v4347_v53, %v1539_v0  ;;  %v1541_v13 = vadd.f32 %v1540_v5, %v629_v51  ;;  %v2844_v16 = vpack.c.bf16 %v2618_v1, %v2616_v3  ;;  %v2364_v21 = vadd.f32 %v4363_v9, %v2096_v4  ;;  %v474_v1 = vld [vmem:[%s4337_s28 + $0x120] sm:$0xff]  ;;  %v4084_v4 = vld [vmem:[%s4181_s11 + $0x150] sm:$0xff]  }
 0x151   : > { %v1544_v15 = vpop.f32.mrf.mxu0  ;;  %3938 = vmatmul.mubr.msk.bf16.gmra.mxu0 %vm1150_vm1, %v4082_v60  ;;  %v2619_v42 = vmax.f32 %v2363_v24, 0.0 }
 0x152   : > { %v2365_v17 = vadd.f32 %v4354_v59, %v2097_v12  ;;  %v2098_v18 = vmul.f32 %v4356_v61, %v1541_v13  ;;  %1792 = vmatprep.mubr.bf16.mxu0 %v4117_v2  ;;  %3222 = vmatprep.mubr.bf16.mxu1 %v2844_v16  ;;  %v1545_v26 = vadd.f32 %v1544_v15, %v630_v6  ;;  %v2620_v36 = vmax.f32 %v2364_v21, 0.0  ;;  %v475_v15 = vld [vmem:[%s4337_s28 + $0x128] sm:$0xff] }
 0x153   : > { %v1546_v22 = vpop.f32.mrf.mxu0  ;;  %3223 = vmatmul.mubr.bf16.gmra.mxu1 %v2843_v19  ;;  %v638_v12 = vunpack.c.l.bf16 %v474_v1  ;;  %v639_v13 = vunpack.c.h.bf16 %v474_v1  ;;  %v641_v28 = vunpack.c.h.bf16 %v475_v15 }
 0x154   : > { %v2366_v25 = vadd.f32 %v4363_v9, %v2098_v18  ;;  %v1547_v27 = vadd.f32 %v1546_v22, %v631_v7  ;;  %v2621_v33 = vmax.f32 %v2365_v17, 0.0  ;;  %v2099_v45 = vmul.f32 %v4347_v53, %v1545_v26 }
 0x155   : > { %v1548_v30 = vpop.f32.mrf.mxu0 }
 0x156   : > { %v1549_v34 = vadd.f32 %v1548_v30, %v632_v20  ;;  %v2622_v35 = vmax.f32 %v2366_v25, 0.0  ;;  %v2100_v37 = vmul.f32 %v4356_v61, %v1547_v27  ;;  %v2845_v52 = vpack.c.bf16 %v2621_v33, %v2619_v42 }
 0x157   : > { %v1550_v38 = vpop.f32.mrf.mxu0  ;;  %v2367_v58 = vadd.f32 %v4354_v59, %v2099_v45  ;;  %v640_v25 = vunpack.c.l.bf16 %v475_v15 }
 0x158   : > { %v2101_v46 = vmul.f32 %v4347_v53, %v1549_v34  ;;  %v1551_v47 = vadd.f32 %v1550_v38, %v633_v23  ;;  %v2846_v49 = vpack.c.bf16 %v2622_v35, %v2620_v36  ;;  %v2368_v55 = vadd.f32 %v4363_v9, %v2100_v37  ;;  %v476_v35 = vld [vmem:[%s4337_s28 + $0x130] sm:$0xff]  ;;  %v4085_v37 = vld [vmem:[%s4181_s11 + $0x158] sm:$0xff]  }
 0x159   : > { %v1554_v48 = vpop.f32.mrf.mxu0  ;;  %3939 = vmatmul.mubr.msk.bf16.gmra.mxu0 %vm1150_vm1, %v4083_v32  ;;  %v2623_v16 = vmax.f32 %v2367_v58, 0.0 }
 0x15a   : > { %v2369_v50 = vadd.f32 %v4354_v59, %v2101_v46  ;;  %v2102_v51 = vmul.f32 %v4356_v61, %v1551_v47  ;;  %1802 = vmatprep.mubr.bf16.mxu0 %v4117_v2  ;;  %3230 = vmatprep.mubr.bf16.mxu1 %v2846_v49  ;;  %v1555_v62 = vadd.f32 %v1554_v48, %v634_v39  ;;  %v2624_v8 = vmax.f32 %v2368_v55, 0.0  ;;  %v477_v48 = vld [vmem:[%s4337_s28 + $0x138] sm:$0xff] }
 0x15b   : > { %v1556_v56 = vpop.f32.mrf.mxu0  ;;  %3231 = vmatmul.mubr.bf16.gmra.mxu1 %v2845_v52  ;;  %v642_v46 = vunpack.c.l.bf16 %v476_v35  ;;  %v643_v47 = vunpack.c.h.bf16 %v476_v35  ;;  %v645_v1 = vunpack.c.h.bf16 %v477_v48 }
 0x15c   : > { %v2370_v60 = vadd.f32 %v4363_v9, %v2102_v51  ;;  %v1557_v0 = vadd.f32 %v1556_v56, %v635_v40  ;;  %v2625_v5 = vmax.f32 %v2369_v50, 0.0  ;;  %v2103_v17 = vmul.f32 %v4347_v53, %v1555_v62 }
 0x15d   : > { %v1558_v3 = vpop.f32.mrf.mxu0 }
 0x15e   : > { %v1559_v6 = vadd.f32 %v1558_v3, %v636_v54  ;;  %v2626_v7 = vmax.f32 %v2370_v60, 0.0  ;;  %v2104_v10 = vmul.f32 %v4356_v61, %v1557_v0  ;;  %v2847_v24 = vpack.c.bf16 %v2625_v5, %v2623_v16 }
 0x15f   : > { %v1560_v11 = vpop.f32.mrf.mxu0  ;;  %v2371_v30 = vadd.f32 %v4354_v59, %v2103_v17  ;;  %v644_v60 = vunpack.c.l.bf16 %v477_v48 }
 0x160   : > { %v2105_v18 = vmul.f32 %v4347_v53, %v1559_v6  ;;  %v1561_v19 = vadd.f32 %v1560_v11, %v637_v57  ;;  %v2848_v21 = vpack.c.bf16 %v2626_v7, %v2624_v8  ;;  %v2372_v26 = vadd.f32 %v4363_v9, %v2104_v10  ;;  %v478_v7 = vld [vmem:[%s4337_s28 + $0x140] sm:$0xff] }
 0x161   : > { %v1564_v20 = vpop.f32.mrf.mxu0  ;;  %3940 = vmatmul.mubr.msk.bf16.gmra.mxu0 %vm1150_vm1, %v4084_v4  ;;  %v2627_v49 = vmax.f32 %v2371_v30, 0.0  ;;  %v4086_v10 = vld [vmem:[%s4181_s11 + $0x160] sm:$0xff]  }
 0x162   : > { %v2373_v22 = vadd.f32 %v4354_v59, %v2105_v18  ;;  %v2106_v23 = vmul.f32 %v4356_v61, %v1561_v19  ;;  %1812 = vmatprep.mubr.bf16.mxu0 %v4117_v2  ;;  %3238 = vmatprep.mubr.bf16.mxu1 %v2848_v21  ;;  %v1565_v33 = vadd.f32 %v1564_v20, %v638_v12  ;;  %v2628_v41 = vmax.f32 %v2372_v26, 0.0  ;;  %v479_v20 = vld [vmem:[%s4337_s28 + $0x148] sm:$0xff] }
 0x163   : > { %v1566_v27 = vpop.f32.mrf.mxu0  ;;  %3239 = vmatmul.mubr.bf16.gmra.mxu1 %v2847_v24  ;;  %v646_v18 = vunpack.c.l.bf16 %v478_v7  ;;  %v647_v19 = vunpack.c.h.bf16 %v478_v7  ;;  %v649_v35 = vunpack.c.h.bf16 %v479_v20 }
 0x164   : > { %v2374_v32 = vadd.f32 %v4363_v9, %v2106_v23  ;;  %v1567_v34 = vadd.f32 %v1566_v27, %v639_v13  ;;  %v2629_v38 = vmax.f32 %v2373_v22, 0.0  ;;  %v2107_v50 = vmul.f32 %v4347_v53, %v1565_v33 }
 0x165   : > { %v1568_v36 = vpop.f32.mrf.mxu0 }
 0x166   : > { %v1569_v39 = vadd.f32 %v1568_v36, %v640_v25  ;;  %v2630_v40 = vmax.f32 %v2374_v32, 0.0  ;;  %v2108_v42 = vmul.f32 %v4356_v61, %v1567_v34  ;;  %v2849_v58 = vpack.c.bf16 %v2629_v38, %v2627_v49 }
 0x167   : > { %v1570_v45 = vpop.f32.mrf.mxu0  ;;  %v2375_v3 = vadd.f32 %v4354_v59, %v2107_v50  ;;  %v648_v32 = vunpack.c.l.bf16 %v479_v20 }
 0x168   : > { %v2109_v51 = vmul.f32 %v4347_v53, %v1569_v39  ;;  %v1571_v52 = vadd.f32 %v1570_v45, %v641_v28  ;;  %v2850_v55 = vpack.c.bf16 %v2630_v40, %v2628_v41  ;;  %v2376_v62 = vadd.f32 %v4363_v9, %v2108_v42  ;;  %v480_v40 = vld [vmem:[%s4337_s28 + $0x150] sm:$0xff]  ;;  %v4087_v42 = vld [vmem:[%s4181_s11 + $0x168] sm:$0xff]  }
 0x169   : > { %v1574_v54 = vpop.f32.mrf.mxu0  ;;  %3941 = vmatmul.mubr.msk.bf16.gmra.mxu0 %vm1150_vm1, %v4085_v37  ;;  %v2631_v21 = vmax.f32 %v2375_v3, 0.0 }
 0x16a   : > { %v2377_v56 = vadd.f32 %v4354_v59, %v2109_v51  ;;  %v2110_v57 = vmul.f32 %v4356_v61, %v1571_v52  ;;  %1822 = vmatprep.mubr.bf16.mxu0 %v4117_v2  ;;  %3246 = vmatprep.mubr.bf16.mxu1 %v2850_v55  ;;  %v1575_v5 = vadd.f32 %v1574_v54, %v642_v46  ;;  %v2632_v15 = vmax.f32 %v2376_v62, 0.0  ;;  %v481_v54 = vld [vmem:[%s4337_s28 + $0x158] sm:$0xff] }
 0x16b   : > { %v1576_v0 = vpop.f32.mrf.mxu0  ;;  %3247 = vmatmul.mubr.bf16.gmra.mxu1 %v2849_v58  ;;  %v650_v51 = vunpack.c.l.bf16 %v480_v40  ;;  %v651_v52 = vunpack.c.h.bf16 %v480_v40  ;;  %v653_v7 = vunpack.c.h.bf16 %v481_v54 }
 0x16c   : > { %v2378_v4 = vadd.f32 %v4363_v9, %v2110_v57  ;;  %v1577_v6 = vadd.f32 %v1576_v0, %v643_v47  ;;  %v2633_v11 = vmax.f32 %v2377_v56, 0.0  ;;  %v2111_v22 = vmul.f32 %v4347_v53, %v1575_v5 }
 0x16d   : > { %v1578_v8 = vpop.f32.mrf.mxu0 }
 0x16e   : > { %v1579_v12 = vadd.f32 %v1578_v8, %v644_v60  ;;  %v2634_v13 = vmax.f32 %v2378_v4, 0.0  ;;  %v2112_v16 = vmul.f32 %v4356_v61, %v1577_v6  ;;  %v2851_v30 = vpack.c.bf16 %v2633_v11, %v2631_v21 }
 0x16f   : > { %v1580_v17 = vpop.f32.mrf.mxu0  ;;  %v2379_v36 = vadd.f32 %v4354_v59, %v2111_v22  ;;  %v652_v4 = vunpack.c.l.bf16 %v481_v54 }
 0x170   : > { %v2113_v23 = vmul.f32 %v4347_v53, %v1579_v12  ;;  %v1581_v24 = vadd.f32 %v1580_v17, %v645_v1  ;;  %v2852_v26 = vpack.c.bf16 %v2634_v13, %v2632_v15  ;;  %v2380_v33 = vadd.f32 %v4363_v9, %v2112_v16  ;;  %v482_v13 = vld [vmem:[%s4337_s28 + $0x160] sm:$0xff]  ;;  %v4088_v16 = vld [vmem:[%s4181_s11 + $0x170] sm:$0xff]  }
 0x171   : > { %v1584_v25 = vpop.f32.mrf.mxu0  ;;  %3942 = vmatmul.mubr.msk.bf16.gmra.mxu0 %vm1150_vm1, %v4086_v10  ;;  %v2635_v55 = vmax.f32 %v2379_v36, 0.0 }
 0x172   : > { %v2381_v27 = vadd.f32 %v4354_v59, %v2113_v23  ;;  %v2114_v28 = vmul.f32 %v4356_v61, %v1581_v24  ;;  %1832 = vmatprep.mubr.bf16.mxu0 %v4117_v2  ;;  %3254 = vmatprep.mubr.bf16.mxu1 %v2852_v26  ;;  %v1585_v38 = vadd.f32 %v1584_v25, %v646_v18  ;;  %v2636_v48 = vmax.f32 %v2380_v33, 0.0  ;;  %v483_v25 = vld [vmem:[%s4337_s28 + $0x168] sm:$0xff] }
 0x173   : > { %v1586_v34 = vpop.f32.mrf.mxu0  ;;  %3255 = vmatmul.mubr.bf16.gmra.mxu1 %v2851_v30  ;;  %v654_v23 = vunpack.c.l.bf16 %v482_v13  ;;  %v655_v24 = vunpack.c.h.bf16 %v482_v13  ;;  %v657_v40 = vunpack.c.h.bf16 %v483_v25 }
 0x174   : > { %v2382_v37 = vadd.f32 %v4363_v9, %v2114_v28  ;;  %v1587_v39 = vadd.f32 %v1586_v34, %v647_v19  ;;  %v2637_v45 = vmax.f32 %v2381_v27, 0.0  ;;  %v2115_v56 = vmul.f32 %v4347_v53, %v1585_v38 }
 0x175   : > { %v1588_v41 = vpop.f32.mrf.mxu0 }
 0x176   : > { %v1589_v46 = vadd.f32 %v1588_v41, %v648_v32  ;;  %v2638_v47 = vmax.f32 %v2382_v37, 0.0  ;;  %v2116_v49 = vmul.f32 %v4356_v61, %v1587_v39  ;;  %v2853_v3 = vpack.c.bf16 %v2637_v45, %v2635_v55 }
 0x177   : > { %v1590_v50 = vpop.f32.mrf.mxu0  ;;  %v2383_v8 = vadd.f32 %v4354_v59, %v2115_v56  ;;  %v656_v37 = vunpack.c.l.bf16 %v483_v25 }
 0x178   : > { %v2117_v57 = vmul.f32 %v4347_v53, %v1589_v46  ;;  %v1591_v58 = vadd.f32 %v1590_v50, %v649_v35  ;;  %v2854_v62 = vpack.c.bf16 %v2638_v47, %v2636_v48  ;;  %v2384_v5 = vadd.f32 %v4363_v9, %v2116_v49  ;;  %v484_v47 = vld [vmem:[%s4337_s28 + $0x170] sm:$0xff]  ;;  %v4089_v49 = vld [vmem:[%s4181_s11 + $0x178] sm:$0xff]  }
 0x179   : > { %v1594_v60 = vpop.f32.mrf.mxu0  ;;  %3943 = vmatmul.mubr.msk.bf16.gmra.mxu0 %vm1150_vm1, %v4087_v42  ;;  %v2639_v26 = vmax.f32 %v2383_v8, 0.0 }
 0x17a   : > { %v2385_v0 = vadd.f32 %v4354_v59, %v2117_v57  ;;  %v2118_v1 = vmul.f32 %v4356_v61, %v1591_v58  ;;  %1842 = vmatprep.mubr.bf16.mxu0 %v4117_v2  ;;  %3262 = vmatprep.mubr.bf16.mxu1 %v2854_v62  ;;  %v1595_v11 = vadd.f32 %v1594_v60, %v650_v51  ;;  %v2640_v20 = vmax.f32 %v2384_v5, 0.0  ;;  %v485_v60 = vld [vmem:[%s4337_s28 + $0x178] sm:$0xff] }
 0x17b   : > { %v1596_v6 = vpop.f32.mrf.mxu0  ;;  %3263 = vmatmul.mubr.bf16.gmra.mxu1 %v2853_v3  ;;  %v658_v57 = vunpack.c.l.bf16 %v484_v47  ;;  %v659_v58 = vunpack.c.h.bf16 %v484_v47  ;;  %v661_v13 = vunpack.c.h.bf16 %v485_v60 }
 0x17c   : > { %v2386_v10 = vadd.f32 %v4363_v9, %v2118_v1  ;;  %v1597_v12 = vadd.f32 %v1596_v6, %v651_v52  ;;  %v2641_v17 = vmax.f32 %v2385_v0, 0.0  ;;  %v2119_v27 = vmul.f32 %v4347_v53, %v1595_v11 }
 0x17d   : > { %v1598_v15 = vpop.f32.mrf.mxu0 }
 0x17e   : > { %v1599_v18 = vadd.f32 %v1598_v15, %v652_v4  ;;  %v2642_v19 = vmax.f32 %v2386_v10, 0.0  ;;  %v2120_v21 = vmul.f32 %v4356_v61, %v1597_v12  ;;  %v2855_v36 = vpack.c.bf16 %v2641_v17, %v2639_v26 }
 0x17f   : > { %v1600_v22 = vpop.f32.mrf.mxu0  ;;  %v2387_v41 = vadd.f32 %v4354_v59, %v2119_v27  ;;  %v660_v10 = vunpack.c.l.bf16 %v485_v60 }
 0x180   : > { %v2121_v28 = vmul.f32 %v4347_v53, %v1599_v18  ;;  %v1601_v30 = vadd.f32 %v1600_v22, %v653_v7  ;;  %v2856_v33 = vpack.c.bf16 %v2642_v19, %v2640_v20  ;;  %v2388_v38 = vadd.f32 %v4363_v9, %v2120_v21  ;;  %v486_v19 = vld [vmem:[%s4337_s28 + $0x180] sm:$0xff] }
 0x181   : > { %v1604_v32 = vpop.f32.mrf.mxu0  ;;  %3944 = vmatmul.mubr.msk.bf16.gmra.mxu0 %vm1150_vm1, %v4088_v16  ;;  %v2643_v62 = vmax.f32 %v2387_v41, 0.0  ;;  %v4090_v21 = vld [vmem:[%s4181_s11 + $0x180] sm:$0xff]  }
 0x182   : > { %v2389_v34 = vadd.f32 %v4354_v59, %v2121_v28  ;;  %v2122_v35 = vmul.f32 %v4356_v61, %v1601_v30  ;;  %1852 = vmatprep.mubr.bf16.mxu0 %v4117_v2  ;;  %3270 = vmatprep.mubr.bf16.mxu1 %v2856_v33  ;;  %v1605_v45 = vadd.f32 %v1604_v32, %v654_v23  ;;  %v2644_v54 = vmax.f32 %v2388_v38, 0.0  ;;  %v487_v32 = vld [vmem:[%s4337_s28 + $0x188] sm:$0xff] }
 0x183   : > { %v1606_v39 = vpop.f32.mrf.mxu0  ;;  %3271 = vmatmul.mubr.bf16.gmra.mxu1 %v2855_v36  ;;  %v662_v28 = vunpack.c.l.bf16 %v486_v19  ;;  %v663_v30 = vunpack.c.h.bf16 %v486_v19  ;;  %v665_v47 = vunpack.c.h.bf16 %v487_v32 }
 0x184   : > { %v2390_v42 = vadd.f32 %v4363_v9, %v2122_v35  ;;  %v1607_v46 = vadd.f32 %v1606_v39, %v655_v24  ;;  %v2645_v50 = vmax.f32 %v2389_v34, 0.0  ;;  %v2123_v0 = vmul.f32 %v4347_v53, %v1605_v45 }
 0x185   : > { %v1608_v48 = vpop.f32.mrf.mxu0 }
 0x186   : > { %v1609_v51 = vadd.f32 %v1608_v48, %v656_v37  ;;  %v2646_v52 = vmax.f32 %v2390_v42, 0.0  ;;  %v2124_v55 = vmul.f32 %v4356_v61, %v1607_v46  ;;  %v2857_v8 = vpack.c.bf16 %v2645_v50, %v2643_v62 }
 0x187   : > { %v1610_v56 = vpop.f32.mrf.mxu0  ;;  %v2391_v15 = vadd.f32 %v4354_v59, %v2123_v0  ;;  %v664_v42 = vunpack.c.l.bf16 %v487_v32 }
 0x188   : > { %v2125_v1 = vmul.f32 %v4347_v53, %v1609_v51  ;;  %v1611_v3 = vadd.f32 %v1610_v56, %v657_v40  ;;  %v2858_v5 = vpack.c.bf16 %v2646_v52, %v2644_v54  ;;  %v2392_v11 = vadd.f32 %v4363_v9, %v2124_v55  ;;  %v488_v52 = vld [vmem:[%s4337_s28 + $0x190] sm:$0xff]  ;;  %v4091_v55 = vld [vmem:[%s4181_s11 + $0x188] sm:$0xff]  }
 0x189   : > { %v1614_v4 = vpop.f32.mrf.mxu0  ;;  %3945 = vmatmul.mubr.msk.bf16.gmra.mxu0 %vm1150_vm1, %v4089_v49  ;;  %v2647_v33 = vmax.f32 %v2391_v15, 0.0 }
 0x18a   : > { %v2393_v6 = vadd.f32 %v4354_v59, %v2125_v1  ;;  %v2126_v7 = vmul.f32 %v4356_v61, %v1611_v3  ;;  %1862 = vmatprep.mubr.bf16.mxu0 %v4117_v2  ;;  %3278 = vmatprep.mubr.bf16.mxu1 %v2858_v5  ;;  %v1615_v17 = vadd.f32 %v1614_v4, %v658_v57  ;;  %v2648_v25 = vmax.f32 %v2392_v11, 0.0  ;;  %v489_v4 = vld [vmem:[%s4337_s28 + $0x198] sm:$0xff] }
 0x18b   : > { %v1616_v12 = vpop.f32.mrf.mxu0  ;;  %3279 = vmatmul.mubr.bf16.gmra.mxu1 %v2857_v8  ;;  %v666_v1 = vunpack.c.l.bf16 %v488_v52  ;;  %v667_v3 = vunpack.c.h.bf16 %v488_v52  ;;  %v669_v19 = vunpack.c.h.bf16 %v489_v4 }
 0x18c   : > { %v2394_v16 = vadd.f32 %v4363_v9, %v2126_v7  ;;  %v1617_v18 = vadd.f32 %v1616_v12, %v659_v58  ;;  %v2649_v22 = vmax.f32 %v2393_v6, 0.0  ;;  %v2127_v34 = vmul.f32 %v4347_v53, %v1615_v17 }
 0x18d   : > { %v1618_v20 = vpop.f32.mrf.mxu0 }
 0x18e   : > { %v1619_v23 = vadd.f32 %v1618_v20, %v660_v10  ;;  %v2650_v24 = vmax.f32 %v2394_v16, 0.0  ;;  %v2128_v26 = vmul.f32 %v4356_v61, %v1617_v18  ;;  %v2859_v41 = vpack.c.bf16 %v2649_v22, %v2647_v33 }
 0x18f   : > { %v1620_v27 = vpop.f32.mrf.mxu0  ;;  %v2395_v48 = vadd.f32 %v4354_v59, %v2127_v34  ;;  %v668_v16 = vunpack.c.l.bf16 %v489_v4 }
 0x190   : > { %v2129_v35 = vmul.f32 %v4347_v53, %v1619_v23  ;;  %v1621_v36 = vadd.f32 %v1620_v27, %v661_v13  ;;  %v2860_v38 = vpack.c.bf16 %v2650_v24, %v2648_v25  ;;  %v2396_v45 = vadd.f32 %v4363_v9, %v2128_v26  ;;  %v490_v24 = vld [vmem:[%s4337_s28 + $0x1a0] sm:$0xff]  ;;  %v4092_v26 = vld [vmem:[%s4181_s11 + $0x190] sm:$0xff]  }
 0x191   : > { %v1624_v37 = vpop.f32.mrf.mxu0  ;;  %3946 = vmatmul.mubr.msk.bf16.gmra.mxu0 %vm1150_vm1, %v4090_v21  ;;  %v2651_v5 = vmax.f32 %v2395_v48, 0.0 }
 0x192   : > { %v2397_v39 = vadd.f32 %v4354_v59, %v2129_v35  ;;  %v2130_v40 = vmul.f32 %v4356_v61, %v1621_v36  ;;  %1872 = vmatprep.mubr.bf16.mxu0 %v4117_v2  ;;  %3286 = vmatprep.mubr.bf16.mxu1 %v2860_v38  ;;  %v1625_v50 = vadd.f32 %v1624_v37, %v662_v28  ;;  %v2652_v60 = vmax.f32 %v2396_v45, 0.0  ;;  %v491_v37 = vld [vmem:[%s4337_s28 + $0x1a8] sm:$0xff] }
 0x193   : > { %v1626_v46 = vpop.f32.mrf.mxu0  ;;  %3287 = vmatmul.mubr.bf16.gmra.mxu1 %v2859_v41  ;;  %v670_v35 = vunpack.c.l.bf16 %v490_v24  ;;  %v671_v36 = vunpack.c.h.bf16 %v490_v24  ;;  %v673_v52 = vunpack.c.h.bf16 %v491_v37 }
 0x194   : > { %v2398_v49 = vadd.f32 %v4363_v9, %v2130_v40  ;;  %v1627_v51 = vadd.f32 %v1626_v46, %v663_v30  ;;  %v2653_v56 = vmax.f32 %v2397_v39, 0.0  ;;  %v2131_v6 = vmul.f32 %v4347_v53, %v1625_v50 }
 0x195   : > { %v1628_v54 = vpop.f32.mrf.mxu0 }
 0x196   : > { %v1629_v57 = vadd.f32 %v1628_v54, %v664_v42  ;;  %v2654_v58 = vmax.f32 %v2398_v49, 0.0  ;;  %v2132_v62 = vmul.f32 %v4356_v61, %v1627_v51  ;;  %v2861_v15 = vpack.c.bf16 %v2653_v56, %v2651_v5 }
 0x197   : > { %v1630_v0 = vpop.f32.mrf.mxu0  ;;  %v2399_v20 = vadd.f32 %v4354_v59, %v2131_v6  ;;  %v672_v49 = vunpack.c.l.bf16 %v491_v37 }
 0x198   : > { %v2133_v7 = vmul.f32 %v4347_v53, %v1629_v57  ;;  %v1631_v8 = vadd.f32 %v1630_v0, %v665_v47  ;;  %v2862_v11 = vpack.c.bf16 %v2654_v58, %v2652_v60  ;;  %v2400_v17 = vadd.f32 %v4363_v9, %v2132_v62  ;;  %v492_v58 = vld [vmem:[%s4337_s28 + $0x1b0] sm:$0xff]  ;;  %v4093_v62 = vld [vmem:[%s4181_s11 + $0x198] sm:$0xff]  }
 0x199   : > { %v1634_v10 = vpop.f32.mrf.mxu0  ;;  %3947 = vmatmul.mubr.msk.bf16.gmra.mxu0 %vm1150_vm1, %v4091_v55  ;;  %v2655_v38 = vmax.f32 %v2399_v20, 0.0 }
 0x19a   : > { %v2401_v12 = vadd.f32 %v4354_v59, %v2133_v7  ;;  %v2134_v13 = vmul.f32 %v4356_v61, %v1631_v8  ;;  %1882 = vmatprep.mubr.bf16.mxu0 %v4117_v2  ;;  %3294 = vmatprep.mubr.bf16.mxu1 %v2862_v11  ;;  %v1635_v22 = vadd.f32 %v1634_v10, %v666_v1  ;;  %v2656_v32 = vmax.f32 %v2400_v17, 0.0  ;;  %v493_v10 = vld [vmem:[%s4337_s28 + $0x1b8] sm:$0xff] }
 0x19b   : > { %v1636_v18 = vpop.f32.mrf.mxu0  ;;  %3295 = vmatmul.mubr.bf16.gmra.mxu1 %v2861_v15  ;;  %v674_v7 = vunpack.c.l.bf16 %v492_v58  ;;  %v675_v8 = vunpack.c.h.bf16 %v492_v58  ;;  %v677_v24 = vunpack.c.h.bf16 %v493_v10 }
 0x19c   : > { %v2402_v21 = vadd.f32 %v4363_v9, %v2134_v13  ;;  %v1637_v23 = vadd.f32 %v1636_v18, %v667_v3  ;;  %v2657_v27 = vmax.f32 %v2401_v12, 0.0  ;;  %v2135_v39 = vmul.f32 %v4347_v53, %v1635_v22 }
 0x19d   : > { %v1638_v25 = vpop.f32.mrf.mxu0 }
 0x19e   : > { %v1639_v28 = vadd.f32 %v1638_v25, %v668_v16  ;;  %v2658_v30 = vmax.f32 %v2402_v21, 0.0  ;;  %v2136_v33 = vmul.f32 %v4356_v61, %v1637_v23  ;;  %v2863_v48 = vpack.c.bf16 %v2657_v27, %v2655_v38 }
 0x19f   : > { %v1640_v34 = vpop.f32.mrf.mxu0  ;;  %v2403_v54 = vadd.f32 %v4354_v59, %v2135_v39  ;;  %v676_v21 = vunpack.c.l.bf16 %v493_v10 }
 0x1a0   : > { %v2137_v40 = vmul.f32 %v4347_v53, %v1639_v28  ;;  %v1641_v41 = vadd.f32 %v1640_v34, %v669_v19  ;;  %v2864_v45 = vpack.c.bf16 %v2658_v30, %v2656_v32  ;;  %v2404_v50 = vadd.f32 %v4363_v9, %v2136_v33  ;;  %v494_v30 = vld [vmem:[%s4337_s28 + $0x1c0] sm:$0xff] }
 0x1a1   : > { %v1644_v42 = vpop.f32.mrf.mxu0  ;;  %3948 = vmatmul.mubr.msk.bf16.gmra.mxu0 %vm1150_vm1, %v4092_v26  ;;  %v2659_v11 = vmax.f32 %v2403_v54, 0.0  ;;  %v4094_v33 = vld [vmem:[%s4181_s11 + $0x1a0] sm:$0xff]  }
 0x1a2   : > { %v2405_v46 = vadd.f32 %v4354_v59, %v2137_v40  ;;  %v2138_v47 = vmul.f32 %v4356_v61, %v1641_v41  ;;  %1892 = vmatprep.mubr.bf16.mxu0 %v4117_v2  ;;  %3302 = vmatprep.mubr.bf16.mxu1 %v2864_v45  ;;  %v1645_v56 = vadd.f32 %v1644_v42, %v670_v35  ;;  %v2660_v4 = vmax.f32 %v2404_v50, 0.0  ;;  %v495_v42 = vld [vmem:[%s4337_s28 + $0x1c8] sm:$0xff] }
 0x1a3   : > { %v1646_v51 = vpop.f32.mrf.mxu0  ;;  %3303 = vmatmul.mubr.bf16.gmra.mxu1 %v2863_v48  ;;  %v678_v40 = vunpack.c.l.bf16 %v494_v30  ;;  %v679_v41 = vunpack.c.h.bf16 %v494_v30  ;;  %v681_v58 = vunpack.c.h.bf16 %v495_v42 }
 0x1a4   : > { %v2406_v55 = vadd.f32 %v4363_v9, %v2138_v47  ;;  %v1647_v57 = vadd.f32 %v1646_v51, %v671_v36  ;;  %v2661_v0 = vmax.f32 %v2405_v46, 0.0  ;;  %v2139_v12 = vmul.f32 %v4347_v53, %v1645_v56 }
 0x1a5   : > { %v1648_v60 = vpop.f32.mrf.mxu0 }
 0x1a6   : > { %v1649_v1 = vadd.f32 %v1648_v60, %v672_v49  ;;  %v2662_v3 = vmax.f32 %v2406_v55, 0.0  ;;  %v2140_v5 = vmul.f32 %v4356_v61, %v1647_v57  ;;  %v2865_v20 = vpack.c.bf16 %v2661_v0, %v2659_v11 }
 0x1a7   : > { %v1650_v6 = vpop.f32.mrf.mxu0  ;;  %v2407_v25 = vadd.f32 %v4354_v59, %v2139_v12  ;;  %v680_v55 = vunpack.c.l.bf16 %v495_v42 }
 0x1a8   : > { %v2141_v13 = vmul.f32 %v4347_v53, %v1649_v1  ;;  %v1651_v15 = vadd.f32 %v1650_v6, %v673_v52  ;;  %v2866_v17 = vpack.c.bf16 %v2662_v3, %v2660_v4  ;;  %v2408_v22 = vadd.f32 %v4363_v9, %v2140_v5  ;;  %v496_v3 = vld [vmem:[%s4337_s28 + $0x1d0] sm:$0xff]  ;;  %v4095_v5 = vld [vmem:[%s4181_s11 + $0x1a8] sm:$0xff]  }
 0x1a9   : > { %v1654_v16 = vpop.f32.mrf.mxu0  ;;  %3949 = vmatmul.mubr.msk.bf16.gmra.mxu0 %vm1150_vm1, %v4093_v62  ;;  %v2663_v45 = vmax.f32 %v2407_v25, 0.0  ;;  %v4748_v25 = vld [vmem:[%s5408_s6] ss:$0 sm:$0xff] }
 0x1aa   : > { %v2409_v18 = vadd.f32 %v4354_v59, %v2141_v13  ;;  %v2142_v19 = vmul.f32 %v4356_v61, %v1651_v15  ;;  %1902 = vmatprep.mubr.bf16.mxu0 %v4117_v2  ;;  %3310 = vmatprep.mubr.bf16.mxu1 %v2866_v17  ;;  %v1655_v27 = vadd.f32 %v1654_v16, %v674_v7  ;;  %v2664_v37 = vmax.f32 %v2408_v22, 0.0  ;;  %v497_v16 = vld [vmem:[%s4337_s28 + $0x1d8] sm:$0xff] }
 0x1ab   : > { %v1656_v23 = vpop.f32.mrf.mxu0  ;;  %3311 = vmatmul.mubr.bf16.gmra.mxu1 %v2865_v20  ;;  %v682_v13 = vunpack.c.l.bf16 %v496_v3  ;;  %v683_v15 = vunpack.c.h.bf16 %v496_v3 }
 0x1ac   : > { %v2410_v26 = vadd.f32 %v4363_v9, %v2142_v19  ;;  %v1657_v28 = vadd.f32 %v1656_v23, %v675_v8  ;;  %v2665_v34 = vmax.f32 %v2409_v18, 0.0  ;;  %v2143_v46 = vmul.f32 %v4347_v53, %v1655_v27 }
 0x1ad   : > { %v1658_v32 = vpop.f32.mrf.mxu0  ;;  %v684_v27 = vunpack.c.l.bf16 %v497_v16 }
 0x1ae   : > { %v1659_v35 = vadd.f32 %v1658_v32, %v676_v21  ;;  %v2666_v36 = vmax.f32 %v2410_v26, 0.0  ;;  %v2144_v38 = vmul.f32 %v4356_v61, %v1657_v28  ;;  %v2867_v54 = vpack.c.bf16 %v2665_v34, %v2663_v45 }
 0x1af   : > { %v1660_v39 = vpop.f32.mrf.mxu0  ;;  %v2411_v60 = vadd.f32 %v4354_v59, %v2143_v46  ;;  %v685_v32 = vunpack.c.h.bf16 %v497_v16 }
 0x1b0   : > { %v2145_v47 = vmul.f32 %v4347_v53, %v1659_v35  ;;  %v1661_v48 = vadd.f32 %v1660_v39, %v677_v24  ;;  %v2868_v50 = vpack.c.bf16 %v2666_v36, %v2664_v37  ;;  %v2412_v56 = vadd.f32 %v4363_v9, %v2144_v38  ;;  %v498_v38 = vld [vmem:[%s4337_s28 + $0x1e0] sm:$0xff] }
 0x1b1   : > { %v1664_v49 = vpop.f32.mrf.mxu0  ;;  %3950 = vmatmul.mubr.msk.bf16.gmra.mxu0 %vm1150_vm1, %v4094_v33  ;;  %v2667_v17 = vmax.f32 %v2411_v60, 0.0 }
 0x1b2   : > { %v2413_v51 = vadd.f32 %v4354_v59, %v2145_v47  ;;  %v2146_v52 = vmul.f32 %v4356_v61, %v1661_v48  ;;  %1912 = vmatprep.mubr.bf16.mxu0 %v4117_v2  ;;  %3318 = vmatprep.mubr.bf16.mxu1 %v2868_v50  ;;  %v1665_v0 = vadd.f32 %v1664_v49, %v678_v40  ;;  %v2668_v10 = vmax.f32 %v2412_v56, 0.0 }
 0x1b3   : > { %v1666_v57 = vpop.f32.mrf.mxu0  ;;  %3319 = vmatmul.mubr.bf16.gmra.mxu1 %v2867_v54  ;;  %v499_v54 = vld [vmem:[%s4337_s28 + $0x1e8] sm:$0xff] }
 0x1b4   : > { %v2414_v62 = vadd.f32 %v4363_v9, %v2146_v52  ;;  %v1667_v1 = vadd.f32 %v1666_v57, %v679_v41  ;;  %v2669_v6 = vmax.f32 %v2413_v51, 0.0  ;;  %v2147_v18 = vmul.f32 %v4347_v53, %v1665_v0  ;;  %v4096_v41 = vld [vmem:[%s4181_s11 + $0x1b0] sm:$0xff]  }
 0x1b5   : > { %v1668_v4 = vpop.f32.mrf.mxu0  ;;  %v686_v51 = vunpack.c.l.bf16 %v498_v38  ;;  %v687_v52 = vunpack.c.h.bf16 %v498_v38 }
 0x1b6   : > { %v1669_v7 = vadd.f32 %v1668_v4, %v680_v55  ;;  %v2670_v8 = vmax.f32 %v2414_v62, 0.0  ;;  %v2148_v11 = vmul.f32 %v4356_v61, %v1667_v1  ;;  %v2869_v26 = vpack.c.bf16 %v2669_v6, %v2667_v17 }
 0x1b7   : > { %v1670_v12 = vpop.f32.mrf.mxu0  ;;  %v2415_v33 = vadd.f32 %v4354_v59, %v2147_v18  ;;  %v500_v18 = vld [vmem:[%s4337_s28 + $0x1f0] sm:$0xff] }
 0x1b8   : > { %v2149_v19 = vmul.f32 %v4347_v53, %v1669_v7  ;;  %v1671_v20 = vadd.f32 %v1670_v12, %v681_v58  ;;  %v2870_v22 = vpack.c.bf16 %v2670_v8, %v2668_v10  ;;  %v2416_v28 = vadd.f32 %v4363_v9, %v2148_v11 }
 0x1b9   : > { %v1674_v21 = vpop.f32.mrf.mxu0  ;;  %3951 = vmatmul.mubr.msk.bf16.gmra.mxu0 %vm1150_vm1, %v4095_v5  ;;  %v2671_v55 = vmax.f32 %v2415_v33, 0.0  ;;  %v688_v7 = vunpack.c.l.bf16 %v499_v54  ;;  %v689_v11 = vunpack.c.h.bf16 %v499_v54  ;;  %v691_v33 = vunpack.c.h.bf16 %v500_v18 }
 0x1ba   : > { %v2417_v23 = vadd.f32 %v4354_v59, %v2149_v19  ;;  %v2150_v24 = vmul.f32 %v4356_v61, %v1671_v20  ;;  %1922 = vmatprep.mubr.bf16.mxu0 %v4117_v2  ;;  %3326 = vmatprep.mubr.bf16.mxu1 %v2870_v22  ;;  %v1675_v35 = vadd.f32 %v1674_v21, %v682_v13  ;;  %v2672_v48 = vmax.f32 %v2416_v28, 0.0  ;;  %v4097_v21 = vld [vmem:[%s4181_s11 + $0x1b8] sm:$0xff]  }
 0x1bb   : > { %v1676_v30 = vpop.f32.mrf.mxu0  ;;  %v3136_v37 = vpop.f32.mrf.mxu1  ;;  %3327 = vmatmul.mubr.bf16.gmra.mxu1 %v2869_v26 }
 0x1bc   : > { %v2418_v34 = vadd.f32 %v4363_v9, %v2150_v24  ;;  %v1677_v36 = vadd.f32 %v1676_v30, %v683_v15  ;;  %v3137_v39 = vadd.f32 %v4748_v25, %v3136_v37  ;;  %v2673_v42 = vmax.f32 %v2417_v23, 0.0 }
 0x1bd   : > { %v1678_v40 = vpop.f32.mrf.mxu0  ;;  %v3138_v46 = vpop.f32.mrf.mxu1  ;;  %v2151_v56 = vmul.f32 %v4347_v53, %v1675_v35 }
 0x1be   : > { %v1679_v45 = vadd.f32 %v1678_v40, %v684_v27  ;;  %v2674_v47 = vmax.f32 %v2418_v34, 0.0  ;;  %v2152_v49 = vmul.f32 %v4356_v61, %v1677_v36  ;;  %3629 = vst [vmem:[%s4759_s16 + $0x30] sm:$0xff] %v3137_v39  ;;  %v2871_v6 = vpack.c.bf16 %v2673_v42, %v2671_v55  ;;  %v501_v34 = vld [vmem:[%s4337_s28 + $0x1f8] sm:$0xff] }
 0x1bf   : > { %v1680_v50 = vpop.f32.mrf.mxu0  ;;  %v3139_v60 = vpop.f32.mrf.mxu1  ;;  %v2419_v12 = vadd.f32 %v4354_v59, %v2151_v56 }
 0x1c0   : > { %v2153_v57 = vmul.f32 %v4347_v53, %v1679_v45  ;;  %v1681_v58 = vadd.f32 %v1680_v50, %v685_v32  ;;  %v3140_v62 = vadd.f32 %v4748_v25, %v3139_v60  ;;  %v2872_v1 = vpack.c.bf16 %v2674_v47, %v2672_v48  ;;  %v502_v60 = vld [vmem:[%s4337_s28 + $0x200] sm:$0xff] }
 0x1c1   : > { %v1684_v0 = vpop.f32.mrf.mxu0  ;;  %3952 = vmatmul.mubr.msk.bf16.gmra.mxu0 %vm1150_vm1, %v4096_v41  ;;  %v3141_v5 = vpop.f32.mrf.mxu1  ;;  %v2420_v8 = vadd.f32 %v4363_v9, %v2152_v49  ;;  %v690_v32 = vunpack.c.l.bf16 %v500_v18  ;;  %v2675_v35 = vmax.f32 %v2419_v12, 0.0  ;;  %v692_v49 = vunpack.c.l.bf16 %v501_v34 }
 0x1c2   : > { %v2421_v3 = vadd.f32 %v4354_v59, %v2153_v57  ;;  %v2154_v4 = vmul.f32 %v4356_v61, %v1681_v58  ;;  %1932 = vmatprep.mubr.bf16.mxu0 %v4117_v2  ;;  %3630 = vst [vmem:[%s4759_s16 + $0x38] sm:$0xff] %v3140_v62  ;;  %3334 = vmatprep.mubr.bf16.mxu1 %v2872_v1  ;;  %v4098_v1 = vld [vmem:[%s4181_s11 + $0x1c0] sm:$0xff]   ;;  %v695_v12 = vunpack.c.h.bf16 %v502_v60 }
 0x1c3   : > { %v1686_v10 = vpop.f32.mrf.mxu0  ;;  %v1685_v15 = vadd.f32 %v1684_v0, %v686_v51  ;;  %v3144_v17 = vpop.f32.mrf.mxu1  ;;  %3335 = vmatmul.mubr.bf16.gmra.mxu1 %v2871_v6  ;;  %v2676_v27 = vmax.f32 %v2420_v8, 0.0 }
 0x1c4   : > { %v2422_v13 = vadd.f32 %v4363_v9, %v2154_v4  ;;  %v1687_v16 = vadd.f32 %v1686_v10, %v687_v52  ;;  %v3145_v19 = vadd.f32 %v4748_v25, %v3144_v17  ;;  %v2677_v22 = vmax.f32 %v2421_v3, 0.0 }
 0x1c5   : > { %v1688_v20 = vpop.f32.mrf.mxu0  ;;  %v3146_v24 = vpop.f32.mrf.mxu1  ;;  %v2155_v36 = vmul.f32 %v4347_v53, %v1685_v15  ;;  %v693_v52 = vunpack.c.h.bf16 %v501_v34  ;;  %v504_v34 = vld [vmem:[%s4337_s28 + $0x210] sm:$0xff] }
 0x1c6   : > { %v1689_v23 = vadd.f32 %v1688_v20, %v688_v7  ;;  %v2678_v26 = vmax.f32 %v2422_v13, 0.0  ;;  %v2156_v28 = vmul.f32 %v4356_v61, %v1687_v16  ;;  %3631 = vst [vmem:[%s4759_s16 + $0x40] sm:$0xff] %v3145_v19  ;;  %v2873_v48 = vpack.c.bf16 %v2677_v22, %v2675_v35  ;;  %v503_v13 = vld [vmem:[%s4337_s28 + $0x208] sm:$0xff] }
 0x1c7   : > { %v1690_v30 = vpop.f32.mrf.mxu0  ;;  %v3147_v39 = vpop.f32.mrf.mxu1  ;;  %v2423_v54 = vadd.f32 %v4354_v59, %v2155_v36 }
 0x1c8   : > { %v2157_v37 = vmul.f32 %v4347_v53, %v1689_v23  ;;  %v1691_v38 = vadd.f32 %v1690_v30, %v689_v11  ;;  %v3148_v40 = vadd.f32 %v4748_v25, %v3147_v39  ;;  %v2874_v42 = vpack.c.bf16 %v2678_v26, %v2676_v27 }
 0x1c9   : > { %v1694_v41 = vpop.f32.mrf.mxu0  ;;  %3953 = vmatmul.mubr.msk.bf16.gmra.mxu0 %vm1150_vm1, %v4097_v21  ;;  %v3149_v47 = vpop.f32.mrf.mxu1  ;;  %v2424_v50 = vadd.f32 %v4363_v9, %v2156_v28  ;;  %v694_v11 = vunpack.c.l.bf16 %v502_v60  ;;  %v2679_v15 = vmax.f32 %v2423_v54, 0.0  ;;  %v696_v28 = vunpack.c.l.bf16 %v503_v13 }
 0x1ca   : > { %v2425_v45 = vadd.f32 %v4354_v59, %v2157_v37  ;;  %v2158_v46 = vmul.f32 %v4356_v61, %v1691_v38  ;;  %1942 = vmatprep.mubr.bf16.mxu0 %v4117_v2  ;;  %3632 = vst [vmem:[%s4759_s16 + $0x48] sm:$0xff] %v3148_v40  ;;  %3342 = vmatprep.mubr.bf16.mxu1 %v2874_v42  ;;  %v4099_v42 = vld [vmem:[%s4181_s11 + $0x1c8] sm:$0xff]   ;;  %v699_v54 = vunpack.c.h.bf16 %v504_v34 }
 0x1cb   : > { %v1696_v51 = vpop.f32.mrf.mxu0  ;;  %v1695_v56 = vadd.f32 %v1694_v41, %v690_v32  ;;  %v3152_v58 = vpop.f32.mrf.mxu1  ;;  %3343 = vmatmul.mubr.bf16.gmra.mxu1 %v2873_v48  ;;  %v2680_v7 = vmax.f32 %v2424_v50, 0.0  ;;  %v698_v48 = vunpack.c.l.bf16 %v504_v34 }
 0x1cc   : > { %v2426_v55 = vadd.f32 %v4363_v9, %v2158_v46  ;;  %v1697_v57 = vadd.f32 %v1696_v51, %v691_v33  ;;  %v3153_v62 = vadd.f32 %v4748_v25, %v3152_v58  ;;  %v2681_v3 = vmax.f32 %v2425_v45, 0.0 }
 0x1cd   : > { %v1698_v0 = vpop.f32.mrf.mxu0  ;;  %v3154_v5 = vpop.f32.mrf.mxu1  ;;  %v2159_v16 = vmul.f32 %v4347_v53, %v1695_v56  ;;  %v697_v33 = vunpack.c.h.bf16 %v503_v13  ;;  %v506_v13 = vld [vmem:[%s4337_s28 + $0x220] sm:$0xff] }
 0x1ce   : > { %v1699_v4 = vadd.f32 %v1698_v0, %v692_v49  ;;  %v2682_v6 = vmax.f32 %v2426_v55, 0.0  ;;  %v2160_v8 = vmul.f32 %v4356_v61, %v1697_v57  ;;  %3633 = vst [vmem:[%s4759_s16 + $0x50] sm:$0xff] %v3153_v62  ;;  %v2875_v27 = vpack.c.bf16 %v2681_v3, %v2679_v15  ;;  %v505_v55 = vld [vmem:[%s4337_s28 + $0x218] sm:$0xff] }
 0x1cf   : > { %v1700_v10 = vpop.f32.mrf.mxu0  ;;  %v3155_v19 = vpop.f32.mrf.mxu1  ;;  %v2427_v35 = vadd.f32 %v4354_v59, %v2159_v16  ;;  %v703_v34 = vunpack.c.h.bf16 %v506_v13 }
 0x1d0   : > { %v2161_v17 = vmul.f32 %v4347_v53, %v1699_v4  ;;  %v1701_v18 = vadd.f32 %v1700_v10, %v693_v52  ;;  %v3156_v20 = vadd.f32 %v4748_v25, %v3155_v19  ;;  %v2876_v22 = vpack.c.bf16 %v2682_v6, %v2680_v7 }
 0x1d1   : > { %v1704_v21 = vpop.f32.mrf.mxu0  ;;  %3954 = vmatmul.mubr.msk.bf16.gmra.mxu0 %vm1150_vm1, %v4098_v1  ;;  %v3157_v26 = vpop.f32.mrf.mxu1  ;;  %v2428_v30 = vadd.f32 %v4363_v9, %v2160_v8  ;;  %v2683_v56 = vmax.f32 %v2427_v35, 0.0  ;;  %v700_v8 = vunpack.c.l.bf16 %v505_v55  ;;  %v507_v35 = vld [vmem:[%s4337_s28 + $0x228] sm:$0xff] }
 0x1d2   : > { %v2429_v23 = vadd.f32 %v4354_v59, %v2161_v17  ;;  %v2162_v24 = vmul.f32 %v4356_v61, %v1701_v18  ;;  %1952 = vmatprep.mubr.bf16.mxu0 %v4117_v2  ;;  %3634 = vst [vmem:[%s4759_s16 + $0x58] sm:$0xff] %v3156_v20  ;;  %3350 = vmatprep.mubr.bf16.mxu1 %v2876_v22  ;;  %v4100_v22 = vld [vmem:[%s4181_s11 + $0x1d0] sm:$0xff]  }
 0x1d3   : > { %v1706_v32 = vpop.f32.mrf.mxu0  ;;  %v1705_v37 = vadd.f32 %v1704_v21, %v694_v11  ;;  %v3160_v39 = vpop.f32.mrf.mxu1  ;;  %3351 = vmatmul.mubr.bf16.gmra.mxu1 %v2875_v27  ;;  %v2684_v49 = vmax.f32 %v2428_v30, 0.0  ;;  %v702_v27 = vunpack.c.l.bf16 %v506_v13 }
 0x1d4   : > { %v2430_v36 = vadd.f32 %v4363_v9, %v2162_v24  ;;  %v1707_v38 = vadd.f32 %v1706_v32, %v695_v12  ;;  %v3161_v40 = vadd.f32 %v4748_v25, %v3160_v39  ;;  %v2685_v45 = vmax.f32 %v2429_v23, 0.0 }
 0x1d5   : > { %v1708_v41 = vpop.f32.mrf.mxu0  ;;  %v3162_v47 = vpop.f32.mrf.mxu1  ;;  %v2163_v57 = vmul.f32 %v4347_v53, %v1705_v37  ;;  %v701_v12 = vunpack.c.h.bf16 %v505_v55  ;;  %v508_v55 = vld [vmem:[%s4337_s28 + $0x230] sm:$0xff] }
 0x1d6   : > { %v1709_v46 = vadd.f32 %v1708_v41, %v696_v28  ;;  %v2164_v50 = vmul.f32 %v4356_v61, %v1707_v38  ;;  %3635 = vst [vmem:[%s4759_s16 + $0x60] sm:$0xff] %v3161_v40  ;;  %v2686_v52 = vmax.f32 %v2430_v36, 0.0  ;;  %v2877_v4 = vpack.c.bf16 %v2685_v45, %v2683_v56 }
 0x1d7   : > { %v1710_v51 = vpop.f32.mrf.mxu0  ;;  %v3163_v62 = vpop.f32.mrf.mxu1  ;;  %v2431_v15 = vadd.f32 %v4354_v59, %v2163_v57  ;;  %v707_v13 = vunpack.c.h.bf16 %v508_v55 }
 0x1d8   : > { %v2165_v58 = vmul.f32 %v4347_v53, %v1709_v46  ;;  %v1711_v60 = vadd.f32 %v1710_v51, %v697_v33  ;;  %v3164_v0 = vadd.f32 %v4748_v25, %v3163_v62  ;;  %v2878_v3 = vpack.c.bf16 %v2686_v52, %v2684_v49 }
 0x1d9   : > { %v1714_v1 = vpop.f32.mrf.mxu0  ;;  %3955 = vmatmul.mubr.msk.bf16.gmra.mxu0 %vm1150_vm1, %v4099_v42  ;;  %v3165_v7 = vpop.f32.mrf.mxu1  ;;  %v2432_v10 = vadd.f32 %v4363_v9, %v2164_v50  ;;  %v2687_v36 = vmax.f32 %v2431_v15, 0.0  ;;  %v704_v50 = vunpack.c.l.bf16 %v507_v35  ;;  %v509_v15 = vld [vmem:[%s4337_s28 + $0x238] sm:$0xff] }
 0x1da   : > { %v2433_v5 = vadd.f32 %v4354_v59, %v2165_v58  ;;  %v2166_v6 = vmul.f32 %v4356_v61, %v1711_v60  ;;  %1962 = vmatprep.mubr.bf16.mxu0 %v4117_v2  ;;  %3636 = vst [vmem:[%s4759_s16 + $0x68] sm:$0xff] %v3164_v0  ;;  %3358 = vmatprep.mubr.bf16.mxu1 %v2878_v3  ;;  %v4101_v3 = vld [vmem:[%s4181_s11 + $0x1d8] sm:$0xff]   ;;  %v706_v7 = vunpack.c.l.bf16 %v508_v55 }
 0x1db   : > { %v1716_v11 = vpop.f32.mrf.mxu0  ;;  %v1715_v17 = vadd.f32 %v1714_v1, %v698_v48  ;;  %v3168_v19 = vpop.f32.mrf.mxu1  ;;  %3359 = vmatmul.mubr.bf16.gmra.mxu1 %v2877_v4  ;;  %v2688_v28 = vmax.f32 %v2432_v10, 0.0 }
 0x1dc   : > { %v2434_v16 = vadd.f32 %v4363_v9, %v2166_v6  ;;  %v1717_v18 = vadd.f32 %v1716_v11, %v699_v54  ;;  %v3169_v20 = vadd.f32 %v4748_v25, %v3168_v19  ;;  %v2689_v23 = vmax.f32 %v2433_v5, 0.0 }
 0x1dd   : > { %v1718_v21 = vpop.f32.mrf.mxu0  ;;  %v3170_v26 = vpop.f32.mrf.mxu1  ;;  %v2167_v37 = vmul.f32 %v4347_v53, %v1715_v17  ;;  %v705_v54 = vunpack.c.h.bf16 %v507_v35  ;;  %v510_v35 = vld [vmem:[%s4337_s28 + $0x240] sm:$0xff] }
 0x1de   : > { %v1719_v24 = vadd.f32 %v1718_v21, %v700_v8  ;;  %v2168_v30 = vmul.f32 %v4356_v61, %v1717_v18  ;;  %3637 = vst [vmem:[%s4759_s16 + $0x70] sm:$0xff] %v3169_v20  ;;  %v2690_v33 = vmax.f32 %v2434_v16, 0.0  ;;  %v2879_v46 = vpack.c.bf16 %v2689_v23, %v2687_v36 }
 0x1df   : > { %v1720_v32 = vpop.f32.mrf.mxu0  ;;  %v3171_v40 = vpop.f32.mrf.mxu1  ;;  %v2435_v56 = vadd.f32 %v4354_v59, %v2167_v37  ;;  %v711_v55 = vunpack.c.h.bf16 %v510_v35 }
 0x1e0   : > { %v2169_v38 = vmul.f32 %v4347_v53, %v1719_v24  ;;  %v1721_v39 = vadd.f32 %v1720_v32, %v701_v12  ;;  %v3172_v41 = vadd.f32 %v4748_v25, %v3171_v40  ;;  %v2880_v45 = vpack.c.bf16 %v2690_v33, %v2688_v28 }
 0x1e1   : > { %v1724_v42 = vpop.f32.mrf.mxu0  ;;  %3956 = vmatmul.mubr.msk.bf16.gmra.mxu0 %vm1150_vm1, %v4100_v22  ;;  %v3173_v49 = vpop.f32.mrf.mxu1  ;;  %v2436_v51 = vadd.f32 %v4363_v9, %v2168_v30  ;;  %v2691_v16 = vmax.f32 %v2435_v56, 0.0  ;;  %v708_v30 = vunpack.c.l.bf16 %v509_v15  ;;  %v511_v56 = vld [vmem:[%s4337_s28 + $0x248] sm:$0xff] }
 0x1e2   : > { %v2437_v47 = vadd.f32 %v4354_v59, %v2169_v38  ;;  %v2170_v48 = vmul.f32 %v4356_v61, %v1721_v39  ;;  %1972 = vmatprep.mubr.bf16.mxu0 %v4117_v2  ;;  %3638 = vst [vmem:[%s4759_s16 + $0x78] sm:$0xff] %v3172_v41  ;;  %3366 = vmatprep.mubr.bf16.mxu1 %v2880_v45  ;;  %v4102_v45 = vld [vmem:[%s4181_s11 + $0x1e0] sm:$0xff]   ;;  %v710_v49 = vunpack.c.l.bf16 %v510_v35 }
 0x1e3   : > { %v1726_v52 = vpop.f32.mrf.mxu0  ;;  %v1725_v58 = vadd.f32 %v1724_v42, %v702_v27  ;;  %v3176_v62 = vpop.f32.mrf.mxu1  ;;  %3367 = vmatmul.mubr.bf16.gmra.mxu1 %v2879_v46  ;;  %v2692_v8 = vmax.f32 %v2436_v51, 0.0 }
 0x1e4   : > { %v2438_v57 = vadd.f32 %v4363_v9, %v2170_v48  ;;  %v1727_v60 = vadd.f32 %v1726_v52, %v703_v34  ;;  %v3177_v0 = vadd.f32 %v4748_v25, %v3176_v62  ;;  %v2693_v4 = vmax.f32 %v2437_v47, 0.0 }
 0x1e5   : > { %v1728_v1 = vpop.f32.mrf.mxu0  ;;  %v3178_v6 = vpop.f32.mrf.mxu1  ;;  %v2171_v17 = vmul.f32 %v4347_v53, %v1725_v58  ;;  %v709_v34 = vunpack.c.h.bf16 %v509_v15  ;;  %v512_v15 = vld [vmem:[%s4337_s28 + $0x250] sm:$0xff] }
 0x1e6   : > { %v1729_v5 = vadd.f32 %v1728_v1, %v704_v50  ;;  %v2172_v10 = vmul.f32 %v4356_v61, %v1727_v60  ;;  %3639 = vst [vmem:[%s4759_s16 + $0x80] sm:$0xff] %v3177_v0  ;;  %v2694_v12 = vmax.f32 %v2438_v57, 0.0  ;;  %v2881_v24 = vpack.c.bf16 %v2693_v4, %v2691_v16 }
 0x1e7   : > { %v1730_v11 = vpop.f32.mrf.mxu0  ;;  %v3179_v20 = vpop.f32.mrf.mxu1  ;;  %v2439_v36 = vadd.f32 %v4354_v59, %v2171_v17  ;;  %v715_v35 = vunpack.c.h.bf16 %v512_v15 }
 0x1e8   : > { %v2173_v18 = vmul.f32 %v4347_v53, %v1729_v5  ;;  %v1731_v19 = vadd.f32 %v1730_v11, %v705_v54  ;;  %v3180_v21 = vadd.f32 %v4748_v25, %v3179_v20  ;;  %v2882_v23 = vpack.c.bf16 %v2694_v12, %v2692_v8 }
 0x1e9   : > { %v1734_v22 = vpop.f32.mrf.mxu0  ;;  %3957 = vmatmul.mubr.msk.bf16.gmra.mxu0 %vm1150_vm1, %v4101_v3  ;;  %v3181_v28 = vpop.f32.mrf.mxu1  ;;  %v2440_v32 = vadd.f32 %v4363_v9, %v2172_v10  ;;  %v2695_v57 = vmax.f32 %v2439_v36, 0.0  ;;  %v712_v10 = vunpack.c.l.bf16 %v511_v56  ;;  %v513_v36 = vld [vmem:[%s4337_s28 + $0x258] sm:$0xff] }
 0x1ea   : > { %v2441_v26 = vadd.f32 %v4354_v59, %v2173_v18  ;;  %v2174_v27 = vmul.f32 %v4356_v61, %v1731_v19  ;;  %1982 = vmatprep.mubr.bf16.mxu0 %v4117_v2  ;;  %3640 = vst [vmem:[%s4759_s16 + $0x88] sm:$0xff] %v3180_v21  ;;  %3374 = vmatprep.mubr.bf16.mxu1 %v2882_v23  ;;  %v4103_v23 = vld [vmem:[%s4181_s11 + $0x1e8] sm:$0xff]   ;;  %v714_v28 = vunpack.c.l.bf16 %v512_v15 }
 0x1eb   : > { %v1736_v33 = vpop.f32.mrf.mxu0  ;;  %v1735_v38 = vadd.f32 %v1734_v22, %v706_v7  ;;  %v3184_v40 = vpop.f32.mrf.mxu1  ;;  %3375 = vmatmul.mubr.bf16.gmra.mxu1 %v2881_v24  ;;  %v2696_v50 = vmax.f32 %v2440_v32, 0.0 }
 0x1ec   : > { %v2442_v37 = vadd.f32 %v4363_v9, %v2174_v27  ;;  %v1737_v39 = vadd.f32 %v1736_v33, %v707_v13  ;;  %v3185_v41 = vadd.f32 %v4748_v25, %v3184_v40  ;;  %v2697_v46 = vmax.f32 %v2441_v26, 0.0 }
 0x1ed   : > { %v1738_v42 = vpop.f32.mrf.mxu0  ;;  %v3186_v48 = vpop.f32.mrf.mxu1  ;;  %v2175_v58 = vmul.f32 %v4347_v53, %v1735_v38  ;;  %v713_v13 = vunpack.c.h.bf16 %v511_v56  ;;  %v514_v56 = vld [vmem:[%s4337_s28 + $0x260] sm:$0xff] }
 0x1ee   : > { %v1739_v47 = vadd.f32 %v1738_v42, %v708_v30  ;;  %v2176_v51 = vmul.f32 %v4356_v61, %v1737_v39  ;;  %3641 = vst [vmem:[%s4759_s16 + $0x90] sm:$0xff] %v3185_v41  ;;  %v2698_v54 = vmax.f32 %v2442_v37, 0.0  ;;  %v2883_v5 = vpack.c.bf16 %v2697_v46, %v2695_v57 }
 0x1ef   : > { %v1740_v52 = vpop.f32.mrf.mxu0  ;;  %v3187_v0 = vpop.f32.mrf.mxu1  ;;  %v2443_v16 = vadd.f32 %v4354_v59, %v2175_v58  ;;  %v719_v15 = vunpack.c.h.bf16 %v514_v56 }
 0x1f0   : > { %v2177_v60 = vmul.f32 %v4347_v53, %v1739_v47  ;;  %v1741_v62 = vadd.f32 %v1740_v52, %v709_v34  ;;  %v3188_v1 = vadd.f32 %v4748_v25, %v3187_v0  ;;  %v2884_v4 = vpack.c.bf16 %v2698_v54, %v2696_v50 }
 0x1f1   : > { %v1744_v3 = vpop.f32.mrf.mxu0  ;;  %3958 = vmatmul.mubr.msk.bf16.gmra.mxu0 %vm1150_vm1, %v4102_v45  ;;  %v3189_v8 = vpop.f32.mrf.mxu1  ;;  %v2444_v11 = vadd.f32 %v4363_v9, %v2176_v51  ;;  %v2699_v37 = vmax.f32 %v2443_v16, 0.0  ;;  %v716_v51 = vunpack.c.l.bf16 %v513_v36  ;;  %v515_v16 = vld [vmem:[%s4337_s28 + $0x268] sm:$0xff] }
 0x1f2   : > { %v2445_v6 = vadd.f32 %v4354_v59, %v2177_v60  ;;  %v2178_v7 = vmul.f32 %v4356_v61, %v1741_v62  ;;  %1992 = vmatprep.mubr.bf16.mxu0 %v4117_v2  ;;  %3642 = vst [vmem:[%s4759_s16 + $0x98] sm:$0xff] %v3188_v1  ;;  %3382 = vmatprep.mubr.bf16.mxu1 %v2884_v4  ;;  %v4104_v4 = vld [vmem:[%s4181_s11 + $0x1f0] sm:$0xff]   ;;  %v718_v8 = vunpack.c.l.bf16 %v514_v56  ;;  %v517_v56 = vld [vmem:[%s4337_s28 + $0x278] sm:$0xff] }
 0x1f3   : > { %v1746_v12 = vpop.f32.mrf.mxu0  ;;  %v1745_v18 = vadd.f32 %v1744_v3, %v710_v49  ;;  %v3192_v20 = vpop.f32.mrf.mxu1  ;;  %3383 = vmatmul.mubr.bf16.gmra.mxu1 %v2883_v5  ;;  %v2700_v30 = vmax.f32 %v2444_v11, 0.0 }
 0x1f4   : > { %v2446_v17 = vadd.f32 %v4363_v9, %v2178_v7  ;;  %v1747_v19 = vadd.f32 %v1746_v12, %v711_v55  ;;  %v3193_v21 = vadd.f32 %v4748_v25, %v3192_v20  ;;  %v2701_v24 = vmax.f32 %v2445_v6, 0.0 }
 0x1f5   : > { %v1748_v22 = vpop.f32.mrf.mxu0  ;;  %v3194_v27 = vpop.f32.mrf.mxu1  ;;  %v2179_v38 = vmul.f32 %v4347_v53, %v1745_v18  ;;  %v717_v55 = vunpack.c.h.bf16 %v513_v36  ;;  %v516_v36 = vld [vmem:[%s4337_s28 + $0x270] sm:$0xff] }
 0x1f6   : > { %v1749_v26 = vadd.f32 %v1748_v22, %v712_v10  ;;  %v2180_v32 = vmul.f32 %v4356_v61, %v1747_v19  ;;  %3643 = vst [vmem:[%s4759_s16 + $0xa0] sm:$0xff] %v3193_v21  ;;  %v2702_v34 = vmax.f32 %v2446_v17, 0.0  ;;  %v2885_v47 = vpack.c.bf16 %v2701_v24, %v2699_v37 }
 0x1f7   : > { %v1750_v33 = vpop.f32.mrf.mxu0  ;;  %v3195_v41 = vpop.f32.mrf.mxu1  ;;  %v2447_v57 = vadd.f32 %v4354_v59, %v2179_v38 }
 0x1f8   : > { %v2181_v39 = vmul.f32 %v4347_v53, %v1749_v26  ;;  %v1751_v40 = vadd.f32 %v1750_v33, %v713_v13  ;;  %v3196_v42 = vadd.f32 %v4748_v25, %v3195_v41  ;;  %v2886_v46 = vpack.c.bf16 %v2702_v34, %v2700_v30 }
 0x1f9   : > { %v1754_v45 = vpop.f32.mrf.mxu0  ;;  %3959 = vmatmul.mubr.msk.bf16.gmra.mxu0 %vm1150_vm1, %v4103_v23  ;;  %v3197_v50 = vpop.f32.mrf.mxu1  ;;  %v2448_v52 = vadd.f32 %v4363_v9, %v2180_v32  ;;  %v2703_v17 = vmax.f32 %v2447_v57, 0.0  ;;  %v720_v32 = vunpack.c.l.bf16 %v515_v16 }
 0x1fa   : > { %v2449_v48 = vadd.f32 %v4354_v59, %v2181_v39  ;;  %v2182_v49 = vmul.f32 %v4356_v61, %v1751_v40  ;;  %2002 = vmatprep.mubr.bf16.mxu0 %v4117_v2  ;;  %3644 = vst [vmem:[%s4759_s16 + $0xa8] sm:$0xff] %v3196_v42  ;;  %3390 = vmatprep.mubr.bf16.mxu1 %v2886_v46 }
 0x1fb   : > { %v1756_v54 = vpop.f32.mrf.mxu0  ;;  %v1755_v60 = vadd.f32 %v1754_v45, %v714_v28  ;;  %v3200_v0 = vpop.f32.mrf.mxu1  ;;  %3391 = vmatmul.mubr.bf16.gmra.mxu1 %v2885_v47  ;;  %v2704_v10 = vmax.f32 %v2448_v52, 0.0  ;;  %v4105_v45 = vld [vmem:[%s4181_s11 + $0x1f8] sm:$0xff]  }
 0x1fc   : > { %v2450_v58 = vadd.f32 %v4363_v9, %v2182_v49  ;;  %v1757_v62 = vadd.f32 %v1756_v54, %v715_v35  ;;  %v3201_v1 = vadd.f32 %v4748_v25, %v3200_v0  ;;  %v2705_v5 = vmax.f32 %v2449_v48, 0.0 }
 0x1fd   : > { %v1758_v3 = vpop.f32.mrf.mxu0  ;;  %v3202_v7 = vpop.f32.mrf.mxu1  ;;  %v2183_v18 = vmul.f32 %v4347_v53, %v1755_v60  ;;  %v721_v35 = vunpack.c.h.bf16 %v515_v16  ;;  %v722_v49 = vunpack.c.l.bf16 %v516_v36 }
 0x1fe   : > { %v1759_v6 = vadd.f32 %v1758_v3, %v716_v51  ;;  %v2184_v11 = vmul.f32 %v4356_v61, %v1757_v62  ;;  %3645 = vst [vmem:[%s4759_s16 + $0xb0] sm:$0xff] %v3201_v1  ;;  %v2706_v13 = vmax.f32 %v2450_v58, 0.0  ;;  %v2887_v26 = vpack.c.bf16 %v2705_v5, %v2703_v17 }
 0x1ff   : > { %v1760_v12 = vpop.f32.mrf.mxu0  ;;  %v3203_v21 = vpop.f32.mrf.mxu1  ;;  %v2451_v37 = vadd.f32 %v4354_v59, %v2183_v18 }
 0x200   : > { %v2185_v19 = vmul.f32 %v4347_v53, %v1759_v6  ;;  %v1761_v20 = vadd.f32 %v1760_v12, %v717_v55  ;;  %v3204_v22 = vadd.f32 %v4748_v25, %v3203_v21  ;;  %v2888_v24 = vpack.c.bf16 %v2706_v13, %v2704_v10 }
 0x201   : > { %v1764_v23 = vpop.f32.mrf.mxu0  ;;  %3960 = vmatmul.mubr.msk.bf16.gmra.mxu0 %vm1150_vm1, %v4104_v4  ;;  %v3205_v30 = vpop.f32.mrf.mxu1  ;;  %v2452_v33 = vadd.f32 %v4363_v9, %v2184_v11  ;;  %v723_v55 = vunpack.c.h.bf16 %v516_v36  ;;  %v2707_v57 = vmax.f32 %v2451_v37, 0.0  ;;  %v724_v10 = vunpack.c.l.bf16 %v517_v56 }
 0x202   : > { %v2453_v27 = vadd.f32 %v4354_v59, %v2185_v19  ;;  %v2186_v28 = vmul.f32 %v4356_v61, %v1761_v20  ;;  %2012 = vmatprep.mubr.bf16.mxu0 %v4117_v2  ;;  %3646 = vst [vmem:[%s4759_s16 + $0xb8] sm:$0xff] %v3204_v22  ;;  %3398 = vmatprep.mubr.bf16.mxu1 %v2888_v24  ;;  %v725_v13 = vunpack.c.h.bf16 %v517_v56  ;;  %v518_v20 = vld [vmem:[%s4337_s28 + $0x280] sm:$0xff] }
 0x203   : > { %v1766_v34 = vpop.f32.mrf.mxu0  ;;  %v1765_v39 = vadd.f32 %v1764_v23, %v718_v8  ;;  %v3208_v41 = vpop.f32.mrf.mxu1  ;;  %3399 = vmatmul.mubr.bf16.gmra.mxu1 %v2887_v26  ;;  %v2708_v50 = vmax.f32 %v2452_v33, 0.0  ;;  %v726_v30 = vunpack.c.l.bf16 %v518_v20  ;;  %v727_v33 = vunpack.c.h.bf16 %v518_v20 }
 0x204   : > { %v2454_v38 = vadd.f32 %v4363_v9, %v2186_v28  ;;  %v1767_v40 = vadd.f32 %v1766_v34, %v719_v15  ;;  %v3209_v42 = vadd.f32 %v4748_v25, %v3208_v41  ;;  %v2709_v46 = vmax.f32 %v2453_v27, 0.0 }
 0x205   : > { %v1768_v2 = vpop.f32.mrf.mxu0  ;;  %v3210_v48 = vpop.f32.mrf.mxu1  ;;  %v2187_v58 = vmul.f32 %v4347_v53, %v1765_v39  ;;  %v519_v39 = vld [vmem:[%s4337_s28 + $0x288] sm:$0xff] }
 0x206   : > { %v1769_v47 = vadd.f32 %v1768_v2, %v720_v32  ;;  %v2188_v51 = vmul.f32 %v4356_v61, %v1767_v40  ;;  %3647 = vst [vmem:[%s4759_s16 + $0xc0] sm:$0xff] %v3209_v42  ;;  %v2710_v54 = vmax.f32 %v2454_v38, 0.0  ;;  %v2889_v5 = vpack.c.bf16 %v2709_v46, %v2707_v57  ;;  %v520_v57 = vld [vmem:[%s4337_s28 + $0x290] sm:$0xff] }
 0x207   : > { %v1770_v52 = vpop.f32.mrf.mxu0  ;;  %v3211_v0 = vpop.f32.mrf.mxu1  ;;  %v2455_v15 = vadd.f32 %v4354_v59, %v2187_v58 }
 0x208   : > { %v2189_v60 = vmul.f32 %v4347_v53, %v1769_v47  ;;  %v1771_v62 = vadd.f32 %v1770_v52, %v721_v35  ;;  %v3212_v1 = vadd.f32 %v4748_v25, %v3211_v0  ;;  %v2890_v4 = vpack.c.bf16 %v2710_v54, %v2708_v50 }
 0x209   : > { %v1774_v3 = vpop.f32.mrf.mxu0  ;;  %3961 = vmatmul.mubr.msk.bf16.gmra.mxu0 %vm1150_vm1, %v4105_v45  ;;  %v3213_v8 = vpop.f32.mrf.mxu1  ;;  %v2456_v11 = vadd.f32 %v4363_v9, %v2188_v51  ;;  %v2711_v34 = vmax.f32 %v2455_v15, 0.0  ;;  %v728_v50 = vunpack.c.l.bf16 %v519_v39  ;;  %v729_v51 = vunpack.c.h.bf16 %v519_v39 }
 0x20a   : > { %v2457_v6 = vadd.f32 %v4354_v59, %v2189_v60  ;;  %v2190_v7 = vmul.f32 %v4356_v61, %v1771_v62  ;;  %3110 = vmatprep.mubr.bf16.mxu0 %v4383_v44  ;;  %3648 = vst [vmem:[%s4759_s16 + $0xc8] sm:$0xff] %v3212_v1  ;;  %3406 = vmatprep.mubr.bf16.mxu1 %v2890_v4  ;;  %v521_v8 = vld [vmem:[%s4337_s28 + $0x298] sm:$0xff] }
 0x20b   : > { %v1776_v12 = vpop.f32.mrf.mxu0  ;;  %v1775_v17 = vadd.f32 %v1774_v3, %v722_v49  ;;  %v3216_v19 = vpop.f32.mrf.mxu1  ;;  %3407 = vmatmul.mubr.bf16.gmra.mxu1 %v2889_v5  ;;  %v2712_v27 = vmax.f32 %v2456_v11, 0.0 }
 0x20c   : > { %v2458_v16 = vadd.f32 %v4363_v9, %v2190_v7  ;;  %v1777_v18 = vadd.f32 %v1776_v12, %v723_v55  ;;  %v3217_v21 = vadd.f32 %v4748_v25, %v3216_v19  ;;  %v2713_v22 = vmax.f32 %v2457_v6, 0.0 }
 0x20d   : > { %v1778_v44 = vpop.f32.mrf.mxu0  ;;  %v3218_v26 = vpop.f32.mrf.mxu1  ;;  %v2191_v35 = vmul.f32 %v4347_v53, %v1775_v17  ;;  %v730_v6 = vunpack.c.l.bf16 %v520_v57  ;;  %v731_v7 = vunpack.c.h.bf16 %v520_v57 }
 0x20e   : > { %v2192_v23 = vmul.f32 %v4356_v61, %v1777_v18  ;;  %v1779_v24 = vadd.f32 %v1778_v44, %v724_v10  ;;  %3649 = vst [vmem:[%s4759_s16 + $0xd0] sm:$0xff] %v3217_v21  ;;  %v2714_v32 = vmax.f32 %v2458_v16, 0.0  ;;  %v2891_v2 = vpack.c.bf16 %v2713_v22, %v2711_v34 }
 0x20f   : > { %v1780_v28 = vpop.f32.mrf.mxu0  ;;  %v3219_v38 = vpop.f32.mrf.mxu1  ;;  %v732_v44 = vunpack.c.l.bf16 %v521_v8  ;;  %v733_v26 = vunpack.c.h.bf16 %v521_v8 }
 0x210   : > { %v2193_v36 = vmul.f32 %v4347_v53, %v1779_v24  ;;  %v1781_v37 = vadd.f32 %v1780_v28, %v725_v13  ;;  %v3220_v40 = vadd.f32 %v4748_v25, %v3219_v38  ;;  %v2892_v42 = vpack.c.bf16 %v2714_v32, %v2712_v27 }
 0x211   : > { %v1784_v41 = vpop.f32.mrf.mxu0  ;;  %3111 = vmatmul.mubr.bf16.vlgmr.msra.gmra.mxu0 %v4376_v31  ;;  %v2460_v45 = vadd.f32 %v4363_v9, %v2192_v23  ;;  %v3221_v48 = vpop.f32.mrf.mxu1  ;;  %v2459_v31 = vadd.f32 %v4354_v59, %v2191_v35 }
 0x212   : > { %v2461_v46 = vadd.f32 %v4354_v59, %v2193_v36  ;;  %v2194_v47 = vmul.f32 %v4356_v61, %v1781_v37  ;;  %3118 = vmatprep.mubr.bf16.mxu0 %v4400_v14  ;;  %3650 = vst [vmem:[%s4759_s16 + $0xd8] sm:$0xff] %v3220_v40  ;;  %3414 = vmatprep.mubr.bf16.mxu1 %v2892_v42 }
 0x213   : > { %v1786_v49 = vpop.f32.mrf.mxu0  ;;  %v1785_v54 = vadd.f32 %v1784_v41, %v726_v30  ;;  %v3224_v56 = vpop.f32.mrf.mxu1  ;;  %3415 = vmatmul.mubr.bf16.gmra.mxu1 %v2891_v2  ;;  %v2716_v14 = vmax.f32 %v2460_v45, 0.0  ;;  %v2715_v10 = vmax.f32 %v2459_v31, 0.0 }
 0x214   : > { %v2462_v52 = vadd.f32 %v4363_v9, %v2194_v47  ;;  %v1787_v55 = vadd.f32 %v1786_v49, %v727_v33  ;;  %v3225_v58 = vadd.f32 %v4748_v25, %v3224_v56  ;;  %v2717_v62 = vmax.f32 %v2461_v46, 0.0  ;;  %v522_v33 = vld [vmem:[%s4337_s28 + $0x2a0] sm:$0xff]  ;;  %v523_v49 = vld [vmem:[%s4337_s28 + $0x2a8] sm:$0xff] }
 0x215   : > { %v1788_v60 = vpop.f32.mrf.mxu0  ;;  %v3226_v1 = vpop.f32.mrf.mxu1  ;;  %v2195_v11 = vmul.f32 %v4347_v53, %v1785_v54  ;;  %v734_v42 = vunpack.c.l.bf16 %v522_v33  ;;  %v735_v2 = vunpack.c.h.bf16 %v522_v33 }
 0x216   : > { %v2718_v0 = vmax.f32 %v2462_v52, 0.0  ;;  %v2196_v3 = vmul.f32 %v4356_v61, %v1787_v55  ;;  %3651 = vst [vmem:[%s4759_s16 + $0xe0] sm:$0xff] %v3225_v58  ;;  %v1789_v4 = vadd.f32 %v1788_v60, %v728_v50  ;;  %v2893_v19 = vpack.c.bf16 %v2717_v62, %v2715_v10  ;;  %v4973_v50 = vld [vmem:[%s5408_s6] ss:$0 sm:$0xff] }
 0x217   : > { %v1790_v5 = vpop.f32.mrf.mxu0  ;;  %v3227_v13 = vpop.f32.mrf.mxu1  ;;  %v2463_v27 = vadd.f32 %v4354_v59, %v2195_v11  ;;  %v737_v62 = vunpack.c.h.bf16 %v523_v49 }
 0x218   : > { %v1791_v12 = vadd.f32 %v1790_v5, %v729_v51  ;;  %v2894_v15 = vpack.c.bf16 %v2718_v0, %v2716_v14  ;;  %v2197_v16 = vmul.f32 %v4347_v53, %v1789_v4  ;;  %v3228_v17 = vadd.f32 %v4748_v25, %v3227_v13  ;;  %v524_v5 = vld [vmem:[%s4337_s28 + $0x2b0] sm:$0xff] }
 0x219   : > { %v1794_v18 = vpop.f32.mrf.mxu0  ;;  %3119 = vmatmul.mubr.bf16.gmra.mxu0 %v4393_v63  ;;  %v3229_v21 = vpop.f32.mrf.mxu1  ;;  %v2464_v22 = vadd.f32 %v4363_v9, %v2196_v3  ;;  %v2719_v45 = vmax.f32 %v2463_v27, 0.0  ;;  %v736_v14 = vunpack.c.l.bf16 %v523_v49 }
 0x21a   : > { %v2198_v20 = vmul.f32 %v4356_v61, %v1791_v12  ;;  %3126 = vmatprep.mubr.bf16.mxu0 %v4416_v43  ;;  %3422 = vmatprep.mubr.bf16.mxu1 %v2894_v15  ;;  %v2465_v23 = vadd.f32 %v4354_v59, %v2197_v16  ;;  %3652 = vst [vmem:[%s4759_s16 + $0xe8] sm:$0xff] %v3228_v17  ;;  %v738_v17 = vunpack.c.l.bf16 %v524_v5 }
 0x21b   : > { %v1796_v24 = vpop.f32.mrf.mxu0  ;;  %v1795_v28 = vadd.f32 %v1794_v18, %v730_v6  ;;  %v3232_v32 = vpop.f32.mrf.mxu1  ;;  %3423 = vmatmul.mubr.bf16.gmra.mxu1 %v2893_v19  ;;  %v2720_v40 = vmax.f32 %v2464_v22, 0.0  ;;  %v739_v18 = vunpack.c.h.bf16 %v524_v5  ;;  %v525_v19 = vld [vmem:[%s4337_s28 + $0x2b8] sm:$0xff] }
 0x21c   : > { %v2466_v63 = vadd.f32 %v4363_v9, %v2198_v20  ;;  %v1797_v30 = vadd.f32 %v1796_v24, %v731_v7  ;;  %v3233_v43 = vadd.f32 %v4748_v25, %v3232_v32  ;;  %v2721_v35 = vmax.f32 %v2465_v23, 0.0 }
 0x21d   : > { %v1798_v34 = vpop.f32.mrf.mxu0  ;;  %v3234_v39 = vpop.f32.mrf.mxu1  ;;  %v2199_v46 = vmul.f32 %v4347_v53, %v1795_v28  ;;  %v740_v32 = vunpack.c.l.bf16 %v525_v19 }
 0x21e   : > { %v2722_v36 = vmax.f32 %v2466_v63, 0.0  ;;  %v2200_v37 = vmul.f32 %v4356_v61, %v1797_v30  ;;  %v1799_v38 = vadd.f32 %v1798_v34, %v732_v44  ;;  %3653 = vst [vmem:[%s4759_s16 + $0xf0] sm:$0xff] %v3233_v43  ;;  %v2895_v54 = vpack.c.bf16 %v2721_v35, %v2719_v45 }
 0x21f   : > { %v1800_v41 = vpop.f32.mrf.mxu0  ;;  %v3235_v48 = vpop.f32.mrf.mxu1  ;;  %v2467_v0 = vadd.f32 %v4354_v59, %v2199_v46  ;;  %v741_v35 = vunpack.c.h.bf16 %v525_v19 }
 0x220   : > { %v2201_v47 = vmul.f32 %v4347_v53, %v1799_v38  ;;  %v1801_v25 = vadd.f32 %v1800_v41, %v733_v26  ;;  %v3236_v51 = vadd.f32 %v4973_v50, %v3235_v48  ;;  %v2896_v52 = vpack.c.bf16 %v2722_v36, %v2720_v40  ;;  %v526_v41 = vld [vmem:[%s4337_s28 + $0x2c0] sm:$0xff] }
 0x221   : > { %v1804_v31 = vpop.f32.mrf.mxu0  ;;  %3127 = vmatmul.mubr.bf16.gmra.mxu0 %v4409_v29  ;;  %v2468_v55 = vadd.f32 %v4363_v9, %v2200_v37  ;;  %v3237_v58 = vpop.f32.mrf.mxu1  ;;  %v2723_v20 = vmax.f32 %v2467_v0, 0.0 }
 0x222   : > { %v2469_v56 = vadd.f32 %v4354_v59, %v2201_v47  ;;  %v2202_v57 = vmul.f32 %v4356_v61, %v1801_v25  ;;  %3654 = vst [vmem:[%s4759_s16 + $0xf8] sm:$0xff] %v3236_v51  ;;  %3430 = vmatprep.mubr.bf16.mxu1 %v2896_v52  ;;  %v1805_v1 = vadd.f32 %v1804_v31, %v734_v42  ;;  %v742_v31 = vunpack.c.l.bf16 %v526_v41 }
 0x223   : > { %v1806_v60 = vpop.f32.mrf.mxu0  ;;  %v3240_v4 = vpop.f32.mrf.mxu1  ;;  %3431 = vmatmul.mubr.bf16.gmra.mxu1 %v2895_v54  ;;  %v2724_v8 = vmax.f32 %v2468_v55, 0.0  ;;  %v743_v52 = vunpack.c.h.bf16 %v526_v41 }
 0x224   : > { %v2470_v29 = vadd.f32 %v4363_v9, %v2202_v57  ;;  %v1807_v3 = vadd.f32 %v1806_v60, %v735_v2  ;;  %v3241_v6 = vadd.f32 %v4973_v50, %v3240_v4  ;;  %v2725_v10 = vmax.f32 %v2469_v56, 0.0  ;;  %v527_v60 = vld [vmem:[%s4337_s28 + $0x2c8] sm:$0xff] }
 0x225   : > { %v1808_v7 = vpop.f32.mrf.mxu0  ;;  %v3242_v12 = vpop.f32.mrf.mxu1  ;;  %v2203_v21 = vmul.f32 %v4347_v53, %v1805_v1 }
 0x226   : > { %v2726_v11 = vmax.f32 %v2470_v29, 0.0  ;;  %v2204_v13 = vmul.f32 %v4356_v61, %v1807_v3  ;;  %3655 = vst [vmem:[%s4759_s16 + $0x100] sm:$0xff] %v3241_v6  ;;  %v1809_v15 = vadd.f32 %v1808_v7, %v736_v14  ;;  %v2897_v63 = vpack.c.bf16 %v2725_v10, %v2723_v20 }
 0x227   : > { %v1810_v16 = vpop.f32.mrf.mxu0  ;;  %v3243_v22 = vpop.f32.mrf.mxu1  ;;  %v2471_v36 = vadd.f32 %v4354_v59, %v2203_v21  ;;  %v744_v7 = vunpack.c.l.bf16 %v527_v60 }
 0x228   : > { %v1811_v44 = vadd.f32 %v1810_v16, %v737_v62  ;;  %v2898_v23 = vpack.c.bf16 %v2726_v11, %v2724_v8  ;;  %v2205_v24 = vmul.f32 %v4347_v53, %v1809_v15  ;;  %v3244_v26 = vadd.f32 %v4973_v50, %v3243_v22  ;;  %v528_v16 = vld [vmem:[%s4337_s28 + $0x2d0] sm:$0xff] }
 0x229   : > { %v1814_v27 = vpop.f32.mrf.mxu0  ;;  %v3245_v30 = vpop.f32.mrf.mxu1  ;;  %v2472_v33 = vadd.f32 %v4363_v9, %v2204_v13  ;;  %v2727_v54 = vmax.f32 %v2471_v36, 0.0  ;;  %v745_v8 = vunpack.c.h.bf16 %v527_v60 }
 0x22a   : > { %v2206_v28 = vmul.f32 %v4356_v61, %v1811_v44  ;;  %3438 = vmatprep.mubr.bf16.mxu1 %v2898_v23  ;;  %v2473_v43 = vadd.f32 %v4354_v59, %v2205_v24  ;;  %3656 = vst [vmem:[%s4759_s16 + $0x108] sm:$0xff] %v3244_v26  ;;  %v1815_v38 = vadd.f32 %v1814_v27, %v738_v17  ;;  %v746_v26 = vunpack.c.l.bf16 %v528_v16 }
 0x22b   : > { %v1816_v34 = vpop.f32.mrf.mxu0  ;;  %v3248_v40 = vpop.f32.mrf.mxu1  ;;  %3439 = vmatmul.mubr.bf16.gmra.mxu1 %v2897_v63  ;;  %v2728_v49 = vmax.f32 %v2472_v33, 0.0  ;;  %v747_v27 = vunpack.c.h.bf16 %v528_v16  ;;  %v529_v63 = vld [vmem:[%s4337_s28 + $0x2d8] sm:$0xff] }
 0x22c   : > { %v2474_v37 = vadd.f32 %v4363_v9, %v2206_v28  ;;  %v1817_v39 = vadd.f32 %v1816_v34, %v739_v18  ;;  %v3249_v42 = vadd.f32 %v4973_v50, %v3248_v40  ;;  %v2729_v45 = vmax.f32 %v2473_v43, 0.0 }
 0x22d   : > { %v1818_v2 = vpop.f32.mrf.mxu0  ;;  %v3250_v48 = vpop.f32.mrf.mxu1  ;;  %v2207_v55 = vmul.f32 %v4347_v53, %v1815_v38  ;;  %v748_v40 = vunpack.c.l.bf16 %v529_v63 }
 0x22e   : > { %v2730_v46 = vmax.f32 %v2474_v37, 0.0  ;;  %v2208_v47 = vmul.f32 %v4356_v61, %v1817_v39  ;;  %v1819_v25 = vadd.f32 %v1818_v2, %v740_v32  ;;  %3657 = vst [vmem:[%s4759_s16 + $0x110] sm:$0xff] %v3249_v42  ;;  %v2899_v29 = vpack.c.bf16 %v2729_v45, %v2727_v54 }
 0x22f   : > { %v1820_v51 = vpop.f32.mrf.mxu0  ;;  %v3251_v58 = vpop.f32.mrf.mxu1  ;;  %v2475_v10 = vadd.f32 %v4354_v59, %v2207_v55  ;;  %v749_v45 = vunpack.c.h.bf16 %v529_v63 }
 0x230   : > { %v2209_v56 = vmul.f32 %v4347_v53, %v1819_v25  ;;  %v1821_v57 = vadd.f32 %v1820_v51, %v741_v35  ;;  %v3252_v14 = vadd.f32 %v4973_v50, %v3251_v58  ;;  %v2900_v0 = vpack.c.bf16 %v2730_v46, %v2728_v49  ;;  %v530_v51 = vld [vmem:[%s4337_s28 + $0x2e0] sm:$0xff] }
 0x231   : > { %v1824_v62 = vpop.f32.mrf.mxu0  ;;  %v2476_v1 = vadd.f32 %v4363_v9, %v2208_v47  ;;  %v3253_v5 = vpop.f32.mrf.mxu1  ;;  %v2731_v28 = vmax.f32 %v2475_v10, 0.0 }
 0x232   : > { %v2477_v3 = vadd.f32 %v4354_v59, %v2209_v56  ;;  %v2210_v4 = vmul.f32 %v4356_v61, %v1821_v57  ;;  %3658 = vst [vmem:[%s4759_s16 + $0x118] sm:$0xff] %v3252_v14  ;;  %3446 = vmatprep.mubr.bf16.mxu1 %v2900_v0  ;;  %v1825_v12 = vadd.f32 %v1824_v62, %v742_v31  ;;  %v750_v62 = vunpack.c.l.bf16 %v530_v51 }
 0x233   : > { %v1826_v6 = vpop.f32.mrf.mxu0  ;;  %v3256_v15 = vpop.f32.mrf.mxu1  ;;  %3447 = vmatmul.mubr.bf16.gmra.mxu1 %v2899_v29  ;;  %v2732_v19 = vmax.f32 %v2476_v1, 0.0  ;;  %v751_v0 = vunpack.c.h.bf16 %v530_v51 }
 0x234   : > { %v2478_v11 = vadd.f32 %v4363_v9, %v2210_v4  ;;  %v1827_v13 = vadd.f32 %v1826_v6, %v743_v52  ;;  %v3257_v17 = vadd.f32 %v4973_v50, %v3256_v15  ;;  %v2733_v20 = vmax.f32 %v2477_v3, 0.0  ;;  %v531_v6 = vld [vmem:[%s4337_s28 + $0x2e8] sm:$0xff] }
 0x235   : > { %v1828_v18 = vpop.f32.mrf.mxu0  ;;  %v3258_v44 = vpop.f32.mrf.mxu1  ;;  %v2211_v30 = vmul.f32 %v4347_v53, %v1825_v12 }
 0x236   : > { %v2734_v21 = vmax.f32 %v2478_v11, 0.0  ;;  %v2212_v22 = vmul.f32 %v4356_v61, %v1827_v13  ;;  %3659 = vst [vmem:[%s4759_s16 + $0x120] sm:$0xff] %v3257_v17  ;;  %v1829_v23 = vadd.f32 %v1828_v18, %v744_v7  ;;  %v2901_v37 = vpack.c.bf16 %v2733_v20, %v2731_v28 }
 0x237   : > { %v1830_v24 = vpop.f32.mrf.mxu0  ;;  %v3259_v33 = vpop.f32.mrf.mxu1  ;;  %v2479_v46 = vadd.f32 %v4354_v59, %v2211_v30  ;;  %v752_v18 = vunpack.c.l.bf16 %v531_v6 }
 0x238   : > { %v1831_v32 = vadd.f32 %v1830_v24, %v745_v8  ;;  %v2902_v43 = vpack.c.bf16 %v2734_v21, %v2732_v19  ;;  %v2213_v34 = vmul.f32 %v4347_v53, %v1829_v23  ;;  %v3260_v35 = vadd.f32 %v4973_v50, %v3259_v33  ;;  %v532_v24 = vld [vmem:[%s4337_s28 + $0x2f0] sm:$0xff] }
 0x239   : > { %v1834_v36 = vpop.f32.mrf.mxu0  ;;  %v3261_v39 = vpop.f32.mrf.mxu1  ;;  %v2480_v41 = vadd.f32 %v4363_v9, %v2212_v22  ;;  %v2735_v29 = vmax.f32 %v2479_v46, 0.0  ;;  %v753_v19 = vunpack.c.h.bf16 %v531_v6 }
 0x23a   : > { %v2214_v38 = vmul.f32 %v4356_v61, %v1831_v32  ;;  %3454 = vmatprep.mubr.bf16.mxu1 %v2902_v43  ;;  %v2481_v42 = vadd.f32 %v4354_v59, %v2213_v34  ;;  %3660 = vst [vmem:[%s4759_s16 + $0x128] sm:$0xff] %v3260_v35  ;;  %v1835_v25 = vadd.f32 %v1834_v36, %v746_v26  ;;  %v754_v35 = vunpack.c.l.bf16 %v532_v24 }
 0x23b   : > { %v1836_v2 = vpop.f32.mrf.mxu0  ;;  %v3264_v49 = vpop.f32.mrf.mxu1  ;;  %3455 = vmatmul.mubr.bf16.gmra.mxu1 %v2901_v37  ;;  %v2736_v60 = vmax.f32 %v2480_v41, 0.0  ;;  %v755_v36 = vunpack.c.h.bf16 %v532_v24  ;;  %v533_v37 = vld [vmem:[%s4337_s28 + $0x2f8] sm:$0xff] }
 0x23c   : > { %v2482_v47 = vadd.f32 %v4363_v9, %v2214_v38  ;;  %v1837_v48 = vadd.f32 %v1836_v2, %v747_v27  ;;  %v3265_v31 = vadd.f32 %v4973_v50, %v3264_v49  ;;  %v2737_v54 = vmax.f32 %v2481_v42, 0.0 }
 0x23d   : > { %v1838_v52 = vpop.f32.mrf.mxu0  ;;  %v3266_v58 = vpop.f32.mrf.mxu1  ;;  %v2215_v1 = vmul.f32 %v4347_v53, %v1835_v25  ;;  %v756_v49 = vunpack.c.l.bf16 %v533_v37 }
 0x23e   : > { %v2738_v55 = vmax.f32 %v2482_v47, 0.0  ;;  %v2216_v56 = vmul.f32 %v4356_v61, %v1837_v48  ;;  %v1839_v57 = vadd.f32 %v1838_v52, %v748_v40  ;;  %3661 = vst [vmem:[%s4759_s16 + $0x130] sm:$0xff] %v3265_v31  ;;  %v2903_v11 = vpack.c.bf16 %v2737_v54, %v2735_v29 }
 0x23f   : > { %v1840_v14 = vpop.f32.mrf.mxu0  ;;  %v3267_v5 = vpop.f32.mrf.mxu1  ;;  %v2483_v20 = vadd.f32 %v4354_v59, %v2215_v1  ;;  %v757_v54 = vunpack.c.h.bf16 %v533_v37 }
 0x240   : > { %v2217_v3 = vmul.f32 %v4347_v53, %v1839_v57  ;;  %v1841_v4 = vadd.f32 %v1840_v14, %v749_v45  ;;  %v3268_v7 = vadd.f32 %v4973_v50, %v3267_v5  ;;  %v2904_v10 = vpack.c.bf16 %v2738_v55, %v2736_v60  ;;  %v534_v14 = vld [vmem:[%s4337_s28 + $0x300] sm:$0xff] }
 0x241   : > { %v1844_v8 = vpop.f32.mrf.mxu0  ;;  %v2484_v12 = vadd.f32 %v4363_v9, %v2216_v56  ;;  %v3269_v16 = vpop.f32.mrf.mxu1  ;;  %v2739_v38 = vmax.f32 %v2483_v20, 0.0 }
 0x242   : > { %v2485_v13 = vadd.f32 %v4354_v59, %v2217_v3  ;;  %v2218_v15 = vmul.f32 %v4356_v61, %v1841_v4  ;;  %3662 = vst [vmem:[%s4759_s16 + $0x138] sm:$0xff] %v3268_v7  ;;  %3462 = vmatprep.mubr.bf16.mxu1 %v2904_v10  ;;  %v1845_v44 = vadd.f32 %v1844_v8, %v750_v62  ;;  %v758_v8 = vunpack.c.l.bf16 %v534_v14 }
 0x243   : > { %v1846_v17 = vpop.f32.mrf.mxu0  ;;  %v3272_v23 = vpop.f32.mrf.mxu1  ;;  %3463 = vmatmul.mubr.bf16.gmra.mxu1 %v2903_v11  ;;  %v2740_v63 = vmax.f32 %v2484_v12, 0.0  ;;  %v759_v10 = vunpack.c.h.bf16 %v534_v14 }
 0x244   : > { %v2486_v21 = vadd.f32 %v4363_v9, %v2218_v15  ;;  %v1847_v22 = vadd.f32 %v1846_v17, %v751_v0  ;;  %v3273_v26 = vadd.f32 %v4973_v50, %v3272_v23  ;;  %v2741_v28 = vmax.f32 %v2485_v13, 0.0  ;;  %v535_v17 = vld [vmem:[%s4337_s28 + $0x308] sm:$0xff] }
 0x245   : > { %v1848_v27 = vpop.f32.mrf.mxu0  ;;  %v3274_v32 = vpop.f32.mrf.mxu1  ;;  %v2219_v39 = vmul.f32 %v4347_v53, %v1845_v44 }
 0x246   : > { %v2742_v30 = vmax.f32 %v2486_v21, 0.0  ;;  %v2220_v33 = vmul.f32 %v4356_v61, %v1847_v22  ;;  %3663 = vst [vmem:[%s4759_s16 + $0x140] sm:$0xff] %v3273_v26  ;;  %v1849_v43 = vadd.f32 %v1848_v27, %v752_v18  ;;  %v2905_v47 = vpack.c.bf16 %v2741_v28, %v2739_v38 }
 0x247   : > { %v1850_v34 = vpop.f32.mrf.mxu0  ;;  %v3275_v41 = vpop.f32.mrf.mxu1  ;;  %v2487_v55 = vadd.f32 %v4354_v59, %v2219_v39  ;;  %v760_v27 = vunpack.c.l.bf16 %v535_v17 }
 0x248   : > { %v1851_v40 = vadd.f32 %v1850_v34, %v753_v19  ;;  %v2906_v42 = vpack.c.bf16 %v2742_v30, %v2740_v63  ;;  %v2221_v2 = vmul.f32 %v4347_v53, %v1849_v43  ;;  %v3276_v45 = vadd.f32 %v4973_v50, %v3275_v41  ;;  %v536_v34 = vld [vmem:[%s4337_s28 + $0x310] sm:$0xff] }
 0x249   : > { %v1854_v46 = vpop.f32.mrf.mxu0  ;;  %v3277_v48 = vpop.f32.mrf.mxu1  ;;  %v2488_v51 = vadd.f32 %v4363_v9, %v2220_v33  ;;  %v2743_v11 = vmax.f32 %v2487_v55, 0.0  ;;  %v761_v63 = vunpack.c.h.bf16 %v535_v17 }
 0x24a   : > { %v2222_v25 = vmul.f32 %v4356_v61, %v1851_v40  ;;  %3470 = vmatprep.mubr.bf16.mxu1 %v2906_v42  ;;  %v2489_v31 = vadd.f32 %v4354_v59, %v2221_v2  ;;  %3664 = vst [vmem:[%s4759_s16 + $0x148] sm:$0xff] %v3276_v45  ;;  %v1855_v57 = vadd.f32 %v1854_v46, %v754_v35  ;;  %v762_v45 = vunpack.c.l.bf16 %v536_v34 }
 0x24b   : > { %v1856_v52 = vpop.f32.mrf.mxu0  ;;  %v3280_v60 = vpop.f32.mrf.mxu1  ;;  %3471 = vmatmul.mubr.bf16.gmra.mxu1 %v2905_v47  ;;  %v2744_v6 = vmax.f32 %v2488_v51, 0.0  ;;  %v763_v46 = vunpack.c.h.bf16 %v536_v34  ;;  %v537_v47 = vld [vmem:[%s4337_s28 + $0x318] sm:$0xff] }
 0x24c   : > { %v2490_v56 = vadd.f32 %v4363_v9, %v2222_v25  ;;  %v1857_v58 = vadd.f32 %v1856_v52, %v755_v36  ;;  %v3281_v62 = vadd.f32 %v4973_v50, %v3280_v60  ;;  %v2745_v29 = vmax.f32 %v2489_v31, 0.0 }
 0x24d   : > { %v1858_v0 = vpop.f32.mrf.mxu0  ;;  %v3282_v5 = vpop.f32.mrf.mxu1  ;;  %v2223_v12 = vmul.f32 %v4347_v53, %v1855_v57  ;;  %v764_v60 = vunpack.c.l.bf16 %v537_v47 }
 0x24e   : > { %v2746_v1 = vmax.f32 %v2490_v56, 0.0  ;;  %v2224_v3 = vmul.f32 %v4356_v61, %v1857_v58  ;;  %v1859_v4 = vadd.f32 %v1858_v0, %v756_v49  ;;  %3665 = vst [vmem:[%s4759_s16 + $0x150] sm:$0xff] %v3281_v62  ;;  %v2907_v21 = vpack.c.bf16 %v2745_v29, %v2743_v11 }
 0x24f   : > { %v1860_v7 = vpop.f32.mrf.mxu0  ;;  %v3283_v16 = vpop.f32.mrf.mxu1  ;;  %v2491_v28 = vadd.f32 %v4354_v59, %v2223_v12  ;;  %v765_v29 = vunpack.c.h.bf16 %v537_v47 }
 0x250   : > { %v2225_v13 = vmul.f32 %v4347_v53, %v1859_v4  ;;  %v1861_v15 = vadd.f32 %v1860_v7, %v757_v54  ;;  %v3284_v18 = vadd.f32 %v4973_v50, %v3283_v16  ;;  %v2908_v20 = vpack.c.bf16 %v2746_v1, %v2744_v6  ;;  %v538_v7 = vld [vmem:[%s4337_s28 + $0x320] sm:$0xff] }
 0x251   : > { %v1864_v19 = vpop.f32.mrf.mxu0  ;;  %v2492_v44 = vadd.f32 %v4363_v9, %v2224_v3  ;;  %v3285_v24 = vpop.f32.mrf.mxu1  ;;  %v2747_v25 = vmax.f32 %v2491_v28, 0.0 }
 0x252   : > { %v2493_v22 = vadd.f32 %v4354_v59, %v2225_v13  ;;  %v2226_v23 = vmul.f32 %v4356_v61, %v1861_v15  ;;  %3666 = vst [vmem:[%s4759_s16 + $0x158] sm:$0xff] %v3284_v18  ;;  %3478 = vmatprep.mubr.bf16.mxu1 %v2908_v20  ;;  %v1865_v32 = vadd.f32 %v1864_v19, %v758_v8  ;;  %v766_v19 = vunpack.c.l.bf16 %v538_v7 }
 0x253   : > { %v1866_v26 = vpop.f32.mrf.mxu0  ;;  %v3288_v43 = vpop.f32.mrf.mxu1  ;;  %3479 = vmatmul.mubr.bf16.gmra.mxu1 %v2907_v21  ;;  %v2748_v37 = vmax.f32 %v2492_v44, 0.0  ;;  %v767_v20 = vunpack.c.h.bf16 %v538_v7 }
 0x254   : > { %v2494_v30 = vadd.f32 %v4363_v9, %v2226_v23  ;;  %v1867_v33 = vadd.f32 %v1866_v26, %v759_v10  ;;  %v3289_v35 = vadd.f32 %v4973_v50, %v3288_v43  ;;  %v2749_v38 = vmax.f32 %v2493_v22, 0.0  ;;  %v539_v26 = vld [vmem:[%s4337_s28 + $0x328] sm:$0xff] }
 0x255   : > { %v1868_v36 = vpop.f32.mrf.mxu0  ;;  %v3290_v40 = vpop.f32.mrf.mxu1  ;;  %v2227_v48 = vmul.f32 %v4347_v53, %v1865_v32 }
 0x256   : > { %v2750_v39 = vmax.f32 %v2494_v30, 0.0  ;;  %v2228_v41 = vmul.f32 %v4356_v61, %v1867_v33  ;;  %3667 = vst [vmem:[%s4759_s16 + $0x160] sm:$0xff] %v3289_v35  ;;  %v1869_v42 = vadd.f32 %v1868_v36, %v760_v27  ;;  %v2909_v56 = vpack.c.bf16 %v2749_v38, %v2747_v25 }
 0x257   : > { %v1870_v2 = vpop.f32.mrf.mxu0  ;;  %v3291_v51 = vpop.f32.mrf.mxu1  ;;  %v2495_v1 = vadd.f32 %v4354_v59, %v2227_v48  ;;  %v768_v36 = vunpack.c.l.bf16 %v539_v26 }
 0x258   : > { %v1871_v49 = vadd.f32 %v1870_v2, %v761_v63  ;;  %v2910_v31 = vpack.c.bf16 %v2750_v39, %v2748_v37  ;;  %v2229_v52 = vmul.f32 %v4347_v53, %v1869_v42  ;;  %v3292_v54 = vadd.f32 %v4973_v50, %v3291_v51  ;;  %v540_v2 = vld [vmem:[%s4337_s28 + $0x330] sm:$0xff] }
 0x259   : > { %v1874_v55 = vpop.f32.mrf.mxu0  ;;  %v3293_v58 = vpop.f32.mrf.mxu1  ;;  %v2496_v14 = vadd.f32 %v4363_v9, %v2228_v41  ;;  %v2751_v21 = vmax.f32 %v2495_v1, 0.0  ;;  %v769_v37 = vunpack.c.h.bf16 %v539_v26 }
 0x25a   : > { %v2230_v57 = vmul.f32 %v4356_v61, %v1871_v49  ;;  %3486 = vmatprep.mubr.bf16.mxu1 %v2910_v31  ;;  %v2497_v62 = vadd.f32 %v4354_v59, %v2229_v52  ;;  %3668 = vst [vmem:[%s4759_s16 + $0x168] sm:$0xff] %v3292_v54  ;;  %v1875_v4 = vadd.f32 %v1874_v55, %v762_v45  ;;  %v770_v54 = vunpack.c.l.bf16 %v540_v2 }
 0x25b   : > { %v1876_v0 = vpop.f32.mrf.mxu0  ;;  %v3296_v6 = vpop.f32.mrf.mxu1  ;;  %3487 = vmatmul.mubr.bf16.gmra.mxu1 %v2909_v56  ;;  %v2752_v17 = vmax.f32 %v2496_v14, 0.0  ;;  %v771_v55 = vunpack.c.h.bf16 %v540_v2  ;;  %v541_v56 = vld [vmem:[%s4337_s28 + $0x338] sm:$0xff] }
 0x25c   : > { %v2498_v3 = vadd.f32 %v4363_v9, %v2230_v57  ;;  %v1877_v5 = vadd.f32 %v1876_v0, %v763_v46  ;;  %v3297_v8 = vadd.f32 %v4973_v50, %v3296_v6  ;;  %v2753_v11 = vmax.f32 %v2497_v62, 0.0 }
 0x25d   : > { %v1878_v10 = vpop.f32.mrf.mxu0  ;;  %v3298_v16 = vpop.f32.mrf.mxu1  ;;  %v2231_v44 = vmul.f32 %v4347_v53, %v1875_v4  ;;  %v772_v6 = vunpack.c.l.bf16 %v541_v56 }
 0x25e   : > { %v2754_v12 = vmax.f32 %v2498_v3, 0.0  ;;  %v2232_v13 = vmul.f32 %v4356_v61, %v1877_v5  ;;  %v1879_v15 = vadd.f32 %v1878_v10, %v764_v60  ;;  %3669 = vst [vmem:[%s4759_s16 + $0x170] sm:$0xff] %v3297_v8  ;;  %v2911_v30 = vpack.c.bf16 %v2753_v11, %v2751_v21 }
 0x25f   : > { %v1880_v18 = vpop.f32.mrf.mxu0  ;;  %v3299_v24 = vpop.f32.mrf.mxu1  ;;  %v2499_v38 = vadd.f32 %v4354_v59, %v2231_v44  ;;  %v773_v11 = vunpack.c.h.bf16 %v541_v56 }
 0x260   : > { %v2233_v22 = vmul.f32 %v4347_v53, %v1879_v15  ;;  %v1881_v23 = vadd.f32 %v1880_v18, %v765_v29  ;;  %v3300_v27 = vadd.f32 %v4973_v50, %v3299_v24  ;;  %v2912_v28 = vpack.c.bf16 %v2754_v12, %v2752_v17  ;;  %v542_v18 = vld [vmem:[%s4337_s28 + $0x340] sm:$0xff] }
 0x261   : > { %v1884_v63 = vpop.f32.mrf.mxu0  ;;  %v2500_v32 = vadd.f32 %v4363_v9, %v2232_v13  ;;  %v3301_v34 = vpop.f32.mrf.mxu1  ;;  %v2755_v57 = vmax.f32 %v2499_v38, 0.0 }
 0x262   : > { %v2501_v33 = vadd.f32 %v4354_v59, %v2233_v22  ;;  %v2234_v43 = vmul.f32 %v4356_v61, %v1881_v23  ;;  %3670 = vst [vmem:[%s4759_s16 + $0x178] sm:$0xff] %v3300_v27  ;;  %3494 = vmatprep.mubr.bf16.mxu1 %v2912_v28  ;;  %v1885_v40 = vadd.f32 %v1884_v63, %v766_v19  ;;  %v774_v63 = vunpack.c.l.bf16 %v542_v18 }
 0x263   : > { %v1886_v35 = vpop.f32.mrf.mxu0  ;;  %v3304_v42 = vpop.f32.mrf.mxu1  ;;  %3495 = vmatmul.mubr.bf16.gmra.mxu1 %v2911_v30  ;;  %v2756_v47 = vmax.f32 %v2500_v32, 0.0  ;;  %v775_v28 = vunpack.c.h.bf16 %v542_v18 }
 0x264   : > { %v2502_v39 = vadd.f32 %v4363_v9, %v2234_v43  ;;  %v1887_v41 = vadd.f32 %v1886_v35, %v767_v20  ;;  %v3305_v45 = vadd.f32 %v4973_v50, %v3304_v42  ;;  %v2757_v25 = vmax.f32 %v2501_v33, 0.0  ;;  %v543_v35 = vld [vmem:[%s4337_s28 + $0x348] sm:$0xff] }
 0x265   : > { %v1888_v46 = vpop.f32.mrf.mxu0  ;;  %v3306_v49 = vpop.f32.mrf.mxu1  ;;  %v2235_v58 = vmul.f32 %v4347_v53, %v1885_v40 }
 0x266   : > { %v2758_v48 = vmax.f32 %v2502_v39, 0.0  ;;  %v2236_v51 = vmul.f32 %v4356_v61, %v1887_v41  ;;  %3671 = vst [vmem:[%s4759_s16 + $0x180] sm:$0xff] %v3305_v45  ;;  %v1889_v31 = vadd.f32 %v1888_v46, %v768_v36  ;;  %v2913_v3 = vpack.c.bf16 %v2757_v25, %v2755_v57 }
 0x267   : > { %v1890_v52 = vpop.f32.mrf.mxu0  ;;  %v3307_v14 = vpop.f32.mrf.mxu1  ;;  %v2503_v12 = vadd.f32 %v4354_v59, %v2235_v58  ;;  %v776_v46 = vunpack.c.l.bf16 %v543_v35 }
 0x268   : > { %v1891_v60 = vadd.f32 %v1890_v52, %v769_v37  ;;  %v2914_v62 = vpack.c.bf16 %v2758_v48, %v2756_v47  ;;  %v2237_v0 = vmul.f32 %v4347_v53, %v1889_v31  ;;  %v3308_v29 = vadd.f32 %v4973_v50, %v3307_v14  ;;  %v544_v52 = vld [vmem:[%s4337_s28 + $0x350] sm:$0xff] }
 0x269   : > { %v1894_v1 = vpop.f32.mrf.mxu0  ;;  %v3309_v5 = vpop.f32.mrf.mxu1  ;;  %v2504_v7 = vadd.f32 %v4363_v9, %v2236_v51  ;;  %v2759_v30 = vmax.f32 %v2503_v12, 0.0  ;;  %v777_v47 = vunpack.c.h.bf16 %v543_v35 }
 0x26a   : > { %v2238_v4 = vmul.f32 %v4356_v61, %v1891_v60  ;;  %3502 = vmatprep.mubr.bf16.mxu1 %v2914_v62  ;;  %v2505_v8 = vadd.f32 %v4354_v59, %v2237_v0  ;;  %3672 = vst [vmem:[%s4759_s16 + $0x188] sm:$0xff] %v3308_v29  ;;  %v1895_v15 = vadd.f32 %v1894_v1, %v770_v54  ;;  %v778_v29 = vunpack.c.l.bf16 %v544_v52 }
 0x26b   : > { %v1896_v10 = vpop.f32.mrf.mxu0  ;;  %v3312_v17 = vpop.f32.mrf.mxu1  ;;  %3503 = vmatmul.mubr.bf16.gmra.mxu1 %v2913_v3  ;;  %v2760_v26 = vmax.f32 %v2504_v7, 0.0  ;;  %v779_v1 = vunpack.c.h.bf16 %v544_v52  ;;  %v545_v3 = vld [vmem:[%s4337_s28 + $0x358] sm:$0xff] }
 0x26c   : > { %v2506_v13 = vadd.f32 %v4363_v9, %v2238_v4  ;;  %v1897_v16 = vadd.f32 %v1896_v10, %v771_v55  ;;  %v3313_v19 = vadd.f32 %v4973_v50, %v3312_v17  ;;  %v2761_v21 = vmax.f32 %v2505_v8, 0.0 }
 0x26d   : > { %v1898_v20 = vpop.f32.mrf.mxu0  ;;  %v3314_v24 = vpop.f32.mrf.mxu1  ;;  %v2239_v32 = vmul.f32 %v4347_v53, %v1895_v15  ;;  %v780_v17 = vunpack.c.l.bf16 %v545_v3 }
 0x26e   : > { %v2762_v44 = vmax.f32 %v2506_v13, 0.0  ;;  %v2240_v22 = vmul.f32 %v4356_v61, %v1897_v16  ;;  %v1899_v23 = vadd.f32 %v1898_v20, %v772_v6  ;;  %3673 = vst [vmem:[%s4759_s16 + $0x190] sm:$0xff] %v3313_v19  ;;  %v2915_v39 = vpack.c.bf16 %v2761_v21, %v2759_v30 }
 0x26f   : > { %v1900_v27 = vpop.f32.mrf.mxu0  ;;  %v3315_v34 = vpop.f32.mrf.mxu1  ;;  %v2507_v25 = vadd.f32 %v4354_v59, %v2239_v32  ;;  %v781_v21 = vunpack.c.h.bf16 %v545_v3 }
 0x270   : > { %v2241_v33 = vmul.f32 %v4347_v53, %v1899_v23  ;;  %v1901_v43 = vadd.f32 %v1900_v27, %v773_v11  ;;  %v3316_v36 = vadd.f32 %v4973_v50, %v3315_v34  ;;  %v2916_v38 = vpack.c.bf16 %v2762_v44, %v2760_v26  ;;  %v546_v27 = vld [vmem:[%s4337_s28 + $0x360] sm:$0xff] }
 0x271   : > { %v1904_v37 = vpop.f32.mrf.mxu0  ;;  %v2508_v40 = vadd.f32 %v4363_v9, %v2240_v22  ;;  %v3317_v2 = vpop.f32.mrf.mxu1  ;;  %v2763_v4 = vmax.f32 %v2507_v25, 0.0 }
 0x272   : > { %v2509_v41 = vadd.f32 %v4354_v59, %v2241_v33  ;;  %v2242_v42 = vmul.f32 %v4356_v61, %v1901_v43  ;;  %3674 = vst [vmem:[%s4759_s16 + $0x198] sm:$0xff] %v3316_v36  ;;  %3510 = vmatprep.mubr.bf16.mxu1 %v2916_v38  ;;  %v1905_v49 = vadd.f32 %v1904_v37, %v774_v63  ;;  %v782_v37 = vunpack.c.l.bf16 %v546_v27 }
 0x273   : > { %v1906_v45 = vpop.f32.mrf.mxu0  ;;  %v3320_v31 = vpop.f32.mrf.mxu1  ;;  %3511 = vmatmul.mubr.bf16.gmra.mxu1 %v2915_v39  ;;  %v2764_v56 = vmax.f32 %v2508_v40, 0.0  ;;  %v783_v38 = vunpack.c.h.bf16 %v546_v27 }
 0x274   : > { %v2510_v48 = vadd.f32 %v4363_v9, %v2242_v42  ;;  %v1907_v51 = vadd.f32 %v1906_v45, %v775_v28  ;;  %v3321_v54 = vadd.f32 %v4973_v50, %v3320_v31  ;;  %v2765_v57 = vmax.f32 %v2509_v41, 0.0  ;;  %v547_v45 = vld [vmem:[%s4337_s28 + $0x368] sm:$0xff] }
 0x275   : > { %v1908_v55 = vpop.f32.mrf.mxu0  ;;  %v3322_v60 = vpop.f32.mrf.mxu1  ;;  %v2243_v5 = vmul.f32 %v4347_v53, %v1905_v49 }
 0x276   : > { %v2766_v58 = vmax.f32 %v2510_v48, 0.0  ;;  %v2244_v14 = vmul.f32 %v4356_v61, %v1907_v51  ;;  %3675 = vst [vmem:[%s4759_s16 + $0x1a0] sm:$0xff] %v3321_v54  ;;  %v1909_v62 = vadd.f32 %v1908_v55, %v776_v46  ;;  %v2917_v13 = vpack.c.bf16 %v2765_v57, %v2763_v4 }
 0x277   : > { %v1910_v0 = vpop.f32.mrf.mxu0  ;;  %v3323_v7 = vpop.f32.mrf.mxu1  ;;  %v2511_v44 = vadd.f32 %v4354_v59, %v2243_v5  ;;  %v784_v55 = vunpack.c.l.bf16 %v547_v45 }
 0x278   : > { %v1911_v6 = vadd.f32 %v1910_v0, %v777_v47  ;;  %v2918_v8 = vpack.c.bf16 %v2766_v58, %v2764_v56  ;;  %v2245_v10 = vmul.f32 %v4347_v53, %v1909_v62  ;;  %v3324_v11 = vadd.f32 %v4973_v50, %v3323_v7  ;;  %v548_v0 = vld [vmem:[%s4337_s28 + $0x370] sm:$0xff] }
 0x279   : > { %v1914_v12 = vpop.f32.mrf.mxu0  ;;  %v3325_v16 = vpop.f32.mrf.mxu1  ;;  %v2512_v18 = vadd.f32 %v4363_v9, %v2244_v14  ;;  %v2767_v39 = vmax.f32 %v2511_v44, 0.0  ;;  %v785_v56 = vunpack.c.h.bf16 %v547_v45 }
 0x27a   : > { %v2246_v15 = vmul.f32 %v4356_v61, %v1911_v6  ;;  %3518 = vmatprep.mubr.bf16.mxu1 %v2918_v8  ;;  %v2513_v19 = vadd.f32 %v4354_v59, %v2245_v10  ;;  %3676 = vst [vmem:[%s4759_s16 + $0x1a8] sm:$0xff] %v3324_v11  ;;  %v1915_v23 = vadd.f32 %v1914_v12, %v778_v29  ;;  %v786_v11 = vunpack.c.l.bf16 %v548_v0 }
 0x27b   : > { %v1916_v20 = vpop.f32.mrf.mxu0  ;;  %v3328_v26 = vpop.f32.mrf.mxu1  ;;  %3519 = vmatmul.mubr.bf16.gmra.mxu1 %v2917_v13  ;;  %v2768_v35 = vmax.f32 %v2512_v18, 0.0  ;;  %v787_v12 = vunpack.c.h.bf16 %v548_v0  ;;  %v549_v13 = vld [vmem:[%s4337_s28 + $0x378] sm:$0xff] }
 0x27c   : > { %v2514_v22 = vadd.f32 %v4363_v9, %v2246_v15  ;;  %v1917_v24 = vadd.f32 %v1916_v20, %v779_v1  ;;  %v3329_v63 = vadd.f32 %v4973_v50, %v3328_v26  ;;  %v2769_v30 = vmax.f32 %v2513_v19, 0.0 }
 0x27d   : > { %v1918_v28 = vpop.f32.mrf.mxu0  ;;  %v3330_v34 = vpop.f32.mrf.mxu1  ;;  %v2247_v40 = vmul.f32 %v4347_v53, %v1915_v23  ;;  %v788_v26 = vunpack.c.l.bf16 %v549_v13 }
 0x27e   : > { %v2770_v32 = vmax.f32 %v2514_v22, 0.0  ;;  %v2248_v33 = vmul.f32 %v4356_v61, %v1917_v24  ;;  %v1919_v43 = vadd.f32 %v1918_v28, %v780_v17  ;;  %3677 = vst [vmem:[%s4759_s16 + $0x1b0] sm:$0xff] %v3329_v63  ;;  %v2919_v48 = vpack.c.bf16 %v2769_v30, %v2767_v39 }
 0x27f   : > { %v1920_v36 = vpop.f32.mrf.mxu0  ;;  %v3331_v2 = vpop.f32.mrf.mxu1  ;;  %v2515_v57 = vadd.f32 %v4354_v59, %v2247_v40  ;;  %v789_v30 = vunpack.c.h.bf16 %v549_v13 }
 0x280   : > { %v2249_v41 = vmul.f32 %v4347_v53, %v1919_v43  ;;  %v1921_v42 = vadd.f32 %v1920_v36, %v781_v21  ;;  %v3332_v46 = vadd.f32 %v4973_v50, %v3331_v2  ;;  %v2920_v25 = vpack.c.bf16 %v2770_v32, %v2768_v35  ;;  %v550_v35 = vld [vmem:[%s4337_s28 + $0x380] sm:$0xff] }
 0x281   : > { %v1924_v47 = vpop.f32.mrf.mxu0  ;;  %v2516_v49 = vadd.f32 %v4363_v9, %v2248_v33  ;;  %v3333_v52 = vpop.f32.mrf.mxu1  ;;  %v2771_v15 = vmax.f32 %v2515_v57, 0.0  ;;  %v5169_v36 = vld [vmem:[%s5408_s6] ss:$0 sm:$0xff] }
 0x282   : > { %v2517_v51 = vadd.f32 %v4354_v59, %v2249_v41  ;;  %v2250_v31 = vmul.f32 %v4356_v61, %v1921_v42  ;;  %3678 = vst [vmem:[%s4759_s16 + $0x1b8] sm:$0xff] %v3332_v46  ;;  %3526 = vmatprep.mubr.bf16.mxu1 %v2920_v25  ;;  %v1925_v60 = vadd.f32 %v1924_v47, %v782_v37  ;;  %v790_v47 = vunpack.c.l.bf16 %v550_v35 }
 0x283   : > { %v1926_v54 = vpop.f32.mrf.mxu0  ;;  %v3336_v62 = vpop.f32.mrf.mxu1  ;;  %3527 = vmatmul.mubr.bf16.gmra.mxu1 %v2919_v48  ;;  %v2772_v3 = vmax.f32 %v2516_v49, 0.0  ;;  %v791_v25 = vunpack.c.h.bf16 %v550_v35 }
 0x284   : > { %v2518_v58 = vadd.f32 %v4363_v9, %v2250_v31  ;;  %v1927_v14 = vadd.f32 %v1926_v54, %v783_v38  ;;  %v3337_v29 = vadd.f32 %v4973_v50, %v3336_v62  ;;  %v2773_v4 = vmax.f32 %v2517_v51, 0.0  ;;  %v551_v54 = vld [vmem:[%s4337_s28 + $0x388] sm:$0xff] }
 0x285   : > { %v1928_v1 = vpop.f32.mrf.mxu0  ;;  %v3338_v6 = vpop.f32.mrf.mxu1  ;;  %v2251_v16 = vmul.f32 %v4347_v53, %v1925_v60 }
 0x286   : > { %v2774_v5 = vmax.f32 %v2518_v58, 0.0  ;;  %v2252_v7 = vmul.f32 %v4356_v61, %v1927_v14  ;;  %3679 = vst [vmem:[%s4759_s16 + $0x1c0] sm:$0xff] %v3337_v29  ;;  %v1929_v8 = vadd.f32 %v1928_v1, %v784_v55  ;;  %v2921_v22 = vpack.c.bf16 %v2773_v4, %v2771_v15 }
 0x287   : > { %v1930_v10 = vpop.f32.mrf.mxu0  ;;  %v3339_v18 = vpop.f32.mrf.mxu1  ;;  %v2519_v32 = vadd.f32 %v4354_v59, %v2251_v16  ;;  %v792_v1 = vunpack.c.l.bf16 %v551_v54 }
 0x288   : > { %v1931_v17 = vadd.f32 %v1930_v10, %v785_v56  ;;  %v2922_v19 = vpack.c.bf16 %v2774_v5, %v2772_v3  ;;  %v2253_v20 = vmul.f32 %v4347_v53, %v1929_v8  ;;  %v3340_v21 = vadd.f32 %v4973_v50, %v3339_v18  ;;  %v552_v10 = vld [vmem:[%s4337_s28 + $0x390] sm:$0xff] }
 0x289   : > { %v1934_v44 = vpop.f32.mrf.mxu0  ;;  %v3341_v24 = vpop.f32.mrf.mxu1  ;;  %v2520_v27 = vadd.f32 %v4363_v9, %v2252_v7  ;;  %v2775_v48 = vmax.f32 %v2519_v32, 0.0  ;;  %v793_v3 = vunpack.c.h.bf16 %v551_v54 }
 0x28a   : > { %v2254_v23 = vmul.f32 %v4356_v61, %v1931_v17  ;;  %3534 = vmatprep.mubr.bf16.mxu1 %v2922_v19  ;;  %v2521_v63 = vadd.f32 %v4354_v59, %v2253_v20  ;;  %3680 = vst [vmem:[%s4759_s16 + $0x1c8] sm:$0xff] %v3340_v21  ;;  %v1935_v33 = vadd.f32 %v1934_v44, %v786_v11  ;;  %v794_v21 = vunpack.c.l.bf16 %v552_v10 }
 0x28b   : > { %v1936_v28 = vpop.f32.mrf.mxu0  ;;  %v3344_v34 = vpop.f32.mrf.mxu1  ;;  %3535 = vmatmul.mubr.bf16.gmra.mxu1 %v2921_v22  ;;  %v2776_v45 = vmax.f32 %v2520_v27, 0.0  ;;  %v795_v44 = vunpack.c.h.bf16 %v552_v10  ;;  %v553_v22 = vld [vmem:[%s4337_s28 + $0x398] sm:$0xff] }
 0x28c   : > { %v2522_v50 = vadd.f32 %v4363_v9, %v2254_v23  ;;  %v1937_v43 = vadd.f32 %v1936_v28, %v787_v12  ;;  %v3345_v37 = vadd.f32 %v5169_v36, %v3344_v34  ;;  %v2777_v39 = vmax.f32 %v2521_v63, 0.0 }
 0x28d   : > { %v1938_v38 = vpop.f32.mrf.mxu0  ;;  %v3346_v2 = vpop.f32.mrf.mxu1  ;;  %v2255_v49 = vmul.f32 %v4347_v53, %v1935_v33  ;;  %v796_v34 = vunpack.c.l.bf16 %v553_v22 }
 0x28e   : > { %v2778_v40 = vmax.f32 %v2522_v50, 0.0  ;;  %v2256_v41 = vmul.f32 %v4356_v61, %v1937_v43  ;;  %v1939_v42 = vadd.f32 %v1938_v38, %v788_v26  ;;  %3681 = vst [vmem:[%s4759_s16 + $0x1d0] sm:$0xff] %v3345_v37  ;;  %v2923_v58 = vpack.c.bf16 %v2777_v39, %v2775_v48 }
 0x28f   : > { %v1940_v46 = vpop.f32.mrf.mxu0  ;;  %v3347_v52 = vpop.f32.mrf.mxu1  ;;  %v2523_v4 = vadd.f32 %v4354_v59, %v2255_v49  ;;  %v797_v39 = vunpack.c.h.bf16 %v553_v22 }
 0x290   : > { %v2257_v51 = vmul.f32 %v4347_v53, %v1939_v42  ;;  %v1941_v31 = vadd.f32 %v1940_v46, %v789_v30  ;;  %v3348_v55 = vadd.f32 %v5169_v36, %v3347_v52  ;;  %v2924_v57 = vpack.c.bf16 %v2778_v40, %v2776_v45  ;;  %v554_v46 = vld [vmem:[%s4337_s28 + $0x3a0] sm:$0xff] }
 0x291   : > { %v1944_v56 = vpop.f32.mrf.mxu0  ;;  %v2524_v60 = vadd.f32 %v4363_v9, %v2256_v41  ;;  %v3349_v0 = vpop.f32.mrf.mxu1  ;;  %v2779_v23 = vmax.f32 %v2523_v4, 0.0 }
 0x292   : > { %v2525_v14 = vadd.f32 %v4354_v59, %v2257_v51  ;;  %v2258_v62 = vmul.f32 %v4356_v61, %v1941_v31  ;;  %3682 = vst [vmem:[%s4759_s16 + $0x1d8] sm:$0xff] %v3348_v55  ;;  %3542 = vmatprep.mubr.bf16.mxu1 %v2924_v57  ;;  %v1945_v6 = vadd.f32 %v1944_v56, %v790_v47  ;;  %v798_v56 = vunpack.c.l.bf16 %v554_v46 }
 0x293   : > { %v1946_v29 = vpop.f32.mrf.mxu0  ;;  %v3352_v8 = vpop.f32.mrf.mxu1  ;;  %3543 = vmatmul.mubr.bf16.gmra.mxu1 %v2923_v58  ;;  %v2780_v13 = vmax.f32 %v2524_v60, 0.0  ;;  %v799_v57 = vunpack.c.h.bf16 %v554_v46 }
 0x294   : > { %v2526_v5 = vadd.f32 %v4363_v9, %v2258_v62  ;;  %v1947_v7 = vadd.f32 %v1946_v29, %v791_v25  ;;  %v3353_v11 = vadd.f32 %v5169_v36, %v3352_v8  ;;  %v2781_v15 = vmax.f32 %v2525_v14, 0.0  ;;  %v555_v29 = vld [vmem:[%s4337_s28 + $0x3a8] sm:$0xff] }
 0x295   : > { %v1948_v12 = vpop.f32.mrf.mxu0  ;;  %v3354_v17 = vpop.f32.mrf.mxu1  ;;  %v2259_v24 = vmul.f32 %v4347_v53, %v1945_v6 }
 0x296   : > { %v2782_v16 = vmax.f32 %v2526_v5, 0.0  ;;  %v2260_v18 = vmul.f32 %v4356_v61, %v1947_v7  ;;  %3683 = vst [vmem:[%s4759_s16 + $0x1e0] sm:$0xff] %v3353_v11  ;;  %v1949_v19 = vadd.f32 %v1948_v12, %v792_v1  ;;  %v2925_v50 = vpack.c.bf16 %v2781_v15, %v2779_v23 }
 0x297   : > { %v1950_v20 = vpop.f32.mrf.mxu0  ;;  %v3355_v27 = vpop.f32.mrf.mxu1  ;;  %v2527_v40 = vadd.f32 %v4354_v59, %v2259_v24  ;;  %v800_v12 = vunpack.c.l.bf16 %v555_v29 }
 0x298   : > { %v1951_v26 = vadd.f32 %v1950_v20, %v793_v3  ;;  %v2926_v63 = vpack.c.bf16 %v2782_v16, %v2780_v13  ;;  %v2261_v28 = vmul.f32 %v4347_v53, %v1949_v19  ;;  %v3356_v30 = vadd.f32 %v5169_v36, %v3355_v27  ;;  %v556_v20 = vld [vmem:[%s4337_s28 + $0x3b0] sm:$0xff] }
 0x299   : > { %v1954_v32 = vpop.f32.mrf.mxu0  ;;  %v3357_v43 = vpop.f32.mrf.mxu1  ;;  %v2528_v35 = vadd.f32 %v4363_v9, %v2260_v18  ;;  %v2783_v58 = vmax.f32 %v2527_v40, 0.0  ;;  %v801_v13 = vunpack.c.h.bf16 %v555_v29 }
 0x29a   : > { %v2262_v33 = vmul.f32 %v4356_v61, %v1951_v26  ;;  %3550 = vmatprep.mubr.bf16.mxu1 %v2926_v63  ;;  %v2529_v37 = vadd.f32 %v4354_v59, %v2261_v28  ;;  %3684 = vst [vmem:[%s4759_s16 + $0x1e8] sm:$0xff] %v3356_v30  ;;  %v1955_v42 = vadd.f32 %v1954_v32, %v794_v21  ;;  %v802_v30 = vunpack.c.l.bf16 %v556_v20 }
 0x29b   : > { %v1956_v38 = vpop.f32.mrf.mxu0  ;;  %v3360_v45 = vpop.f32.mrf.mxu1  ;;  %3551 = vmatmul.mubr.bf16.gmra.mxu1 %v2925_v50  ;;  %v2784_v54 = vmax.f32 %v2528_v35, 0.0  ;;  %v803_v32 = vunpack.c.h.bf16 %v556_v20  ;;  %v557_v50 = vld [vmem:[%s4337_s28 + $0x3b8] sm:$0xff] }
 0x29c   : > { %v2530_v41 = vadd.f32 %v4363_v9, %v2262_v33  ;;  %v1957_v2 = vadd.f32 %v1956_v38, %v795_v44  ;;  %v3361_v47 = vadd.f32 %v5169_v36, %v3360_v45  ;;  %v2785_v48 = vmax.f32 %v2529_v37, 0.0 }
 0x29d   : > { %v1958_v25 = vpop.f32.mrf.mxu0  ;;  %v3362_v52 = vpop.f32.mrf.mxu1  ;;  %v2263_v60 = vmul.f32 %v4347_v53, %v1955_v42  ;;  %v804_v45 = vunpack.c.l.bf16 %v557_v50 }
 0x29e   : > { %v2786_v49 = vmax.f32 %v2530_v41, 0.0  ;;  %v2264_v51 = vmul.f32 %v4356_v61, %v1957_v2  ;;  %v1959_v31 = vadd.f32 %v1958_v25, %v796_v34  ;;  %3685 = vst [vmem:[%s4759_s16 + $0x1f0] sm:$0xff] %v3361_v47  ;;  %v2927_v5 = vpack.c.bf16 %v2785_v48, %v2783_v58 }
 0x29f   : > { %v1960_v55 = vpop.f32.mrf.mxu0  ;;  %v3363_v0 = vpop.f32.mrf.mxu1  ;;  %v2531_v15 = vadd.f32 %v4354_v59, %v2263_v60  ;;  %v805_v48 = vunpack.c.h.bf16 %v557_v50 }
 0x2a0   : > { %v2265_v14 = vmul.f32 %v4347_v53, %v1959_v31  ;;  %v1961_v62 = vadd.f32 %v1960_v55, %v797_v39  ;;  %v3364_v1 = vadd.f32 %v5169_v36, %v3363_v0  ;;  %v2928_v4 = vpack.c.bf16 %v2786_v49, %v2784_v54  ;;  %v558_v55 = vld [vmem:[%s4337_s28 + $0x3c0] sm:$0xff] }
 0x2a1   : > { %v1964_v3 = vpop.f32.mrf.mxu0  ;;  %v2532_v6 = vadd.f32 %v4363_v9, %v2264_v51  ;;  %v3365_v10 = vpop.f32.mrf.mxu1  ;;  %v2787_v33 = vmax.f32 %v2531_v15, 0.0 }
 0x2a2   : > { %v2533_v7 = vadd.f32 %v4354_v59, %v2265_v14  ;;  %v2266_v8 = vmul.f32 %v4356_v61, %v1961_v62  ;;  %3686 = vst [vmem:[%s4759_s16 + $0x1f8] sm:$0xff] %v3364_v1  ;;  %3558 = vmatprep.mubr.bf16.mxu1 %v2928_v4  ;;  %v1965_v17 = vadd.f32 %v1964_v3, %v798_v56  ;;  %v806_v3 = vunpack.c.l.bf16 %v558_v55 }
 0x2a3   : > { %v1966_v11 = vpop.f32.mrf.mxu0  ;;  %v3368_v19 = vpop.f32.mrf.mxu1  ;;  %3559 = vmatmul.mubr.bf16.gmra.mxu1 %v2927_v5  ;;  %v2788_v22 = vmax.f32 %v2532_v6, 0.0  ;;  %v807_v4 = vunpack.c.h.bf16 %v558_v55 }
 0x2a4   : > { %v2534_v16 = vadd.f32 %v4363_v9, %v2266_v8  ;;  %v1967_v18 = vadd.f32 %v1966_v11, %v799_v57  ;;  %v3369_v21 = vadd.f32 %v5169_v36, %v3368_v19  ;;  %v2789_v23 = vmax.f32 %v2533_v7, 0.0  ;;  %v559_v11 = vld [vmem:[%s4337_s28 + $0x3c8] sm:$0xff] }
 0x2a5   : > { %v1968_v44 = vpop.f32.mrf.mxu0  ;;  %v3370_v26 = vpop.f32.mrf.mxu1  ;;  %v2267_v43 = vmul.f32 %v4347_v53, %v1965_v17 }
 0x2a6   : > { %v2790_v24 = vmax.f32 %v2534_v16, 0.0  ;;  %v2268_v27 = vmul.f32 %v4356_v61, %v1967_v18  ;;  %3687 = vst [vmem:[%s4759_s16 + $0x200] sm:$0xff] %v3369_v21  ;;  %v1969_v63 = vadd.f32 %v1968_v44, %v800_v12  ;;  %v2929_v41 = vpack.c.bf16 %v2789_v23, %v2787_v33 }
 0x2a7   : > { %v1970_v28 = vpop.f32.mrf.mxu0  ;;  %v3371_v35 = vpop.f32.mrf.mxu1  ;;  %v2535_v49 = vadd.f32 %v4354_v59, %v2267_v43  ;;  %v808_v44 = vunpack.c.l.bf16 %v559_v11 }
 0x2a8   : > { %v1971_v34 = vadd.f32 %v1970_v28, %v801_v13  ;;  %v2930_v37 = vpack.c.bf16 %v2790_v24, %v2788_v22  ;;  %v2269_v38 = vmul.f32 %v4347_v53, %v1969_v63  ;;  %v3372_v39 = vadd.f32 %v5169_v36, %v3371_v35  ;;  %v560_v28 = vld [vmem:[%s4337_s28 + $0x3d0] sm:$0xff] }
 0x2a9   : > { %v1974_v40 = vpop.f32.mrf.mxu0  ;;  %v3373_v2 = vpop.f32.mrf.mxu1  ;;  %v2536_v46 = vadd.f32 %v4363_v9, %v2268_v27  ;;  %v2791_v5 = vmax.f32 %v2535_v49, 0.0  ;;  %v809_v22 = vunpack.c.h.bf16 %v559_v11 }
 0x2aa   : > { %v2270_v42 = vmul.f32 %v4356_v61, %v1971_v34  ;;  %3566 = vmatprep.mubr.bf16.mxu1 %v2930_v37  ;;  %v2537_v47 = vadd.f32 %v4354_v59, %v2269_v38  ;;  %3688 = vst [vmem:[%s4759_s16 + $0x208] sm:$0xff] %v3372_v39  ;;  %v1975_v31 = vadd.f32 %v1974_v40, %v802_v30  ;;  %v810_v39 = vunpack.c.l.bf16 %v560_v28 }
 0x2ab   : > { %v1976_v25 = vpop.f32.mrf.mxu0  ;;  %v3376_v54 = vpop.f32.mrf.mxu1  ;;  %3567 = vmatmul.mubr.bf16.gmra.mxu1 %v2929_v41  ;;  %v2792_v29 = vmax.f32 %v2536_v46, 0.0  ;;  %v811_v40 = vunpack.c.h.bf16 %v560_v28  ;;  %v561_v41 = vld [vmem:[%s4337_s28 + $0x3d8] sm:$0xff] }
 0x2ac   : > { %v2538_v51 = vadd.f32 %v4363_v9, %v2270_v42  ;;  %v1977_v52 = vadd.f32 %v1976_v25, %v803_v32  ;;  %v3377_v56 = vadd.f32 %v5169_v36, %v3376_v54  ;;  %v2793_v58 = vmax.f32 %v2537_v47, 0.0 }
 0x2ad   : > { %v1978_v57 = vpop.f32.mrf.mxu0  ;;  %v3378_v0 = vpop.f32.mrf.mxu1  ;;  %v2271_v6 = vmul.f32 %v4347_v53, %v1975_v31  ;;  %v812_v54 = vunpack.c.l.bf16 %v561_v41 }
 0x2ae   : > { %v2794_v60 = vmax.f32 %v2538_v51, 0.0  ;;  %v2272_v14 = vmul.f32 %v4356_v61, %v1977_v52  ;;  %v1979_v62 = vadd.f32 %v1978_v57, %v804_v45  ;;  %3689 = vst [vmem:[%s4759_s16 + $0x210] sm:$0xff] %v3377_v56  ;;  %v2931_v16 = vpack.c.bf16 %v2793_v58, %v2791_v5 }
 0x2af   : > { %v1980_v1 = vpop.f32.mrf.mxu0  ;;  %v3379_v10 = vpop.f32.mrf.mxu1  ;;  %v2539_v23 = vadd.f32 %v4354_v59, %v2271_v6  ;;  %v813_v58 = vunpack.c.h.bf16 %v561_v41 }
 0x2b0   : > { %v2273_v7 = vmul.f32 %v4347_v53, %v1979_v62  ;;  %v1981_v8 = vadd.f32 %v1980_v1, %v805_v48  ;;  %v3380_v12 = vadd.f32 %v5169_v36, %v3379_v10  ;;  %v2932_v15 = vpack.c.bf16 %v2794_v60, %v2792_v29  ;;  %v562_v1 = vld [vmem:[%s4337_s28 + $0x3e0] sm:$0xff] }
 0x2b1   : > { %v1984_v13 = vpop.f32.mrf.mxu0  ;;  %v2540_v17 = vadd.f32 %v4363_v9, %v2272_v14  ;;  %v3381_v20 = vpop.f32.mrf.mxu1  ;;  %v2795_v42 = vmax.f32 %v2539_v23, 0.0 }
 0x2b2   : > { %v2541_v18 = vadd.f32 %v4354_v59, %v2273_v7  ;;  %v2274_v19 = vmul.f32 %v4356_v61, %v1981_v8  ;;  %3690 = vst [vmem:[%s4759_s16 + $0x218] sm:$0xff] %v3380_v12  ;;  %3574 = vmatprep.mubr.bf16.mxu1 %v2932_v15  ;;  %v1985_v26 = vadd.f32 %v1984_v13, %v806_v3  ;;  %v814_v13 = vunpack.c.l.bf16 %v562_v1 }
 0x2b3   : > { %v1986_v21 = vpop.f32.mrf.mxu0  ;;  %v3384_v63 = vpop.f32.mrf.mxu1  ;;  %3575 = vmatmul.mubr.bf16.gmra.mxu1 %v2931_v16  ;;  %v2796_v50 = vmax.f32 %v2540_v17, 0.0  ;;  %v815_v15 = vunpack.c.h.bf16 %v562_v1 }
 0x2b4   : > { %v2542_v24 = vadd.f32 %v4363_v9, %v2274_v19  ;;  %v1987_v27 = vadd.f32 %v1986_v21, %v807_v4  ;;  %v3385_v30 = vadd.f32 %v5169_v36, %v3384_v63  ;;  %v2797_v33 = vmax.f32 %v2541_v18, 0.0  ;;  %v563_v21 = vld [vmem:[%s4337_s28 + $0x3e8] sm:$0xff] }
 0x2b5   : > { %v1988_v32 = vpop.f32.mrf.mxu0  ;;  %v3386_v34 = vpop.f32.mrf.mxu1  ;;  %v2275_v2 = vmul.f32 %v4347_v53, %v1985_v26 }
 0x2b6   : > { %v2798_v43 = vmax.f32 %v2542_v24, 0.0  ;;  %v2276_v35 = vmul.f32 %v4356_v61, %v1987_v27  ;;  %3691 = vst [vmem:[%s4759_s16 + $0x220] sm:$0xff] %v3385_v30  ;;  %v1989_v37 = vadd.f32 %v1988_v32, %v808_v44  ;;  %v2933_v51 = vpack.c.bf16 %v2797_v33, %v2795_v42 }
 0x2b7   : > { %v1990_v38 = vpop.f32.mrf.mxu0  ;;  %v3387_v46 = vpop.f32.mrf.mxu1  ;;  %v2543_v60 = vadd.f32 %v4354_v59, %v2275_v2 }
 0x2b8   : > { %v1991_v45 = vadd.f32 %v1990_v38, %v809_v22  ;;  %v2934_v47 = vpack.c.bf16 %v2798_v43, %v2796_v50  ;;  %v2277_v25 = vmul.f32 %v4347_v53, %v1989_v37  ;;  %v3388_v48 = vadd.f32 %v5169_v36, %v3387_v46  ;;  %v564_v38 = vld [vmem:[%s4337_s28 + $0x3f0] sm:$0xff] }
 0x2b9   : > { %v1994_v49 = vpop.f32.mrf.mxu0  ;;  %v3389_v52 = vpop.f32.mrf.mxu1  ;;  %v2544_v55 = vadd.f32 %v4363_v9, %v2276_v35  ;;  %v2799_v16 = vmax.f32 %v2543_v60, 0.0  ;;  %v816_v50 = vunpack.c.l.bf16 %v563_v21  ;;  %v817_v37 = vunpack.c.h.bf16 %v563_v21 }
 0x2ba   : > { %v2278_v31 = vmul.f32 %v4356_v61, %v1991_v45  ;;  %3582 = vmatprep.mubr.bf16.mxu1 %v2934_v47  ;;  %v2545_v56 = vadd.f32 %v4354_v59, %v2277_v25  ;;  %3692 = vst [vmem:[%s4759_s16 + $0x228] sm:$0xff] %v3388_v48  ;;  %v1995_v62 = vadd.f32 %v1994_v49, %v810_v39  ;;  %v818_v49 = vunpack.c.l.bf16 %v564_v38 }
 0x2bb   : > { %v1996_v57 = vpop.f32.mrf.mxu0  ;;  %v3392_v29 = vpop.f32.mrf.mxu1  ;;  %3583 = vmatmul.mubr.bf16.gmra.mxu1 %v2933_v51  ;;  %v2800_v11 = vmax.f32 %v2544_v55, 0.0  ;;  %v565_v51 = vld [vmem:[%s4337_s28 + $0x3f8] sm:$0xff] }
 0x2bc   : > { %v2546_v14 = vadd.f32 %v4363_v9, %v2278_v31  ;;  %v1997_v0 = vadd.f32 %v1996_v57, %v811_v40  ;;  %v3393_v3 = vadd.f32 %v5169_v36, %v3392_v29  ;;  %v2801_v5 = vmax.f32 %v2545_v56, 0.0 }
 0x2bd   : > { %v1998_v4 = vpop.f32.mrf.mxu0  ;;  %v3394_v10 = vpop.f32.mrf.mxu1  ;;  %v2279_v17 = vmul.f32 %v4347_v53, %v1995_v62  ;;  %v819_v56 = vunpack.c.h.bf16 %v564_v38  ;;  %v820_v29 = vunpack.c.l.bf16 %v565_v51 }
 0x2be   : > { %v2802_v6 = vmax.f32 %v2546_v14, 0.0  ;;  %v2280_v7 = vmul.f32 %v4356_v61, %v1997_v0  ;;  %v1999_v8 = vadd.f32 %v1998_v4, %v812_v54  ;;  %3693 = vst [vmem:[%s4759_s16 + $0x230] sm:$0xff] %v3393_v3  ;;  %v2935_v24 = vpack.c.bf16 %v2801_v5, %v2799_v16 }
 0x2bf   : > { %v2000_v12 = vpop.f32.mrf.mxu0  ;;  %v3395_v20 = vpop.f32.mrf.mxu1  ;;  %v2547_v33 = vadd.f32 %v4354_v59, %v2279_v17 }
 0x2c0   : > { %v2281_v18 = vmul.f32 %v4347_v53, %v1999_v8  ;;  %v2001_v19 = vadd.f32 %v2000_v12, %v813_v58  ;;  %v3396_v44 = vadd.f32 %v5169_v36, %v3395_v20  ;;  %v2936_v23 = vpack.c.bf16 %v2802_v6, %v2800_v11 }
 0x2c1   : > { %v2004_v22 = vpop.f32.mrf.mxu0  ;;  %v2548_v26 = vadd.f32 %v4363_v9, %v2280_v7  ;;  %v3397_v28 = vpop.f32.mrf.mxu1  ;;  %v2803_v31 = vmax.f32 %v2547_v33, 0.0  ;;  %v821_v11 = vunpack.c.h.bf16 %v565_v51 }
 0x2c2   : > { %v2549_v27 = vadd.f32 %v4354_v59, %v2281_v18  ;;  %v2282_v63 = vmul.f32 %v4356_v61, %v2001_v19  ;;  %3694 = vst [vmem:[%s4759_s16 + $0x238] sm:$0xff] %v3396_v44  ;;  %v2005_v30 = vadd.f32 %v2004_v22, %v814_v13  ;;  %3590 = vmatprep.mubr.bf16.mxu1 %v2936_v23 }
 0x2c3   : > { %v2006_v32 = vpop.f32.mrf.mxu0  ;;  %v3400_v35 = vpop.f32.mrf.mxu1  ;;  %3591 = vmatmul.mubr.bf16.gmra.mxu1 %v2935_v24  ;;  %v2804_v41 = vmax.f32 %v2548_v26, 0.0 }
 0x2c4   : > { %v2550_v43 = vadd.f32 %v4363_v9, %v2282_v63  ;;  %v2007_v34 = vadd.f32 %v2006_v32, %v815_v15  ;;  %v3401_v39 = vadd.f32 %v5169_v36, %v3400_v35  ;;  %v2805_v42 = vmax.f32 %v2549_v27, 0.0 }
 0x2c5   : > { %v2008_v40 = vpop.f32.mrf.mxu0  ;;  %v3402_v45 = vpop.f32.mrf.mxu1  ;;  %v2283_v46 = vmul.f32 %v4347_v53, %v2005_v30 }
 0x2c6   : > { %v2806_v2 = vmax.f32 %v2550_v43, 0.0  ;;  %v2284_v47 = vmul.f32 %v4356_v61, %v2007_v34  ;;  %3695 = vst [vmem:[%s4759_s16 + $0x240] sm:$0xff] %v3401_v39  ;;  %v2009_v25 = vadd.f32 %v2008_v40, %v816_v50  ;;  %v2937_v14 = vpack.c.bf16 %v2805_v42, %v2803_v31 }
 0x2c7   : > { %v2010_v48 = vpop.f32.mrf.mxu0  ;;  %v3403_v54 = vpop.f32.mrf.mxu1  ;;  %v2551_v1 = vadd.f32 %v4354_v59, %v2283_v46 }
 0x2c8   : > { %v2011_v52 = vadd.f32 %v2010_v48, %v817_v37  ;;  %v2938_v55 = vpack.c.bf16 %v2806_v2, %v2804_v41  ;;  %v2285_v57 = vmul.f32 %v4347_v53, %v2009_v25  ;;  %v3404_v58 = vadd.f32 %v5169_v36, %v3403_v54 }
 0x2c9   : > { %v2014_v60 = vpop.f32.mrf.mxu0  ;;  %v3405_v0 = vpop.f32.mrf.mxu1  ;;  %v2552_v3 = vadd.f32 %v4363_v9, %v2284_v47  ;;  %v2807_v20 = vmax.f32 %v2551_v1, 0.0 }
 0x2ca   : > { %v2286_v62 = vmul.f32 %v4356_v61, %v2011_v52  ;;  %3598 = vmatprep.mubr.bf16.mxu1 %v2938_v55  ;;  %v2553_v4 = vadd.f32 %v4354_v59, %v2285_v57  ;;  %3696 = vst [vmem:[%s4759_s16 + $0x248] sm:$0xff] %v3404_v58  ;;  %v2015_v7 = vadd.f32 %v2014_v60, %v818_v49 }
 0x2cb   : > { %v2016_v5 = vpop.f32.mrf.mxu0  ;;  %v3408_v10 = vpop.f32.mrf.mxu1  ;;  %3599 = vmatmul.mubr.bf16.gmra.mxu1 %v2937_v14  ;;  %v2808_v21 = vmax.f32 %v2552_v3, 0.0 }
 0x2cc   : > { %v2554_v6 = vadd.f32 %v4363_v9, %v2286_v62  ;;  %v2017_v8 = vadd.f32 %v2016_v5, %v819_v56  ;;  %v2809_v12 = vmax.f32 %v2553_v4, 0.0  ;;  %v3409_v13 = vadd.f32 %v5169_v36, %v3408_v10 }
 0x2cd   : > { %v2018_v15 = vpop.f32.mrf.mxu0  ;;  %v3410_v19 = vpop.f32.mrf.mxu1  ;;  %v2287_v22 = vmul.f32 %v4347_v53, %v2015_v7 }
 0x2ce   : > { %v2810_v16 = vmax.f32 %v2554_v6, 0.0  ;;  %v2288_v17 = vmul.f32 %v4356_v61, %v2017_v8  ;;  %v2019_v18 = vadd.f32 %v2018_v15, %v820_v29  ;;  %3697 = vst [vmem:[%s4759_s16 + $0x250] sm:$0xff] %v3409_v13  ;;  %v2939_v27 = vpack.c.bf16 %v2809_v12, %v2807_v20 }
 0x2cf   : > { %v2020_v44 = vpop.f32.mrf.mxu0  ;;  %v3411_v26 = vpop.f32.mrf.mxu1  ;;  %v2555_v35 = vadd.f32 %v4354_v59, %v2287_v22 }
 0x2d0   : > { %v2289_v23 = vmul.f32 %v4347_v53, %v2019_v18  ;;  %v2021_v24 = vadd.f32 %v2020_v44, %v821_v11  ;;  %v3412_v63 = vadd.f32 %v5169_v36, %v3411_v26  ;;  %v2940_v30 = vpack.c.bf16 %v2810_v16, %v2808_v21 }
 0x2d1   : > { %v3112_v28 = vpop.f32.mrf.mxu0  ;;  %v2556_v32 = vadd.f32 %v4363_v9, %v2288_v17  ;;  %v3413_v34 = vpop.f32.mrf.mxu1  ;;  %v2811_v47 = vmax.f32 %v2555_v35, 0.0 }
 0x2d2   : > { %v2557_v50 = vadd.f32 %v4354_v59, %v2289_v23  ;;  %v2290_v33 = vmul.f32 %v4356_v61, %v2021_v24  ;;  %v3113_v43 = vadd.f32 %v5169_v36, %v3112_v28  ;;  %3698 = vst [vmem:[%s4759_s16 + $0x258] sm:$0xff] %v3412_v63  ;;  %3606 = vmatprep.mubr.bf16.mxu1 %v2940_v30 }
 0x2d3   : > { %v3114_v53 = vpop.f32.mrf.mxu0  ;;  %v3416_v38 = vpop.f32.mrf.mxu1  ;;  %3607 = vmatmul.mubr.bf16.gmra.mxu1 %v2939_v27  ;;  %v2812_v41 = vmax.f32 %v2556_v32, 0.0 }
 0x2d4   : > { %v2558_v37 = vadd.f32 %v4363_v9, %v2290_v33  ;;  %3623 = vst [vmem:[%s4759_s16] sm:$0xff] %v3113_v43  ;;  %v3417_v39 = vadd.f32 %v5169_v36, %v3416_v38  ;;  %v2813_v61 = vmax.f32 %v2557_v50, 0.0 }
 0x2d5   : > { %v3115_v40 = vpop.f32.mrf.mxu0  ;;  %v3418_v45 = vpop.f32.mrf.mxu1 }
 0x2d6   : > { %v2814_v42 = vmax.f32 %v2558_v37, 0.0  ;;  %v3116_v2 = vadd.f32 %v5169_v36, %v3115_v40  ;;  %3699 = vst [vmem:[%s4759_s16 + $0x260] sm:$0xff] %v3417_v39  ;;  %v2941_v49 = vpack.c.bf16 %v2813_v61, %v2811_v47 }
 0x2d7   : > { %v3117_v46 = vpop.f32.mrf.mxu0  ;;  %v3419_v59 = vpop.f32.mrf.mxu1 }
 0x2d8   : > { %3624 = vst [vmem:[%s4759_s16 + $0x8] sm:$0xff] %v3116_v2  ;;  %v2942_v9 = vpack.c.bf16 %v2814_v42, %v2812_v41  ;;  %v3420_v25 = vadd.f32 %v5169_v36, %v3419_v59 }
 0x2d9   : > { %v3120_v48 = vpop.f32.mrf.mxu0  ;;  %v3421_v31 = vpop.f32.mrf.mxu1 }
 0x2da   : > { %v3121_v51 = vadd.f32 %v5169_v36, %v3120_v48  ;;  %3614 = vmatprep.mubr.bf16.mxu1 %v2942_v9  ;;  %3700 = vst [vmem:[%s4759_s16 + $0x268] sm:$0xff] %v3420_v25 }
 0x2db   : > { %v3122_v52 = vpop.f32.mrf.mxu0  ;;  %v3424_v54 = vpop.f32.mrf.mxu1  ;;  %3615 = vmatmul.mubr.bf16.gmra.mxu1 %v2941_v49 }
 0x2dc   : > { %3625 = vst [vmem:[%s4759_s16 + $0x10] sm:$0xff] %v3121_v51  ;;  %v3425_v55 = vadd.f32 %v5169_v36, %v3424_v54 }
 0x2dd   : > { %v3123_v56 = vpop.f32.mrf.mxu0  ;;  %v3426_v58 = vpop.f32.mrf.mxu1 }
 0x2de   : > { %v3124_v57 = vadd.f32 %v5169_v36, %v3123_v56  ;;  %3701 = vst [vmem:[%s4759_s16 + $0x270] sm:$0xff] %v3425_v55 }
 0x2df   : > { %v3125_v60 = vpop.f32.mrf.mxu0  ;;  %v3427_v14 = vpop.f32.mrf.mxu1 }
 0x2e0   : > { %3626 = vst [vmem:[%s4759_s16 + $0x18] sm:$0xff] %v3124_v57  ;;  %v3428_v62 = vadd.f32 %v5169_v36, %v3427_v14 }
 0x2e1   : > { %v3128_v0 = vpop.f32.mrf.mxu0  ;;  %v3429_v1 = vpop.f32.mrf.mxu1 }
 0x2e2   : > { %v3129_v29 = vadd.f32 %v5169_v36, %v3128_v0  ;;  %3702 = vst [vmem:[%s4759_s16 + $0x278] sm:$0xff] %v3428_v62 }
 0x2e3   : > { %v3130_v3 = vpop.f32.mrf.mxu0  ;;  %v3432_v4 = vpop.f32.mrf.mxu1 }
 0x2e4   : > { %3627 = vst [vmem:[%s4759_s16 + $0x20] sm:$0xff] %v3129_v29  ;;  %v3433_v5 = vadd.f32 %v5169_v36, %v3432_v4 }
 0x2e5   : > { %v3131_v6 = vpop.f32.mrf.mxu0  ;;  %v3434_v8 = vpop.f32.mrf.mxu1 }
 0x2e6   : > { %v3132_v7 = vadd.f32 %v5169_v36, %v3131_v6  ;;  %3703 = vst [vmem:[%s4759_s16 + $0x280] sm:$0xff] %v3433_v5 }
 0x2e7   : > { %v3133_v10 = vpop.f32.mrf.mxu0  ;;  %v3435_v11 = vpop.f32.mrf.mxu1 }
 0x2e8   : > { %3628 = vst [vmem:[%s4759_s16 + $0x28] sm:$0xff] %v3132_v7  ;;  %v3436_v12 = vadd.f32 %v5169_v36, %v3435_v11 }
 0x2e9   : > { %v3437_v13 = vpop.f32.mrf.mxu1 }
 0x2ea   : > { %3704 = vst [vmem:[%s4759_s16 + $0x288] sm:$0xff] %v3436_v12 }
 0x2eb   : > { %v3440_v15 = vpop.f32.mrf.mxu1 }
 0x2ec   : > { %v3441_v16 = vadd.f32 %v5169_v36, %v3440_v15 }
 0x2ed   : > { %v3442_v17 = vpop.f32.mrf.mxu1 }
 0x2ee   : > { %3705 = vst [vmem:[%s4759_s16 + $0x290] sm:$0xff] %v3441_v16 }
 0x2ef   : > { %v3443_v18 = vpop.f32.mrf.mxu1 }
 0x2f0   : > { %v3444_v19 = vadd.f32 %v5169_v36, %v3443_v18 }
 0x2f1   : > { %v3445_v20 = vpop.f32.mrf.mxu1 }
 0x2f2   : > { %3706 = vst [vmem:[%s4759_s16 + $0x298] sm:$0xff] %v3444_v19 }
 0x2f3   : > { %v3448_v21 = vpop.f32.mrf.mxu1 }
 0x2f4   : > { %v3449_v44 = vadd.f32 %v5169_v36, %v3448_v21 }
 0x2f5   : > { %v3450_v22 = vpop.f32.mrf.mxu1 }
 0x2f6   : > { %3707 = vst [vmem:[%s4759_s16 + $0x2a0] sm:$0xff] %v3449_v44 }
 0x2f7   : > { %v3451_v23 = vpop.f32.mrf.mxu1 }
 0x2f8   : > { %v3452_v24 = vadd.f32 %v5169_v36, %v3451_v23 }
 0x2f9   : > { %v3453_v26 = vpop.f32.mrf.mxu1 }
 0x2fa   : > { %3708 = vst [vmem:[%s4759_s16 + $0x2a8] sm:$0xff] %v3452_v24 }
 0x2fb   : > { %v3456_v27 = vpop.f32.mrf.mxu1 }
 0x2fc   : > { %v3457_v63 = vadd.f32 %v5169_v36, %v3456_v27 }
 0x2fd   : > { %v3458_v28 = vpop.f32.mrf.mxu1 }
 0x2fe   : > { %3709 = vst [vmem:[%s4759_s16 + $0x2b0] sm:$0xff] %v3457_v63 }
 0x2ff   : > { %v3459_v30 = vpop.f32.mrf.mxu1 }
 0x300   : > { %v3460_v32 = vadd.f32 %v5169_v36, %v3459_v30 }
 0x301   : > { %v3461_v50 = vpop.f32.mrf.mxu1 }
 0x302   : > { %3710 = vst [vmem:[%s4759_s16 + $0x2b8] sm:$0xff] %v3460_v32 }
 0x303   : > { %v3464_v33 = vpop.f32.mrf.mxu1 }
 0x304   : > { %v3465_v43 = vadd.f32 %v5169_v36, %v3464_v33 }
 0x305   : > { %v3466_v34 = vpop.f32.mrf.mxu1 }
 0x306   : > { %3711 = vst [vmem:[%s4759_s16 + $0x2c0] sm:$0xff] %v3465_v43 }
 0x307   : > { %v3467_v53 = vpop.f32.mrf.mxu1 }
 0x308   : > { %v3468_v35 = vadd.f32 %v5169_v36, %v3467_v53 }
 0x309   : > { %v3469_v37 = vpop.f32.mrf.mxu1 }
 0x30a   : > { %3712 = vst [vmem:[%s4759_s16 + $0x2c8] sm:$0xff] %v3468_v35 }
 0x30b   : > { %v3472_v38 = vpop.f32.mrf.mxu1 }
 0x30c   : > { %v3473_v39 = vadd.f32 %v5169_v36, %v3472_v38 }
 0x30d   : > { %v3474_v40 = vpop.f32.mrf.mxu1 }
 0x30e   : > { %3713 = vst [vmem:[%s4759_s16 + $0x2d0] sm:$0xff] %v3473_v39 }
 0x30f   : > { %v3475_v41 = vpop.f32.mrf.mxu1 }
 0x310   : > { %v3476_v61 = vadd.f32 %v5169_v36, %v3475_v41 }
 0x311   : > { %v3477_v42 = vpop.f32.mrf.mxu1 }
 0x312   : > { %3714 = vst [vmem:[%s4759_s16 + $0x2d8] sm:$0xff] %v3476_v61 }
 0x313   : > { %v3480_v2 = vpop.f32.mrf.mxu1 }
 0x314   : > { %v3481_v45 = vadd.f32 %v5169_v36, %v3480_v2 }
 0x315   : > { %v3482_v46 = vpop.f32.mrf.mxu1 }
 0x316   : > { %3715 = vst [vmem:[%s4759_s16 + $0x2e0] sm:$0xff] %v3481_v45 }
 0x317   : > { %v3483_v47 = vpop.f32.mrf.mxu1 }
 0x318   : > { %v3484_v59 = vadd.f32 %v5169_v36, %v3483_v47 }
 0x319   : > { %v3485_v9 = vpop.f32.mrf.mxu1 }
 0x31a   : > { %3716 = vst [vmem:[%s4759_s16 + $0x2e8] sm:$0xff] %v3484_v59  ;;  %v4108_v59 = vld [vmem:[%s5408_s6] ss:$0 sm:$0xff] }
 0x31b   : > { %v3488_v25 = vpop.f32.mrf.mxu1 }
 0x31c   : > { %v3489_v48 = vadd.f32 %v5169_v36, %v3488_v25 }
 0x31d   : > { %v3490_v49 = vpop.f32.mrf.mxu1 }
 0x31e   : > { %3717 = vst [vmem:[%s4759_s16 + $0x2f0] sm:$0xff] %v3489_v48 }
 0x31f   : > { %v3491_v51 = vpop.f32.mrf.mxu1 }
 0x320   : > { %v3492_v31 = vadd.f32 %v5169_v36, %v3491_v51 }
 0x321   : > { %v3493_v52 = vpop.f32.mrf.mxu1 }
 0x322   : > { %3718 = vst [vmem:[%s4759_s16 + $0x2f8] sm:$0xff] %v3492_v31 }
 0x323   : > { %v3496_v54 = vpop.f32.mrf.mxu1 }
 0x324   : > { %v3497_v55 = vadd.f32 %v5169_v36, %v3496_v54 }
 0x325   : > { %v3498_v56 = vpop.f32.mrf.mxu1 }
 0x326   : > { %3719 = vst [vmem:[%s4759_s16 + $0x300] sm:$0xff] %v3497_v55 }
 0x327   : > { %v3499_v57 = vpop.f32.mrf.mxu1 }
 0x328   : > { %v3500_v58 = vadd.f32 %v5169_v36, %v3499_v57 }
 0x329   : > { %v3501_v60 = vpop.f32.mrf.mxu1 }
 0x32a   : > { %3720 = vst [vmem:[%s4759_s16 + $0x308] sm:$0xff] %v3500_v58 }
 0x32b   : > { %v3504_v14 = vpop.f32.mrf.mxu1 }
 0x32c   : > { %v3505_v62 = vadd.f32 %v5169_v36, %v3504_v14 }
 0x32d   : > { %v3506_v0 = vpop.f32.mrf.mxu1 }
 0x32e   : > { %3721 = vst [vmem:[%s4759_s16 + $0x310] sm:$0xff] %v3505_v62 }
 0x32f   : > { %v3507_v29 = vpop.f32.mrf.mxu1 }
 0x330   : > { %v3508_v1 = vadd.f32 %v5169_v36, %v3507_v29 }
 0x331   : > { %v3509_v3 = vpop.f32.mrf.mxu1 }
 0x332   : > { %3722 = vst [vmem:[%s4759_s16 + $0x318] sm:$0xff] %v3508_v1 }
 0x333   : > { %v3512_v4 = vpop.f32.mrf.mxu1 }
 0x334   : > { %v3513_v5 = vadd.f32 %v5169_v36, %v3512_v4 }
 0x335   : > { %v3514_v6 = vpop.f32.mrf.mxu1 }
 0x336   : > { %3723 = vst [vmem:[%s4759_s16 + $0x320] sm:$0xff] %v3513_v5 }
 0x337   : > { %v3515_v7 = vpop.f32.mrf.mxu1 }
 0x338   : > { %v3516_v8 = vadd.f32 %v5169_v36, %v3515_v7 }
 0x339   : > { %v3517_v10 = vpop.f32.mrf.mxu1 }
 0x33a   : > { %3724 = vst [vmem:[%s4759_s16 + $0x328] sm:$0xff] %v3516_v8 }
 0x33b   : > { %v3520_v11 = vpop.f32.mrf.mxu1 }
 0x33c   : > { %v3521_v12 = vadd.f32 %v5169_v36, %v3520_v11 }
 0x33d   : > { %v3522_v13 = vpop.f32.mrf.mxu1 }
 0x33e   : > { %3725 = vst [vmem:[%s4759_s16 + $0x330] sm:$0xff] %v3521_v12 }
 0x33f   : > { %v3523_v15 = vpop.f32.mrf.mxu1 }
 0x340   : > { %v3524_v16 = vadd.f32 %v5169_v36, %v3523_v15 }
 0x341   : > { %v3525_v17 = vpop.f32.mrf.mxu1 }
 0x342   : > { %3726 = vst [vmem:[%s4759_s16 + $0x338] sm:$0xff] %v3524_v16 }
 0x343   : > { %v3528_v18 = vpop.f32.mrf.mxu1 }
 0x344   : > { %v3529_v19 = vadd.f32 %v5169_v36, %v3528_v18 }
 0x345   : > { %v3530_v20 = vpop.f32.mrf.mxu1 }
 0x346   : > { %3727 = vst [vmem:[%s4759_s16 + $0x340] sm:$0xff] %v3529_v19 }
 0x347   : > { %v3531_v21 = vpop.f32.mrf.mxu1 }
 0x348   : > { %v3532_v44 = vadd.f32 %v5169_v36, %v3531_v21 }
 0x349   : > { %v3533_v22 = vpop.f32.mrf.mxu1 }
 0x34a   : > { %3728 = vst [vmem:[%s4759_s16 + $0x348] sm:$0xff] %v3532_v44 }
 0x34b   : > { %v3536_v23 = vpop.f32.mrf.mxu1 }
 0x34c   : > { %v3537_v24 = vadd.f32 %v5169_v36, %v3536_v23 }
 0x34d   : > { %v3538_v26 = vpop.f32.mrf.mxu1 }
 0x34e   : > { %3729 = vst [vmem:[%s4759_s16 + $0x350] sm:$0xff] %v3537_v24 }
 0x34f   : > { %v3539_v27 = vpop.f32.mrf.mxu1 }
 0x350   : > { %v3540_v63 = vadd.f32 %v5169_v36, %v3539_v27 }
 0x351   : > { %v3541_v28 = vpop.f32.mrf.mxu1 }
 0x352   : > { %3730 = vst [vmem:[%s4759_s16 + $0x358] sm:$0xff] %v3540_v63 }
 0x353   : > { %v3544_v30 = vpop.f32.mrf.mxu1 }
 0x354   : > { %v3545_v32 = vadd.f32 %v5169_v36, %v3544_v30 }
 0x355   : > { %v3546_v50 = vpop.f32.mrf.mxu1 }
 0x356   : > { %3731 = vst [vmem:[%s4759_s16 + $0x360] sm:$0xff] %v3545_v32 }
 0x357   : > { %v3547_v33 = vpop.f32.mrf.mxu1 }
 0x358   : > { %v3548_v43 = vadd.f32 %v5169_v36, %v3547_v33 }
 0x359   : > { %v3549_v34 = vpop.f32.mrf.mxu1 }
 0x35a   : > { %3732 = vst [vmem:[%s4759_s16 + $0x368] sm:$0xff] %v3548_v43 }
 0x35b   : > { %v3552_v53 = vpop.f32.mrf.mxu1 }
 0x35c   : > { %v3553_v35 = vadd.f32 %v5169_v36, %v3552_v53 }
 0x35d   : > { %v3554_v37 = vpop.f32.mrf.mxu1 }
 0x35e   : > { %3733 = vst [vmem:[%s4759_s16 + $0x370] sm:$0xff] %v3553_v35 }
 0x35f   : > { %v3555_v38 = vpop.f32.mrf.mxu1 }
 0x360   : > { %v3556_v39 = vadd.f32 %v5169_v36, %v3555_v38 }
 0x361   : > { %v3557_v40 = vpop.f32.mrf.mxu1 }
 0x362   : > { %3734 = vst [vmem:[%s4759_s16 + $0x378] sm:$0xff] %v3556_v39 }
 0x363   : > { %v3560_v41 = vpop.f32.mrf.mxu1 }
 0x364   : > { %v3561_v61 = vadd.f32 %v5169_v36, %v3560_v41 }
 0x365   : > { %v3562_v42 = vpop.f32.mrf.mxu1 }
 0x366   : > { %3735 = vst [vmem:[%s4759_s16 + $0x380] sm:$0xff] %v3561_v61 }
 0x367   : > { %v3563_v2 = vpop.f32.mrf.mxu1 }
 0x368   : > { %v3564_v45 = vadd.f32 %v5169_v36, %v3563_v2 }
 0x369   : > { %v3565_v46 = vpop.f32.mrf.mxu1 }
 0x36a   : > { %3736 = vst [vmem:[%s4759_s16 + $0x388] sm:$0xff] %v3564_v45 }
 0x36b   : > { %v3568_v47 = vpop.f32.mrf.mxu1 }
 0x36c   : > { %v3569_v9 = vadd.f32 %v4108_v59, %v3568_v47 }
 0x36d   : > { %v3570_v25 = vpop.f32.mrf.mxu1 }
 0x36e   : > { %3737 = vst [vmem:[%s4759_s16 + $0x390] sm:$0xff] %v3569_v9 }
 0x36f   : > { %v3571_v48 = vpop.f32.mrf.mxu1 }
 0x370   : > { %v3572_v49 = vadd.f32 %v4108_v59, %v3571_v48 }
 0x371   : > { %v3573_v51 = vpop.f32.mrf.mxu1 }
 0x372   : > { %3738 = vst [vmem:[%s4759_s16 + $0x398] sm:$0xff] %v3572_v49 }
 0x373   : > { %v3576_v31 = vpop.f32.mrf.mxu1 }
 0x374   : > { %v3577_v52 = vadd.f32 %v4108_v59, %v3576_v31 }
 0x375   : > { %v3578_v36 = vpop.f32.mrf.mxu1 }
 0x376   : > { %3739 = vst [vmem:[%s4759_s16 + $0x3a0] sm:$0xff] %v3577_v52 }
 0x377   : > { %v3579_v54 = vpop.f32.mrf.mxu1 }
 0x378   : > { %v3580_v55 = vadd.f32 %v4108_v59, %v3579_v54 }
 0x379   : > { %v3581_v56 = vpop.f32.mrf.mxu1 }
 0x37a   : > { %3740 = vst [vmem:[%s4759_s16 + $0x3a8] sm:$0xff] %v3580_v55 }
 0x37b   : > { %v3584_v57 = vpop.f32.mrf.mxu1 }
 0x37c   : > { %v3585_v58 = vadd.f32 %v4108_v59, %v3584_v57 }
 0x37d   : > { %v3586_v60 = vpop.f32.mrf.mxu1 }
 0x37e   : > { %3741 = vst [vmem:[%s4759_s16 + $0x3b0] sm:$0xff] %v3585_v58 }
 0x37f   : > { %v3587_v14 = vpop.f32.mrf.mxu1 }
 0x380   : > { %v3588_v62 = vadd.f32 %v4108_v59, %v3587_v14 }
 0x381   : > { %v3589_v0 = vpop.f32.mrf.mxu1 }
 0x382   : > { %3742 = vst [vmem:[%s4759_s16 + $0x3b8] sm:$0xff] %v3588_v62 }
 0x383   : > { %v3592_v29 = vpop.f32.mrf.mxu1 }
 0x384   : > { %v3593_v1 = vadd.f32 %v4108_v59, %v3592_v29 }
 0x385   : > { %v3594_v3 = vpop.f32.mrf.mxu1 }
 0x386   : > { %3743 = vst [vmem:[%s4759_s16 + $0x3c0] sm:$0xff] %v3593_v1 }
 0x387   : > { %v3595_v4 = vpop.f32.mrf.mxu1 }
 0x388   : > { %v3596_v5 = vadd.f32 %v4108_v59, %v3595_v4 }
 0x389   : > { %v3597_v6 = vpop.f32.mrf.mxu1 }
 0x38a   : > { %3744 = vst [vmem:[%s4759_s16 + $0x3c8] sm:$0xff] %v3596_v5 }
 0x38b   : > { %v3600_v7 = vpop.f32.mrf.mxu1 }
 0x38c   : > { %v3601_v8 = vadd.f32 %v4108_v59, %v3600_v7 }
 0x38d   : > { %v3602_v10 = vpop.f32.mrf.mxu1 }
 0x38e   : > { %3745 = vst [vmem:[%s4759_s16 + $0x3d0] sm:$0xff] %v3601_v8 }
 0x38f   : > { %v3603_v11 = vpop.f32.mrf.mxu1 }
 0x390   : > { %v3604_v12 = vadd.f32 %v4108_v59, %v3603_v11 }
 0x391   : > { %v3605_v13 = vpop.f32.mrf.mxu1 }
 0x392   : > { %3746 = vst [vmem:[%s4759_s16 + $0x3d8] sm:$0xff] %v3604_v12 }
 0x393   : > { %v3608_v15 = vpop.f32.mrf.mxu1 }
 0x394   : > { %v3609_v16 = vadd.f32 %v4108_v59, %v3608_v15 }
 0x395   : > { %v3610_v17 = vpop.f32.mrf.mxu1 }
 0x396   : > { %3747 = vst [vmem:[%s4759_s16 + $0x3e0] sm:$0xff] %v3609_v16 }
 0x397   : > { %v3611_v18 = vpop.f32.mrf.mxu1 }
 0x398   : > { %v3612_v19 = vadd.f32 %v4108_v59, %v3611_v18 }
 0x399   : > { %v3613_v20 = vpop.f32.mrf.mxu1 }
 0x39a   : > { %3748 = vst [vmem:[%s4759_s16 + $0x3e8] sm:$0xff] %v3612_v19 }
 0x39b   : > { %v3616_v21 = vpop.f32.mrf.mxu1 }
 0x39c   : > { %v3617_v44 = vadd.f32 %v4108_v59, %v3616_v21 }
 0x39d   : > { %v3618_v22 = vpop.f32.mrf.mxu1 }
 0x39e   : > { %3749 = vst [vmem:[%s4759_s16 + $0x3f0] sm:$0xff] %v3617_v44 }
 0x39f   : > { %v3619_v23 = vpop.f32.mrf.mxu1 }
 0x3a0   : > { %v3620_v24 = vadd.f32 %v4108_v59, %v3619_v23 }
 0x3a1   : > { %v3621_v26 = vpop.f32.mrf.mxu1 }
 0x3a2   : > { %3750 = vst [vmem:[%s4759_s16 + $0x3f8] sm:$0xff] %v3620_v24 }
 0x3a3 PF: > { %s17_s24 = sadd.s32 1, %s4115_s24  }
 0x3a4   : > { %p14_p4 = scmp.ge.s32.totalorder %s17_s24, 4  }
 0x3a6   :  { %16 = sbr.rel (!%p14_p4) target bundleno = 1 (0x1), region = 81 }

</bundles_post_ra>
